<compile_context>
chip_gen: v6e
topology: v6e:2x2x1
jax: 0.10.0
libtpu: 0.0.40
codegen_flags: <defaults>
</compile_context>

<pallas_src>
import jax
import jax.numpy as jnp
from jax.experimental import pallas as pl
from jax.experimental.pallas import tpu as pltpu

EPS = 1e-5        # InstanceNorm2d default eps
SLOPE = 0.2       # LeakyReLU negative slope


# ----------------------------- Pallas kernels ------------------------------

def _conv_in_lrelu_kernel(p_ref, w_ref, o_ref):
    # p_ref: (1, CK, HW) bf16   w_ref: (Cout, CK) bf16   o_ref: (1, Cout, HW) bf16
    x = jnp.dot(w_ref[...], p_ref[0], preferred_element_type=jnp.float32)  # (Cout, HW) f32
    hw = x.shape[1]
    # InstanceNorm2d (affine=False), one-pass stats over the spatial (lane) axis.
    s1 = jnp.sum(x, axis=1, keepdims=True)
    s2 = jnp.sum(x * x, axis=1, keepdims=True)
    mean = s1 / hw
    var = jnp.maximum(s2 / hw - mean * mean, 0.0)
    xn = (x - mean) * jax.lax.rsqrt(var + EPS)
    # LeakyReLU(0.2)
    o_ref[0] = jnp.where(xn >= 0, xn, SLOPE * xn).astype(o_ref.dtype)


def _make_convt_in_lrelu_kernel(cout):
    # Parity-split ConvTranspose: output rows are [p00 | p01 | p10 | p11] blocks
    # of `cout` channels each.  InstanceNorm statistics are taken per channel
    # over all 4 parity planes (= the full 2H x 2W spatial map).
    def kernel(t_ref, w_ref, o_ref):
        # t_ref: (1, 4*Cin, HW) bf16   w_ref: (4*Cout, 4*Cin) bf16
        x = jnp.dot(w_ref[...], t_ref[0], preferred_element_type=jnp.float32)  # (4*Cout, HW)
        hw = x.shape[1]
        x0 = x[0 * cout:1 * cout]
        x1 = x[1 * cout:2 * cout]
        x2 = x[2 * cout:3 * cout]
        x3 = x[3 * cout:4 * cout]
        s1 = jnp.sum(x0 + x1 + x2 + x3, axis=1, keepdims=True)                  # (Cout, 1)
        s2 = jnp.sum(x0 * x0 + x1 * x1 + x2 * x2 + x3 * x3, axis=1, keepdims=True)
        n = 4.0 * hw
        mean = s1 / n
        var = jnp.maximum(s2 / n - mean * mean, 0.0)
        inv = jax.lax.rsqrt(var + EPS)
        mean4 = jnp.concatenate([mean, mean, mean, mean], axis=0)               # (4*Cout, 1)
        inv4 = jnp.concatenate([inv, inv, inv, inv], axis=0)
        xn = (x - mean4) * inv4
        o_ref[0] = jnp.where(xn >= 0, xn, SLOPE * xn).astype(o_ref.dtype)
    return kernel


def _conv_tanh_pool_kernel(p_ref, w_ref, b_ref, m_ref, o_ref):
    # Final conv + Tanh fused with the per-region masked mean pool.
    # p_ref: (1, CK, HW) bf16   w_ref: (F, CK) bf16   b_ref: (F, 1) f32
    # m_ref: (1, S, HW) f32     o_ref: (1, S, F) f32
    x = jnp.dot(w_ref[...], p_ref[0], preferred_element_type=jnp.float32) + b_ref[...]
    codes = jnp.tanh(x)                                   # (F, HW) f32
    m = m_ref[0]                                          # (S, HW) f32
    sums = jax.lax.dot_general(m, codes, (((1,), (1,)), ((), ())),
                               preferred_element_type=jnp.float32)   # (S, F)
    counts = jnp.sum(m, axis=1, keepdims=True)            # (S, 1)
    o_ref[0] = jnp.where(counts > 0, sums / jnp.maximum(counts, 1.0), 0.0)


# ------------------------------ kernel callers ------------------------------

def _call_conv_in_lrelu(patches, w_mat):
    B, CK, HW = patches.shape
    Cout = w_mat.shape[0]
    return pl.pallas_call(
        _conv_in_lrelu_kernel,
        out_shape=jax.ShapeDtypeStruct((B, Cout, HW), jnp.bfloat16),
        grid=(B,),
        in_specs=[
            pl.BlockSpec((1, CK, HW), lambda i: (i, 0, 0)),
            pl.BlockSpec((Cout, CK), lambda i: (0, 0)),
        ],
        out_specs=pl.BlockSpec((1, Cout, HW), lambda i: (i, 0, 0)),
        compiler_params=pltpu.CompilerParams(dimension_semantics=("parallel",)),
    )(patches, w_mat)


# ------------------------------ JAX-side glue -------------------------------

def _extract_patches(xp, stride):
    # xp: (B, C, Hp, Wp) already padded; 3x3 kernel.
    # CK ordering matches PyTorch weight.reshape(Cout, Cin*9): idx = c*9 + kh*3 + kw
    B, C, Hp, Wp = xp.shape
    Ho = (Hp - 3) // stride + 1
    Wo = (Wp - 3) // stride + 1
    cols = []
    for dh in range(3):
        for dw in range(3):
            sl = xp[:, :, dh:dh + stride * (Ho - 1) + 1:stride,
                         dw:dw + stride * (Wo - 1) + 1:stride]
            cols.append(sl)                          # (B, C, Ho, Wo)
    p = jnp.stack(cols, axis=2)                      # (B, C, 9, Ho, Wo)
    return p.reshape(B, C * 9, Ho * Wo), Ho, Wo


def _conv_in_lrelu_block(x, w, stride, pad_mode):
    # x: (B, Cin, H, W)   w: (Cout, Cin, 3, 3)
    # Conv bias is omitted: InstanceNorm(affine=False) cancels any per-channel bias.
    if pad_mode == "reflect":
        xp = jnp.pad(x, ((0, 0), (0, 0), (1, 1), (1, 1)), mode="reflect")
    else:
        xp = jnp.pad(x, ((0, 0), (0, 0), (1, 1), (1, 1)))
    patches, Ho, Wo = _extract_patches(xp, stride)
    patches = patches.astype(jnp.bfloat16)
    Cout = w.shape[0]
    w_mat = w.reshape(Cout, -1).astype(jnp.bfloat16)        # (Cout, Cin*9)
    out = _call_conv_in_lrelu(patches, w_mat)               # (B, Cout, Ho*Wo)
    return out.reshape(x.shape[0], Cout, Ho, Wo)


def _convT_in_lrelu_block(x, w_t):
    # ConvTranspose2d(k=3, stride=2, padding=1, output_padding=1) via parity split.
    # x: (B, Cin, H, W)   w_t: (Cin, Cout, 3, 3)  (torch ConvTranspose layout)
    B, C, H, W = x.shape
    Cout = w_t.shape[1]
    xp = jnp.pad(x, ((0, 0), (0, 0), (0, 1), (0, 1)))       # zero-pad right/bottom
    t0 = x                                                  # x[m,   n  ]
    t1 = xp[:, :, :H, 1:W + 1]                              # x[m,   n+1]
    t2 = xp[:, :, 1:H + 1, :W]                              # x[m+1, n  ]
    t3 = xp[:, :, 1:H + 1, 1:W + 1]                         # x[m+1, n+1]
    taps = jnp.concatenate([t0, t1, t2, t3], axis=1).reshape(B, 4 * C, H * W)
    taps = taps.astype(jnp.bfloat16)

    def wt(kh, kw):                                         # (Cout, Cin)
        return w_t[:, :, kh, kw].T
    Z = jnp.zeros((Cout, C), w_t.dtype)
    rows = [
        jnp.concatenate([wt(1, 1), Z,        Z,        Z       ], axis=1),  # out[2m,   2n  ]
        jnp.concatenate([wt(1, 2), wt(1, 0), Z,        Z       ], axis=1),  # out[2m,   2n+1]
        jnp.concatenate([wt(2, 1), Z,        wt(0, 1), Z       ], axis=1),  # out[2m+1, 2n  ]
        jnp.concatenate([wt(2, 2), wt(2, 0), wt(0, 2), wt(0, 0)], axis=1),  # out[2m+1, 2n+1]
    ]
    w_mat = jnp.concatenate(rows, axis=0).astype(jnp.bfloat16)   # (4*Cout, 4*Cin)

    out4 = pl.pallas_call(
        _make_convt_in_lrelu_kernel(Cout),
        out_shape=jax.ShapeDtypeStruct((B, 4 * Cout, H * W), jnp.bfloat16),
        grid=(B,),
        in_specs=[
            pl.BlockSpec((1, 4 * C, H * W), lambda i: (i, 0, 0)),
            pl.BlockSpec((4 * Cout, 4 * C), lambda i: (0, 0)),
        ],
        out_specs=pl.BlockSpec((1, 4 * Cout, H * W), lambda i: (i, 0, 0)),
        compiler_params=pltpu.CompilerParams(dimension_semantics=("parallel",)),
    )(taps, w_mat)

    # Pixel-shuffle the 4 parity planes back into the (2H, 2W) map.
    out = out4.reshape(B, 2, 2, Cout, H, W)                  # (B, py, px, Cout, m, n)
    out = jnp.transpose(out, (0, 3, 4, 1, 5, 2)).reshape(B, Cout, 2 * H, 2 * W)
    return out


def _conv_tanh_pool_block(x, w, b, segmap):
    # Final reflect-pad conv + Tanh fused with the per-region masked mean pool.
    # x: (B, Cin, H, W)   w: (F, Cin, 3, 3)   segmap: (B, S, Hs, Ws)
    B = x.shape[0]
    F_ = w.shape[0]
    xp = jnp.pad(x, ((0, 0), (0, 0), (1, 1), (1, 1)), mode="reflect")
    patches, Ho, Wo = _extract_patches(xp, 1)
    patches = patches.astype(jnp.bfloat16)
    CK = patches.shape[1]
    HW = Ho * Wo
    w_mat = w.reshape(F_, -1).astype(jnp.bfloat16)
    b2 = b.reshape(F_, 1).astype(jnp.float32)

    # F.interpolate(mode='nearest'): src = floor(dst * in / out)
    S, Hs, Ws = segmap.shape[1], segmap.shape[2], segmap.shape[3]
    ih = jnp.floor(jnp.arange(Ho) * (Hs / Ho)).astype(jnp.int32)
    iw = jnp.floor(jnp.arange(Wo) * (Ws / Wo)).astype(jnp.int32)
    seg_r = segmap[:, :, ih, :][:, :, :, iw]                          # (B, S, Ho, Wo)
    mask = (seg_r != 0).astype(jnp.float32).reshape(B, S, HW)

    return pl.pallas_call(
        _conv_tanh_pool_kernel,
        out_shape=jax.ShapeDtypeStruct((B, S, F_), jnp.float32),
        grid=(B,),
        in_specs=[
            pl.BlockSpec((1, CK, HW), lambda i: (i, 0, 0)),
            pl.BlockSpec((F_, CK), lambda i: (0, 0)),
            pl.BlockSpec((F_, 1), lambda i: (0, 0)),
            pl.BlockSpec((1, S, HW), lambda i: (i, 0, 0)),
        ],
        out_specs=pl.BlockSpec((1, S, F_), lambda i: (i, 0, 0)),
        compiler_params=pltpu.CompilerParams(dimension_semantics=("parallel",)),
    )(patches, w_mat, b2, mask)


# ----------------------------- model definition -----------------------------

def init_params(key, input_nc, output_nc, ngf=32):
    # ngf must be 32: the reference module hard-codes the final Conv2d(256, ...).
    # Conv / ConvTranspose biases (b0..bt) are kept for parameter fidelity but are
    # NOT applied: InstanceNorm(affine=False) cancels them exactly.
    ks = jax.random.split(key, 10)
    def w(k, cout, cin): return jax.random.normal(k, (cout, cin, 3, 3), jnp.float32) * 0.05
    def b(k, c): return jax.random.normal(k, (c,), jnp.float32) * 0.05
    return {
        "w0": w(ks[0], ngf, input_nc),        "b0": b(ks[1], ngf),
        "w1": w(ks[2], ngf * 2, ngf),         "b1": b(ks[3], ngf * 2),
        "w2": w(ks[4], ngf * 4, ngf * 2),     "b2": b(ks[5], ngf * 4),
        # ConvTranspose2d weight layout (Cin, Cout, kh, kw)
        "wt": jax.random.normal(ks[6], (ngf * 4, ngf * 8, 3, 3), jnp.float32) * 0.05,
        "bt": b(ks[7], ngf * 8),
        "wf": w(ks[8], output_nc, ngf * 8),   "bf": b(ks[9], output_nc),
    }


def zencoder_forward(params, x, segmap):
    # ReflectionPad + Conv(3) + IN + LReLU
    h = _conv_in_lrelu_block(x, params["w0"], 1, "reflect")
    # two stride-2 downsampling Conv + IN + LReLU
    h = _conv_in_lrelu_block(h, params["w1"], 2, "zero")
    h = _conv_in_lrelu_block(h, params["w2"], 2, "zero")
    # ConvTranspose(stride 2) + IN + LReLU  (parity-split, no zero-dilation)
    h = _convT_in_lrelu_block(h, params["wt"])
    # ReflectionPad + Conv(3) + Tanh fused with per-(batch, region) masked mean
    return _conv_tanh_pool_block(h, params["wf"], params["bf"], segmap)


# ---------------------------------- main -------------------------------------

if __name__ == "__main__":
    key = jax.random.PRNGKey(0)
    k_param, k_x, k_seg = jax.random.split(key, 3)

    B, input_nc, H, W = 2, 3, 16, 16
    output_nc, S = 8, 6

    params = init_params(k_param, input_nc, output_nc)
    x = jax.random.normal(k_x, (B, input_nc, H, W), jnp.float32)
    labels = jax.random.randint(k_seg, (B, H, W), 0, S)
    segmap = jax.nn.one_hot(labels, S, axis=1, dtype=jnp.float32)   # (B, S, H, W)

    fwd = jax.jit(zencoder_forward)
    codes_vector = fwd(params, x, segmap)
    codes_vector = jax.block_until_ready(codes_vector)
    assert codes_vector.shape == (B, S, output_nc), codes_vector.shape
    assert codes_vector.dtype == jnp.float32
    print("KERNEL_OK")
</pallas_src>

<mosaic_0001>
module attributes {stable_mosaic.version = 11 : i64} {
  func.func @_conv_in_lrelu_kernel(%arg0: i32, %arg1: memref<1x27x256xbf16, #tpu.memory_space<vmem>>, %arg2: memref<32x27xbf16, #tpu.memory_space<vmem>>, %arg3: memref<1x32x256xbf16, #tpu.memory_space<vmem>>) attributes {dimension_semantics = [#tpu.dimension_semantics<parallel>], iteration_bounds = array<i64: 2>, scalar_prefetch = 0 : i64, scratch_operands = 0 : i64, tpu.core_type = #tpu.core_type<tc>, window_params = [{transform_indices = @transform_0, window_bounds = array<i64: 1, 27, 256>}, {pipeline_mode = #tpu.pipeline_mode<synchronous>, transform_indices = @transform_1, window_bounds = array<i64: 32, 27>}, {transform_indices = @transform_2, window_bounds = array<i64: 1, 32, 256>}]} {
    %c0 = arith.constant 0 : index
    %c0_0 = arith.constant 0 : index
    %0 = vector.load %arg2[%c0, %c0_0] : memref<32x27xbf16, #tpu.memory_space<vmem>>, vector<32x27xbf16>
    %c0_1 = arith.constant 0 : index
    %c0_2 = arith.constant 0 : index
    %c0_3 = arith.constant 0 : index
    %1 = vector.load %arg1[%c0_1, %c0_2, %c0_3] : memref<1x27x256xbf16, #tpu.memory_space<vmem>>, vector<1x27x256xbf16>
    %2 = vector.shape_cast %1 : vector<1x27x256xbf16> to vector<27x256xbf16>
    %cst = arith.constant dense<0.000000e+00> : vector<32x256xf32>
    %3 = tpu.matmul %0, %2, %cst {dimension_numbers = #tpu.dot_dimension_numbers<[1], [0], [0], [1], [0, 0, 1, 1], [], []>} : vector<32x27xbf16>, vector<27x256xbf16>, vector<32x256xf32> -> vector<32x256xf32>
    %cst_4 = arith.constant dense<0.000000e+00> : vector<32xf32>
    %4 = vector.multi_reduction <add>, %3, %cst_4 [1] : vector<32x256xf32> to vector<32xf32>
    %5 = vector.shape_cast %4 : vector<32xf32> to vector<32x1xf32>
    %6 = arith.mulf %3, %3 : vector<32x256xf32>
    %cst_5 = arith.constant dense<0.000000e+00> : vector<32xf32>
    %7 = vector.multi_reduction <add>, %6, %cst_5 [1] : vector<32x256xf32> to vector<32xf32>
    %8 = vector.shape_cast %7 : vector<32xf32> to vector<32x1xf32>
    %cst_6 = arith.constant 2.560000e+02 : f32
    %9 = vector.broadcast %cst_6 : f32 to vector<32x1xf32>
    %10 = arith.divf %5, %9 : vector<32x1xf32>
    %cst_7 = arith.constant 2.560000e+02 : f32
    %11 = vector.broadcast %cst_7 : f32 to vector<32x1xf32>
    %12 = arith.divf %8, %11 : vector<32x1xf32>
    %13 = arith.mulf %10, %10 : vector<32x1xf32>
    %14 = arith.subf %12, %13 : vector<32x1xf32>
    %cst_8 = arith.constant 0.000000e+00 : f32
    %15 = vector.broadcast %cst_8 : f32 to vector<32x1xf32>
    %16 = arith.maximumf %14, %15 : vector<32x1xf32>
    %17 = vector.broadcast %10 : vector<32x1xf32> to vector<32x256xf32>
    %18 = arith.subf %3, %17 : vector<32x256xf32>
    %cst_9 = arith.constant 9.99999974E-6 : f32
    %19 = vector.broadcast %cst_9 : f32 to vector<32x1xf32>
    %20 = arith.addf %16, %19 : vector<32x1xf32>
    %21 = math.rsqrt %20 : vector<32x1xf32>
    %22 = vector.broadcast %21 : vector<32x1xf32> to vector<32x256xf32>
    %23 = arith.mulf %18, %22 : vector<32x256xf32>
    %cst_10 = arith.constant 0.000000e+00 : f32
    %24 = vector.broadcast %cst_10 : f32 to vector<32x256xf32>
    %25 = arith.cmpf oge, %23, %24 : vector<32x256xf32>
    %cst_11 = arith.constant 2.000000e-01 : f32
    %26 = vector.broadcast %cst_11 : f32 to vector<32x256xf32>
    %27 = arith.mulf %26, %23 : vector<32x256xf32>
    %28 = arith.select %25, %23, %27 : vector<32x256xi1>, vector<32x256xf32>
    %29 = arith.truncf %28 : vector<32x256xf32> to vector<32x256xbf16>
    %c0_12 = arith.constant 0 : index
    %c0_13 = arith.constant 0 : index
    %c0_14 = arith.constant 0 : index
    %30 = vector.load %arg3[%c0_12, %c0_13, %c0_14] : memref<1x32x256xbf16, #tpu.memory_space<vmem>>, vector<1x32x256xbf16>
    %31 = vector.shape_cast %30 : vector<1x32x256xbf16> to vector<32x256xbf16>
    %32 = vector.shape_cast %29 : vector<32x256xbf16> to vector<1x32x256xbf16>
    tpu.vector_store %arg3[%c0_12, %c0_13, %c0_14], %32 {strides = array<i32>} : memref<1x32x256xbf16, #tpu.memory_space<vmem>>, vector<1x32x256xbf16>,
    return
  }
  func.func @transform_0(%arg0: i32) -> (i32, i32, i32) {
    %c0_i32 = arith.constant 0 : i32
    %c0_i32_0 = arith.constant 0 : i32
    %c0_i32_1 = arith.constant 0 : i32
    return %arg0, %c0_i32, %c0_i32_0 : i32, i32, i32
  }
  func.func @transform_1(%arg0: i32) -> (i32, i32) {
    %c0_i32 = arith.constant 0 : i32
    %c0_i32_0 = arith.constant 0 : i32
    %c0_i32_1 = arith.constant 0 : i32
    return %c0_i32, %c0_i32_0 : i32, i32
  }
  func.func @transform_2(%arg0: i32) -> (i32, i32, i32) {
    %c0_i32 = arith.constant 0 : i32
    %c0_i32_0 = arith.constant 0 : i32
    %c0_i32_1 = arith.constant 0 : i32
    return %arg0, %c0_i32, %c0_i32_0 : i32, i32, i32
  }
}

module attributes {stable_mosaic.version = 11 : i64} {
  func.func @_conv_in_lrelu_kernel(%arg0: i32, %arg1: memref<1x288x64xbf16, #tpu.memory_space<vmem>>, %arg2: memref<64x288xbf16, #tpu.memory_space<vmem>>, %arg3: memref<1x64x64xbf16, #tpu.memory_space<vmem>>) attributes {dimension_semantics = [#tpu.dimension_semantics<parallel>], iteration_bounds = array<i64: 2>, scalar_prefetch = 0 : i64, scratch_operands = 0 : i64, tpu.core_type = #tpu.core_type<tc>, window_params = [{transform_indices = @transform_0, window_bounds = array<i64: 1, 288, 64>}, {pipeline_mode = #tpu.pipeline_mode<synchronous>, transform_indices = @transform_1, window_bounds = array<i64: 64, 288>}, {transform_indices = @transform_2, window_bounds = array<i64: 1, 64, 64>}]} {
    %c0 = arith.constant 0 : index
    %c0_0 = arith.constant 0 : index
    %0 = vector.load %arg2[%c0, %c0_0] : memref<64x288xbf16, #tpu.memory_space<vmem>>, vector<64x288xbf16>
    %c0_1 = arith.constant 0 : index
    %c0_2 = arith.constant 0 : index
    %c0_3 = arith.constant 0 : index
    %1 = vector.load %arg1[%c0_1, %c0_2, %c0_3] : memref<1x288x64xbf16, #tpu.memory_space<vmem>>, vector<1x288x64xbf16>
    %2 = vector.shape_cast %1 : vector<1x288x64xbf16> to vector<288x64xbf16>
    %cst = arith.constant dense<0.000000e+00> : vector<64x64xf32>
    %3 = tpu.matmul %0, %2, %cst {dimension_numbers = #tpu.dot_dimension_numbers<[1], [0], [0], [1], [0, 0, 1, 1], [], []>} : vector<64x288xbf16>, vector<288x64xbf16>, vector<64x64xf32> -> vector<64x64xf32>
    %cst_4 = arith.constant dense<0.000000e+00> : vector<64xf32>
    %4 = vector.multi_reduction <add>, %3, %cst_4 [1] : vector<64x64xf32> to vector<64xf32>
    %5 = vector.shape_cast %4 : vector<64xf32> to vector<64x1xf32>
    %6 = arith.mulf %3, %3 : vector<64x64xf32>
    %cst_5 = arith.constant dense<0.000000e+00> : vector<64xf32>
    %7 = vector.multi_reduction <add>, %6, %cst_5 [1] : vector<64x64xf32> to vector<64xf32>
    %8 = vector.shape_cast %7 : vector<64xf32> to vector<64x1xf32>
    %cst_6 = arith.constant 6.400000e+01 : f32
    %9 = vector.broadcast %cst_6 : f32 to vector<64x1xf32>
    %10 = arith.divf %5, %9 : vector<64x1xf32>
    %cst_7 = arith.constant 6.400000e+01 : f32
    %11 = vector.broadcast %cst_7 : f32 to vector<64x1xf32>
    %12 = arith.divf %8, %11 : vector<64x1xf32>
    %13 = arith.mulf %10, %10 : vector<64x1xf32>
    %14 = arith.subf %12, %13 : vector<64x1xf32>
    %cst_8 = arith.constant 0.000000e+00 : f32
    %15 = vector.broadcast %cst_8 : f32 to vector<64x1xf32>
    %16 = arith.maximumf %14, %15 : vector<64x1xf32>
    %17 = vector.broadcast %10 : vector<64x1xf32> to vector<64x64xf32>
    %18 = arith.subf %3, %17 : vector<64x64xf32>
    %cst_9 = arith.constant 9.99999974E-6 : f32
    %19 = vector.broadcast %cst_9 : f32 to vector<64x1xf32>
    %20 = arith.addf %16, %19 : vector<64x1xf32>
    %21 = math.rsqrt %20 : vector<64x1xf32>
    %22 = vector.broadcast %21 : vector<64x1xf32> to vector<64x64xf32>
    %23 = arith.mulf %18, %22 : vector<64x64xf32>
    %cst_10 = arith.constant 0.000000e+00 : f32
    %24 = vector.broadcast %cst_10 : f32 to vector<64x64xf32>
    %25 = arith.cmpf oge, %23, %24 : vector<64x64xf32>
    %cst_11 = arith.constant 2.000000e-01 : f32
    %26 = vector.broadcast %cst_11 : f32 to vector<64x64xf32>
    %27 = arith.mulf %26, %23 : vector<64x64xf32>
    %28 = arith.select %25, %23, %27 : vector<64x64xi1>, vector<64x64xf32>
    %29 = arith.truncf %28 : vector<64x64xf32> to vector<64x64xbf16>
    %c0_12 = arith.constant 0 : index
    %c0_13 = arith.constant 0 : index
    %c0_14 = arith.constant 0 : index
    %30 = vector.load %arg3[%c0_12, %c0_13, %c0_14] : memref<1x64x64xbf16, #tpu.memory_space<vmem>>, vector<1x64x64xbf16>
    %31 = vector.shape_cast %30 : vector<1x64x64xbf16> to vector<64x64xbf16>
    %32 = vector.shape_cast %29 : vector<64x64xbf16> to vector<1x64x64xbf16>
    tpu.vector_store %arg3[%c0_12, %c0_13, %c0_14], %32 {strides = array<i32>} : memref<1x64x64xbf16, #tpu.memory_space<vmem>>, vector<1x64x64xbf16>,
    return
  }
  func.func @transform_0(%arg0: i32) -> (i32, i32, i32) {
    %c0_i32 = arith.constant 0 : i32
    %c0_i32_0 = arith.constant 0 : i32
    %c0_i32_1 = arith.constant 0 : i32
    return %arg0, %c0_i32, %c0_i32_0 : i32, i32, i32
  }
  func.func @transform_1(%arg0: i32) -> (i32, i32) {
    %c0_i32 = arith.constant 0 : i32
    %c0_i32_0 = arith.constant 0 : i32
    %c0_i32_1 = arith.constant 0 : i32
    return %c0_i32, %c0_i32_0 : i32, i32
  }
  func.func @transform_2(%arg0: i32) -> (i32, i32, i32) {
    %c0_i32 = arith.constant 0 : i32
    %c0_i32_0 = arith.constant 0 : i32
    %c0_i32_1 = arith.constant 0 : i32
    return %arg0, %c0_i32, %c0_i32_0 : i32, i32, i32
  }
}

module attributes {stable_mosaic.version = 11 : i64} {
  func.func @_conv_in_lrelu_kernel(%arg0: i32, %arg1: memref<1x576x16xbf16, #tpu.memory_space<vmem>>, %arg2: memref<128x576xbf16, #tpu.memory_space<vmem>>, %arg3: memref<1x128x16xbf16, #tpu.memory_space<vmem>>) attributes {dimension_semantics = [#tpu.dimension_semantics<parallel>], iteration_bounds = array<i64: 2>, scalar_prefetch = 0 : i64, scratch_operands = 0 : i64, tpu.core_type = #tpu.core_type<tc>, window_params = [{transform_indices = @transform_0, window_bounds = array<i64: 1, 576, 16>}, {pipeline_mode = #tpu.pipeline_mode<synchronous>, transform_indices = @transform_1, window_bounds = array<i64: 128, 576>}, {transform_indices = @transform_2, window_bounds = array<i64: 1, 128, 16>}]} {
    %c0 = arith.constant 0 : index
    %c0_0 = arith.constant 0 : index
    %0 = vector.load %arg2[%c0, %c0_0] : memref<128x576xbf16, #tpu.memory_space<vmem>>, vector<128x576xbf16>
    %c0_1 = arith.constant 0 : index
    %c0_2 = arith.constant 0 : index
    %c0_3 = arith.constant 0 : index
    %1 = vector.load %arg1[%c0_1, %c0_2, %c0_3] : memref<1x576x16xbf16, #tpu.memory_space<vmem>>, vector<1x576x16xbf16>
    %2 = vector.shape_cast %1 : vector<1x576x16xbf16> to vector<576x16xbf16>
    %cst = arith.constant dense<0.000000e+00> : vector<128x16xf32>
    %3 = tpu.matmul %0, %2, %cst {dimension_numbers = #tpu.dot_dimension_numbers<[1], [0], [0], [1], [0, 0, 1, 1], [], []>} : vector<128x576xbf16>, vector<576x16xbf16>, vector<128x16xf32> -> vector<128x16xf32>
    %cst_4 = arith.constant dense<0.000000e+00> : vector<128xf32>
    %4 = vector.multi_reduction <add>, %3, %cst_4 [1] : vector<128x16xf32> to vector<128xf32>
    %5 = vector.shape_cast %4 : vector<128xf32> to vector<128x1xf32>
    %6 = arith.mulf %3, %3 : vector<128x16xf32>
    %cst_5 = arith.constant dense<0.000000e+00> : vector<128xf32>
    %7 = vector.multi_reduction <add>, %6, %cst_5 [1] : vector<128x16xf32> to vector<128xf32>
    %8 = vector.shape_cast %7 : vector<128xf32> to vector<128x1xf32>
    %cst_6 = arith.constant 1.600000e+01 : f32
    %9 = vector.broadcast %cst_6 : f32 to vector<128x1xf32>
    %10 = arith.divf %5, %9 : vector<128x1xf32>
    %cst_7 = arith.constant 1.600000e+01 : f32
    %11 = vector.broadcast %cst_7 : f32 to vector<128x1xf32>
    %12 = arith.divf %8, %11 : vector<128x1xf32>
    %13 = arith.mulf %10, %10 : vector<128x1xf32>
    %14 = arith.subf %12, %13 : vector<128x1xf32>
    %cst_8 = arith.constant 0.000000e+00 : f32
    %15 = vector.broadcast %cst_8 : f32 to vector<128x1xf32>
    %16 = arith.maximumf %14, %15 : vector<128x1xf32>
    %17 = vector.broadcast %10 : vector<128x1xf32> to vector<128x16xf32>
    %18 = arith.subf %3, %17 : vector<128x16xf32>
    %cst_9 = arith.constant 9.99999974E-6 : f32
    %19 = vector.broadcast %cst_9 : f32 to vector<128x1xf32>
    %20 = arith.addf %16, %19 : vector<128x1xf32>
    %21 = math.rsqrt %20 : vector<128x1xf32>
    %22 = vector.broadcast %21 : vector<128x1xf32> to vector<128x16xf32>
    %23 = arith.mulf %18, %22 : vector<128x16xf32>
    %cst_10 = arith.constant 0.000000e+00 : f32
    %24 = vector.broadcast %cst_10 : f32 to vector<128x16xf32>
    %25 = arith.cmpf oge, %23, %24 : vector<128x16xf32>
    %cst_11 = arith.constant 2.000000e-01 : f32
    %26 = vector.broadcast %cst_11 : f32 to vector<128x16xf32>
    %27 = arith.mulf %26, %23 : vector<128x16xf32>
    %28 = arith.select %25, %23, %27 : vector<128x16xi1>, vector<128x16xf32>
    %29 = arith.truncf %28 : vector<128x16xf32> to vector<128x16xbf16>
    %c0_12 = arith.constant 0 : index
    %c0_13 = arith.constant 0 : index
    %c0_14 = arith.constant 0 : index
    %30 = vector.load %arg3[%c0_12, %c0_13, %c0_14] : memref<1x128x16xbf16, #tpu.memory_space<vmem>>, vector<1x128x16xbf16>
    %31 = vector.shape_cast %30 : vector<1x128x16xbf16> to vector<128x16xbf16>
    %32 = vector.shape_cast %29 : vector<128x16xbf16> to vector<1x128x16xbf16>
    tpu.vector_store %arg3[%c0_12, %c0_13, %c0_14], %32 {strides = array<i32>} : memref<1x128x16xbf16, #tpu.memory_space<vmem>>, vector<1x128x16xbf16>,
    return
  }
  func.func @transform_0(%arg0: i32) -> (i32, i32, i32) {
    %c0_i32 = arith.constant 0 : i32
    %c0_i32_0 = arith.constant 0 : i32
    %c0_i32_1 = arith.constant 0 : i32
    return %arg0, %c0_i32, %c0_i32_0 : i32, i32, i32
  }
  func.func @transform_1(%arg0: i32) -> (i32, i32) {
    %c0_i32 = arith.constant 0 : i32
    %c0_i32_0 = arith.constant 0 : i32
    %c0_i32_1 = arith.constant 0 : i32
    return %c0_i32, %c0_i32_0 : i32, i32
  }
  func.func @transform_2(%arg0: i32) -> (i32, i32, i32) {
    %c0_i32 = arith.constant 0 : i32
    %c0_i32_0 = arith.constant 0 : i32
    %c0_i32_1 = arith.constant 0 : i32
    return %arg0, %c0_i32, %c0_i32_0 : i32, i32, i32
  }
}

module attributes {stable_mosaic.version = 11 : i64} {
  func.func @kernel(%arg0: i32, %arg1: memref<1x512x16xbf16, #tpu.memory_space<vmem>>, %arg2: memref<1024x512xbf16, #tpu.memory_space<vmem>>, %arg3: memref<1x1024x16xbf16, #tpu.memory_space<vmem>>) attributes {dimension_semantics = [#tpu.dimension_semantics<parallel>], iteration_bounds = array<i64: 2>, scalar_prefetch = 0 : i64, scratch_operands = 0 : i64, tpu.core_type = #tpu.core_type<tc>, window_params = [{transform_indices = @transform_0, window_bounds = array<i64: 1, 512, 16>}, {pipeline_mode = #tpu.pipeline_mode<synchronous>, transform_indices = @transform_1, window_bounds = array<i64: 1024, 512>}, {transform_indices = @transform_2, window_bounds = array<i64: 1, 1024, 16>}]} {
    %c0 = arith.constant 0 : index
    %c0_0 = arith.constant 0 : index
    %0 = vector.load %arg2[%c0, %c0_0] : memref<1024x512xbf16, #tpu.memory_space<vmem>>, vector<1024x512xbf16>
    %c0_1 = arith.constant 0 : index
    %c0_2 = arith.constant 0 : index
    %c0_3 = arith.constant 0 : index
    %1 = vector.load %arg1[%c0_1, %c0_2, %c0_3] : memref<1x512x16xbf16, #tpu.memory_space<vmem>>, vector<1x512x16xbf16>
    %2 = vector.shape_cast %1 : vector<1x512x16xbf16> to vector<512x16xbf16>
    %cst = arith.constant dense<0.000000e+00> : vector<1024x16xf32>
    %3 = tpu.matmul %0, %2, %cst {dimension_numbers = #tpu.dot_dimension_numbers<[1], [0], [0], [1], [0, 0, 1, 1], [], []>} : vector<1024x512xbf16>, vector<512x16xbf16>, vector<1024x16xf32> -> vector<1024x16xf32>
    %4 = vector.extract_strided_slice %3 {offsets = [0, 0], sizes = [256, 16], strides = [1, 1]} : vector<1024x16xf32> to vector<256x16xf32>
    %5 = vector.extract_strided_slice %3 {offsets = [256, 0], sizes = [256, 16], strides = [1, 1]} : vector<1024x16xf32> to vector<256x16xf32>
    %6 = vector.extract_strided_slice %3 {offsets = [512, 0], sizes = [256, 16], strides = [1, 1]} : vector<1024x16xf32> to vector<256x16xf32>
    %7 = vector.extract_strided_slice %3 {offsets = [768, 0], sizes = [256, 16], strides = [1, 1]} : vector<1024x16xf32> to vector<256x16xf32>
    %8 = arith.addf %4, %5 : vector<256x16xf32>
    %9 = arith.addf %8, %6 : vector<256x16xf32>
    %10 = arith.addf %9, %7 : vector<256x16xf32>
    %cst_4 = arith.constant dense<0.000000e+00> : vector<256xf32>
    %11 = vector.multi_reduction <add>, %10, %cst_4 [1] : vector<256x16xf32> to vector<256xf32>
    %12 = vector.shape_cast %11 : vector<256xf32> to vector<256x1xf32>
    %13 = arith.mulf %4, %4 : vector<256x16xf32>
    %14 = arith.mulf %5, %5 : vector<256x16xf32>
    %15 = arith.addf %13, %14 : vector<256x16xf32>
    %16 = arith.mulf %6, %6 : vector<256x16xf32>
    %17 = arith.addf %15, %16 : vector<256x16xf32>
    %18 = arith.mulf %7, %7 : vector<256x16xf32>
    %19 = arith.addf %17, %18 : vector<256x16xf32>
    %cst_5 = arith.constant dense<0.000000e+00> : vector<256xf32>
    %20 = vector.multi_reduction <add>, %19, %cst_5 [1] : vector<256x16xf32> to vector<256xf32>
    %21 = vector.shape_cast %20 : vector<256xf32> to vector<256x1xf32>
    %cst_6 = arith.constant 6.400000e+01 : f32
    %22 = vector.broadcast %cst_6 : f32 to vector<256x1xf32>
    %23 = arith.divf %12, %22 : vector<256x1xf32>
    %cst_7 = arith.constant 6.400000e+01 : f32
    %24 = vector.broadcast %cst_7 : f32 to vector<256x1xf32>
    %25 = arith.divf %21, %24 : vector<256x1xf32>
    %26 = arith.mulf %23, %23 : vector<256x1xf32>
    %27 = arith.subf %25, %26 : vector<256x1xf32>
    %cst_8 = arith.constant 0.000000e+00 : f32
    %28 = vector.broadcast %cst_8 : f32 to vector<256x1xf32>
    %29 = arith.maximumf %27, %28 : vector<256x1xf32>
    %cst_9 = arith.constant 9.99999974E-6 : f32
    %30 = vector.broadcast %cst_9 : f32 to vector<256x1xf32>
    %31 = arith.addf %29, %30 : vector<256x1xf32>
    %32 = math.rsqrt %31 : vector<256x1xf32>
    %33 = tpu.concatenate %23, %23, %23, %23 in 0 : vector<256x1xf32>, vector<256x1xf32>, vector<256x1xf32>, vector<256x1xf32> -> vector<1024x1xf32>
    %34 = tpu.concatenate %32, %32, %32, %32 in 0 : vector<256x1xf32>, vector<256x1xf32>, vector<256x1xf32>, vector<256x1xf32> -> vector<1024x1xf32>
    %35 = vector.broadcast %33 : vector<1024x1xf32> to vector<1024x16xf32>
    %36 = arith.subf %3, %35 : vector<1024x16xf32>
    %37 = vector.broadcast %34 : vector<1024x1xf32> to vector<1024x16xf32>
    %38 = arith.mulf %36, %37 : vector<1024x16xf32>
    %cst_10 = arith.constant 0.000000e+00 : f32
    %39 = vector.broadcast %cst_10 : f32 to vector<1024x16xf32>
    %40 = arith.cmpf oge, %38, %39 : vector<1024x16xf32>
    %cst_11 = arith.constant 2.000000e-01 : f32
    %41 = vector.broadcast %cst_11 : f32 to vector<1024x16xf32>
    %42 = arith.mulf %41, %38 : vector<1024x16xf32>
    %43 = arith.select %40, %38, %42 : vector<1024x16xi1>, vector<1024x16xf32>
    %44 = arith.truncf %43 : vector<1024x16xf32> to vector<1024x16xbf16>
    %c0_12 = arith.constant 0 : index
    %c0_13 = arith.constant 0 : index
    %c0_14 = arith.constant 0 : index
    %45 = vector.load %arg3[%c0_12, %c0_13, %c0_14] : memref<1x1024x16xbf16, #tpu.memory_space<vmem>>, vector<1x1024x16xbf16>
    %46 = vector.shape_cast %45 : vector<1x1024x16xbf16> to vector<1024x16xbf16>
    %47 = vector.shape_cast %44 : vector<1024x16xbf16> to vector<1x1024x16xbf16>
    tpu.vector_store %arg3[%c0_12, %c0_13, %c0_14], %47 {strides = array<i32>} : memref<1x1024x16xbf16, #tpu.memory_space<vmem>>, vector<1x1024x16xbf16>,
    return
  }
  func.func @transform_0(%arg0: i32) -> (i32, i32, i32) {
    %c0_i32 = arith.constant 0 : i32
    %c0_i32_0 = arith.constant 0 : i32
    %c0_i32_1 = arith.constant 0 : i32
    return %arg0, %c0_i32, %c0_i32_0 : i32, i32, i32
  }
  func.func @transform_1(%arg0: i32) -> (i32, i32) {
    %c0_i32 = arith.constant 0 : i32
    %c0_i32_0 = arith.constant 0 : i32
    %c0_i32_1 = arith.constant 0 : i32
    return %c0_i32, %c0_i32_0 : i32, i32
  }
  func.func @transform_2(%arg0: i32) -> (i32, i32, i32) {
    %c0_i32 = arith.constant 0 : i32
    %c0_i32_0 = arith.constant 0 : i32
    %c0_i32_1 = arith.constant 0 : i32
    return %arg0, %c0_i32, %c0_i32_0 : i32, i32, i32
  }
}

module attributes {stable_mosaic.version = 11 : i64} {
  func.func @_conv_tanh_pool_kernel(%arg0: i32, %arg1: memref<1x2304x64xbf16, #tpu.memory_space<vmem>>, %arg2: memref<8x2304xbf16, #tpu.memory_space<vmem>>, %arg3: memref<8x1xf32, #tpu.memory_space<vmem>>, %arg4: memref<1x6x64xf32, #tpu.memory_space<vmem>>, %arg5: memref<1x6x8xf32, #tpu.memory_space<vmem>>) attributes {dimension_semantics = [#tpu.dimension_semantics<parallel>], iteration_bounds = array<i64: 2>, scalar_prefetch = 0 : i64, scratch_operands = 0 : i64, tpu.core_type = #tpu.core_type<tc>, window_params = [{transform_indices = @transform_0, window_bounds = array<i64: 1, 2304, 64>}, {pipeline_mode = #tpu.pipeline_mode<synchronous>, transform_indices = @transform_1, window_bounds = array<i64: 8, 2304>}, {pipeline_mode = #tpu.pipeline_mode<synchronous>, transform_indices = @transform_2, window_bounds = array<i64: 8, 1>}, {transform_indices = @transform_3, window_bounds = array<i64: 1, 6, 64>}, {transform_indices = @transform_4, window_bounds = array<i64: 1, 6, 8>}]} {
    %c0 = arith.constant 0 : index
    %c0_0 = arith.constant 0 : index
    %0 = vector.load %arg2[%c0, %c0_0] : memref<8x2304xbf16, #tpu.memory_space<vmem>>, vector<8x2304xbf16>
    %c0_1 = arith.constant 0 : index
    %c0_2 = arith.constant 0 : index
    %c0_3 = arith.constant 0 : index
    %1 = vector.load %arg1[%c0_1, %c0_2, %c0_3] : memref<1x2304x64xbf16, #tpu.memory_space<vmem>>, vector<1x2304x64xbf16>
    %2 = vector.shape_cast %1 : vector<1x2304x64xbf16> to vector<2304x64xbf16>
    %cst = arith.constant dense<0.000000e+00> : vector<8x64xf32>
    %3 = tpu.matmul %0, %2, %cst {dimension_numbers = #tpu.dot_dimension_numbers<[1], [0], [0], [1], [0, 0, 1, 1], [], []>} : vector<8x2304xbf16>, vector<2304x64xbf16>, vector<8x64xf32> -> vector<8x64xf32>
    %c0_4 = arith.constant 0 : index
    %c0_5 = arith.constant 0 : index
    %4 = vector.load %arg3[%c0_4, %c0_5] : memref<8x1xf32, #tpu.memory_space<vmem>>, vector<8x1xf32>
    %5 = vector.broadcast %4 : vector<8x1xf32> to vector<8x64xf32>
    %6 = arith.addf %3, %5 : vector<8x64xf32>
    %7 = math.tanh %6 : vector<8x64xf32>
    %c0_6 = arith.constant 0 : index
    %c0_7 = arith.constant 0 : index
    %c0_8 = arith.constant 0 : index
    %8 = vector.load %arg4[%c0_6, %c0_7, %c0_8] : memref<1x6x64xf32, #tpu.memory_space<vmem>>, vector<1x6x64xf32>
    %9 = vector.shape_cast %8 : vector<1x6x64xf32> to vector<6x64xf32>
    %cst_9 = arith.constant dense<0.000000e+00> : vector<6x8xf32>
    %10 = tpu.matmul %9, %7, %cst_9 {dimension_numbers = #tpu.dot_dimension_numbers<[1], [1], [0], [0], [0, 0, 1, 0], [], []>} : vector<6x64xf32>, vector<8x64xf32>, vector<6x8xf32> -> vector<6x8xf32>
    %cst_10 = arith.constant dense<0.000000e+00> : vector<6xf32>
    %11 = vector.multi_reduction <add>, %9, %cst_10 [1] : vector<6x64xf32> to vector<6xf32>
    %12 = vector.shape_cast %11 : vector<6xf32> to vector<6x1xf32>
    %cst_11 = arith.constant 0.000000e+00 : f32
    %13 = vector.broadcast %cst_11 : f32 to vector<6x1xf32>
    %14 = arith.cmpf ogt, %12, %13 : vector<6x1xf32>
    %cst_12 = arith.constant 1.000000e+00 : f32
    %15 = vector.broadcast %cst_12 : f32 to vector<6x1xf32>
    %16 = arith.maximumf %12, %15 : vector<6x1xf32>
    %17 = vector.broadcast %16 : vector<6x1xf32> to vector<6x8xf32>
    %18 = arith.divf %10, %17 : vector<6x8xf32>
    %cst_13 = arith.constant 0.000000e+00 : f32
    %19 = vector.shape_cast %14 : vector<6x1xi1> to vector<6x1xi1>
    %20 = vector.broadcast %19 : vector<6x1xi1> to vector<6x8xi1>
    %21 = vector.broadcast %cst_13 : f32 to vector<6x8xf32>
    %22 = arith.select %20, %18, %21 : vector<6x8xi1>, vector<6x8xf32>
    %c0_14 = arith.constant 0 : index
    %c0_15 = arith.constant 0 : index
    %c0_16 = arith.constant 0 : index
    %23 = vector.load %arg5[%c0_14, %c0_15, %c0_16] : memref<1x6x8xf32, #tpu.memory_space<vmem>>, vector<1x6x8xf32>
    %24 = vector.shape_cast %23 : vector<1x6x8xf32> to vector<6x8xf32>
    %25 = vector.shape_cast %22 : vector<6x8xf32> to vector<1x6x8xf32>
    tpu.vector_store %arg5[%c0_14, %c0_15, %c0_16], %25 {strides = array<i32>} : memref<1x6x8xf32, #tpu.memory_space<vmem>>, vector<1x6x8xf32>,
    return
  }
  func.func @transform_0(%arg0: i32) -> (i32, i32, i32) {
    %c0_i32 = arith.constant 0 : i32
    %c0_i32_0 = arith.constant 0 : i32
    %c0_i32_1 = arith.constant 0 : i32
    return %arg0, %c0_i32, %c0_i32_0 : i32, i32, i32
  }
  func.func @transform_1(%arg0: i32) -> (i32, i32) {
    %c0_i32 = arith.constant 0 : i32
    %c0_i32_0 = arith.constant 0 : i32
    %c0_i32_1 = arith.constant 0 : i32
    return %c0_i32, %c0_i32_0 : i32, i32
  }
  func.func @transform_2(%arg0: i32) -> (i32, i32) {
    %c0_i32 = arith.constant 0 : i32
    %c0_i32_0 = arith.constant 0 : i32
    %c0_i32_1 = arith.constant 0 : i32
    return %c0_i32, %c0_i32_0 : i32, i32
  }
  func.func @transform_3(%arg0: i32) -> (i32, i32, i32) {
    %c0_i32 = arith.constant 0 : i32
    %c0_i32_0 = arith.constant 0 : i32
    %c0_i32_1 = arith.constant 0 : i32
    return %arg0, %c0_i32, %c0_i32_0 : i32, i32, i32
  }
  func.func @transform_4(%arg0: i32) -> (i32, i32, i32) {
    %c0_i32 = arith.constant 0 : i32
    %c0_i32_0 = arith.constant 0 : i32
    %c0_i32_1 = arith.constant 0 : i32
    return %arg0, %c0_i32, %c0_i32_0 : i32, i32, i32
  }
}

</mosaic_0001>

<bundles_post_ra>
// kernel: zencoder_forward.5
= control target key start
LH: loop header
LB: loop body
LE: loop exit
PB: predicated region body
PF: predicated region fallthrough
CT: control target
= control target key end

     0   :  { %s519_s9 = smov 0   ;;  %s603_s0 = inlined_call_operand.vmem [shape: bf16[2,27,256], index: 0, kind: input, shape index: {}]   ;;  %s604_s1 = inlined_call_operand.vmem [shape: bf16[32,27], index: 1, kind: input, shape index: {}]   ;;  %s605_s2 = inlined_call_operand.vmem [shape: bf16[2,32,256], index: 2, kind: output, shape index: {}]  }
   0x1 LB: > { %s435_s10 = sadd.s32 4294967295, %s500_s9   ;;  %p439_p0 = scmp.ge.s32.totalorder %s500_s9, 1  ;;  %s500_s9 = sphi %s519_s9, %s12_s9  }
   0x2   : > { %p112_p1 = scmp.lt.s32.totalorder %s500_s9, 3 }
   0x4   : > { %p113_p2 = pnand %p439_p0, %p112_p1 }
   0x5   : > { %p134_p3 = scmp.lt.s32.totalorder (!%p113_p2), %s435_s10, 1 }
   0x6   : > { %116 = sbr.rel (%p113_p2) target bundleno = 405 (0x195), region = 28 }
   0xb   : > { %vm188_vm0 = vcmask 1044480   ;;  %vm189_vm1 = vcmask 1045504   ;;  %v502_v0 = vmov 0   ;;  %s607_s10 = smov (!%p134_p3, %s435_s10), 1  ;;  %v503_v1 = vmov 65535   ;;  %v484_v10 = vld [vmem:[%s604_s1] sm:$0xff]  }
   0xc   : > { %230 = vmatprep.mubr.bf16.mxu0 %v502_v0  ;;  %240 = vmatprep.mubr.bf16.mxu1 %v502_v0  ;;  %v190_v2 = vsel %vm188_vm0, 4294967295, %v503_v1  ;;  %s458_s11 = sshll.u32 %s607_s10, 5  ;;  %v485_v11 = vld [vmem:[%s604_s1 + $0x8] sm:$0xff]   ;;  %vm181_vm2 = vcmask 220160  }
   0xd   : > { %s138_s14 = scalar_lea.vmem %s603_s0, %s458_s11  ;;  %v191_v3 = vsel %vm189_vm1, %v190_v2, 0  ;;  %s588_s21 = scalar_lea.vmem %s605_s2, %s458_s11 }
   0xe   : > { %v478_v4 = vld [vmem:[%s138_s14 + $0x14] ss:$8 sps:$4 sm:$0x3f]   ;;  %v480_v5 = vld [vmem:[%s138_s14 + $0x10] ss:$8 sps:$4 sm:$0x3f]  }
   0xf   : > { %v196_v6 = vand.u32 %v478_v4, %v191_v3  ;;  %v481_v7 = vld [vmem:[%s138_s14 + $0x4] ss:$8 sps:$4 sm:$0xff]   ;;  %v193_v8 = vand.u32 %v480_v5, %v191_v3  ;;  %v483_v9 = vld [vmem:[%s138_s14] ss:$8 sps:$4 sm:$0xff]  }
  0x11   : > { %210 = vmatprep.subr.bf16.mxu0 %v196_v6  ;;  %464 = vmatprep.subr.bf16.mxu1 %v196_v6 }
  0x12   : > { %211 = vmatpush1.bf16.msra.mxu0 %v193_v8  ;;  %466 = vmatpush1.bf16.msra.mxu1 %v193_v8 }
  0x13   : > { %212 = vmatprep.subr.bf16.mxu0 %v481_v7  ;;  %465 = vmatprep.subr.bf16.mxu1 %v481_v7 }
  0x16   : > { %213 = vmatpush1.bf16.msra.mxu0 %v483_v9  ;;  %467 = vmatpush1.bf16.msra.mxu1 %v483_v9 }
  0x19   : > { %450 = vmatmul.mubr.msk.bf16.vlgmr.msra.gmra.mxu0 %vm181_vm2, %v484_v10  ;;  %451 = vmatmul.mubr.msk.bf16.vlgmr.msra.gmra.mxu1 %vm181_vm2, %v485_v11 }
  0xd9   : > { %v541_v12 = vpop.f32.mrf.mxu0  ;;  %v543_v13 = vpop.f32.mrf.mxu1 }
  0xda   : > { %v263_v21 = vmul.f32 %v541_v12, %v541_v12  ;;  %v267_v33 = vmul.f32 %v543_v13, %v543_v13 }
  0xdb   : > { %v545_v14 = vpop.f32.mrf.mxu0  ;;  %v547_v15 = vpop.f32.mrf.mxu1 }
  0xdc   : > { %v257_v16 = vadd.f32 %v547_v15, %v543_v13  ;;  %v251_v17 = vadd.f32 %v545_v14, %v541_v12  ;;  %v264_v18 = vmul.f32 %v545_v14, %v545_v14  ;;  %v268_v31 = vmul.f32 %v547_v15, %v547_v15 }
  0xdd   : > { %v555_v19 = vpop.f32.mrf.mxu0  ;;  %v557_v20 = vpop.f32.mrf.mxu1 }
  0xde   : > { %258 = vadd.xlane.f32.xlu1 %v257_v16  ;;  %252 = vadd.xlane.f32.xlu0 %v251_v17  ;;  %v271_v26 = vadd.f32 %v264_v18, %v263_v21  ;;  %v265_v27 = vmul.f32 %v555_v19, %v555_v19  ;;  %v269_v32 = vmul.f32 %v557_v20, %v557_v20 }
  0xdf   : > { %v561_v22 = vpop.f32.mrf.mxu0  ;;  %v563_v23 = vpop.f32.mrf.mxu1  ;;  %v277_v35 = vadd.f32 %v268_v31, %v267_v33 }
  0xe0   : > { %v266_v24 = vmul.f32 %v561_v22, %v561_v22  ;;  %v260_v25 = vadd.f32 %v563_v23, %v557_v20  ;;  %v270_v28 = vmul.f32 %v563_v23, %v563_v23  ;;  %v254_v30 = vadd.f32 %v561_v22, %v555_v19 }
  0xe2   : > { %261 = vadd.xlane.f32.xlu1 %v260_v25  ;;  %272 = vadd.xlane.f32.xlu0 %v271_v26  ;;  %v274_v29 = vadd.f32 %v266_v24, %v265_v27  ;;  %v280_v34 = vadd.f32 %v270_v28, %v269_v32 }
  0xe6   : > { %275 = vadd.xlane.f32.xlu1 %v274_v29  ;;  %255 = vadd.xlane.f32.xlu0 %v254_v30 }
  0xea   : > { %281 = vadd.xlane.f32.xlu1 %v280_v34  ;;  %278 = vadd.xlane.f32.xlu0 %v277_v35 }
 0x167   : > { %v259_v36 = vpop.xlane.xlu1 %258  ;;  %v253_v37 = vpop.xlane.xlu0 %252 }
 0x168   : > { %v284_v38 = vmul.f32 0.00390625, %v253_v37  ;;  %v286_v44 = vmul.f32 0.00390625, %v259_v36 }
 0x16a   : > { %v292_v41 = vmul.f32 %v284_v38, %v284_v38  ;;  %v294_v55 = vmul.f32 %v286_v44, %v286_v44  ;;  %v304_v4 = vsub.f32 %v541_v12, %v284_v38  ;;  %v305_v5 = vsub.f32 %v545_v14, %v284_v38 }
 0x16b   : > { %v262_v39 = vpop.xlane.xlu1 %261  ;;  %v273_v40 = vpop.xlane.xlu0 %272  ;;  %v308_v26 = vsub.f32 %v543_v13, %v286_v44  ;;  %v309_v27 = vsub.f32 %v547_v15, %v286_v44 }
 0x16c   : > { %v288_v42 = vmul.f32 0.00390625, %v273_v40  ;;  %v287_v45 = vmul.f32 0.00390625, %v262_v39 }
 0x16e   : > { %v296_v43 = vsub.f32 %v288_v42, %v292_v41  ;;  %v295_v53 = vmul.f32 %v287_v45, %v287_v45  ;;  %v310_v28 = vsub.f32 %v557_v20, %v287_v45  ;;  %v311_v29 = vsub.f32 %v563_v23, %v287_v45 }
 0x16f   : > { %v276_v46 = vpop.xlane.xlu1 %275  ;;  %v256_v47 = vpop.xlane.xlu0 %255 }
 0x170   : > { %v300_v48 = vmax.f32 %v296_v43, 0.0  ;;  %v285_v49 = vmul.f32 0.00390625, %v256_v47  ;;  %v289_v51 = vmul.f32 0.00390625, %v276_v46 }
 0x172   : > { %v312_v50 = vadd.f32 1e-05, %v300_v48  ;;  %v293_v52 = vmul.f32 %v285_v49, %v285_v49  ;;  %v306_v12 = vsub.f32 %v555_v19, %v285_v49  ;;  %v307_v14 = vsub.f32 %v561_v22, %v285_v49 }
 0x173   : > { %v282_v54 = vpop.xlane.xlu1 %281  ;;  %v279_v56 = vpop.xlane.xlu0 %278 }
 0x174   : > { %486 = vrsqrt.f32 %v312_v50  ;;  %v297_v57 = vsub.f32 %v289_v51, %v293_v52  ;;  %v291_v58 = vmul.f32 0.00390625, %v282_v54  ;;  %v290_v59 = vmul.f32 0.00390625, %v279_v56 }
 0x176   : > { %v301_v60 = vmax.f32 %v297_v57, 0.0  ;;  %v299_v61 = vsub.f32 %v291_v58, %v295_v53  ;;  %v298_v62 = vsub.f32 %v290_v59, %v294_v55 }
 0x178   : > { %v313_v63 = vadd.f32 1e-05, %v301_v60  ;;  %v303_v0 = vmax.f32 %v299_v61, 0.0  ;;  %v302_v1 = vmax.f32 %v298_v62, 0.0 }
 0x17a   : > { %488 = vrsqrt.f32 %v313_v63  ;;  %v315_v2 = vadd.f32 1e-05, %v303_v0  ;;  %v314_v3 = vadd.f32 1e-05, %v302_v1 }
 0x17c   : > { %490 = vrsqrt.f32 %v315_v2 }
 0x17d   : > { %492 = vrsqrt.f32 %v314_v3 }
 0x181   : > { %v487_v6 = vpop.eup %486 }
 0x182   : > { %v320_v7 = vmul.f32 %v487_v6, %v304_v4  ;;  %v321_v8 = vmul.f32 %v487_v6, %v305_v5 }
 0x184   : > { %vm328_vm3 = vcmp.ge.f32.partialorder %v320_v7, 0.0  ;;  %vm329_vm4 = vcmp.ge.f32.partialorder %v321_v8, 0.0  ;;  %v336_v9 = vmul.f32 0.2, %v320_v7  ;;  %v337_v10 = vmul.f32 0.2, %v321_v8 }
 0x186   : > { %v344_v11 = vsel %vm328_vm3, %v320_v7, %v336_v9  ;;  %v345_v16 = vsel %vm329_vm4, %v321_v8, %v337_v10 }
 0x187   : > { %v489_v17 = vpop.eup %488  ;;  %v460_v18 = vpack.c.bf16 %v345_v16, %v344_v11 }
 0x188   : > { %v322_v21 = vmul.f32 %v489_v17, %v306_v12  ;;  %v323_v24 = vmul.f32 %v489_v17, %v307_v14 }
 0x189   : > { %v491_v25 = vpop.eup %490  ;;  %376 = vst [vmem:[%s588_s21] sm:$0xff] %v460_v18 }
 0x18a   : > { %v493_v30 = vpop.eup %492  ;;  %vm330_vm5 = vcmp.ge.f32.partialorder %v322_v21, 0.0  ;;  %vm331_vm6 = vcmp.ge.f32.partialorder %v323_v24, 0.0  ;;  %v338_v19 = vmul.f32 0.2, %v322_v21  ;;  %v339_v22 = vmul.f32 0.2, %v323_v24 }
 0x18b   : > { %v326_v31 = vmul.f32 %v491_v25, %v310_v28  ;;  %v327_v32 = vmul.f32 %v491_v25, %v311_v29  ;;  %v324_v33 = vmul.f32 %v493_v30, %v308_v26  ;;  %v325_v34 = vmul.f32 %v493_v30, %v309_v27 }
 0x18c   : > { %v346_v35 = vsel %vm330_vm5, %v322_v21, %v338_v19  ;;  %v347_v36 = vsel %vm331_vm6, %v323_v24, %v339_v22 }
 0x18d   : > { %v461_v13 = vpack.c.bf16 %v347_v36, %v346_v35  ;;  %vm334_vm7 = vcmp.ge.f32.partialorder %v326_v31, 0.0  ;;  %vm335_vm8 = vcmp.ge.f32.partialorder %v327_v32, 0.0  ;;  %v342_v15 = vmul.f32 0.2, %v326_v31 }
 0x18e   : > { %v343_v20 = vmul.f32 0.2, %v327_v32  ;;  %vm332_vm9 = vcmp.ge.f32.partialorder %v324_v33, 0.0  ;;  %vm333_vm10 = vcmp.ge.f32.partialorder %v325_v34, 0.0  ;;  %v340_v23 = vmul.f32 0.2, %v324_v33 }
 0x18f   : > { %377 = vst [vmem:[%s588_s21 + $0x8] sm:$0xff] %v461_v13  ;;  %v350_v37 = vsel %vm334_vm7, %v326_v31, %v342_v15  ;;  %v341_v38 = vmul.f32 0.2, %v325_v34 }
 0x190   : > { %v351_v39 = vsel %vm335_vm8, %v327_v32, %v343_v20  ;;  %v348_v40 = vsel %vm332_vm9, %v324_v33, %v340_v23 }
 0x191   : > { %v463_v41 = vpack.c.bf16 %v351_v39, %v350_v37  ;;  %v349_v42 = vsel %vm333_vm10, %v325_v34, %v341_v38 }
 0x192   : > { %v462_v43 = vpack.c.bf16 %v349_v42, %v348_v40 }
 0x193   : > { %379 = vst [vmem:[%s588_s21 + $0x18] sm:$0xff] %v463_v41 }
 0x194   : > { %378 = vst [vmem:[%s588_s21 + $0x10] sm:$0xff] %v462_v43 }
 0x195 PF: > { %s12_s9 = sadd.s32 1, %s500_s9  }
 0x196   : > { %p9_p4 = scmp.ge.s32.totalorder %s12_s9, 4  }
 0x198   :  { %11 = sbr.rel (!%p9_p4) target bundleno = 1 (0x1), region = 58 }

// kernel: zencoder_forward.6
= control target key start
LH: loop header
LB: loop body
LE: loop exit
PB: predicated region body
PF: predicated region fallthrough
CT: control target
= control target key end

     0   :  { %s975_s9 = smov 0   ;;  %s1173_s0 = inlined_call_operand.vmem [shape: bf16[2,288,64], index: 0, kind: input, shape index: {}]   ;;  %s1174_s1 = inlined_call_operand.vmem [shape: bf16[64,288], index: 1, kind: input, shape index: {}]   ;;  %s1175_s2 = inlined_call_operand.vmem [shape: bf16[2,64,64], index: 2, kind: output, shape index: {}]  }
   0x1 LB: > { %s758_s10 = sadd.s32 4294967295, %s958_s9   ;;  %p762_p0 = scmp.ge.s32.totalorder %s958_s9, 1  ;;  %s958_s9 = sphi %s975_s9, %s12_s9  }
   0x2   : > { %p112_p1 = scmp.lt.s32.totalorder %s958_s9, 3 }
   0x4   : > { %p113_p2 = pnand %p762_p0, %p112_p1 }
   0x5   : > { %p134_p3 = scmp.lt.s32.totalorder (!%p113_p2), %s758_s10, 1 }
   0x6   : > { %116 = sbr.rel (%p113_p2) target bundleno = 453 (0x1c5), region = 28 }
   0xb   : > { %v920_v0 = vld [vmem:[%s1174_s1 + $0x4] ss:$12 sps:$4 sm:$0xff]   ;;  %s1177_s10 = smov (!%p134_p3, %s758_s10), 1  ;;  %v923_v1 = vld [vmem:[%s1174_s1 + $0x4c] ss:$12 sps:$4 sm:$0xff]   ;;  %vm365_vm0 = vcmask 261120  }
   0xc   : > { %410 = vmatprep.mubr.bf16.mxu0 %v920_v0  ;;  %s893_s15 = smul.u32 144, %s1177_s10  ;;  %434 = vmatprep.mubr.bf16.mxu1 %v923_v1  ;;  %v918_v19 = vld [vmem:[%s1174_s1] ss:$12 sps:$4 sm:$0xff]   ;;  %v921_v20 = vld [vmem:[%s1174_s1 + $0x48] ss:$12 sps:$4 sm:$0xff]   ;;  %vm508_vm1 = vcmask 523264  }
   0xd   : > { %v926_v21 = vld [vmem:[%s1174_s1 + $0x1c] ss:$12 sps:$4 sm:$0xff]   ;;  %v929_v24 = vld [vmem:[%s1174_s1 + $0x18] ss:$12 sps:$4 sm:$0xff]   ;;  %v930_v25 = vld [vmem:[%s1174_s1 + $0x20] ss:$12 sps:$4 sm:$0xff]  }
   0xe   : > { %s995_s18 = scalar_lea.vmem %s1173_s0, %s893_s15  ;;  %v928_v23 = vld [vmem:[%s1174_s1 + $0x8] ss:$12 sps:$4 sm:$0xff]   ;;  %v933_v27 = vld [vmem:[%s1174_s1 + $0x38] ss:$12 sps:$4 sm:$0xff]   ;;  %v934_v28 = vld [vmem:[%s1174_s1 + $0x30] ss:$12 sps:$4 sm:$0xff]  }
   0xf   : > { %v902_v2 = vld [vmem:[%s995_s18 + $0x78] sm:$0xff]   ;;  %v904_v4 = vld [vmem:[%s995_s18 + $0x70] sm:$0xff]   ;;  %v906_v6 = vld [vmem:[%s995_s18 + $0x68] sm:$0xff]   ;;  %s810_s13 = sshll.u32 %s1177_s10, 5  ;;  %vm694_vm2 = vcmask 519168  }
  0x10   : > { %v903_v3 = vld [vmem:[%s995_s18 + $0x38] sm:$0xff]   ;;  %819 = vmatprep.subr.bf16.mxu0 %v902_v2  ;;  %877 = vmatprep.subr.bf16.mxu1 %v902_v2  ;;  %v905_v5 = vld [vmem:[%s995_s18 + $0x30] sm:$0xff]   ;;  %v907_v7 = vld [vmem:[%s995_s18 + $0x28] sm:$0xff]   ;;  %s1140_s10 = scalar_lea.vmem %s1175_s2, %s810_s13 }
  0x11   : > { %820 = vmatpush3.bf16.msra.mxu0 %v903_v3  ;;  %885 = vmatpush3.bf16.msra.mxu1 %v903_v3  ;;  %v908_v8 = vld [vmem:[%s995_s18 + $0x60] sm:$0xff]   ;;  %v910_v10 = vld [vmem:[%s995_s18 + $0x58] sm:$0xff]   ;;  %v912_v12 = vld [vmem:[%s995_s18 + $0x50] sm:$0xff]  }
  0x12   : > { %821 = vmatprep.subr.bf16.mxu0 %v904_v4  ;;  %878 = vmatprep.subr.bf16.mxu1 %v904_v4  ;;  %v909_v9 = vld [vmem:[%s995_s18 + $0x20] sm:$0xff]   ;;  %v911_v11 = vld [vmem:[%s995_s18 + $0x18] sm:$0xff]   ;;  %v913_v13 = vld [vmem:[%s995_s18 + $0x10] sm:$0xff]  }
  0x13   : > { %v914_v14 = vld [vmem:[%s995_s18 + $0x48] sm:$0xff]   ;;  %v916_v16 = vld [vmem:[%s995_s18 + $0x40] sm:$0xff]   ;;  %v935_v29 = vld [vmem:[%s1174_s1 + $0x50] ss:$12 sps:$4 sm:$0xff]  }
  0x14   : > { %v915_v15 = vld [vmem:[%s995_s18 + $0x8] sm:$0xff]   ;;  %v917_v17 = vld [vmem:[%s995_s18] sm:$0xff]  }
  0x15   : > { %822 = vmatpush3.bf16.msra.mxu0 %v905_v5  ;;  %886 = vmatpush3.bf16.msra.mxu1 %v905_v5  ;;  %v924_v18 = vld [vmem:[%s995_s18 + $0x88] sm:$0xff]   ;;  %v925_v22 = vld [vmem:[%s995_s18 + $0x80] sm:$0xff]  }
  0x16   : > { %823 = vmatprep.subr.bf16.mxu0 %v906_v6  ;;  %879 = vmatprep.subr.bf16.mxu1 %v906_v6  ;;  %v931_v26 = vld [vmem:[%s1174_s1 + $0x34] ss:$12 sps:$4 sm:$0xff]  }
  0x19   : > { %824 = vmatpush3.bf16.msra.mxu0 %v907_v7  ;;  %887 = vmatpush3.bf16.msra.mxu1 %v907_v7 }
  0x1a   : > { %825 = vmatprep.subr.bf16.mxu0 %v908_v8  ;;  %880 = vmatprep.subr.bf16.mxu1 %v908_v8 }
  0x1d   : > { %826 = vmatpush3.bf16.msra.mxu0 %v909_v9  ;;  %888 = vmatpush3.bf16.msra.mxu1 %v909_v9 }
  0x1e   : > { %827 = vmatprep.subr.bf16.mxu0 %v910_v10  ;;  %881 = vmatprep.subr.bf16.mxu1 %v910_v10 }
  0x21   : > { %828 = vmatpush3.bf16.msra.mxu0 %v911_v11  ;;  %889 = vmatpush3.bf16.msra.mxu1 %v911_v11 }
  0x22   : > { %829 = vmatprep.subr.bf16.mxu0 %v912_v12  ;;  %882 = vmatprep.subr.bf16.mxu1 %v912_v12 }
  0x25   : > { %830 = vmatpush3.bf16.msra.mxu0 %v913_v13  ;;  %890 = vmatpush3.bf16.msra.mxu1 %v913_v13 }
  0x26   : > { %831 = vmatprep.subr.bf16.mxu0 %v914_v14  ;;  %883 = vmatprep.subr.bf16.mxu1 %v914_v14 }
  0x29   : > { %832 = vmatpush3.bf16.msra.mxu0 %v915_v15  ;;  %891 = vmatpush3.bf16.msra.mxu1 %v915_v15 }
  0x2a   : > { %833 = vmatprep.subr.bf16.mxu0 %v916_v16  ;;  %884 = vmatprep.subr.bf16.mxu1 %v916_v16 }
  0x2d   : > { %834 = vmatpush3.bf16.msra.mxu0 %v917_v17  ;;  %892 = vmatpush3.bf16.msra.mxu1 %v917_v17 }
  0x2e   : > { %865 = vmatprep.subr.bf16.mxu1 %v924_v18 }
  0x30   : > { %411 = vmatmul.mubr.bf16.vlgmr.msra.gmra.mxu0 %v918_v19  ;;  %435 = vmatmul.mubr.bf16.vlgmr.msra.gmra.mxu1 %v921_v20 }
  0x31   : > { %866 = vmatpush3.bf16.msra.mxu1 %v924_v18  ;;  %418 = vmatprep.mubr.bf16.mxu0 %v926_v21 }
  0x32   : > { %867 = vmatprep.subr.bf16.mxu1 %v925_v22  ;;  %869 = vmatprep.mubr.msk.bf16.mxu1 %vm365_vm0, %v928_v23 }
  0x35   : > { %868 = vmatpush3.bf16.msra.mxu1 %v925_v22 }
  0x38   : > { %419 = vmatmul.mubr.bf16.gmra.mxu0 %v929_v24  ;;  %870 = vmatmul.mubr.msk.bf16.vlgmr.msra.gmra.mxu1 %vm365_vm0, %v930_v25 }
  0x39   : > { %426 = vmatprep.mubr.bf16.mxu0 %v931_v26  ;;  %873 = vmatprep.mubr.msk.bf16.mxu1 %vm365_vm0, %v933_v27 }
  0x40   : > { %427 = vmatmul.mubr.bf16.gmra.mxu0 %v934_v28  ;;  %874 = vmatmul.mubr.msk.bf16.gmra.mxu1 %vm365_vm0, %v935_v29 }
  0xf0   : > { %v835_v30 = vpop.f32.mrf.mxu0  ;;  %v853_v31 = vpop.f32.mrf.mxu1 }
  0xf2   : > { %v836_v32 = vpop.f32.mrf.mxu0  ;;  %v854_v33 = vpop.f32.mrf.mxu1 }
  0xf3   : > { %v837_v40 = vadd.f32 %v836_v32, %v835_v30  ;;  %v855_v3 = vadd.f32 %v854_v33, %v853_v31 }
  0xf4   : > { %v838_v34 = vpop.f32.mrf.mxu0  ;;  %v856_v35 = vpop.f32.mrf.mxu1 }
  0xf6   : > { %v839_v36 = vpop.f32.mrf.mxu0  ;;  %v857_v37 = vpop.f32.mrf.mxu1 }
  0xf7   : > { %v840_v47 = vadd.f32 %v839_v36, %v838_v34  ;;  %v858_v8 = vadd.f32 %v857_v37, %v856_v35 }
  0xf8   : > { %v841_v38 = vpop.f32.mrf.mxu0  ;;  %v871_v39 = vpop.f32.mrf.mxu1 }
  0xfa   : > { %v842_v41 = vpop.f32.mrf.mxu0  ;;  %v477_v42 = vpop.f32.mrf.mxu1 }
  0xfb   : > { %v843_v43 = vadd.f32 %v842_v41, %v841_v38  ;;  %v1049_v44 = vadd.f32 %v837_v40, %v477_v42 }
  0xfc   : > { %v844_v45 = vpop.f32.mrf.mxu0  ;;  %v872_v46 = vpop.f32.mrf.mxu1 }
  0xfd   : > { %v1051_v48 = vadd.f32 %v871_v39, %v843_v43  ;;  %v509_v49 = vsel %vm508_vm1, %v1049_v44, 0.0  ;;  %v533_v50 = vmul.f32 %v1049_v44, %v1049_v44 }
  0xfe   : > { %v845_v51 = vpop.f32.mrf.mxu0  ;;  %v480_v52 = vpop.f32.mrf.mxu1  ;;  %510 = vadd.xlane.f32.xlu0 %v509_v49 }
  0xff   : > { %v846_v53 = vadd.f32 %v845_v51, %v844_v45  ;;  %v1057_v54 = vadd.f32 %v840_v47, %v480_v52  ;;  %v515_v55 = vsel %vm508_vm1, %v1051_v48, 0.0  ;;  %v541_v59 = vsel %vm508_vm1, %v533_v50, 0.0 }
 0x100   : > { %v847_v56 = vpop.f32.mrf.mxu0  ;;  %v875_v57 = vpop.f32.mrf.mxu1  ;;  %516 = vadd.xlane.f32.xlu1 %v515_v55  ;;  %v535_v2 = vmul.f32 %v1051_v48, %v1051_v48 }
 0x101   : > { %v1061_v58 = vadd.f32 %v872_v46, %v846_v53  ;;  %v534_v62 = vmul.f32 %v1057_v54, %v1057_v54  ;;  %v512_v1 = vsel %vm508_vm1, %v1057_v54, 0.0  ;;  %v1075_v9 = vadd.f32 %v875_v57, %v855_v3 }
 0x102   : > { %v848_v60 = vpop.f32.mrf.mxu0  ;;  %542 = vadd.xlane.f32.xlu0 %v541_v59  ;;  %v493_v63 = vpop.f32.mrf.mxu1  ;;  %v547_v11 = vsel %vm508_vm1, %v535_v2, 0.0 }
 0x103   : > { %v518_v61 = vsel %vm508_vm1, %v1061_v58, 0.0  ;;  %v544_v4 = vsel %vm508_vm1, %v534_v62, 0.0  ;;  %v536_v5 = vmul.f32 %v1061_v58, %v1061_v58  ;;  %v849_v10 = vadd.f32 %v848_v60, %v847_v56 }
 0x104   : > { %v850_v0 = vpop.f32.mrf.mxu0  ;;  %519 = vadd.xlane.f32.xlu1 %v518_v61  ;;  %v876_v6 = vpop.f32.mrf.mxu1  ;;  %v527_v17 = vsel %vm508_vm1, %v1075_v9, 0.0  ;;  %v539_v25 = vmul.f32 %v1075_v9, %v1075_v9 }
 0x105   : > { %v1078_v12 = vadd.f32 %v876_v6, %v858_v8  ;;  %v550_v14 = vsel %vm508_vm1, %v536_v5, 0.0  ;;  %v1081_v16 = vadd.f32 %v849_v10, %v493_v63 }
 0x106   : > { %513 = vadd.xlane.f32.xlu0 %v512_v1  ;;  %v851_v7 = vpop.f32.mrf.mxu0  ;;  %v496_v15 = vpop.f32.mrf.mxu1  ;;  %v559_v28 = vsel %vm508_vm1, %v539_v25, 0.0 }
 0x107   : > { %v852_v13 = vadd.f32 %v851_v7, %v850_v0  ;;  %v530_v19 = vsel %vm508_vm1, %v1078_v12, 0.0  ;;  %v521_v20 = vsel %vm508_vm1, %v1081_v16, 0.0  ;;  %v537_v21 = vmul.f32 %v1081_v16, %v1081_v16 }
 0x108   : > { %545 = vadd.xlane.f32.xlu1 %v544_v4  ;;  %v540_v27 = vmul.f32 %v1078_v12, %v1078_v12 }
 0x109   : > { %v1085_v18 = vadd.f32 %v852_v13, %v496_v15  ;;  %v553_v24 = vsel %vm508_vm1, %v537_v21, 0.0 }
 0x10a   : > { %548 = vadd.xlane.f32.xlu0 %v547_v11  ;;  %v562_v29 = vsel %vm508_vm1, %v540_v27, 0.0 }
 0x10b   : > { %v524_v22 = vsel %vm508_vm1, %v1085_v18, 0.0  ;;  %v538_v23 = vmul.f32 %v1085_v18, %v1085_v18 }
 0x10c   : > { %551 = vadd.xlane.f32.xlu1 %v550_v14 }
 0x10d   : > { %v556_v26 = vsel %vm508_vm1, %v538_v23, 0.0 }
 0x10e   : > { %528 = vadd.xlane.f32.xlu0 %v527_v17 }
 0x110   : > { %531 = vadd.xlane.f32.xlu1 %v530_v19 }
 0x112   : > { %522 = vadd.xlane.f32.xlu0 %v521_v20 }
 0x114   : > { %525 = vadd.xlane.f32.xlu1 %v524_v22 }
 0x116   : > { %554 = vadd.xlane.f32.xlu0 %v553_v24 }
 0x118   : > { %557 = vadd.xlane.f32.xlu1 %v556_v26 }
 0x11a   : > { %560 = vadd.xlane.f32.xlu0 %v559_v28 }
 0x11c   : > { %563 = vadd.xlane.f32.xlu1 %v562_v29 }
 0x187   : > { %v511_v30 = vpop.xlane.xlu0 %510 }
 0x188   : > { %v566_v31 = vmul.f32 0.015625, %v511_v30 }
 0x189   : > { %v517_v32 = vpop.xlane.xlu1 %516 }
 0x18a   : > { %v582_v34 = vmul.f32 %v566_v31, %v566_v31  ;;  %v1105_v39 = vmul.f32 0.015625, %v517_v32  ;;  %v606_v10 = vsub.f32 %v1049_v44, %v566_v31 }
 0x18b   : > { %v543_v33 = vpop.xlane.xlu0 %542 }
 0x18c   : > { %v574_v35 = vmul.f32 0.015625, %v543_v33  ;;  %v584_v50 = vmul.f32 %v1105_v39, %v1105_v39 }
 0x18d   : > { %v520_v36 = vpop.xlane.xlu1 %519 }
 0x18e   : > { %v590_v37 = vsub.f32 %v574_v35, %v582_v34  ;;  %v1109_v45 = vmul.f32 0.015625, %v520_v36 }
 0x18f   : > { %v514_v38 = vpop.xlane.xlu0 %513 }
 0x190   : > { %v598_v40 = vmax.f32 %v590_v37, 0.0  ;;  %v1107_v41 = vmul.f32 0.015625, %v514_v38  ;;  %v585_v55 = vmul.f32 %v1109_v45, %v1109_v45 }
 0x191   : > { %v546_v42 = vpop.xlane.xlu1 %545 }
 0x192   : > { %v614_v43 = vadd.f32 1e-05, %v598_v40  ;;  %v583_v46 = vmul.f32 %v1107_v41, %v1107_v41  ;;  %v575_v47 = vmul.f32 0.015625, %v546_v42  ;;  %v607_v27 = vsub.f32 %v1057_v54, %v1107_v41 }
 0x193   : > { %v549_v49 = vpop.xlane.xlu0 %548  ;;  %v608_v54 = vsub.f32 %v1051_v48, %v1105_v39 }
 0x194   : > { %936 = vrsqrt.f32 %v614_v43  ;;  %v591_v51 = vsub.f32 %v575_v47, %v583_v46  ;;  %v576_v52 = vmul.f32 0.015625, %v549_v49  ;;  %v609_v46 = vsub.f32 %v1061_v58, %v1109_v45 }
 0x195   : > { %v552_v53 = vpop.xlane.xlu1 %551 }
 0x196   : > { %v599_v56 = vmax.f32 %v591_v51, 0.0  ;;  %v592_v57 = vsub.f32 %v576_v52, %v584_v50  ;;  %v577_v59 = vmul.f32 0.015625, %v552_v53 }
 0x197   : > { %v529_v60 = vpop.xlane.xlu0 %528 }
 0x198   : > { %v615_v61 = vadd.f32 1e-05, %v599_v56  ;;  %v600_v62 = vmax.f32 %v592_v57, 0.0  ;;  %v593_v63 = vsub.f32 %v577_v59, %v585_v55  ;;  %v1124_v15 = vmul.f32 0.015625, %v529_v60 }
 0x199   : > { %v532_v0 = vpop.xlane.xlu1 %531 }
 0x19a   : > { %938 = vrsqrt.f32 %v615_v61  ;;  %v616_v1 = vadd.f32 1e-05, %v600_v62  ;;  %v601_v2 = vmax.f32 %v593_v63, 0.0  ;;  %v1126_v17 = vmul.f32 0.015625, %v532_v0 }
 0x19b   : > { %v523_v3 = vpop.xlane.xlu0 %522  ;;  %v588_v28 = vmul.f32 %v1124_v15, %v1124_v15 }
 0x19c   : > { %940 = vrsqrt.f32 %v616_v1  ;;  %v617_v4 = vadd.f32 1e-05, %v601_v2  ;;  %v1117_v5 = vmul.f32 0.015625, %v523_v3  ;;  %v589_v29 = vmul.f32 %v1126_v17, %v1126_v17 }
 0x19d   : > { %v526_v6 = vpop.xlane.xlu1 %525 }
 0x19e   : > { %942 = vrsqrt.f32 %v617_v4  ;;  %v1119_v7 = vmul.f32 0.015625, %v526_v6  ;;  %v586_v11 = vmul.f32 %v1117_v5, %v1117_v5  ;;  %v610_v62 = vsub.f32 %v1081_v16, %v1117_v5 }
 0x19f   : > { %v555_v8 = vpop.xlane.xlu0 %554  ;;  %v612_v6 = vsub.f32 %v1075_v9, %v1124_v15  ;;  %v613_v16 = vsub.f32 %v1078_v12, %v1126_v17 }
 0x1a0   : > { %v578_v13 = vmul.f32 0.015625, %v555_v8  ;;  %v587_v21 = vmul.f32 %v1119_v7, %v1119_v7  ;;  %v611_v0 = vsub.f32 %v1085_v18, %v1119_v7 }
 0x1a1   : > { %v937_v14 = vpop.eup %936  ;;  %v558_v19 = vpop.xlane.xlu1 %557 }
 0x1a2   : > { %v630_v20 = vmul.f32 %v937_v14, %v606_v10  ;;  %v594_v22 = vsub.f32 %v578_v13, %v586_v11  ;;  %v579_v23 = vmul.f32 0.015625, %v558_v19 }
 0x1a3   : > { %v561_v24 = vpop.xlane.xlu0 %560 }
 0x1a4   : > { %vm638_vm3 = vcmp.ge.f32.partialorder %v630_v20, 0.0  ;;  %v646_v44 = vmul.f32 0.2, %v630_v20  ;;  %v602_v25 = vmax.f32 %v594_v22, 0.0  ;;  %v595_v26 = vsub.f32 %v579_v23, %v587_v21 }
 0x1a5   : > { %v580_v30 = vmul.f32 0.015625, %v561_v24  ;;  %v564_v31 = vpop.xlane.xlu1 %563 }
 0x1a6   : > { %v654_v32 = vsel %vm638_vm3, %v630_v20, %v646_v44  ;;  %v618_v33 = vadd.f32 1e-05, %v602_v25  ;;  %v603_v34 = vmax.f32 %v595_v26, 0.0  ;;  %v581_v35 = vmul.f32 0.015625, %v564_v31 }
 0x1a7   : > { %v939_v36 = vpop.eup %938  ;;  %v811_v37 = vpack.c.bf16 %v654_v32, %v654_v32  ;;  %v596_v38 = vsub.f32 %v580_v30, %v588_v28 }
 0x1a8   : > { %v631_v40 = vmul.f32 %v939_v36, %v607_v27  ;;  %944 = vrsqrt.f32 %v618_v33  ;;  %v619_v41 = vadd.f32 1e-05, %v603_v34  ;;  %v597_v42 = vsub.f32 %v581_v35, %v589_v29 }
 0x1a9   : > { %v941_v43 = vpop.eup %940  ;;  %695 = vst.msk [vmem:[%s1140_s10] sm:$0xf] %vm694_vm2, %v811_v37  ;;  %v604_v47 = vmax.f32 %v596_v38, 0.0 }
 0x1aa   : > { %vm639_vm4 = vcmp.ge.f32.partialorder %v631_v40, 0.0  ;;  %v647_v49 = vmul.f32 0.2, %v631_v40  ;;  %v632_v50 = vmul.f32 %v941_v43, %v608_v54  ;;  %946 = vrsqrt.f32 %v619_v41 }
 0x1ab   : > { %v943_v51 = vpop.eup %942  ;;  %v620_v48 = vadd.f32 1e-05, %v604_v47  ;;  %v605_v39 = vmax.f32 %v597_v42, 0.0 }
 0x1ac   : > { %v655_v52 = vsel %vm639_vm4, %v631_v40, %v647_v49  ;;  %vm640_vm5 = vcmp.ge.f32.partialorder %v632_v50, 0.0  ;;  %v648_v53 = vmul.f32 0.2, %v632_v50  ;;  %v633_v55 = vmul.f32 %v943_v51, %v609_v46 }
 0x1ad   : > { %v812_v56 = vpack.c.bf16 %v655_v52, %v655_v52  ;;  %948 = vrsqrt.f32 %v620_v48  ;;  %v621_v57 = vadd.f32 1e-05, %v605_v39 }
 0x1ae   : > { %v656_v59 = vsel %vm640_vm5, %v632_v50, %v648_v53  ;;  %vm641_vm6 = vcmp.ge.f32.partialorder %v633_v55, 0.0  ;;  %v649_v58 = vmul.f32 0.2, %v633_v55 }
 0x1af   : > { %696 = vst.msk [vmem:[%s1140_s10 + $0x4] sm:$0xf] %vm694_vm2, %v812_v56  ;;  %v813_v45 = vpack.c.bf16 %v656_v59, %v656_v59  ;;  %950 = vrsqrt.f32 %v621_v57 }
 0x1b0   : > { %v657_v60 = vsel %vm641_vm6, %v633_v55, %v649_v58 }
 0x1b1   : > { %697 = vst.msk [vmem:[%s1140_s10 + $0x8] sm:$0xf] %vm694_vm2, %v813_v45  ;;  %v814_v61 = vpack.c.bf16 %v657_v60, %v657_v60 }
 0x1b3   : > { %698 = vst.msk [vmem:[%s1140_s10 + $0xc] sm:$0xf] %vm694_vm2, %v814_v61 }
 0x1b5   : > { %v945_v63 = vpop.eup %944 }
 0x1b6   : > { %v634_v1 = vmul.f32 %v945_v63, %v610_v62 }
 0x1b7   : > { %v947_v2 = vpop.eup %946 }
 0x1b8   : > { %vm642_vm7 = vcmp.ge.f32.partialorder %v634_v1, 0.0  ;;  %v650_v3 = vmul.f32 0.2, %v634_v1  ;;  %v635_v4 = vmul.f32 %v947_v2, %v611_v0 }
 0x1ba   : > { %v949_v8 = vpop.eup %948  ;;  %v658_v10 = vsel %vm642_vm7, %v634_v1, %v650_v3  ;;  %vm643_vm8 = vcmp.ge.f32.partialorder %v635_v4, 0.0  ;;  %v651_v11 = vmul.f32 0.2, %v635_v4 }
 0x1bb   : > { %v815_v5 = vpack.c.bf16 %v658_v10, %v658_v10  ;;  %v636_v18 = vmul.f32 %v949_v8, %v612_v6 }
 0x1bc   : > { %v951_v7 = vpop.eup %950  ;;  %v659_v13 = vsel %vm643_vm8, %v635_v4, %v651_v11 }
 0x1bd   : > { %699 = vst.msk [vmem:[%s1140_s10 + $0x10] sm:$0xf] %vm694_vm2, %v815_v5  ;;  %v816_v14 = vpack.c.bf16 %v659_v13, %v659_v13  ;;  %vm644_vm9 = vcmp.ge.f32.partialorder %v636_v18, 0.0  ;;  %v652_v19 = vmul.f32 0.2, %v636_v18  ;;  %v637_v20 = vmul.f32 %v951_v7, %v613_v16 }
 0x1bf   : > { %700 = vst.msk [vmem:[%s1140_s10 + $0x14] sm:$0xf] %vm694_vm2, %v816_v14  ;;  %v660_v9 = vsel %vm644_vm9, %v636_v18, %v652_v19  ;;  %vm645_vm10 = vcmp.ge.f32.partialorder %v637_v20, 0.0  ;;  %v653_v15 = vmul.f32 0.2, %v637_v20 }
 0x1c0   : > { %v817_v21 = vpack.c.bf16 %v660_v9, %v660_v9 }
 0x1c1   : > { %v661_v22 = vsel %vm645_vm10, %v637_v20, %v653_v15 }
 0x1c2   : > { %701 = vst.msk [vmem:[%s1140_s10 + $0x18] sm:$0xf] %vm694_vm2, %v817_v21  ;;  %v818_v12 = vpack.c.bf16 %v661_v22, %v661_v22 }
 0x1c4   : > { %702 = vst.msk [vmem:[%s1140_s10 + $0x1c] sm:$0xf] %vm694_vm2, %v818_v12 }
 0x1c5 PF: > { %s12_s9 = sadd.s32 1, %s958_s9  }
 0x1c6   : > { %p9_p4 = scmp.ge.s32.totalorder %s12_s9, 4  }
 0x1c8   :  { %11 = sbr.rel (!%p9_p4) target bundleno = 1 (0x1), region = 58 }

// kernel: zencoder_forward.7
= control target key start
LH: loop header
LB: loop body
LE: loop exit
PB: predicated region body
PF: predicated region fallthrough
CT: control target
= control target key end

     0   :  { %s1894_s9 = smov 0   ;;  %s2404_s0 = inlined_call_operand.vmem [shape: bf16[2,576,16], index: 0, kind: input, shape index: {}]   ;;  %s2405_s1 = inlined_call_operand.vmem [shape: bf16[128,576], index: 1, kind: input, shape index: {}]   ;;  %s2406_s2 = inlined_call_operand.vmem [shape: bf16[2,128,16], index: 2, kind: output, shape index: {}]  }
   0x1 LB: > { %s1439_s10 = sadd.s32 4294967295, %s1877_s9   ;;  %p1443_p0 = scmp.ge.s32.totalorder %s1877_s9, 1  ;;  %s1877_s9 = sphi %s1894_s9, %s12_s9  }
   0x2   : > { %p112_p1 = scmp.lt.s32.totalorder %s1877_s9, 3 }
   0x4   : > { %p113_p2 = pnand %p1443_p0, %p112_p1 }
   0x5   : > { %p134_p3 = scmp.lt.s32.totalorder (!%p113_p2), %s1439_s10, 1 }
   0x6   : > { %116 = sbr.rel (%p113_p2) target bundleno = 539 (0x21b), region = 28 }
   0xb   : > { %v1781_v0 = vld [vmem:[%s2405_s1 + $0x4] ss:$20 sps:$4 sm:$0xff]   ;;  %s2408_s10 = smov (!%p134_p3, %s1439_s10), 1  ;;  %v1784_v1 = vld [vmem:[%s2405_s1 + $0xc] ss:$20 sps:$4 sm:$0xff]   ;;  %vm681_vm0 = vcmask 523264  }
   0xc   : > { %738 = vmatprep.mubr.bf16.mxu0 %v1781_v0  ;;  %s1738_s15 = smul.u32 288, %s2408_s10  ;;  %835 = vmatprep.mubr.bf16.mxu1 %v1784_v1  ;;  %v1779_v32 = vld [vmem:[%s2405_s1] ss:$20 sps:$4 sm:$0xff]   ;;  %v1782_v34 = vld [vmem:[%s2405_s1 + $0x8] ss:$20 sps:$4 sm:$0xff]   ;;  %vm997_vm1 = vcmask 130048  }
   0xd   : > { %v1786_v37 = vld [vmem:[%s2405_s1 + $0x2c] ss:$20 sps:$4 sm:$0xff]   ;;  %v1788_v38 = vld [vmem:[%s2405_s1 + $0x34] ss:$20 sps:$4 sm:$0xff]   ;;  %v1791_v41 = vld [vmem:[%s2405_s1 + $0x30] ss:$20 sps:$4 sm:$0xff]  }
   0xe   : > { %s1914_s18 = scalar_lea.vmem %s2404_s0, %s1738_s15  ;;  %v1790_v40 = vld [vmem:[%s2405_s1 + $0x28] ss:$20 sps:$4 sm:$0xff]   ;;  %v1796_v45 = vld [vmem:[%s2405_s1 + $0x50] ss:$20 sps:$4 sm:$0xff]   ;;  %v1797_v46 = vld [vmem:[%s2405_s1 + $0x58] ss:$20 sps:$4 sm:$0xff]  }
   0xf   : > { %v1747_v2 = vld [vmem:[%s1914_s18 + $0x78] sm:$0xff]   ;;  %v1751_v6 = vld [vmem:[%s1914_s18 + $0x70] sm:$0xff]   ;;  %v1755_v10 = vld [vmem:[%s1914_s18 + $0x68] sm:$0xff]   ;;  %s1549_s17 = sshll.u32 %s2408_s10, 6  ;;  %vm1367_vm3 = vcmask 125952  }
  0x10   : > { %v1748_v3 = vld [vmem:[%s1914_s18 + $0xf8] sm:$0xff]   ;;  %1566 = vmatprep.subr.bf16.mxu0 %v1747_v2  ;;  %v1752_v7 = vld [vmem:[%s1914_s18 + $0xf0] sm:$0xff]   ;;  %v1756_v11 = vld [vmem:[%s1914_s18 + $0xe8] sm:$0xff]   ;;  %s2309_s20 = scalar_lea.vmem %s2406_s2, %s1549_s17 }
  0x11   : > { %v1749_v4 = vld [vmem:[%s1914_s18 + $0x38] sm:$0xff]   ;;  %1630 = vmatprep.subr.bf16.mxu1 %v1748_v3  ;;  %v1753_v8 = vld [vmem:[%s1914_s18 + $0x30] sm:$0xff]   ;;  %v1757_v12 = vld [vmem:[%s1914_s18 + $0x28] sm:$0xff]  }
  0x12   : > { %v1750_v5 = vld [vmem:[%s1914_s18 + $0xb8] sm:$0xff]   ;;  %1567 = vmatpush3.bf16.msra.mxu0 %v1749_v4  ;;  %v1754_v9 = vld [vmem:[%s1914_s18 + $0xb0] sm:$0xff]   ;;  %v1758_v13 = vld [vmem:[%s1914_s18 + $0xa8] sm:$0xff]  }
  0x13   : > { %1631 = vmatpush3.bf16.msra.mxu1 %v1750_v5  ;;  %1568 = vmatprep.subr.bf16.mxu0 %v1751_v6  ;;  %v1759_v14 = vld [vmem:[%s1914_s18 + $0x60] sm:$0xff]   ;;  %v1763_v18 = vld [vmem:[%s1914_s18 + $0x58] sm:$0xff]   ;;  %v1767_v22 = vld [vmem:[%s1914_s18 + $0x50] sm:$0xff]  }
  0x14   : > { %1632 = vmatprep.subr.bf16.mxu1 %v1752_v7  ;;  %v1760_v15 = vld [vmem:[%s1914_s18 + $0xe0] sm:$0xff]   ;;  %v1764_v19 = vld [vmem:[%s1914_s18 + $0xd8] sm:$0xff]   ;;  %v1768_v23 = vld [vmem:[%s1914_s18 + $0xd0] sm:$0xff]  }
  0x15   : > { %v1761_v16 = vld [vmem:[%s1914_s18 + $0x20] sm:$0xff]   ;;  %v1765_v20 = vld [vmem:[%s1914_s18 + $0x18] sm:$0xff]   ;;  %v1769_v24 = vld [vmem:[%s1914_s18 + $0x10] sm:$0xff]  }
  0x16   : > { %1569 = vmatpush3.bf16.msra.mxu0 %v1753_v8  ;;  %v1762_v17 = vld [vmem:[%s1914_s18 + $0xa0] sm:$0xff]   ;;  %v1766_v21 = vld [vmem:[%s1914_s18 + $0x98] sm:$0xff]   ;;  %v1770_v25 = vld [vmem:[%s1914_s18 + $0x90] sm:$0xff]  }
  0x17   : > { %1633 = vmatpush3.bf16.msra.mxu1 %v1754_v9  ;;  %1570 = vmatprep.subr.bf16.mxu0 %v1755_v10  ;;  %v1771_v26 = vld [vmem:[%s1914_s18 + $0x48] sm:$0xff]   ;;  %v1775_v30 = vld [vmem:[%s1914_s18 + $0x40] sm:$0xff]   ;;  %v1785_v36 = vld [vmem:[%s1914_s18 + $0x118] sm:$0xff]  }
  0x18   : > { %1634 = vmatprep.subr.bf16.mxu1 %v1756_v11  ;;  %v1772_v27 = vld [vmem:[%s1914_s18 + $0xc8] sm:$0xff]   ;;  %v1776_v31 = vld [vmem:[%s1914_s18 + $0xc0] sm:$0xff]   ;;  %v1798_v39 = vld [vmem:[%s1914_s18 + $0x110] sm:$0xff]  }
  0x19   : > { %v1773_v28 = vld [vmem:[%s1914_s18 + $0x8] sm:$0xff]   ;;  %v1777_v33 = vld [vmem:[%s1914_s18] sm:$0xff]   ;;  %v1794_v43 = vld [vmem:[%s2405_s1 + $0x5c] ss:$20 sps:$4 sm:$0xff]  }
  0x1a   : > { %1571 = vmatpush3.bf16.msra.mxu0 %v1757_v12  ;;  %v1774_v29 = vld [vmem:[%s1914_s18 + $0x88] sm:$0xff]   ;;  %v1778_v35 = vld [vmem:[%s1914_s18 + $0x80] sm:$0xff]   ;;  %v1799_v48 = vld [vmem:[%s2405_s1 + $0x7c] ss:$20 sps:$4 sm:$0xff]  }
  0x1b   : > { %1635 = vmatpush3.bf16.msra.mxu1 %v1758_v13  ;;  %1572 = vmatprep.subr.bf16.mxu0 %v1759_v14  ;;  %v1792_v42 = vld [vmem:[%s2405_s1 + $0x54] ss:$20 sps:$4 sm:$0xff]   ;;  %v1824_v47 = vld [vmem:[%s1914_s18 + $0x100] sm:$0xff]   ;;  %v1803_v50 = vld [vmem:[%s2405_s1 + $0x78] ss:$20 sps:$4 sm:$0xff]  }
  0x1c   : > { %1636 = vmatprep.subr.bf16.mxu1 %v1760_v15  ;;  %v1811_v44 = vld [vmem:[%s1914_s18 + $0x108] sm:$0xff]   ;;  %v1801_v49 = vld [vmem:[%s2405_s1 + $0x84] ss:$20 sps:$4 sm:$0xff]   ;;  %v1804_v51 = vld [vmem:[%s2405_s1 + $0x80] ss:$20 sps:$4 sm:$0xff]  }
  0x1d   : > { %v1805_v52 = vld [vmem:[%s2405_s1 + $0xa4] ss:$20 sps:$4 sm:$0xff]   ;;  %v1807_v53 = vld [vmem:[%s2405_s1 + $0xac] ss:$20 sps:$4 sm:$0xff]   ;;  %v1810_v55 = vld [vmem:[%s2405_s1 + $0xa8] ss:$20 sps:$4 sm:$0xff]  }
  0x1e   : > { %1573 = vmatpush3.bf16.msra.mxu0 %v1761_v16  ;;  %v1809_v54 = vld [vmem:[%s2405_s1 + $0xa0] ss:$20 sps:$4 sm:$0xff]   ;;  %v1816_v58 = vld [vmem:[%s2405_s1 + $0xc8] ss:$20 sps:$4 sm:$0xff]   ;;  %v1817_v59 = vld [vmem:[%s2405_s1 + $0xd0] ss:$20 sps:$4 sm:$0xff]  }
  0x1f   : > { %1637 = vmatpush3.bf16.msra.mxu1 %v1762_v17  ;;  %1574 = vmatprep.subr.bf16.mxu0 %v1763_v18  ;;  %v1812_v56 = vld [vmem:[%s2405_s1 + $0xcc] ss:$20 sps:$4 sm:$0xff]   ;;  %v1814_v57 = vld [vmem:[%s2405_s1 + $0xd4] ss:$20 sps:$4 sm:$0xff]   ;;  %v1820_v61 = vld [vmem:[%s2405_s1 + $0xfc] ss:$20 sps:$4 sm:$0xff]  }
  0x20   : > { %1638 = vmatprep.subr.bf16.mxu1 %v1764_v19  ;;  %v1818_v60 = vld [vmem:[%s2405_s1 + $0xf4] ss:$20 sps:$4 sm:$0xff]   ;;  %v1822_v62 = vld [vmem:[%s2405_s1 + $0xf0] ss:$20 sps:$4 sm:$0xff]   ;;  %v1823_v63 = vld [vmem:[%s2405_s1 + $0xf8] ss:$20 sps:$4 sm:$0xff]  }
  0x21   : > { %v1825_v0 = vld [vmem:[%s2405_s1 + $0x11c] ss:$20 sps:$4 sm:$0xff]   ;;  %v1827_v1 = vld [vmem:[%s2405_s1 + $0x124] ss:$20 sps:$4 sm:$0xff]   ;;  %v1830_v3 = vld [vmem:[%s2405_s1 + $0x120] ss:$20 sps:$4 sm:$0xff]  }
  0x22   : > { %1575 = vmatpush3.bf16.msra.mxu0 %v1765_v20  ;;  %v1829_v2 = vld [vmem:[%s2405_s1 + $0x118] ss:$20 sps:$4 sm:$0xff]   ;;  %v1831_v4 = vld [vmem:[%s2405_s1 + $0x10] ss:$20 sps:$4 sm:$0xff]   ;;  %v1835_v8 = vld [vmem:[%s2405_s1 + $0x60] ss:$20 sps:$4 sm:$0xff]  }
  0x23   : > { %1639 = vmatpush3.bf16.msra.mxu1 %v1766_v21  ;;  %1576 = vmatprep.subr.bf16.mxu0 %v1767_v22  ;;  %v1832_v5 = vld [vmem:[%s2405_s1 + $0xb0] ss:$20 sps:$4 sm:$0xff]   ;;  %v1833_v6 = vld [vmem:[%s2405_s1 + $0x38] ss:$20 sps:$4 sm:$0xff]   ;;  %v1836_v9 = vld [vmem:[%s2405_s1 + $0x100] ss:$20 sps:$4 sm:$0xff]  }
  0x24   : > { %1640 = vmatprep.subr.bf16.mxu1 %v1768_v23  ;;  %v1834_v7 = vld [vmem:[%s2405_s1 + $0xd8] ss:$20 sps:$4 sm:$0xff]   ;;  %v1837_v10 = vld [vmem:[%s2405_s1 + $0x88] ss:$20 sps:$4 sm:$0xff]  }
  0x25   : > { %v1838_v11 = vld [vmem:[%s2405_s1 + $0x128] ss:$20 sps:$4 sm:$0xff]  }
  0x26   : > { %1577 = vmatpush3.bf16.msra.mxu0 %v1769_v24 }
  0x27   : > { %1641 = vmatpush3.bf16.msra.mxu1 %v1770_v25  ;;  %1578 = vmatprep.subr.bf16.mxu0 %v1771_v26 }
  0x28   : > { %1642 = vmatprep.subr.bf16.mxu1 %v1772_v27 }
  0x2a   : > { %1579 = vmatpush3.bf16.msra.mxu0 %v1773_v28 }
  0x2b   : > { %1643 = vmatpush3.bf16.msra.mxu1 %v1774_v29  ;;  %1580 = vmatprep.subr.bf16.mxu0 %v1775_v30 }
  0x2c   : > { %1644 = vmatprep.subr.bf16.mxu1 %v1776_v31 }
  0x2e   : > { %1581 = vmatpush3.bf16.msra.mxu0 %v1777_v33 }
  0x2f   : > { %1645 = vmatpush3.bf16.msra.mxu1 %v1778_v35  ;;  %1706 = vmatprep.subr.bf16.mxu0 %v1785_v36 }
  0x30   : > { %1730 = vmatprep.subr.bf16.mxu1 %v1785_v36 }
  0x31   : > { %739 = vmatmul.mubr.bf16.vlgmr.msra.gmra.mxu0 %v1779_v32 }
  0x32   : > { %836 = vmatmul.mubr.bf16.vlgmr.msra.gmra.mxu1 %v1782_v34  ;;  %1707 = vmatpush3.bf16.msra.mxu0 %v1785_v36 }
  0x33   : > { %1734 = vmatpush3.bf16.msra.mxu1 %v1785_v36  ;;  %746 = vmatprep.mubr.bf16.mxu0 %v1786_v37 }
  0x34   : > { %843 = vmatprep.mubr.bf16.mxu1 %v1788_v38  ;;  %1708 = vmatprep.subr.bf16.mxu0 %v1798_v39 }
  0x35   : > { %1731 = vmatprep.subr.bf16.mxu1 %v1798_v39 }
  0x36   : > { %1709 = vmatpush3.bf16.msra.mxu0 %v1798_v39 }
  0x37   : > { %1735 = vmatpush3.bf16.msra.mxu1 %v1798_v39  ;;  %1710 = vmatprep.subr.bf16.mxu0 %v1811_v44 }
  0x38   : > { %1732 = vmatprep.subr.bf16.mxu1 %v1811_v44 }
  0x39   : > { %747 = vmatmul.mubr.bf16.gmra.mxu0 %v1790_v40 }
  0x3a   : > { %844 = vmatmul.mubr.bf16.gmra.mxu1 %v1791_v41  ;;  %754 = vmatprep.mubr.bf16.mxu0 %v1792_v42 }
  0x3b   : > { %851 = vmatprep.mubr.bf16.mxu1 %v1794_v43  ;;  %1711 = vmatpush3.bf16.msra.mxu0 %v1811_v44 }
  0x3c   : > { %1736 = vmatpush3.bf16.msra.mxu1 %v1811_v44  ;;  %1712 = vmatprep.subr.bf16.mxu0 %v1824_v47 }
  0x3d   : > { %1733 = vmatprep.subr.bf16.mxu1 %v1824_v47 }
  0x3f   : > { %1713 = vmatpush3.bf16.msra.mxu0 %v1824_v47 }
  0x40   : > { %1737 = vmatpush3.bf16.msra.mxu1 %v1824_v47 }
  0x41   : > { %755 = vmatmul.mubr.bf16.gmra.mxu0 %v1796_v45 }
  0x42   : > { %852 = vmatmul.mubr.bf16.gmra.mxu1 %v1797_v46  ;;  %762 = vmatprep.mubr.bf16.mxu0 %v1799_v48 }
  0x43   : > { %859 = vmatprep.mubr.bf16.mxu1 %v1801_v49 }
  0x49   : > { %763 = vmatmul.mubr.bf16.gmra.mxu0 %v1803_v50 }
  0x4a   : > { %860 = vmatmul.mubr.bf16.gmra.mxu1 %v1804_v51  ;;  %770 = vmatprep.mubr.bf16.mxu0 %v1805_v52 }
  0x4b   : > { %867 = vmatprep.mubr.bf16.mxu1 %v1807_v53 }
  0x51   : > { %771 = vmatmul.mubr.bf16.gmra.mxu0 %v1809_v54 }
  0x52   : > { %868 = vmatmul.mubr.bf16.gmra.mxu1 %v1810_v55  ;;  %778 = vmatprep.mubr.bf16.mxu0 %v1812_v56 }
  0x53   : > { %875 = vmatprep.mubr.bf16.mxu1 %v1814_v57 }
  0x59   : > { %779 = vmatmul.mubr.bf16.gmra.mxu0 %v1816_v58 }
  0x5a   : > { %876 = vmatmul.mubr.bf16.gmra.mxu1 %v1817_v59  ;;  %786 = vmatprep.mubr.bf16.mxu0 %v1818_v60 }
  0x5b   : > { %883 = vmatprep.mubr.bf16.mxu1 %v1820_v61 }
  0x61   : > { %787 = vmatmul.mubr.bf16.gmra.mxu0 %v1822_v62 }
  0x62   : > { %884 = vmatmul.mubr.bf16.gmra.mxu1 %v1823_v63  ;;  %794 = vmatprep.mubr.bf16.mxu0 %v1825_v0 }
  0x63   : > { %891 = vmatprep.mubr.bf16.mxu1 %v1827_v1 }
  0x69   : > { %795 = vmatmul.mubr.bf16.gmra.mxu0 %v1829_v2 }
  0x6a   : > { %892 = vmatmul.mubr.bf16.gmra.mxu1 %v1830_v3  ;;  %1714 = vmatprep.mubr.msk.bf16.mxu0 %vm681_vm0, %v1831_v4 }
  0x6b   : > { %1722 = vmatprep.mubr.msk.bf16.mxu1 %vm681_vm0, %v1832_v5 }
  0x71   : > { %1715 = vmatmul.mubr.msk.bf16.vlgmr.msra.gmra.mxu0 %vm681_vm0, %v1833_v6 }
  0x72   : > { %1723 = vmatmul.mubr.msk.bf16.vlgmr.msra.gmra.mxu1 %vm681_vm0, %v1834_v7  ;;  %1718 = vmatprep.mubr.msk.bf16.mxu0 %vm681_vm0, %v1835_v8 }
  0x73   : > { %1726 = vmatprep.mubr.msk.bf16.mxu1 %vm681_vm0, %v1836_v9 }
  0x79   : > { %1719 = vmatmul.mubr.msk.bf16.gmra.mxu0 %vm681_vm0, %v1837_v10 }
  0x7a   : > { %1727 = vmatmul.mubr.msk.bf16.gmra.mxu1 %vm681_vm0, %v1838_v11 }
  0xf1   : > { %v1582_v12 = vpop.f32.mrf.mxu0 }
  0xf2   : > { %v1646_v13 = vpop.f32.mrf.mxu1 }
  0xf3   : > { %v1583_v14 = vpop.f32.mrf.mxu0 }
  0xf4   : > { %v1584_v15 = vadd.f32 %v1583_v14, %v1582_v12  ;;  %v1647_v16 = vpop.f32.mrf.mxu1 }
  0xf5   : > { %v1648_v17 = vadd.f32 %v1647_v16, %v1646_v13  ;;  %v1585_v18 = vpop.f32.mrf.mxu0 }
  0xf6   : > { %v1649_v19 = vpop.f32.mrf.mxu1 }
  0xf7   : > { %v1586_v20 = vpop.f32.mrf.mxu0  ;;  %v2074_v21 = vadd.f32 %v1648_v17, %v1584_v15 }
  0xf8   : > { %v1587_v22 = vadd.f32 %v1586_v20, %v1585_v18  ;;  %v1650_v23 = vpop.f32.mrf.mxu1 }
  0xf9   : > { %v1651_v24 = vadd.f32 %v1650_v23, %v1649_v19  ;;  %v1588_v25 = vpop.f32.mrf.mxu0 }
  0xfa   : > { %v1652_v26 = vpop.f32.mrf.mxu1 }
  0xfb   : > { %v1589_v27 = vpop.f32.mrf.mxu0  ;;  %v2076_v28 = vadd.f32 %v1651_v24, %v1587_v22 }
  0xfc   : > { %v1653_v29 = vpop.f32.mrf.mxu1  ;;  %v1590_v23 = vadd.f32 %v1589_v27, %v1588_v25 }
  0xfd   : > { %v2078_v30 = vpop.f32.mrf.mxu0  ;;  %v1654_v24 = vadd.f32 %v1653_v29, %v1652_v26 }
  0xfe   : > { %v2080_v31 = vpop.f32.mrf.mxu1 }
  0xff   : > { %v1592_v32 = vpop.f32.mrf.mxu0 }
 0x100   : > { %v1656_v33 = vpop.f32.mrf.mxu1 }
 0x101   : > { %v1594_v34 = vpop.f32.mrf.mxu0 }
 0x102   : > { %v1658_v35 = vpop.f32.mrf.mxu1 }
 0x103   : > { %v1595_v36 = vpop.f32.mrf.mxu0 }
 0x104   : > { %v1596_v37 = vadd.f32 %v1595_v36, %v1594_v34  ;;  %v1659_v38 = vpop.f32.mrf.mxu1 }
 0x105   : > { %v1660_v39 = vadd.f32 %v1659_v38, %v1658_v35  ;;  %v1597_v40 = vpop.f32.mrf.mxu0 }
 0x106   : > { %v1661_v41 = vpop.f32.mrf.mxu1 }
 0x107   : > { %v1598_v42 = vpop.f32.mrf.mxu0  ;;  %v2082_v43 = vadd.f32 %v1660_v39, %v1596_v37 }
 0x108   : > { %v1599_v44 = vadd.f32 %v1598_v42, %v1597_v40  ;;  %v1662_v45 = vpop.f32.mrf.mxu1  ;;  %v1593_v40 = vadd.f32 %v1592_v32, %v2078_v30 }
 0x109   : > { %v1663_v46 = vadd.f32 %v1662_v45, %v1661_v41  ;;  %v1600_v47 = vpop.f32.mrf.mxu0  ;;  %v1657_v41 = vadd.f32 %v1656_v33, %v2080_v31 }
 0x10a   : > { %v1664_v48 = vpop.f32.mrf.mxu1 }
 0x10b   : > { %v1601_v49 = vpop.f32.mrf.mxu0  ;;  %v2084_v50 = vadd.f32 %v1663_v46, %v1599_v44  ;;  %v846_v44 = vadd.f32 %v1654_v24, %v1590_v23  ;;  %v849_v30 = vadd.f32 %v1657_v41, %v1593_v40 }
 0x10c   : > { %v1602_v51 = vadd.f32 %v1601_v49, %v1600_v47  ;;  %v1665_v52 = vpop.f32.mrf.mxu1 }
 0x10d   : > { %v1666_v53 = vadd.f32 %v1665_v52, %v1664_v48  ;;  %v2086_v54 = vpop.f32.mrf.mxu0 }
 0x10e   : > { %v2088_v55 = vpop.f32.mrf.mxu1 }
 0x10f   : > { %v2090_v56 = vpop.f32.mrf.mxu0  ;;  %v2092_v57 = vadd.f32 %v1666_v53, %v1602_v51 }
 0x110   : > { %v2094_v58 = vpop.f32.mrf.mxu1 }
 0x111   : > { %v1606_v59 = vpop.f32.mrf.mxu0 }
 0x112   : > { %v1670_v60 = vpop.f32.mrf.mxu1 }
 0x113   : > { %v1607_v61 = vpop.f32.mrf.mxu0 }
 0x114   : > { %v1671_v62 = vpop.f32.mrf.mxu1  ;;  %v1608_v47 = vadd.f32 %v1607_v61, %v1606_v59 }
 0x115   : > { %v1609_v63 = vpop.f32.mrf.mxu0  ;;  %v1672_v48 = vadd.f32 %v1671_v62, %v1670_v60 }
 0x116   : > { %v1673_v0 = vpop.f32.mrf.mxu1 }
 0x117   : > { %v1610_v1 = vpop.f32.mrf.mxu0  ;;  %v870_v62 = vadd.f32 %v1672_v48, %v1608_v47 }
 0x118   : > { %v1674_v2 = vpop.f32.mrf.mxu1 }
 0x119   : > { %v1612_v3 = vpop.f32.mrf.mxu0 }
 0x11a   : > { %v1676_v4 = vpop.f32.mrf.mxu1 }
 0x11b   : > { %v1613_v5 = vpop.f32.mrf.mxu0 }
 0x11c   : > { %v1677_v6 = vpop.f32.mrf.mxu1  ;;  %v1614_v35 = vadd.f32 %v1613_v5, %v1612_v3  ;;  %v1611_v3 = vadd.f32 %v1610_v1, %v1609_v63 }
 0x11d   : > { %v1615_v7 = vpop.f32.mrf.mxu0  ;;  %v1678_v36 = vadd.f32 %v1677_v6, %v1676_v4  ;;  %v1675_v4 = vadd.f32 %v1674_v2, %v1673_v0 }
 0x11e   : > { %v1679_v8 = vpop.f32.mrf.mxu1 }
 0x11f   : > { %v1616_v9 = vpop.f32.mrf.mxu0  ;;  %v878_v25 = vadd.f32 %v1678_v36, %v1614_v35  ;;  %v873_v63 = vadd.f32 %v1675_v4, %v1611_v3 }
 0x120   : > { %v1680_v10 = vpop.f32.mrf.mxu1  ;;  %v1617_v26 = vadd.f32 %v1616_v9, %v1615_v7 }
 0x121   : > { %v2096_v11 = vpop.f32.mrf.mxu0  ;;  %v1681_v27 = vadd.f32 %v1680_v10, %v1679_v8 }
 0x122   : > { %v2098_v12 = vpop.f32.mrf.mxu1 }
 0x123   : > { %v2100_v13 = vpop.f32.mrf.mxu0  ;;  %v881_v60 = vadd.f32 %v1681_v27, %v1617_v26 }
 0x124   : > { %v2102_v14 = vpop.f32.mrf.mxu1 }
 0x125   : > { %v2104_v15 = vpop.f32.mrf.mxu0 }
 0x126   : > { %v2106_v16 = vpop.f32.mrf.mxu1 }
 0x127   : > { %v2108_v17 = vpop.f32.mrf.mxu0 }
 0x128   : > { %v2110_v18 = vpop.f32.mrf.mxu1 }
 0x129   : > { %v2112_v19 = vpop.f32.mrf.mxu0 }
 0x12a   : > { %v2114_v20 = vpop.f32.mrf.mxu1 }
 0x12b   : > { %v2116_v22 = vpop.f32.mrf.mxu0 }
 0x12c   : > { %v2118_v34 = vpop.f32.mrf.mxu1 }
 0x12d   : > { %v2120_v37 = vpop.f32.mrf.mxu0 }
 0x12e   : > { %v2122_v38 = vpop.f32.mrf.mxu1 }
 0x12f   : > { %v2124_v39 = vpop.f32.mrf.mxu0 }
 0x130   : > { %v2128_v42 = vpop.f32.mrf.mxu1 }
 0x131   : > { %v1716_v45 = vpop.f32.mrf.mxu0 }
 0x132   : > { %v2130_v29 = vadd.f32 %v1716_v45, %v846_v44  ;;  %v1724_v46 = vpop.f32.mrf.mxu1 }
 0x133   : > { %v2132_v49 = vadd.f32 %v1724_v46, %v878_v25  ;;  %v934_v51 = vpop.f32.mrf.mxu0 }
 0x134   : > { %v966_v52 = vpop.f32.mrf.mxu1  ;;  %v1004_v31 = vsel %vm997_vm1, %v2130_v29, 0.0  ;;  %v2137_v32 = vadd.f32 %v934_v51, %v2074_v21  ;;  %v1048_v9 = vmul.f32 %v2130_v29, %v2130_v29 }
 0x135   : > { %v1717_v33 = vpop.f32.mrf.mxu0  ;;  %v1028_v53 = vsel %vm997_vm1, %v2132_v49, 0.0  ;;  %1005 = vadd.xlane.f32.xlu1 %v1004_v31  ;;  %v2147_v21 = vadd.f32 %v966_v52, %v870_v62  ;;  %v1056_v36 = vmul.f32 %v2132_v49, %v2132_v49  ;;  %v1605_v52 = vadd.f32 %v2090_v56, %v2086_v54 }
 0x136   : > { %v2141_v59 = vadd.f32 %v1717_v33, %v849_v30  ;;  %v1725_v61 = vpop.f32.mrf.mxu1  ;;  %1029 = vadd.xlane.f32.xlu0 %v1028_v53  ;;  %v998_v8 = vsel %vm997_vm1, %v2137_v32, 0.0  ;;  %v1068_v35 = vsel %vm997_vm1, %v1048_v9, 0.0  ;;  %v1046_v26 = vmul.f32 %v2137_v32, %v2137_v32 }
 0x137   : > { %v2143_v5 = vadd.f32 %v1725_v61, %v881_v60  ;;  %v1022_v2 = vsel %vm997_vm1, %v2147_v21, 0.0  ;;  %v937_v24 = vpop.f32.mrf.mxu0  ;;  %v1092_v25 = vsel %vm997_vm1, %v1056_v36, 0.0  ;;  %v1054_v51 = vmul.f32 %v2147_v21, %v2147_v21 }
 0x138   : > { %v1007_v6 = vsel %vm997_vm1, %v2141_v59, 0.0  ;;  %v969_v7 = vpop.f32.mrf.mxu1  ;;  %v1049_v23 = vmul.f32 %v2141_v59, %v2141_v59  ;;  %v2167_v40 = vadd.f32 %v937_v24, %v2076_v28  ;;  %v1062_v48 = vsel %vm997_vm1, %v1046_v26, 0.0 }
 0x139   : > { %1008 = vadd.xlane.f32.xlu1 %v1007_v6  ;;  %v2151_v0 = vadd.f32 %v969_v7, %v873_v63  ;;  %v1031_v1 = vsel %vm997_vm1, %v2143_v5, 0.0  ;;  %v1057_v44 = vmul.f32 %v2143_v5, %v2143_v5  ;;  %v1720_v45 = vpop.f32.mrf.mxu0  ;;  %v1669_v30 = vadd.f32 %v2094_v58, %v2088_v55 }
 0x13a   : > { %999 = vadd.xlane.f32.xlu0 %v998_v8  ;;  %v1071_v41 = vsel %vm997_vm1, %v1049_v23, 0.0  ;;  %v1047_v46 = vmul.f32 %v2167_v40, %v2167_v40  ;;  %v1728_v28 = vpop.f32.mrf.mxu1  ;;  %v1086_v4 = vsel %vm997_vm1, %v1054_v51, 0.0  ;;  %v1629_v60 = vadd.f32 %v2124_v39, %v2120_v37 }
 0x13b   : > { %v1025_v10 = vsel %vm997_vm1, %v2151_v0, 0.0  ;;  %v1095_v27 = vsel %vm997_vm1, %v1057_v44, 0.0  ;;  %v950_v47 = vpop.f32.mrf.mxu0  ;;  %v1055_v33 = vmul.f32 %v2151_v0, %v2151_v0  ;;  %v1693_v54 = vadd.f32 %v2128_v42, %v2122_v38 }
 0x13c   : > { %v1065_v31 = vsel %vm997_vm1, %v1047_v46, 0.0  ;;  %v982_v53 = vpop.f32.mrf.mxu1  ;;  %v865_v56 = vadd.f32 %v1669_v30, %v1605_v52  ;;  %v1626_v55 = vadd.f32 %v2116_v22, %v2112_v19  ;;  %v1690_v58 = vadd.f32 %v2118_v34, %v2114_v20 }
 0x13d   : > { %1032 = vadd.xlane.f32.xlu1 %v1031_v1  ;;  %v1721_v3 = vpop.f32.mrf.mxu0  ;;  %v1089_v62 = vsel %vm997_vm1, %v1055_v33, 0.0  ;;  %v2201_v6 = vadd.f32 %v1720_v45, %v2092_v57  ;;  %v1001_v37 = vsel %vm997_vm1, %v2167_v40, 0.0  ;;  %v897_v38 = vadd.f32 %v1693_v54, %v1629_v60 }
 0x13e   : > { %1023 = vadd.xlane.f32.xlu0 %v1022_v2  ;;  %v2197_v61 = vadd.f32 %v1721_v3, %v865_v56  ;;  %v1729_v7 = vpop.f32.mrf.mxu1  ;;  %v894_v39 = vadd.f32 %v1690_v58, %v1626_v55  ;;  %v1623_v34 = vadd.f32 %v2108_v17, %v2104_v15  ;;  %v1687_v8 = vadd.f32 %v2110_v18, %v2106_v16 }
 0x13f   : > { %v2205_v42 = vadd.f32 %v1729_v7, %v897_v38  ;;  %v953_v22 = vpop.f32.mrf.mxu0  ;;  %v1016_v57 = vsel %vm997_vm1, %v2201_v6, 0.0  ;;  %v1620_v63 = vadd.f32 %v2100_v13, %v2096_v11  ;;  %v1684_v1 = vadd.f32 %v2102_v14, %v2098_v12 }
 0x140   : > { %v1019_v19 = vsel %vm997_vm1, %v2197_v61, 0.0  ;;  %v2209_v20 = vadd.f32 %v1728_v28, %v894_v39  ;;  %v2222_v2 = vadd.f32 %v953_v22, %v2084_v50  ;;  %v985_v15 = vpop.f32.mrf.mxu1  ;;  %v889_v17 = vadd.f32 %v1687_v8, %v1623_v34 }
 0x141   : > { %1026 = vadd.xlane.f32.xlu1 %v1025_v10  ;;  %v1043_v9 = vsel %vm997_vm1, %v2205_v42, 0.0  ;;  %v2227_v10 = vadd.f32 %v950_v47, %v2082_v43  ;;  %v886_v11 = vadd.f32 %v1684_v1, %v1620_v63  ;;  %v1053_v18 = vmul.f32 %v2197_v61, %v2197_v61 }
 0x142   : > { %1069 = vadd.xlane.f32.xlu0 %v1068_v35  ;;  %v1040_v16 = vsel %vm997_vm1, %v2209_v20, 0.0  ;;  %v2231_v13 = vadd.f32 %v985_v15, %v889_v17  ;;  %v1013_v50 = vsel %vm997_vm1, %v2222_v2, 0.0  ;;  %v1052_v24 = vmul.f32 %v2201_v6, %v2201_v6 }
 0x143   : > { %v2235_v12 = vadd.f32 %v982_v53, %v886_v11  ;;  %v1010_v43 = vsel %vm997_vm1, %v2227_v10, 0.0  ;;  %v1083_v35 = vsel %vm997_vm1, %v1053_v18, 0.0  ;;  %v1051_v36 = vmul.f32 %v2222_v2, %v2222_v2 }
 0x144   : > { %v1037_v14 = vsel %vm997_vm1, %v2231_v13, 0.0  ;;  %v1050_v44 = vmul.f32 %v2227_v10, %v2227_v10  ;;  %v1061_v28 = vmul.f32 %v2205_v42, %v2205_v42 }
 0x145   : > { %1072 = vadd.xlane.f32.xlu1 %v1071_v41  ;;  %v1034_v23 = vsel %vm997_vm1, %v2235_v12, 0.0  ;;  %v1080_v41 = vsel %vm997_vm1, %v1052_v24, 0.0  ;;  %v1077_v45 = vsel %vm997_vm1, %v1051_v36, 0.0 }
 0x146   : > { %1093 = vadd.xlane.f32.xlu0 %v1092_v25  ;;  %v1059_v25 = vmul.f32 %v2231_v13, %v2231_v13  ;;  %v1074_v26 = vsel %vm997_vm1, %v1050_v44, 0.0  ;;  %v1107_v51 = vsel %vm997_vm1, %v1061_v28, 0.0 }
 0x148   : > { %v1101_v46 = vsel %vm997_vm1, %v1059_v25, 0.0 }
 0x149   : > { %1096 = vadd.xlane.f32.xlu1 %v1095_v27  ;;  %v1058_v27 = vmul.f32 %v2235_v12, %v2235_v12 }
 0x14a   : > { %1063 = vadd.xlane.f32.xlu0 %v1062_v48  ;;  %v1060_v48 = vmul.f32 %v2209_v20, %v2209_v20 }
 0x14b   : > { %v1098_v47 = vsel %vm997_vm1, %v1058_v27, 0.0 }
 0x14c   : > { %v1104_v52 = vsel %vm997_vm1, %v1060_v48, 0.0 }
 0x14d   : > { %1066 = vadd.xlane.f32.xlu1 %v1065_v31 }
 0x14e   : > { %1087 = vadd.xlane.f32.xlu0 %v1086_v4 }
 0x151   : > { %1090 = vadd.xlane.f32.xlu1 %v1089_v62 }
 0x152   : > { %1002 = vadd.xlane.f32.xlu0 %v1001_v37 }
 0x155   : > { %1020 = vadd.xlane.f32.xlu1 %v1019_v19 }
 0x156   : > { %1017 = vadd.xlane.f32.xlu0 %v1016_v57 }
 0x159   : > { %1044 = vadd.xlane.f32.xlu1 %v1043_v9 }
 0x15a   : > { %1041 = vadd.xlane.f32.xlu0 %v1040_v16 }
 0x15d   : > { %1014 = vadd.xlane.f32.xlu1 %v1013_v50 }
 0x15e   : > { %1011 = vadd.xlane.f32.xlu0 %v1010_v43 }
 0x161   : > { %1038 = vadd.xlane.f32.xlu1 %v1037_v14 }
 0x162   : > { %1035 = vadd.xlane.f32.xlu0 %v1034_v23 }
 0x165   : > { %1084 = vadd.xlane.f32.xlu1 %v1083_v35 }
 0x166   : > { %1081 = vadd.xlane.f32.xlu0 %v1080_v41 }
 0x169   : > { %1078 = vadd.xlane.f32.xlu1 %v1077_v45 }
 0x16a   : > { %1075 = vadd.xlane.f32.xlu0 %v1074_v26 }
 0x16d   : > { %1102 = vadd.xlane.f32.xlu1 %v1101_v46 }
 0x16e   : > { %1099 = vadd.xlane.f32.xlu0 %v1098_v47 }
 0x171   : > { %1108 = vadd.xlane.f32.xlu1 %v1107_v51 }
 0x172   : > { %1105 = vadd.xlane.f32.xlu0 %v1104_v52 }
 0x1be   : > { %v1006_v30 = vpop.xlane.xlu1 %1005 }
 0x1bf   : > { %v1030_v31 = vpop.xlane.xlu0 %1029  ;;  %v2267_v60 = vmul.f32 0.0625, %v1006_v30 }
 0x1c0   : > { %v2271_v58 = vmul.f32 0.0625, %v1030_v31 }
 0x1c1   : > { %v1145_v62 = vmul.f32 %v2267_v60, %v2267_v60 }
 0x1c2   : > { %v1009_v33 = vpop.xlane.xlu1 %1008  ;;  %v1153_v8 = vmul.f32 %v2271_v58, %v2271_v58 }
 0x1c3   : > { %v1000_v53 = vpop.xlane.xlu0 %999  ;;  %v2269_v56 = vmul.f32 0.0625, %v1009_v33 }
 0x1c4   : > { %v2277_v19 = vmul.f32 0.0625, %v1000_v53 }
 0x1c5   : > { %v1146_v39 = vmul.f32 %v2269_v56, %v2269_v56 }
 0x1c6   : > { %v1033_v3 = vpop.xlane.xlu1 %1032  ;;  %v1143_v11 = vmul.f32 %v2277_v19, %v2277_v19 }
 0x1c7   : > { %v1024_v4 = vpop.xlane.xlu0 %1023  ;;  %v2279_v22 = vmul.f32 0.0625, %v1033_v3 }
 0x1c8   : > { %v2287_v23 = vmul.f32 0.0625, %v1024_v4 }
 0x1c9   : > { %v1154_v50 = vmul.f32 %v2279_v22, %v2279_v22 }
 0x1ca   : > { %v1027_v54 = vpop.xlane.xlu1 %1026  ;;  %v1151_v28 = vmul.f32 %v2287_v23, %v2287_v23 }
 0x1cb   : > { %v1070_v55 = vpop.xlane.xlu0 %1069  ;;  %v2289_v26 = vmul.f32 0.0625, %v1027_v54 }
 0x1cc   : > { %v1129_v7 = vmul.f32 0.0625, %v1070_v55 }
 0x1cd   : > { %v1152_v33 = vmul.f32 %v2289_v26, %v2289_v26 }
 0x1ce   : > { %v1161_v37 = vsub.f32 %v1129_v7, %v1145_v62  ;;  %v1073_v38 = vpop.xlane.xlu1 %1072 }
 0x1cf   : > { %v1130_v57 = vmul.f32 0.0625, %v1073_v38  ;;  %v1094_v34 = vpop.xlane.xlu0 %1093 }
 0x1d0   : > { %v1177_v63 = vmax.f32 %v1161_v37, 0.0  ;;  %v1137_v1 = vmul.f32 0.0625, %v1094_v34  ;;  %v1193_v34 = vsub.f32 %v2130_v29, %v2267_v60 }
 0x1d1   : > { %v1162_v9 = vsub.f32 %v1130_v57, %v1146_v39 }
 0x1d2   : > { %v1209_v15 = vadd.f32 1e-05, %v1177_v63  ;;  %v1169_v16 = vsub.f32 %v1137_v1, %v1153_v8  ;;  %v1097_v17 = vpop.xlane.xlu1 %1096 }
 0x1d3   : > { %v1178_v43 = vmax.f32 %v1162_v9, 0.0  ;;  %v1138_v14 = vmul.f32 0.0625, %v1097_v17  ;;  %v1064_v18 = vpop.xlane.xlu0 %1063  ;;  %v1194_v17 = vsub.f32 %v2141_v59, %v2269_v56 }
 0x1d4   : > { %1839 = vrsqrt.f32 %v1209_v15  ;;  %v1185_v24 = vmax.f32 %v1169_v16, 0.0  ;;  %v1127_v35 = vmul.f32 0.0625, %v1064_v18 }
 0x1d5   : > { %v1210_v36 = vadd.f32 1e-05, %v1178_v43  ;;  %v1170_v41 = vsub.f32 %v1138_v14, %v1154_v50  ;;  %v1201_v43 = vsub.f32 %v2132_v49, %v2271_v58 }
 0x1d6   : > { %v1217_v44 = vadd.f32 1e-05, %v1185_v24  ;;  %v1159_v45 = vsub.f32 %v1127_v35, %v1143_v11  ;;  %v1067_v25 = vpop.xlane.xlu1 %1066  ;;  %v1202_v35 = vsub.f32 %v2143_v5, %v2279_v22 }
 0x1d7   : > { %1841 = vrsqrt.f32 %v1210_v36  ;;  %v1186_v27 = vmax.f32 %v1170_v41, 0.0  ;;  %v1088_v46 = vpop.xlane.xlu0 %1087  ;;  %v1128_v62 = vmul.f32 0.0625, %v1067_v25 }
 0x1d8   : > { %1843 = vrsqrt.f32 %v1217_v44  ;;  %v1175_v47 = vmax.f32 %v1159_v45, 0.0  ;;  %v1135_v48 = vmul.f32 0.0625, %v1088_v46  ;;  %v1191_v44 = vsub.f32 %v2137_v32, %v2277_v19 }
 0x1d9   : > { %v1218_v51 = vadd.f32 1e-05, %v1186_v27  ;;  %v1199_v19 = vsub.f32 %v2147_v21, %v2287_v23 }
 0x1da   : > { %v1207_v52 = vadd.f32 1e-05, %v1175_v47  ;;  %v1167_v30 = vsub.f32 %v1135_v48, %v1151_v28  ;;  %v1091_v31 = vpop.xlane.xlu1 %1090 }
 0x1db   : > { %1845 = vrsqrt.f32 %v1218_v51  ;;  %v1136_v53 = vmul.f32 0.0625, %v1091_v31  ;;  %v1003_v3 = vpop.xlane.xlu0 %1002 }
 0x1dc   : > { %1847 = vrsqrt.f32 %v1207_v52  ;;  %v1183_v4 = vmax.f32 %v1167_v30, 0.0  ;;  %v2295_v54 = vmul.f32 0.0625, %v1003_v3 }
 0x1dd   : > { %v1168_v55 = vsub.f32 %v1136_v53, %v1152_v33  ;;  %v1200_v53 = vsub.f32 %v2151_v0, %v2289_v26 }
 0x1de   : > { %v1215_v7 = vadd.f32 1e-05, %v1183_v4  ;;  %v1144_v37 = vmul.f32 %v2295_v54, %v2295_v54  ;;  %v1021_v38 = vpop.xlane.xlu1 %1020  ;;  %v1192_v4 = vsub.f32 %v2167_v40, %v2295_v54 }
 0x1df   : > { %v1184_v39 = vmax.f32 %v1168_v55, 0.0  ;;  %v1018_v57 = vpop.xlane.xlu0 %1017  ;;  %v2317_v22 = vmul.f32 0.0625, %v1021_v38 }
 0x1e0   : > { %1849 = vrsqrt.f32 %v1215_v7  ;;  %v1160_v8 = vsub.f32 %v1128_v62, %v1144_v37  ;;  %v2319_v30 = vmul.f32 0.0625, %v1018_v57 }
 0x1e1   : > { %v1840_v63 = vpop.eup %1839  ;;  %v1216_v1 = vadd.f32 1e-05, %v1184_v39  ;;  %v1150_v38 = vmul.f32 %v2317_v22, %v2317_v22 }
 0x1e2   : > { %v1241_v9 = vmul.f32 %v1840_v63, %v1193_v34  ;;  %v1176_v15 = vmax.f32 %v1160_v8, 0.0  ;;  %v1045_v16 = vpop.xlane.xlu1 %1044  ;;  %v1149_v0 = vmul.f32 %v2319_v30, %v2319_v30 }
 0x1e3   : > { %1851 = vrsqrt.f32 %v1216_v1  ;;  %v1042_v11 = vpop.xlane.xlu0 %1041  ;;  %v2337_v26 = vmul.f32 0.0625, %v1045_v16 }
 0x1e4   : > { %v1842_v50 = vpop.eup %1841  ;;  %vm1257_vm2 = vcmp.ge.f32.partialorder %v1241_v9, 0.0  ;;  %v1273_v14 = vmul.f32 0.2, %v1241_v9  ;;  %v1208_v29 = vadd.f32 1e-05, %v1176_v15  ;;  %v2341_v54 = vmul.f32 0.0625, %v1042_v11 }
 0x1e5   : > { %v1844_v60 = vpop.eup %1843  ;;  %v1242_v18 = vmul.f32 %v1842_v50, %v1194_v17 }
 0x1e6   : > { %v1289_v59 = vsel %vm1257_vm2, %v1241_v9, %v1273_v14  ;;  %v1249_v56 = vmul.f32 %v1844_v60, %v1201_v43  ;;  %1853 = vrsqrt.f32 %v1208_v29  ;;  %v1015_v24 = vpop.xlane.xlu1 %1014 }
 0x1e7   : > { %v1552_v49 = vpack.c.bf16 %v1289_v59, %v1289_v59  ;;  %vm1258_vm4 = vcmp.ge.f32.partialorder %v1242_v18, 0.0  ;;  %v1274_v58 = vmul.f32 0.2, %v1242_v18  ;;  %v1012_v36 = vpop.xlane.xlu0 %1011  ;;  %v2331_v21 = vmul.f32 0.0625, %v1015_v24 }
 0x1e8   : > { %v1846_v41 = vpop.eup %1845  ;;  %vm1265_vm5 = vcmp.ge.f32.partialorder %v1249_v56, 0.0  ;;  %v1281_v45 = vmul.f32 0.2, %v1249_v56  ;;  %v2345_v63 = vmul.f32 0.0625, %v1012_v36 }
 0x1e9   : > { %v1848_v25 = vpop.eup %1847  ;;  %1370 = vst.msk [vmem:[%s2309_s20 + $0x8] sm:$0xf] %vm1367_vm3, %v1552_v49  ;;  %v1290_v27 = vsel %vm1258_vm4, %v1242_v18, %v1274_v58  ;;  %v1250_v46 = vmul.f32 %v1846_v41, %v1202_v35  ;;  %v1148_v16 = vmul.f32 %v2331_v21, %v2331_v21 }
 0x1ea   : > { %v1553_v28 = vpack.c.bf16 %v1290_v27, %v1290_v27  ;;  %v1297_v47 = vsel %vm1265_vm5, %v1249_v56, %v1281_v45  ;;  %v1239_v5 = vmul.f32 %v1848_v25, %v1191_v44  ;;  %v1039_v48 = vpop.xlane.xlu1 %1038  ;;  %v1147_v58 = vmul.f32 %v2345_v63, %v2345_v63 }
 0x1eb   : > { %v1560_v51 = vpack.c.bf16 %v1297_v47, %v1297_v47  ;;  %vm1266_vm6 = vcmp.ge.f32.partialorder %v1250_v46, 0.0  ;;  %v1282_v52 = vmul.f32 0.2, %v1250_v46  ;;  %v1036_v32 = vpop.xlane.xlu0 %1035  ;;  %v2347_v1 = vmul.f32 0.0625, %v1039_v48 }
 0x1ec   : > { %1371 = vst.msk [vmem:[%s2309_s20 + $0xc] sm:$0xf] %vm1367_vm3, %v1553_v28  ;;  %vm1255_vm7 = vcmp.ge.f32.partialorder %v1239_v5, 0.0  ;;  %v1271_v31 = vmul.f32 0.2, %v1239_v5  ;;  %v2351_v17 = vmul.f32 0.0625, %v1036_v32 }
 0x1ed   : > { %v1850_v33 = vpop.eup %1849  ;;  %1378 = vst.msk [vmem:[%s2309_s20 + $0x28] sm:$0xf] %vm1367_vm3, %v1560_v51  ;;  %v1298_v3 = vsel %vm1266_vm6, %v1250_v46, %v1282_v52  ;;  %v1156_v36 = vmul.f32 %v2347_v1, %v2347_v1 }
 0x1ee   : > { %v1561_v55 = vpack.c.bf16 %v1298_v3, %v1298_v3  ;;  %v1287_v62 = vsel %vm1255_vm7, %v1239_v5, %v1271_v31  ;;  %v1247_v7 = vmul.f32 %v1850_v33, %v1199_v19  ;;  %v1085_v23 = vpop.xlane.xlu1 %1084  ;;  %v1155_v52 = vmul.f32 %v2351_v17, %v2351_v17 }
 0x1ef   : > { %v1550_v37 = vpack.c.bf16 %v1287_v62, %v1287_v62  ;;  %v1082_v39 = vpop.xlane.xlu0 %1081  ;;  %v1134_v34 = vmul.f32 0.0625, %v1085_v23 }
 0x1f0   : > { %v1852_v57 = vpop.eup %1851  ;;  %1379 = vst.msk [vmem:[%s2309_s20 + $0x2c] sm:$0xf] %vm1367_vm3, %v1561_v55  ;;  %vm1263_vm8 = vcmp.ge.f32.partialorder %v1247_v7, 0.0  ;;  %v1279_v40 = vmul.f32 0.2, %v1247_v7  ;;  %v1133_v9 = vmul.f32 0.0625, %v1082_v39  ;;  %v1158_v55 = vmul.f32 %v2337_v26, %v2337_v26 }
 0x1f1   : > { %1368 = vst.msk [vmem:[%s2309_s20] sm:$0xf] %vm1367_vm3, %v1550_v37  ;;  %v1248_v8 = vmul.f32 %v1852_v57, %v1200_v53  ;;  %v1166_v50 = vsub.f32 %v1134_v34, %v1150_v38  ;;  %v1157_v38 = vmul.f32 %v2341_v54, %v2341_v54 }
 0x1f2   : > { %v1295_v15 = vsel %vm1263_vm8, %v1247_v7, %v1279_v40  ;;  %v1079_v43 = vpop.xlane.xlu1 %1078  ;;  %v1165_v60 = vsub.f32 %v1133_v9, %v1149_v0 }
 0x1f3   : > { %v1854_v11 = vpop.eup %1853  ;;  %v1558_v14 = vpack.c.bf16 %v1295_v15, %v1295_v15  ;;  %vm1264_vm9 = vcmp.ge.f32.partialorder %v1248_v8, 0.0  ;;  %v1280_v29 = vmul.f32 0.2, %v1248_v8  ;;  %v1076_v18 = vpop.xlane.xlu0 %1075  ;;  %v1182_v56 = vmax.f32 %v1166_v50, 0.0 }
 0x1f4   : > { %v1240_v59 = vmul.f32 %v1854_v11, %v1192_v4  ;;  %v1132_v24 = vmul.f32 0.0625, %v1079_v43  ;;  %v1131_v35 = vmul.f32 0.0625, %v1076_v18  ;;  %v1181_v41 = vmax.f32 %v1165_v60, 0.0 }
 0x1f5   : > { %1376 = vst.msk [vmem:[%s2309_s20 + $0x20] sm:$0xf] %vm1367_vm3, %v1558_v14  ;;  %v1296_v49 = vsel %vm1264_vm9, %v1248_v8, %v1280_v29  ;;  %v1214_v25 = vadd.f32 1e-05, %v1182_v56  ;;  %v1198_v11 = vsub.f32 %v2197_v61, %v2317_v22  ;;  %v1197_v29 = vsub.f32 %v2201_v6, %v2319_v30 }
 0x1f6   : > { %v1559_v44 = vpack.c.bf16 %v1296_v49, %v1296_v49  ;;  %vm1256_vm10 = vcmp.ge.f32.partialorder %v1240_v59, 0.0  ;;  %v1272_v45 = vmul.f32 0.2, %v1240_v59  ;;  %v1103_v27 = vpop.xlane.xlu1 %1102  ;;  %v1213_v46 = vadd.f32 1e-05, %v1181_v41 }
 0x1f7   : > { %v1164_v28 = vsub.f32 %v1132_v24, %v1148_v16  ;;  %v1163_v47 = vsub.f32 %v1131_v35, %v1147_v58  ;;  %v1140_v5 = vmul.f32 0.0625, %v1103_v27  ;;  %v1100_v48 = vpop.xlane.xlu0 %1099  ;;  %1855 = vrsqrt.f32 %v1214_v25 }
 0x1f8   : > { %1377 = vst.msk [vmem:[%s2309_s20 + $0x24] sm:$0xf] %vm1367_vm3, %v1559_v44  ;;  %v1288_v51 = vsel %vm1256_vm10, %v1240_v59, %v1272_v45  ;;  %v1139_v32 = vmul.f32 0.0625, %v1100_v48  ;;  %1857 = vrsqrt.f32 %v1213_v46  ;;  %v1196_v24 = vsub.f32 %v2222_v2, %v2331_v21 }
 0x1f9   : > { %v1551_v19 = vpack.c.bf16 %v1288_v51, %v1288_v51  ;;  %v1180_v31 = vmax.f32 %v1164_v28, 0.0  ;;  %v1179_v33 = vmax.f32 %v1163_v47, 0.0  ;;  %v1172_v53 = vsub.f32 %v1140_v5, %v1156_v36 }
 0x1fa   : > { %v1171_v3 = vsub.f32 %v1139_v32, %v1155_v52  ;;  %v1109_v4 = vpop.xlane.xlu1 %1108  ;;  %v1195_v61 = vsub.f32 %v2227_v10, %v2345_v63  ;;  %v1204_v41 = vsub.f32 %v2231_v13, %v2347_v1  ;;  %v1203_v2 = vsub.f32 %v2235_v12, %v2351_v17 }
 0x1fb   : > { %1369 = vst.msk [vmem:[%s2309_s20 + $0x4] sm:$0xf] %vm1367_vm3, %v1551_v19  ;;  %v1212_v62 = vadd.f32 1e-05, %v1180_v31  ;;  %v1211_v7 = vadd.f32 1e-05, %v1179_v33  ;;  %v1106_v37 = vpop.xlane.xlu0 %1105  ;;  %v1206_v13 = vsub.f32 %v2205_v42, %v2337_v26  ;;  %v1205_v1 = vsub.f32 %v2209_v20, %v2341_v54 }
 0x1fc   : > { %v1142_v23 = vmul.f32 0.0625, %v1109_v4  ;;  %v1188_v0 = vmax.f32 %v1172_v53, 0.0  ;;  %v1187_v39 = vmax.f32 %v1171_v3, 0.0  ;;  %v1141_v57 = vmul.f32 0.0625, %v1106_v37 }
 0x1fd   : > { %1859 = vrsqrt.f32 %v1212_v62 }
 0x1fe   : > { %v1174_v40 = vsub.f32 %v1142_v23, %v1158_v55  ;;  %1861 = vrsqrt.f32 %v1211_v7  ;;  %v1220_v34 = vadd.f32 1e-05, %v1188_v0  ;;  %v1219_v8 = vadd.f32 1e-05, %v1187_v39 }
 0x1ff   : > { %v1173_v9 = vsub.f32 %v1141_v57, %v1157_v38 }
 0x200   : > { %v1190_v15 = vmax.f32 %v1174_v40, 0.0  ;;  %1863 = vrsqrt.f32 %v1220_v34 }
 0x201   : > { %v1189_v16 = vmax.f32 %v1173_v9, 0.0  ;;  %1865 = vrsqrt.f32 %v1219_v8 }
 0x202   : > { %v1222_v50 = vadd.f32 1e-05, %v1190_v15 }
 0x203   : > { %v1221_v43 = vadd.f32 1e-05, %v1189_v16 }
 0x204   : > { %1867 = vrsqrt.f32 %v1222_v50  ;;  %v1856_v14 = vpop.eup %1855 }
 0x205   : > { %1869 = vrsqrt.f32 %v1221_v43  ;;  %v1858_v60 = vpop.eup %1857  ;;  %v1246_v18 = vmul.f32 %v1856_v14, %v1198_v11 }
 0x206   : > { %v1245_v59 = vmul.f32 %v1858_v60, %v1197_v29 }
 0x207   : > { %vm1262_vm11 = vcmp.ge.f32.partialorder %v1246_v18, 0.0  ;;  %v1278_v56 = vmul.f32 0.2, %v1246_v18 }
 0x208   : > { %vm1261_vm12 = vcmp.ge.f32.partialorder %v1245_v59, 0.0  ;;  %v1277_v35 = vmul.f32 0.2, %v1245_v59 }
 0x209   : > { %v1294_v22 = vsel %vm1262_vm11, %v1246_v18, %v1278_v56 }
 0x20a   : > { %v1860_v49 = vpop.eup %1859  ;;  %v1557_v36 = vpack.c.bf16 %v1294_v22, %v1294_v22  ;;  %v1293_v6 = vsel %vm1261_vm12, %v1245_v59, %v1277_v35 }
 0x20b   : > { %v1862_v58 = vpop.eup %1861  ;;  %v1244_v30 = vmul.f32 %v1860_v49, %v1196_v24  ;;  %v1556_v44 = vpack.c.bf16 %v1293_v6, %v1293_v6 }
 0x20c   : > { %v1243_v45 = vmul.f32 %v1862_v58, %v1195_v61  ;;  %1375 = vst.msk [vmem:[%s2309_s20 + $0x1c] sm:$0xf] %vm1367_vm3, %v1557_v36 }
 0x20d   : > { %v1864_v25 = vpop.eup %1863  ;;  %vm1260_vm13 = vcmp.ge.f32.partialorder %v1244_v30, 0.0  ;;  %v1276_v21 = vmul.f32 0.2, %v1244_v30  ;;  %1374 = vst.msk [vmem:[%s2309_s20 + $0x18] sm:$0xf] %vm1367_vm3, %v1556_v44 }
 0x20e   : > { %v1866_v27 = vpop.eup %1865  ;;  %vm1259_vm14 = vcmp.ge.f32.partialorder %v1243_v45, 0.0  ;;  %v1275_v10 = vmul.f32 0.2, %v1243_v45  ;;  %v1252_v63 = vmul.f32 %v1864_v25, %v1204_v41 }
 0x20f   : > { %v1292_v46 = vsel %vm1260_vm13, %v1244_v30, %v1276_v21  ;;  %v1251_v12 = vmul.f32 %v1866_v27, %v1203_v2 }
 0x210   : > { %v1555_v28 = vpack.c.bf16 %v1292_v46, %v1292_v46  ;;  %v1291_v47 = vsel %vm1259_vm14, %v1243_v45, %v1275_v10  ;;  %vm1268_vm15 = vcmp.ge.f32.partialorder %v1252_v63, 0.0  ;;  %v1284_v5 = vmul.f32 0.2, %v1252_v63 }
 0x211   : > { %v1868_v17 = vpop.eup %1867  ;;  %v1554_v51 = vpack.c.bf16 %v1291_v47, %v1291_v47  ;;  %vm1267_vm0 = vcmp.ge.f32.partialorder %v1251_v12, 0.0  ;;  %v1283_v52 = vmul.f32 0.2, %v1251_v12 }
 0x212   : > { %v1870_v48 = vpop.eup %1869  ;;  %v1254_v32 = vmul.f32 %v1868_v17, %v1206_v13  ;;  %1373 = vst.msk [vmem:[%s2309_s20 + $0x14] sm:$0xf] %vm1367_vm3, %v1555_v28  ;;  %v1300_v42 = vsel %vm1268_vm15, %v1252_v63, %v1284_v5 }
 0x213   : > { %v1253_v20 = vmul.f32 %v1870_v48, %v1205_v1  ;;  %1372 = vst.msk [vmem:[%s2309_s20 + $0x10] sm:$0xf] %vm1367_vm3, %v1554_v51  ;;  %v1563_v26 = vpack.c.bf16 %v1300_v42, %v1300_v42  ;;  %v1299_v54 = vsel %vm1267_vm0, %v1251_v12, %v1283_v52 }
 0x214   : > { %vm1270_vm1 = vcmp.ge.f32.partialorder %v1254_v32, 0.0  ;;  %v1286_v19 = vmul.f32 0.2, %v1254_v32  ;;  %v1562_v31 = vpack.c.bf16 %v1299_v54, %v1299_v54 }
 0x215   : > { %vm1269_vm2 = vcmp.ge.f32.partialorder %v1253_v20, 0.0  ;;  %v1285_v33 = vmul.f32 0.2, %v1253_v20  ;;  %1381 = vst.msk [vmem:[%s2309_s20 + $0x34] sm:$0xf] %vm1367_vm3, %v1563_v26 }
 0x216   : > { %v1302_v53 = vsel %vm1270_vm1, %v1254_v32, %v1286_v19  ;;  %1380 = vst.msk [vmem:[%s2309_s20 + $0x30] sm:$0xf] %vm1367_vm3, %v1562_v31 }
 0x217   : > { %v1565_v3 = vpack.c.bf16 %v1302_v53, %v1302_v53  ;;  %v1301_v4 = vsel %vm1269_vm2, %v1253_v20, %v1285_v33 }
 0x218   : > { %v1564_v55 = vpack.c.bf16 %v1301_v4, %v1301_v4 }
 0x219   : > { %1383 = vst.msk [vmem:[%s2309_s20 + $0x3c] sm:$0xf] %vm1367_vm3, %v1565_v3 }
 0x21a   : > { %1382 = vst.msk [vmem:[%s2309_s20 + $0x38] sm:$0xf] %vm1367_vm3, %v1564_v55 }
 0x21b PF: > { %s12_s9 = sadd.s32 1, %s1877_s9  }
 0x21c   : > { %p9_p4 = scmp.ge.s32.totalorder %s12_s9, 4  }
 0x21e   :  { %11 = sbr.rel (!%p9_p4) target bundleno = 1 (0x1), region = 58 }

// kernel: zencoder_forward.8
= control target key start
LH: loop header
LB: loop body
LE: loop exit
PB: predicated region body
PF: predicated region fallthrough
CT: control target
= control target key end

     0   :  { %s6493_s9 = smov 0   ;;  %s9030_s0 = inlined_call_operand.vmem [shape: bf16[2,512,16], index: 0, kind: input, shape index: {}]   ;;  %s9031_s1 = inlined_call_operand.vmem [shape: bf16[1024,512], index: 1, kind: input, shape index: {}]   ;;  %s9032_s2 = inlined_call_operand.vmem [shape: bf16[2,1024,16], index: 2, kind: output, shape index: {}]  }
   0x1 LB: > { %s5421_s10 = sadd.s32 4294967295, %s6475_s9   ;;  %p5425_p0 = scmp.ge.s32.totalorder %s6475_s9, 1  ;;  %s6475_s9 = sphi %s6493_s9, %s12_s9  }
   0x2   : > { %p112_p1 = scmp.lt.s32.totalorder %s6475_s9, 3 }
   0x4   : > { %p113_p2 = pnand %p5425_p0, %p112_p1 }
   0x6   : > { %116 = sbr.rel (%p113_p2) target bundleno = 1156 (0x484), region = 28 }
   0xb   : > { %p134_p3 = scmp.lt.s32.totalorder %s5421_s10, 1  ;;  %v6477_v0 = vmov 0   ;;  %v6023_v1 = vld [vmem:[%s9031_s1 + $0x4] ss:$16 sps:$4 sm:$0xff]   ;;  %v6026_v2 = vld [vmem:[%s9031_s1 + $0xc] ss:$16 sps:$4 sm:$0xff]  }
   0xc   : > { %1937 = vmatprep.subr.bf16.mxu0 %v6477_v0  ;;  %2482 = vmatprep.subr.bf16.mxu1 %v6477_v0  ;;  %v6021_v35 = vld [vmem:[%s9031_s1] ss:$16 sps:$4 sm:$0xff]   ;;  %v6024_v36 = vld [vmem:[%s9031_s1 + $0x8] ss:$16 sps:$4 sm:$0xff]   ;;  %v6027_v37 = vld [vmem:[%s9031_s1 + $0x24] ss:$16 sps:$4 sm:$0xff]  }
   0xd   : > { %s9494_s10 = smov (!%p134_p3, %s5421_s10), 1  ;;  %5987 = vset.pattern.permute.xlu0 %v6477_v0  ;;  %5988 = vset.pattern.permute.xlu1 %v6477_v0  ;;  %v6029_v38 = vld [vmem:[%s9031_s1 + $0x2c] ss:$16 sps:$4 sm:$0xff]   ;;  %v6031_v39 = vld [vmem:[%s9031_s1 + $0x20] ss:$16 sps:$4 sm:$0xff]   ;;  %vm3123_vm0 = vcmask 130048  }
   0xe   : > { %1969 = vmatprep.mubr.bf16.mxu0 %v6023_v1  ;;  %s5848_s15 = sshll.u32 %s9494_s10, 8  ;;  %2514 = vmatprep.mubr.bf16.mxu1 %v6026_v2  ;;  %v6032_v40 = vld [vmem:[%s9031_s1 + $0x28] ss:$16 sps:$4 sm:$0xff]   ;;  %v6033_v41 = vld [vmem:[%s9031_s1 + $0x44] ss:$16 sps:$4 sm:$0xff]   ;;  %vm5237_vm1 = vcmask 125952  }
   0xf   : > { %s6517_s18 = scalar_lea.vmem %s9030_s0, %s5848_s15  ;;  %v6035_v42 = vld [vmem:[%s9031_s1 + $0x4c] ss:$16 sps:$4 sm:$0xff]   ;;  %v6037_v43 = vld [vmem:[%s9031_s1 + $0x40] ss:$16 sps:$4 sm:$0xff]   ;;  %v6038_v44 = vld [vmem:[%s9031_s1 + $0x48] ss:$16 sps:$4 sm:$0xff]  }
  0x10   : > { %v5989_v3 = vld [vmem:[%s6517_s18 + $0x38] sm:$0xff]   ;;  %v5991_v5 = vld [vmem:[%s6517_s18 + $0x30] sm:$0xff]   ;;  %v5993_v7 = vld [vmem:[%s6517_s18 + $0x28] sm:$0xff]   ;;  %s5849_s5 = sshll.u32 %s9494_s10, 9 }
  0x11   : > { %v5990_v4 = vld [vmem:[%s6517_s18 + $0xb8] sm:$0xff]   ;;  %1938 = vmatpush1.bf16.msra.mxu0 %v5989_v3  ;;  %v5992_v6 = vld [vmem:[%s6517_s18 + $0xb0] sm:$0xff]   ;;  %v5994_v8 = vld [vmem:[%s6517_s18 + $0xa8] sm:$0xff]   ;;  %s8107_s8 = scalar_lea.vmem %s9032_s2, %s5849_s5 }
  0x12   : > { %2483 = vmatpush1.bf16.msra.mxu1 %v5990_v4  ;;  %1939 = vmatprep.subr.bf16.mxu0 %v6477_v0  ;;  %v5995_v9 = vld [vmem:[%s6517_s18 + $0x20] sm:$0xff]   ;;  %v5997_v11 = vld [vmem:[%s6517_s18 + $0x18] sm:$0xff]   ;;  %v5999_v13 = vld [vmem:[%s6517_s18 + $0x10] sm:$0xff]  }
  0x13   : > { %2484 = vmatprep.subr.bf16.mxu1 %v6477_v0  ;;  %v5996_v10 = vld [vmem:[%s6517_s18 + $0xa0] sm:$0xff]   ;;  %v5998_v12 = vld [vmem:[%s6517_s18 + $0x98] sm:$0xff]   ;;  %v6000_v14 = vld [vmem:[%s6517_s18 + $0x90] sm:$0xff]  }
  0x14   : > { %v6001_v15 = vld [vmem:[%s6517_s18 + $0x8] sm:$0xff]   ;;  %v6003_v17 = vld [vmem:[%s6517_s18] sm:$0xff]   ;;  %v6005_v19 = vld [vmem:[%s6517_s18 + $0x78] sm:$0xff]  }
  0x15   : > { %1940 = vmatpush1.bf16.msra.mxu0 %v5991_v5  ;;  %v6002_v16 = vld [vmem:[%s6517_s18 + $0x88] sm:$0xff]   ;;  %v6004_v18 = vld [vmem:[%s6517_s18 + $0x80] sm:$0xff]   ;;  %v6006_v20 = vld [vmem:[%s6517_s18 + $0xf8] sm:$0xff]  }
  0x16   : > { %2485 = vmatpush1.bf16.msra.mxu1 %v5992_v6  ;;  %1941 = vmatprep.subr.bf16.mxu0 %v6477_v0  ;;  %v6007_v21 = vld [vmem:[%s6517_s18 + $0x70] sm:$0xff]   ;;  %v6009_v23 = vld [vmem:[%s6517_s18 + $0x68] sm:$0xff]   ;;  %v6011_v25 = vld [vmem:[%s6517_s18 + $0x60] sm:$0xff]  }
  0x17   : > { %2486 = vmatprep.subr.bf16.mxu1 %v6477_v0  ;;  %v6008_v22 = vld [vmem:[%s6517_s18 + $0xf0] sm:$0xff]   ;;  %v6010_v24 = vld [vmem:[%s6517_s18 + $0xe8] sm:$0xff]   ;;  %v6012_v26 = vld [vmem:[%s6517_s18 + $0xe0] sm:$0xff]  }
  0x18   : > { %v6013_v27 = vld [vmem:[%s6517_s18 + $0x58] sm:$0xff]   ;;  %v6015_v29 = vld [vmem:[%s6517_s18 + $0x50] sm:$0xff]   ;;  %v6017_v31 = vld [vmem:[%s6517_s18 + $0x48] sm:$0xff]  }
  0x19   : > { %1942 = vmatpush1.bf16.msra.mxu0 %v5993_v7  ;;  %v6014_v28 = vld [vmem:[%s6517_s18 + $0xd8] sm:$0xff]   ;;  %v6016_v30 = vld [vmem:[%s6517_s18 + $0xd0] sm:$0xff]   ;;  %v6018_v32 = vld [vmem:[%s6517_s18 + $0xc8] sm:$0xff]  }
  0x1a   : > { %2487 = vmatpush1.bf16.msra.mxu1 %v5994_v8  ;;  %1943 = vmatprep.subr.bf16.mxu0 %v6477_v0  ;;  %v6019_v33 = vld [vmem:[%s6517_s18 + $0x40] sm:$0xff]   ;;  %v6041_v46 = vld [vmem:[%s9031_s1 + $0x6c] ss:$16 sps:$4 sm:$0xff]   ;;  %v6044_v48 = vld [vmem:[%s9031_s1 + $0x68] ss:$16 sps:$4 sm:$0xff]  }
  0x1b   : > { %2488 = vmatprep.subr.bf16.mxu1 %v6477_v0  ;;  %v6020_v34 = vld [vmem:[%s6517_s18 + $0xc0] sm:$0xff]   ;;  %v6047_v50 = vld [vmem:[%s9031_s1 + $0x8c] ss:$16 sps:$4 sm:$0xff]   ;;  %v6050_v52 = vld [vmem:[%s9031_s1 + $0x88] ss:$16 sps:$4 sm:$0xff]  }
  0x1c   : > { %v6039_v45 = vld [vmem:[%s9031_s1 + $0x64] ss:$16 sps:$4 sm:$0xff]   ;;  %v6043_v47 = vld [vmem:[%s9031_s1 + $0x60] ss:$16 sps:$4 sm:$0xff]   ;;  %v6053_v54 = vld [vmem:[%s9031_s1 + $0xac] ss:$16 sps:$4 sm:$0xff]  }
  0x1d   : > { %1944 = vmatpush1.bf16.msra.mxu0 %v5995_v9  ;;  %v6045_v49 = vld [vmem:[%s9031_s1 + $0x84] ss:$16 sps:$4 sm:$0xff]   ;;  %v6049_v51 = vld [vmem:[%s9031_s1 + $0x80] ss:$16 sps:$4 sm:$0xff]   ;;  %v6056_v56 = vld [vmem:[%s9031_s1 + $0xa8] ss:$16 sps:$4 sm:$0xff]  }
  0x1e   : > { %2489 = vmatpush1.bf16.msra.mxu1 %v5996_v10  ;;  %1945 = vmatprep.subr.bf16.mxu0 %v6477_v0  ;;  %v6051_v53 = vld [vmem:[%s9031_s1 + $0xa4] ss:$16 sps:$4 sm:$0xff]   ;;  %v6055_v55 = vld [vmem:[%s9031_s1 + $0xa0] ss:$16 sps:$4 sm:$0xff]   ;;  %v6059_v58 = vld [vmem:[%s9031_s1 + $0xcc] ss:$16 sps:$4 sm:$0xff]  }
  0x1f   : > { %2490 = vmatprep.subr.bf16.mxu1 %v6477_v0  ;;  %v6057_v57 = vld [vmem:[%s9031_s1 + $0xc4] ss:$16 sps:$4 sm:$0xff]   ;;  %v6061_v59 = vld [vmem:[%s9031_s1 + $0xc0] ss:$16 sps:$4 sm:$0xff]   ;;  %v6062_v60 = vld [vmem:[%s9031_s1 + $0xc8] ss:$16 sps:$4 sm:$0xff]  }
  0x20   : > { %v6063_v61 = vld [vmem:[%s9031_s1 + $0xe4] ss:$16 sps:$4 sm:$0xff]   ;;  %v6065_v62 = vld [vmem:[%s9031_s1 + $0xec] ss:$16 sps:$4 sm:$0xff]   ;;  %v6067_v63 = vld [vmem:[%s9031_s1 + $0xe0] ss:$16 sps:$4 sm:$0xff]  }
  0x21   : > { %1946 = vmatpush1.bf16.msra.mxu0 %v5997_v11  ;;  %v6069_v1 = vld [vmem:[%s9031_s1 + $0x104] ss:$16 sps:$4 sm:$0xff]   ;;  %v6071_v2 = vld [vmem:[%s9031_s1 + $0x10c] ss:$16 sps:$4 sm:$0xff]   ;;  %v6073_v3 = vld [vmem:[%s9031_s1 + $0x100] ss:$16 sps:$4 sm:$0xff]  }
  0x22   : > { %2491 = vmatpush1.bf16.msra.mxu1 %v5998_v12  ;;  %1947 = vmatprep.subr.bf16.mxu0 %v6477_v0  ;;  %v6074_v4 = vld [vmem:[%s9031_s1 + $0x108] ss:$16 sps:$4 sm:$0xff]   ;;  %v6075_v5 = vld [vmem:[%s9031_s1 + $0x124] ss:$16 sps:$4 sm:$0xff]   ;;  %v6077_v6 = vld [vmem:[%s9031_s1 + $0x12c] ss:$16 sps:$4 sm:$0xff]  }
  0x23   : > { %2492 = vmatprep.subr.bf16.mxu1 %v6477_v0  ;;  %v6079_v7 = vld [vmem:[%s9031_s1 + $0x120] ss:$16 sps:$4 sm:$0xff]   ;;  %v6080_v8 = vld [vmem:[%s9031_s1 + $0x128] ss:$16 sps:$4 sm:$0xff]   ;;  %v6081_v9 = vld [vmem:[%s9031_s1 + $0x144] ss:$16 sps:$4 sm:$0xff]  }
  0x24   : > { %v6083_v10 = vld [vmem:[%s9031_s1 + $0x14c] ss:$16 sps:$4 sm:$0xff]   ;;  %v6085_v11 = vld [vmem:[%s9031_s1 + $0x140] ss:$16 sps:$4 sm:$0xff]   ;;  %v6086_v12 = vld [vmem:[%s9031_s1 + $0x148] ss:$16 sps:$4 sm:$0xff]  }
  0x25   : > { %1948 = vmatpush1.bf16.msra.mxu0 %v5999_v13  ;;  %v6087_v13 = vld [vmem:[%s9031_s1 + $0x164] ss:$16 sps:$4 sm:$0xff]  }
  0x26   : > { %2493 = vmatpush1.bf16.msra.mxu1 %v6000_v14  ;;  %1949 = vmatprep.subr.bf16.mxu0 %v6477_v0  ;;  %v6089_v14 = vld [vmem:[%s9031_s1 + $0x16c] ss:$16 sps:$4 sm:$0xff]  }
  0x27   : > { %2494 = vmatprep.subr.bf16.mxu1 %v6477_v0 }
  0x29   : > { %1950 = vmatpush1.bf16.msra.mxu0 %v6001_v15  ;;  %v6091_v15 = vld [vmem:[%s9031_s1 + $0x160] ss:$16 sps:$4 sm:$0xff]  }
  0x2a   : > { %2495 = vmatpush1.bf16.msra.mxu1 %v6002_v16  ;;  %1951 = vmatprep.subr.bf16.mxu0 %v6477_v0  ;;  %v6092_v16 = vld [vmem:[%s9031_s1 + $0x168] ss:$16 sps:$4 sm:$0xff]  }
  0x2b   : > { %2496 = vmatprep.subr.bf16.mxu1 %v6477_v0 }
  0x2d   : > { %1952 = vmatpush1.bf16.msra.mxu0 %v6003_v17  ;;  %v6093_v17 = vld [vmem:[%s9031_s1 + $0x184] ss:$16 sps:$4 sm:$0xff]  }
  0x2e   : > { %2497 = vmatpush1.bf16.msra.mxu1 %v6004_v18  ;;  %1953 = vmatprep.subr.bf16.mxu0 %v6477_v0  ;;  %v6095_v18 = vld [vmem:[%s9031_s1 + $0x18c] ss:$16 sps:$4 sm:$0xff]  }
  0x2f   : > { %2498 = vmatprep.subr.bf16.mxu1 %v6477_v0 }
  0x31   : > { %1954 = vmatpush2.bf16.msra.mxu0 %v6005_v19  ;;  %v6097_v19 = vld [vmem:[%s9031_s1 + $0x180] ss:$16 sps:$4 sm:$0xff]  }
  0x32   : > { %2499 = vmatpush2.bf16.msra.mxu1 %v6006_v20  ;;  %1955 = vmatprep.subr.bf16.mxu0 %v6477_v0  ;;  %v6098_v20 = vld [vmem:[%s9031_s1 + $0x188] ss:$16 sps:$4 sm:$0xff]  }
  0x33   : > { %2500 = vmatprep.subr.bf16.mxu1 %v6477_v0 }
  0x35   : > { %1956 = vmatpush2.bf16.msra.mxu0 %v6007_v21  ;;  %v6099_v21 = vld [vmem:[%s9031_s1 + $0x1a4] ss:$16 sps:$4 sm:$0xff]  }
  0x36   : > { %2501 = vmatpush2.bf16.msra.mxu1 %v6008_v22  ;;  %1957 = vmatprep.subr.bf16.mxu0 %v6477_v0  ;;  %v6101_v22 = vld [vmem:[%s9031_s1 + $0x1ac] ss:$16 sps:$4 sm:$0xff]  }
  0x37   : > { %2502 = vmatprep.subr.bf16.mxu1 %v6477_v0 }
  0x39   : > { %1958 = vmatpush2.bf16.msra.mxu0 %v6009_v23  ;;  %v6103_v23 = vld [vmem:[%s9031_s1 + $0x1a0] ss:$16 sps:$4 sm:$0xff]  }
  0x3a   : > { %2503 = vmatpush2.bf16.msra.mxu1 %v6010_v24  ;;  %1959 = vmatprep.subr.bf16.mxu0 %v6477_v0  ;;  %v6104_v24 = vld [vmem:[%s9031_s1 + $0x1a8] ss:$16 sps:$4 sm:$0xff]  }
  0x3b   : > { %2504 = vmatprep.subr.bf16.mxu1 %v6477_v0 }
  0x3d   : > { %1960 = vmatpush2.bf16.msra.mxu0 %v6011_v25  ;;  %v6105_v25 = vld [vmem:[%s9031_s1 + $0x1c4] ss:$16 sps:$4 sm:$0xff]  }
  0x3e   : > { %2505 = vmatpush2.bf16.msra.mxu1 %v6012_v26  ;;  %1961 = vmatprep.subr.bf16.mxu0 %v6477_v0  ;;  %v6107_v26 = vld [vmem:[%s9031_s1 + $0x1cc] ss:$16 sps:$4 sm:$0xff]  }
  0x3f   : > { %2506 = vmatprep.subr.bf16.mxu1 %v6477_v0 }
  0x41   : > { %1962 = vmatpush2.bf16.msra.mxu0 %v6013_v27  ;;  %v6109_v27 = vld [vmem:[%s9031_s1 + $0x1c0] ss:$16 sps:$4 sm:$0xff]  }
  0x42   : > { %2507 = vmatpush2.bf16.msra.mxu1 %v6014_v28  ;;  %1963 = vmatprep.subr.bf16.mxu0 %v6477_v0  ;;  %v6110_v28 = vld [vmem:[%s9031_s1 + $0x1c8] ss:$16 sps:$4 sm:$0xff]  }
  0x43   : > { %2508 = vmatprep.subr.bf16.mxu1 %v6477_v0 }
  0x45   : > { %1964 = vmatpush2.bf16.msra.mxu0 %v6015_v29  ;;  %v6111_v29 = vld [vmem:[%s9031_s1 + $0x1e4] ss:$16 sps:$4 sm:$0xff]  }
  0x46   : > { %2509 = vmatpush2.bf16.msra.mxu1 %v6016_v30  ;;  %1965 = vmatprep.subr.bf16.mxu0 %v6477_v0  ;;  %v6113_v30 = vld [vmem:[%s9031_s1 + $0x1ec] ss:$16 sps:$4 sm:$0xff]  }
  0x47   : > { %2510 = vmatprep.subr.bf16.mxu1 %v6477_v0 }
  0x49   : > { %1966 = vmatpush2.bf16.msra.mxu0 %v6017_v31  ;;  %v6115_v31 = vld [vmem:[%s9031_s1 + $0x1e0] ss:$16 sps:$4 sm:$0xff]  }
  0x4a   : > { %2511 = vmatpush2.bf16.msra.mxu1 %v6018_v32  ;;  %1967 = vmatprep.subr.bf16.mxu0 %v6477_v0  ;;  %v6116_v32 = vld [vmem:[%s9031_s1 + $0x1e8] ss:$16 sps:$4 sm:$0xff]  }
  0x4b   : > { %2512 = vmatprep.subr.bf16.mxu1 %v6477_v0  ;;  %v6068_v0 = vld [vmem:[%s9031_s1 + $0xe8] ss:$16 sps:$4 sm:$0xff]  }
  0x4d   : > { %1968 = vmatpush2.bf16.msra.mxu0 %v6019_v33  ;;  %v6117_v33 = vld [vmem:[%s9031_s1 + $0x204] ss:$16 sps:$4 sm:$0xff]  }
  0x4e   : > { %2513 = vmatpush2.bf16.msra.mxu1 %v6020_v34  ;;  %v6119_v34 = vld [vmem:[%s9031_s1 + $0x20c] ss:$16 sps:$4 sm:$0xff]  }
  0x50   : > { %1970 = vmatmul.mubr.bf16.vlgmr.msra.gmra.mxu0 %v6021_v35  ;;  %v6121_v35 = vld [vmem:[%s9031_s1 + $0x200] ss:$16 sps:$4 sm:$0xff]  }
  0x51   : > { %2515 = vmatmul.mubr.bf16.vlgmr.msra.gmra.mxu1 %v6024_v36  ;;  %1977 = vmatprep.mubr.bf16.mxu0 %v6027_v37  ;;  %v6122_v36 = vld [vmem:[%s9031_s1 + $0x208] ss:$16 sps:$4 sm:$0xff]   ;;  %v6123_v37 = vld [vmem:[%s9031_s1 + $0x224] ss:$16 sps:$4 sm:$0xff]  }
  0x52   : > { %2522 = vmatprep.mubr.bf16.mxu1 %v6029_v38  ;;  %v6125_v38 = vld [vmem:[%s9031_s1 + $0x22c] ss:$16 sps:$4 sm:$0xff]  }
  0x58   : > { %1978 = vmatmul.mubr.bf16.gmra.mxu0 %v6031_v39  ;;  %v6127_v39 = vld [vmem:[%s9031_s1 + $0x220] ss:$16 sps:$4 sm:$0xff]  }
  0x59   : > { %2523 = vmatmul.mubr.bf16.gmra.mxu1 %v6032_v40  ;;  %1985 = vmatprep.mubr.bf16.mxu0 %v6033_v41  ;;  %v6128_v40 = vld [vmem:[%s9031_s1 + $0x228] ss:$16 sps:$4 sm:$0xff]   ;;  %v6129_v41 = vld [vmem:[%s9031_s1 + $0x244] ss:$16 sps:$4 sm:$0xff]  }
  0x5a   : > { %2530 = vmatprep.mubr.bf16.mxu1 %v6035_v42  ;;  %v6131_v42 = vld [vmem:[%s9031_s1 + $0x24c] ss:$16 sps:$4 sm:$0xff]  }
  0x60   : > { %1986 = vmatmul.mubr.bf16.gmra.mxu0 %v6037_v43  ;;  %v6133_v43 = vld [vmem:[%s9031_s1 + $0x240] ss:$16 sps:$4 sm:$0xff]  }
  0x61   : > { %2531 = vmatmul.mubr.bf16.gmra.mxu1 %v6038_v44  ;;  %1993 = vmatprep.mubr.bf16.mxu0 %v6039_v45  ;;  %v6134_v44 = vld [vmem:[%s9031_s1 + $0x248] ss:$16 sps:$4 sm:$0xff]   ;;  %v6135_v45 = vld [vmem:[%s9031_s1 + $0x264] ss:$16 sps:$4 sm:$0xff]  }
  0x62   : > { %2538 = vmatprep.mubr.bf16.mxu1 %v6041_v46  ;;  %v6137_v46 = vld [vmem:[%s9031_s1 + $0x26c] ss:$16 sps:$4 sm:$0xff]  }
  0x68   : > { %1994 = vmatmul.mubr.bf16.gmra.mxu0 %v6043_v47  ;;  %v6139_v47 = vld [vmem:[%s9031_s1 + $0x260] ss:$16 sps:$4 sm:$0xff]  }
  0x69   : > { %2539 = vmatmul.mubr.bf16.gmra.mxu1 %v6044_v48  ;;  %2001 = vmatprep.mubr.bf16.mxu0 %v6045_v49  ;;  %v6140_v48 = vld [vmem:[%s9031_s1 + $0x268] ss:$16 sps:$4 sm:$0xff]   ;;  %v6141_v49 = vld [vmem:[%s9031_s1 + $0x284] ss:$16 sps:$4 sm:$0xff]  }
  0x6a   : > { %2546 = vmatprep.mubr.bf16.mxu1 %v6047_v50  ;;  %v6143_v50 = vld [vmem:[%s9031_s1 + $0x28c] ss:$16 sps:$4 sm:$0xff]  }
  0x70   : > { %2002 = vmatmul.mubr.bf16.gmra.mxu0 %v6049_v51  ;;  %v6145_v51 = vld [vmem:[%s9031_s1 + $0x280] ss:$16 sps:$4 sm:$0xff]  }
  0x71   : > { %2547 = vmatmul.mubr.bf16.gmra.mxu1 %v6050_v52  ;;  %2009 = vmatprep.mubr.bf16.mxu0 %v6051_v53  ;;  %v6146_v52 = vld [vmem:[%s9031_s1 + $0x288] ss:$16 sps:$4 sm:$0xff]   ;;  %v6147_v53 = vld [vmem:[%s9031_s1 + $0x2a4] ss:$16 sps:$4 sm:$0xff]  }
  0x72   : > { %2554 = vmatprep.mubr.bf16.mxu1 %v6053_v54  ;;  %v6149_v54 = vld [vmem:[%s9031_s1 + $0x2ac] ss:$16 sps:$4 sm:$0xff]  }
  0x78   : > { %2010 = vmatmul.mubr.bf16.gmra.mxu0 %v6055_v55  ;;  %v6151_v55 = vld [vmem:[%s9031_s1 + $0x2a0] ss:$16 sps:$4 sm:$0xff]  }
  0x79   : > { %2555 = vmatmul.mubr.bf16.gmra.mxu1 %v6056_v56  ;;  %2017 = vmatprep.mubr.bf16.mxu0 %v6057_v57  ;;  %v6152_v56 = vld [vmem:[%s9031_s1 + $0x2a8] ss:$16 sps:$4 sm:$0xff]   ;;  %v6153_v57 = vld [vmem:[%s9031_s1 + $0x2c4] ss:$16 sps:$4 sm:$0xff]  }
  0x7a   : > { %2562 = vmatprep.mubr.bf16.mxu1 %v6059_v58  ;;  %v6155_v58 = vld [vmem:[%s9031_s1 + $0x2cc] ss:$16 sps:$4 sm:$0xff]  }
  0x80   : > { %2018 = vmatmul.mubr.bf16.gmra.mxu0 %v6061_v59  ;;  %v6157_v59 = vld [vmem:[%s9031_s1 + $0x2c0] ss:$16 sps:$4 sm:$0xff]  }
  0x81   : > { %2563 = vmatmul.mubr.bf16.gmra.mxu1 %v6062_v60  ;;  %2025 = vmatprep.mubr.bf16.mxu0 %v6063_v61  ;;  %v6158_v60 = vld [vmem:[%s9031_s1 + $0x2c8] ss:$16 sps:$4 sm:$0xff]   ;;  %v6159_v61 = vld [vmem:[%s9031_s1 + $0x2e4] ss:$16 sps:$4 sm:$0xff]  }
  0x82   : > { %2570 = vmatprep.mubr.bf16.mxu1 %v6065_v62  ;;  %v6161_v62 = vld [vmem:[%s9031_s1 + $0x2ec] ss:$16 sps:$4 sm:$0xff]  }
  0x88   : > { %2026 = vmatmul.mubr.bf16.gmra.mxu0 %v6067_v63  ;;  %v6163_v63 = vld [vmem:[%s9031_s1 + $0x2e0] ss:$16 sps:$4 sm:$0xff]  }
  0x89   : > { %2571 = vmatmul.mubr.bf16.gmra.mxu1 %v6068_v0  ;;  %2033 = vmatprep.mubr.bf16.mxu0 %v6069_v1  ;;  %v6164_v0 = vld [vmem:[%s9031_s1 + $0x2e8] ss:$16 sps:$4 sm:$0xff]   ;;  %v6165_v1 = vld [vmem:[%s9031_s1 + $0x304] ss:$16 sps:$4 sm:$0xff]  }
  0x8a   : > { %2578 = vmatprep.mubr.bf16.mxu1 %v6071_v2  ;;  %v6167_v2 = vld [vmem:[%s9031_s1 + $0x30c] ss:$16 sps:$4 sm:$0xff]  }
  0x90   : > { %2034 = vmatmul.mubr.bf16.gmra.mxu0 %v6073_v3  ;;  %v6169_v3 = vld [vmem:[%s9031_s1 + $0x300] ss:$16 sps:$4 sm:$0xff]  }
  0x91   : > { %2579 = vmatmul.mubr.bf16.gmra.mxu1 %v6074_v4  ;;  %2041 = vmatprep.mubr.bf16.mxu0 %v6075_v5  ;;  %v6170_v4 = vld [vmem:[%s9031_s1 + $0x308] ss:$16 sps:$4 sm:$0xff]   ;;  %v6171_v5 = vld [vmem:[%s9031_s1 + $0x324] ss:$16 sps:$4 sm:$0xff]  }
  0x92   : > { %2586 = vmatprep.mubr.bf16.mxu1 %v6077_v6  ;;  %v6173_v6 = vld [vmem:[%s9031_s1 + $0x32c] ss:$16 sps:$4 sm:$0xff]  }
  0x98   : > { %2042 = vmatmul.mubr.bf16.gmra.mxu0 %v6079_v7 }
  0x99   : > { %2587 = vmatmul.mubr.bf16.gmra.mxu1 %v6080_v8  ;;  %2049 = vmatprep.mubr.bf16.mxu0 %v6081_v9 }
  0x9a   : > { %2594 = vmatprep.mubr.bf16.mxu1 %v6083_v10 }
  0xa0   : > { %2050 = vmatmul.mubr.bf16.gmra.mxu0 %v6085_v11 }
  0xa1   : > { %2595 = vmatmul.mubr.bf16.gmra.mxu1 %v6086_v12  ;;  %2057 = vmatprep.mubr.bf16.mxu0 %v6087_v13  ;;  %v6175_v13 = vld [vmem:[%s9031_s1 + $0x320] ss:$16 sps:$4 sm:$0xff]  }
  0xa2   : > { %2602 = vmatprep.mubr.bf16.mxu1 %v6089_v14 }
  0xa8   : > { %2058 = vmatmul.mubr.bf16.gmra.mxu0 %v6091_v15  ;;  %v6176_v15 = vld [vmem:[%s9031_s1 + $0x328] ss:$16 sps:$4 sm:$0xff]  }
  0xa9   : > { %2603 = vmatmul.mubr.bf16.gmra.mxu1 %v6092_v16  ;;  %2065 = vmatprep.mubr.bf16.mxu0 %v6093_v17  ;;  %v6177_v16 = vld [vmem:[%s9031_s1 + $0x344] ss:$16 sps:$4 sm:$0xff]  }
  0xaa   : > { %2610 = vmatprep.mubr.bf16.mxu1 %v6095_v18 }
  0xb0   : > { %2066 = vmatmul.mubr.bf16.gmra.mxu0 %v6097_v19  ;;  %v6179_v19 = vld [vmem:[%s9031_s1 + $0x34c] ss:$16 sps:$4 sm:$0xff]  }
  0xb1   : > { %2611 = vmatmul.mubr.bf16.gmra.mxu1 %v6098_v20  ;;  %2073 = vmatprep.mubr.bf16.mxu0 %v6099_v21 }
  0xb2   : > { %2618 = vmatprep.mubr.bf16.mxu1 %v6101_v22 }
  0xb8   : > { %2074 = vmatmul.mubr.bf16.gmra.mxu0 %v6103_v23 }
  0xb9   : > { %2619 = vmatmul.mubr.bf16.gmra.mxu1 %v6104_v24  ;;  %2081 = vmatprep.mubr.bf16.mxu0 %v6105_v25 }
  0xba   : > { %2626 = vmatprep.mubr.bf16.mxu1 %v6107_v26 }
  0xc0   : > { %2082 = vmatmul.mubr.bf16.gmra.mxu0 %v6109_v27  ;;  %v6181_v27 = vld [vmem:[%s9031_s1 + $0x340] ss:$16 sps:$4 sm:$0xff]  }
  0xc1   : > { %2627 = vmatmul.mubr.bf16.gmra.mxu1 %v6110_v28  ;;  %2089 = vmatprep.mubr.bf16.mxu0 %v6111_v29  ;;  %v6182_v29 = vld [vmem:[%s9031_s1 + $0x348] ss:$16 sps:$4 sm:$0xff]  }
  0xc2   : > { %2634 = vmatprep.mubr.bf16.mxu1 %v6113_v30  ;;  %v6183_v30 = vld [vmem:[%s9031_s1 + $0x364] ss:$16 sps:$4 sm:$0xff]  }
  0xc8   : > { %2090 = vmatmul.mubr.bf16.gmra.mxu0 %v6115_v31 }
  0xc9   : > { %2635 = vmatmul.mubr.bf16.gmra.mxu1 %v6116_v32  ;;  %2097 = vmatprep.mubr.bf16.mxu0 %v6117_v33  ;;  %v6185_v33 = vld [vmem:[%s9031_s1 + $0x36c] ss:$16 sps:$4 sm:$0xff]  }
  0xca   : > { %2642 = vmatprep.mubr.bf16.mxu1 %v6119_v34 }
  0xd0   : > { %2098 = vmatmul.mubr.bf16.gmra.mxu0 %v6121_v35 }
  0xd1   : > { %2643 = vmatmul.mubr.bf16.gmra.mxu1 %v6122_v36  ;;  %2105 = vmatprep.mubr.bf16.mxu0 %v6123_v37 }
  0xd2   : > { %2650 = vmatprep.mubr.bf16.mxu1 %v6125_v38 }
  0xd8   : > { %2106 = vmatmul.mubr.bf16.gmra.mxu0 %v6127_v39 }
  0xd9   : > { %2651 = vmatmul.mubr.bf16.gmra.mxu1 %v6128_v40  ;;  %2113 = vmatprep.mubr.bf16.mxu0 %v6129_v41  ;;  %v6187_v41 = vld [vmem:[%s9031_s1 + $0x360] ss:$16 sps:$4 sm:$0xff]  }
  0xda   : > { %2658 = vmatprep.mubr.bf16.mxu1 %v6131_v42 }
  0xe0   : > { %2114 = vmatmul.mubr.bf16.gmra.mxu0 %v6133_v43  ;;  %v6188_v43 = vld [vmem:[%s9031_s1 + $0x368] ss:$16 sps:$4 sm:$0xff]  }
  0xe1   : > { %2659 = vmatmul.mubr.bf16.gmra.mxu1 %v6134_v44  ;;  %2121 = vmatprep.mubr.bf16.mxu0 %v6135_v45  ;;  %v6191_v44 = vld [vmem:[%s9031_s1 + $0x384] ss:$16 sps:$4 sm:$0xff]  }
  0xe2   : > { %2666 = vmatprep.mubr.bf16.mxu1 %v6137_v46 }
  0xe8   : > { %2122 = vmatmul.mubr.bf16.gmra.mxu0 %v6139_v47  ;;  %v6194_v47 = vld [vmem:[%s9031_s1 + $0x38c] ss:$16 sps:$4 sm:$0xff]  }
  0xe9   : > { %2667 = vmatmul.mubr.bf16.gmra.mxu1 %v6140_v48  ;;  %2129 = vmatprep.mubr.bf16.mxu0 %v6141_v49 }
  0xea   : > { %2674 = vmatprep.mubr.bf16.mxu1 %v6143_v50 }
  0xf0   : > { %2130 = vmatmul.mubr.bf16.gmra.mxu0 %v6145_v51 }
  0xf1   : > { %2675 = vmatmul.mubr.bf16.gmra.mxu1 %v6146_v52  ;;  %2137 = vmatprep.mubr.bf16.mxu0 %v6147_v53 }
  0xf2   : > { %2682 = vmatprep.mubr.bf16.mxu1 %v6149_v54 }
  0xf8   : > { %2138 = vmatmul.mubr.bf16.gmra.mxu0 %v6151_v55  ;;  %v6189_v55 = vld [vmem:[%s9031_s1 + $0x380] ss:$16 sps:$4 sm:$0xff]  }
  0xf9   : > { %2683 = vmatmul.mubr.bf16.gmra.mxu1 %v6152_v56  ;;  %2145 = vmatprep.mubr.bf16.mxu0 %v6153_v57  ;;  %v6192_v57 = vld [vmem:[%s9031_s1 + $0x388] ss:$16 sps:$4 sm:$0xff]  }
  0xfa   : > { %2690 = vmatprep.mubr.bf16.mxu1 %v6155_v58  ;;  %v6197_v58 = vld [vmem:[%s9031_s1 + $0x3a4] ss:$16 sps:$4 sm:$0xff]  }
 0x100   : > { %2146 = vmatmul.mubr.bf16.gmra.mxu0 %v6157_v59 }
 0x101   : > { %2691 = vmatmul.mubr.bf16.gmra.mxu1 %v6158_v60  ;;  %2153 = vmatprep.mubr.bf16.mxu0 %v6159_v61  ;;  %v6200_v61 = vld [vmem:[%s9031_s1 + $0x3ac] ss:$16 sps:$4 sm:$0xff]  }
 0x102   : > { %2698 = vmatprep.mubr.bf16.mxu1 %v6161_v62 }
 0x108   : > { %2154 = vmatmul.mubr.bf16.gmra.mxu0 %v6163_v63 }
 0x109   : > { %2699 = vmatmul.mubr.bf16.gmra.mxu1 %v6164_v0  ;;  %2161 = vmatprep.mubr.bf16.mxu0 %v6165_v1 }
 0x10a   : > { %2706 = vmatprep.mubr.bf16.mxu1 %v6167_v2 }
 0x110   : > { %v1971_v7 = vpop.f32.mrf.mxu0  ;;  %2162 = vmatmul.mubr.bf16.gmra.mxu0 %v6169_v3 }
 0x111   : > { %v2516_v8 = vpop.f32.mrf.mxu1  ;;  %2707 = vmatmul.mubr.bf16.gmra.mxu1 %v6170_v4  ;;  %2169 = vmatprep.mubr.bf16.mxu0 %v6171_v5  ;;  %v6195_v5 = vld [vmem:[%s9031_s1 + $0x3a0] ss:$16 sps:$4 sm:$0xff]  }
 0x112   : > { %v6881_v9 = vadd.f32 %v2516_v8, %v1971_v7  ;;  %v1973_v10 = vpop.f32.mrf.mxu0  ;;  %2714 = vmatprep.mubr.bf16.mxu1 %v6173_v6  ;;  %v6198_v7 = vld [vmem:[%s9031_s1 + $0x3a8] ss:$16 sps:$4 sm:$0xff]   ;;  %v6203_v8 = vld [vmem:[%s9031_s1 + $0x3c4] ss:$16 sps:$4 sm:$0xff]  }
 0x113   : > { %v2518_v11 = vpop.f32.mrf.mxu1 }
 0x114   : > { %9213 = vst [vmem:[#allocation2_spill] sm:$0xff] %v6881_v9  ;;  %v1974_v12 = vpop.f32.mrf.mxu0 }
 0x115   : > { %v2519_v14 = vpop.f32.mrf.mxu1 }
 0x116   : > { %v6892_v17 = vadd.f32 %v2519_v14, %v1974_v12  ;;  %v1976_v18 = vpop.f32.mrf.mxu0  ;;  %v6206_v12 = vld [vmem:[%s9031_s1 + $0x3cc] ss:$16 sps:$4 sm:$0xff]  }
 0x117   : > { %v2521_v20 = vpop.f32.mrf.mxu1 }
 0x118   : > { %9214 = vst [vmem:[#allocation3_spill] sm:$0xff] %v6892_v17  ;;  %v1979_v21 = vpop.f32.mrf.mxu0  ;;  %2170 = vmatmul.mubr.bf16.gmra.mxu0 %v6175_v13 }
 0x119   : > { %v2524_v22 = vpop.f32.mrf.mxu1  ;;  %2715 = vmatmul.mubr.bf16.gmra.mxu1 %v6176_v15  ;;  %2177 = vmatprep.mubr.bf16.mxu0 %v6177_v16 }
 0x11a   : > { %v6897_v23 = vadd.f32 %v2524_v22, %v1979_v21  ;;  %v1981_v24 = vpop.f32.mrf.mxu0  ;;  %2722 = vmatprep.mubr.bf16.mxu1 %v6179_v19  ;;  %v6201_v21 = vld [vmem:[%s9031_s1 + $0x3c0] ss:$16 sps:$4 sm:$0xff]  }
 0x11b   : > { %v2526_v25 = vpop.f32.mrf.mxu1  ;;  %v6204_v24 = vld [vmem:[%s9031_s1 + $0x3c8] ss:$16 sps:$4 sm:$0xff]  }
 0x11c   : > { %v1982_v26 = vpop.f32.mrf.mxu0  ;;  %v6209_v25 = vld [vmem:[%s9031_s1 + $0x3e4] ss:$16 sps:$4 sm:$0xff]  }
 0x11d   : > { %v2527_v28 = vpop.f32.mrf.mxu1 }
 0x11e   : > { %v6908_v31 = vadd.f32 %v2527_v28, %v1982_v26  ;;  %v1984_v32 = vpop.f32.mrf.mxu0  ;;  %v6212_v28 = vld [vmem:[%s9031_s1 + $0x3ec] ss:$16 sps:$4 sm:$0xff]  }
 0x11f   : > { %v2529_v34 = vpop.f32.mrf.mxu1 }
 0x120   : > { %v1987_v35 = vpop.f32.mrf.mxu0  ;;  %2178 = vmatmul.mubr.bf16.gmra.mxu0 %v6181_v27 }
 0x121   : > { %v2532_v36 = vpop.f32.mrf.mxu1  ;;  %2723 = vmatmul.mubr.bf16.gmra.mxu1 %v6182_v29  ;;  %2185 = vmatprep.mubr.bf16.mxu0 %v6183_v30 }
 0x122   : > { %v6913_v37 = vadd.f32 %v2532_v36, %v1987_v35  ;;  %v1989_v38 = vpop.f32.mrf.mxu0  ;;  %2730 = vmatprep.mubr.bf16.mxu1 %v6185_v33 }
 0x123   : > { %v2534_v39 = vpop.f32.mrf.mxu1  ;;  %v6207_v38 = vld [vmem:[%s9031_s1 + $0x3e0] ss:$16 sps:$4 sm:$0xff]  }
 0x124   : > { %9215 = vst [vmem:[#allocation4_spill] sm:$0xff] %v6913_v37  ;;  %v1990_v40 = vpop.f32.mrf.mxu0 }
 0x125   : > { %v2535_v42 = vpop.f32.mrf.mxu1 }
 0x126   : > { %v6924_v45 = vadd.f32 %v2535_v42, %v1990_v40  ;;  %v1992_v46 = vpop.f32.mrf.mxu0  ;;  %v6210_v40 = vld [vmem:[%s9031_s1 + $0x3e8] ss:$16 sps:$4 sm:$0xff]  }
 0x127   : > { %v2537_v48 = vpop.f32.mrf.mxu1 }
 0x128   : > { %v1995_v49 = vpop.f32.mrf.mxu0  ;;  %2186 = vmatmul.mubr.bf16.gmra.mxu0 %v6187_v41  ;;  %v6215_v41 = vld [vmem:[%s9031_s1 + $0x404] ss:$16 sps:$4 sm:$0xff]  }
 0x129   : > { %v2540_v50 = vpop.f32.mrf.mxu1  ;;  %2731 = vmatmul.mubr.bf16.gmra.mxu1 %v6188_v43  ;;  %2193 = vmatprep.mubr.bf16.mxu0 %v6191_v44  ;;  %v6218_v44 = vld [vmem:[%s9031_s1 + $0x40c] ss:$16 sps:$4 sm:$0xff]  }
 0x12a   : > { %v6929_v51 = vadd.f32 %v2540_v50, %v1995_v49  ;;  %v1997_v52 = vpop.f32.mrf.mxu0  ;;  %2738 = vmatprep.mubr.bf16.mxu1 %v6194_v47 }
 0x12b   : > { %v2542_v53 = vpop.f32.mrf.mxu1 }
 0x12c   : > { %9216 = vst [vmem:[#allocation5_spill] sm:$0xff] %v6929_v51  ;;  %v1998_v54 = vpop.f32.mrf.mxu0 }
 0x12d   : > { %v2543_v56 = vpop.f32.mrf.mxu1 }
 0x12e   : > { %v6940_v59 = vadd.f32 %v2543_v56, %v1998_v54  ;;  %v2000_v60 = vpop.f32.mrf.mxu0  ;;  %v6213_v54 = vld [vmem:[%s9031_s1 + $0x400] ss:$16 sps:$4 sm:$0xff]   ;;  %v6216_v56 = vld [vmem:[%s9031_s1 + $0x408] ss:$16 sps:$4 sm:$0xff]  }
 0x12f   : > { %v2545_v62 = vpop.f32.mrf.mxu1 }
 0x130   : > { %v2003_v63 = vpop.f32.mrf.mxu0  ;;  %2194 = vmatmul.mubr.bf16.gmra.mxu0 %v6189_v55 }
 0x131   : > { %v2548_v0 = vpop.f32.mrf.mxu1  ;;  %2739 = vmatmul.mubr.bf16.gmra.mxu1 %v6192_v57  ;;  %2201 = vmatprep.mubr.bf16.mxu0 %v6197_v58  ;;  %v6221_v57 = vld [vmem:[%s9031_s1 + $0x424] ss:$16 sps:$4 sm:$0xff]  }
 0x132   : > { %v6945_v1 = vadd.f32 %v2548_v0, %v2003_v63  ;;  %v2005_v2 = vpop.f32.mrf.mxu0  ;;  %2746 = vmatprep.mubr.bf16.mxu1 %v6200_v61  ;;  %v6224_v61 = vld [vmem:[%s9031_s1 + $0x42c] ss:$16 sps:$4 sm:$0xff]  }
 0x133   : > { %v2550_v3 = vpop.f32.mrf.mxu1 }
 0x134   : > { %9217 = vst [vmem:[#allocation6_spill] sm:$0xff] %v6945_v1  ;;  %v2006_v4 = vpop.f32.mrf.mxu0 }
 0x135   : > { %v2551_v6 = vpop.f32.mrf.mxu1 }
 0x136   : > { %v6956_v10 = vadd.f32 %v2551_v6, %v2006_v4  ;;  %v2008_v11 = vpop.f32.mrf.mxu0  ;;  %v6219_v6 = vld [vmem:[%s9031_s1 + $0x420] ss:$16 sps:$4 sm:$0xff]  }
 0x137   : > { %v2553_v13 = vpop.f32.mrf.mxu1  ;;  %v6227_v11 = vld [vmem:[%s9031_s1 + $0x444] ss:$16 sps:$4 sm:$0xff]  }
 0x138   : > { %v2011_v14 = vpop.f32.mrf.mxu0  ;;  %2202 = vmatmul.mubr.bf16.gmra.mxu0 %v6195_v5 }
 0x139   : > { %v2556_v15 = vpop.f32.mrf.mxu1  ;;  %2747 = vmatmul.mubr.bf16.gmra.mxu1 %v6198_v7  ;;  %2209 = vmatprep.mubr.bf16.mxu0 %v6203_v8  ;;  %v6222_v8 = vld [vmem:[%s9031_s1 + $0x428] ss:$16 sps:$4 sm:$0xff]  }
 0x13a   : > { %v6961_v16 = vadd.f32 %v2556_v15, %v2011_v14  ;;  %v2013_v18 = vpop.f32.mrf.mxu0  ;;  %2754 = vmatprep.mubr.bf16.mxu1 %v6206_v12  ;;  %v6230_v14 = vld [vmem:[%s9031_s1 + $0x44c] ss:$16 sps:$4 sm:$0xff]  }
 0x13b   : > { %v2558_v19 = vpop.f32.mrf.mxu1 }
 0x13c   : > { %9218 = vst [vmem:[#allocation7_spill] sm:$0xff] %v6961_v16  ;;  %v2014_v20 = vpop.f32.mrf.mxu0 }
 0x13d   : > { %v2559_v22 = vpop.f32.mrf.mxu1 }
 0x13e   : > { %v6972_v26 = vadd.f32 %v2559_v22, %v2014_v20  ;;  %v2016_v27 = vpop.f32.mrf.mxu0 }
 0x13f   : > { %v2561_v29 = vpop.f32.mrf.mxu1 }
 0x140   : > { %v2019_v30 = vpop.f32.mrf.mxu0  ;;  %2210 = vmatmul.mubr.bf16.gmra.mxu0 %v6201_v21  ;;  %v6233_v29 = vld [vmem:[%s9031_s1 + $0x464] ss:$16 sps:$4 sm:$0xff]  }
 0x141   : > { %v2564_v32 = vpop.f32.mrf.mxu1  ;;  %2755 = vmatmul.mubr.bf16.gmra.mxu1 %v6204_v24  ;;  %2217 = vmatprep.mubr.bf16.mxu0 %v6209_v25  ;;  %v6225_v25 = vld [vmem:[%s9031_s1 + $0x440] ss:$16 sps:$4 sm:$0xff]  }
 0x142   : > { %v6977_v33 = vadd.f32 %v2564_v32, %v2019_v30  ;;  %v2021_v34 = vpop.f32.mrf.mxu0  ;;  %2762 = vmatprep.mubr.bf16.mxu1 %v6212_v28  ;;  %v6228_v28 = vld [vmem:[%s9031_s1 + $0x448] ss:$16 sps:$4 sm:$0xff]  }
 0x143   : > { %v2566_v35 = vpop.f32.mrf.mxu1  ;;  %v6236_v34 = vld [vmem:[%s9031_s1 + $0x46c] ss:$16 sps:$4 sm:$0xff]  }
 0x144   : > { %9219 = vst [vmem:[#allocation8_spill] sm:$0xff] %v6977_v33  ;;  %v2022_v36 = vpop.f32.mrf.mxu0 }
 0x145   : > { %v2567_v39 = vpop.f32.mrf.mxu1 }
 0x146   : > { %v6988_v42 = vadd.f32 %v2567_v39, %v2022_v36  ;;  %v2024_v43 = vpop.f32.mrf.mxu0 }
 0x147   : > { %v2569_v46 = vpop.f32.mrf.mxu1 }
 0x148   : > { %v2027_v47 = vpop.f32.mrf.mxu0  ;;  %2218 = vmatmul.mubr.bf16.gmra.mxu0 %v6207_v38 }
 0x149   : > { %v2572_v48 = vpop.f32.mrf.mxu1  ;;  %2763 = vmatmul.mubr.bf16.gmra.mxu1 %v6210_v40  ;;  %2225 = vmatprep.mubr.bf16.mxu0 %v6215_v41 }
 0x14a   : > { %v6993_v49 = vadd.f32 %v2572_v48, %v2027_v47  ;;  %v2029_v50 = vpop.f32.mrf.mxu0  ;;  %2770 = vmatprep.mubr.bf16.mxu1 %v6218_v44  ;;  %v6231_v44 = vld [vmem:[%s9031_s1 + $0x460] ss:$16 sps:$4 sm:$0xff]   ;;  %v6234_v47 = vld [vmem:[%s9031_s1 + $0x468] ss:$16 sps:$4 sm:$0xff]   ;;  %v6239_v48 = vld [vmem:[%s9031_s1 + $0x484] ss:$16 sps:$4 sm:$0xff]  }
 0x14b   : > { %v2574_v52 = vpop.f32.mrf.mxu1 }
 0x14c   : > { %9220 = vst [vmem:[#allocation9_spill] sm:$0xff] %v6993_v49  ;;  %v2030_v53 = vpop.f32.mrf.mxu0 }
 0x14d   : > { %v2575_v55 = vpop.f32.mrf.mxu1 }
 0x14e   : > { %v7004_v58 = vadd.f32 %v2575_v55, %v2030_v53  ;;  %v2032_v60 = vpop.f32.mrf.mxu0  ;;  %v6242_v53 = vld [vmem:[%s9031_s1 + $0x48c] ss:$16 sps:$4 sm:$0xff]  }
 0x14f   : > { %v2577_v62 = vpop.f32.mrf.mxu1 }
 0x150   : > { %9221 = vst [vmem:[#allocation10_spill] sm:$0xff] %v7004_v58  ;;  %v2035_v63 = vpop.f32.mrf.mxu0  ;;  %2226 = vmatmul.mubr.bf16.gmra.mxu0 %v6213_v54 }
 0x151   : > { %v2580_v0 = vpop.f32.mrf.mxu1  ;;  %2771 = vmatmul.mubr.bf16.gmra.mxu1 %v6216_v56  ;;  %2233 = vmatprep.mubr.bf16.mxu0 %v6221_v57 }
 0x152   : > { %v7009_v2 = vadd.f32 %v2580_v0, %v2035_v63  ;;  %v2037_v3 = vpop.f32.mrf.mxu0  ;;  %2778 = vmatprep.mubr.bf16.mxu1 %v6224_v61  ;;  %v6237_v63 = vld [vmem:[%s9031_s1 + $0x480] ss:$16 sps:$4 sm:$0xff]  }
 0x153   : > { %v2582_v4 = vpop.f32.mrf.mxu1  ;;  %v6240_v3 = vld [vmem:[%s9031_s1 + $0x488] ss:$16 sps:$4 sm:$0xff]  }
 0x154   : > { %9222 = vst [vmem:[#allocation11_spill] sm:$0xff] %v7009_v2  ;;  %v2038_v5 = vpop.f32.mrf.mxu0  ;;  %v6245_v4 = vld [vmem:[%s9031_s1 + $0x4a4] ss:$16 sps:$4 sm:$0xff]  }
 0x155   : > { %v2583_v7 = vpop.f32.mrf.mxu1 }
 0x156   : > { %v7020_v12 = vadd.f32 %v2583_v7, %v2038_v5  ;;  %v2040_v13 = vpop.f32.mrf.mxu0  ;;  %v6248_v7 = vld [vmem:[%s9031_s1 + $0x4ac] ss:$16 sps:$4 sm:$0xff]  }
 0x157   : > { %v2585_v15 = vpop.f32.mrf.mxu1 }
 0x158   : > { %9223 = vst [vmem:[#allocation12_spill] sm:$0xff] %v7020_v12  ;;  %v2043_v18 = vpop.f32.mrf.mxu0  ;;  %2234 = vmatmul.mubr.bf16.gmra.mxu0 %v6219_v6 }
 0x159   : > { %v2588_v19 = vpop.f32.mrf.mxu1  ;;  %2779 = vmatmul.mubr.bf16.gmra.mxu1 %v6222_v8  ;;  %2241 = vmatprep.mubr.bf16.mxu0 %v6227_v11 }
 0x15a   : > { %v7025_v20 = vadd.f32 %v2588_v19, %v2043_v18  ;;  %v2045_v21 = vpop.f32.mrf.mxu0  ;;  %2786 = vmatprep.mubr.bf16.mxu1 %v6230_v14 }
 0x15b   : > { %v2590_v22 = vpop.f32.mrf.mxu1  ;;  %v6243_v21 = vld [vmem:[%s9031_s1 + $0x4a0] ss:$16 sps:$4 sm:$0xff]  }
 0x15c   : > { %9224 = vst [vmem:[#allocation13_spill] sm:$0xff] %v7025_v20  ;;  %v2046_v24 = vpop.f32.mrf.mxu0 }
 0x15d   : > { %v2591_v27 = vpop.f32.mrf.mxu1 }
 0x15e   : > { %v7036_v30 = vadd.f32 %v2591_v27, %v2046_v24  ;;  %v2048_v32 = vpop.f32.mrf.mxu0  ;;  %v6246_v24 = vld [vmem:[%s9031_s1 + $0x4a8] ss:$16 sps:$4 sm:$0xff]  }
 0x15f   : > { %v2593_v35 = vpop.f32.mrf.mxu1 }
 0x160   : > { %9225 = vst [vmem:[#allocation14_spill] sm:$0xff] %v7036_v30  ;;  %v2051_v36 = vpop.f32.mrf.mxu0  ;;  %2242 = vmatmul.mubr.bf16.gmra.mxu0 %v6225_v25  ;;  %v6251_v25 = vld [vmem:[%s9031_s1 + $0x4c4] ss:$16 sps:$4 sm:$0xff]  }
 0x161   : > { %v2596_v38 = vpop.f32.mrf.mxu1  ;;  %2787 = vmatmul.mubr.bf16.gmra.mxu1 %v6228_v28  ;;  %2249 = vmatprep.mubr.bf16.mxu0 %v6233_v29  ;;  %v6254_v29 = vld [vmem:[%s9031_s1 + $0x4cc] ss:$16 sps:$4 sm:$0xff]  }
 0x162   : > { %v7041_v39 = vadd.f32 %v2596_v38, %v2051_v36  ;;  %v2053_v40 = vpop.f32.mrf.mxu0  ;;  %2794 = vmatprep.mubr.bf16.mxu1 %v6236_v34 }
 0x163   : > { %v2598_v41 = vpop.f32.mrf.mxu1 }
 0x164   : > { %9226 = vst [vmem:[#allocation15_spill] sm:$0xff] %v7041_v39  ;;  %v2054_v43 = vpop.f32.mrf.mxu0 }
 0x165   : > { %v2599_v46 = vpop.f32.mrf.mxu1 }
 0x166   : > { %v7052_v50 = vadd.f32 %v2599_v46, %v2054_v43  ;;  %v2056_v52 = vpop.f32.mrf.mxu0  ;;  %v6249_v43 = vld [vmem:[%s9031_s1 + $0x4c0] ss:$16 sps:$4 sm:$0xff]   ;;  %v6252_v46 = vld [vmem:[%s9031_s1 + $0x4c8] ss:$16 sps:$4 sm:$0xff]  }
 0x167   : > { %v2601_v54 = vpop.f32.mrf.mxu1 }
 0x168   : > { %9227 = vst [vmem:[#allocation16_spill] sm:$0xff] %v7052_v50  ;;  %v2059_v55 = vpop.f32.mrf.mxu0  ;;  %2250 = vmatmul.mubr.bf16.gmra.mxu0 %v6231_v44 }
 0x169   : > { %v2604_v56 = vpop.f32.mrf.mxu1  ;;  %2795 = vmatmul.mubr.bf16.gmra.mxu1 %v6234_v47  ;;  %2257 = vmatprep.mubr.bf16.mxu0 %v6239_v48  ;;  %v6257_v47 = vld [vmem:[%s9031_s1 + $0x4e4] ss:$16 sps:$4 sm:$0xff]  }
 0x16a   : > { %v7057_v57 = vadd.f32 %v2604_v56, %v2059_v55  ;;  %v2061_v60 = vpop.f32.mrf.mxu0  ;;  %2802 = vmatprep.mubr.bf16.mxu1 %v6242_v53  ;;  %v6260_v53 = vld [vmem:[%s9031_s1 + $0x4ec] ss:$16 sps:$4 sm:$0xff]  }
 0x16b   : > { %v2606_v61 = vpop.f32.mrf.mxu1 }
 0x16c   : > { %9228 = vst [vmem:[#allocation17_spill] sm:$0xff] %v7057_v57  ;;  %v2062_v62 = vpop.f32.mrf.mxu0 }
 0x16d   : > { %v2607_v0 = vpop.f32.mrf.mxu1 }
 0x16e   : > { %v7068_v5 = vadd.f32 %v2607_v0, %v2062_v62  ;;  %v2064_v6 = vpop.f32.mrf.mxu0  ;;  %v6255_v0 = vld [vmem:[%s9031_s1 + $0x4e0] ss:$16 sps:$4 sm:$0xff]  }
 0x16f   : > { %v2609_v8 = vpop.f32.mrf.mxu1  ;;  %v6263_v6 = vld [vmem:[%s9031_s1 + $0x504] ss:$16 sps:$4 sm:$0xff]  }
 0x170   : > { %9229 = vst [vmem:[#allocation18_spill] sm:$0xff] %v7068_v5  ;;  %v2067_v11 = vpop.f32.mrf.mxu0  ;;  %2258 = vmatmul.mubr.bf16.gmra.mxu0 %v6237_v63 }
 0x171   : > { %v2612_v13 = vpop.f32.mrf.mxu1  ;;  %2803 = vmatmul.mubr.bf16.gmra.mxu1 %v6240_v3  ;;  %2265 = vmatprep.mubr.bf16.mxu0 %v6245_v4  ;;  %v6258_v4 = vld [vmem:[%s9031_s1 + $0x4e8] ss:$16 sps:$4 sm:$0xff]  }
 0x172   : > { %v7073_v14 = vadd.f32 %v2612_v13, %v2067_v11  ;;  %v2069_v15 = vpop.f32.mrf.mxu0  ;;  %2810 = vmatprep.mubr.bf16.mxu1 %v6248_v7  ;;  %v6266_v11 = vld [vmem:[%s9031_s1 + $0x50c] ss:$16 sps:$4 sm:$0xff]  }
 0x173   : > { %v2614_v18 = vpop.f32.mrf.mxu1 }
 0x174   : > { %9230 = vst [vmem:[#allocation19_spill] sm:$0xff] %v7073_v14  ;;  %v2070_v19 = vpop.f32.mrf.mxu0 }
 0x175   : > { %v2615_v22 = vpop.f32.mrf.mxu1 }
 0x176   : > { %v7084_v27 = vadd.f32 %v2615_v22, %v2070_v19  ;;  %v2072_v28 = vpop.f32.mrf.mxu0 }
 0x177   : > { %v2617_v32 = vpop.f32.mrf.mxu1 }
 0x178   : > { %9231 = vst [vmem:[#allocation20_spill] sm:$0xff] %v7084_v27  ;;  %v2075_v34 = vpop.f32.mrf.mxu0  ;;  %2266 = vmatmul.mubr.bf16.gmra.mxu0 %v6243_v21  ;;  %v6269_v32 = vld [vmem:[%s9031_s1 + $0x524] ss:$16 sps:$4 sm:$0xff]  }
 0x179   : > { %v2620_v35 = vpop.f32.mrf.mxu1  ;;  %2811 = vmatmul.mubr.bf16.gmra.mxu1 %v6246_v24  ;;  %2273 = vmatprep.mubr.bf16.mxu0 %v6251_v25  ;;  %v6261_v25 = vld [vmem:[%s9031_s1 + $0x500] ss:$16 sps:$4 sm:$0xff]  }
 0x17a   : > { %v7089_v36 = vadd.f32 %v2620_v35, %v2075_v34  ;;  %v2077_v38 = vpop.f32.mrf.mxu0  ;;  %2818 = vmatprep.mubr.bf16.mxu1 %v6254_v29  ;;  %v6264_v29 = vld [vmem:[%s9031_s1 + $0x508] ss:$16 sps:$4 sm:$0xff]  }
 0x17b   : > { %v2622_v40 = vpop.f32.mrf.mxu1  ;;  %v6272_v38 = vld [vmem:[%s9031_s1 + $0x52c] ss:$16 sps:$4 sm:$0xff]  }
 0x17c   : > { %9232 = vst [vmem:[#allocation21_spill] sm:$0xff] %v7089_v36  ;;  %v2078_v41 = vpop.f32.mrf.mxu0 }
 0x17d   : > { %v2623_v44 = vpop.f32.mrf.mxu1 }
 0x17e   : > { %v7100_v48 = vadd.f32 %v2623_v44, %v2078_v41  ;;  %v2080_v52 = vpop.f32.mrf.mxu0 }
 0x17f   : > { %v2625_v54 = vpop.f32.mrf.mxu1 }
 0x180   : > { %9233 = vst [vmem:[#allocation22_spill] sm:$0xff] %v7100_v48  ;;  %v2083_v55 = vpop.f32.mrf.mxu0  ;;  %2274 = vmatmul.mubr.bf16.gmra.mxu0 %v6249_v43 }
 0x181   : > { %v2628_v56 = vpop.f32.mrf.mxu1  ;;  %2819 = vmatmul.mubr.bf16.gmra.mxu1 %v6252_v46  ;;  %2281 = vmatprep.mubr.bf16.mxu0 %v6257_v47 }
 0x182   : > { %v7105_v60 = vadd.f32 %v2628_v56, %v2083_v55  ;;  %v2085_v61 = vpop.f32.mrf.mxu0  ;;  %2826 = vmatprep.mubr.bf16.mxu1 %v6260_v53  ;;  %v6267_v53 = vld [vmem:[%s9031_s1 + $0x520] ss:$16 sps:$4 sm:$0xff]   ;;  %v6270_v55 = vld [vmem:[%s9031_s1 + $0x528] ss:$16 sps:$4 sm:$0xff]   ;;  %v6275_v56 = vld [vmem:[%s9031_s1 + $0x544] ss:$16 sps:$4 sm:$0xff]  }
 0x183   : > { %v2630_v62 = vpop.f32.mrf.mxu1 }
 0x184   : > { %9234 = vst [vmem:[#allocation23_spill] sm:$0xff] %v7105_v60  ;;  %v2086_v63 = vpop.f32.mrf.mxu0 }
 0x185   : > { %v2631_v3 = vpop.f32.mrf.mxu1 }
 0x186   : > { %v7116_v7 = vadd.f32 %v2631_v3, %v2086_v63  ;;  %v2088_v8 = vpop.f32.mrf.mxu0  ;;  %v6278_v63 = vld [vmem:[%s9031_s1 + $0x54c] ss:$16 sps:$4 sm:$0xff]  }
 0x187   : > { %v2633_v13 = vpop.f32.mrf.mxu1 }
 0x188   : > { %9235 = vst [vmem:[#allocation24_spill] sm:$0xff] %v7116_v7  ;;  %v2091_v15 = vpop.f32.mrf.mxu0  ;;  %2282 = vmatmul.mubr.bf16.gmra.mxu0 %v6255_v0 }
 0x189   : > { %v2636_v18 = vpop.f32.mrf.mxu1  ;;  %2827 = vmatmul.mubr.bf16.gmra.mxu1 %v6258_v4  ;;  %2289 = vmatprep.mubr.bf16.mxu0 %v6263_v6 }
 0x18a   : > { %v7121_v19 = vadd.f32 %v2636_v18, %v2091_v15  ;;  %v2093_v21 = vpop.f32.mrf.mxu0  ;;  %2834 = vmatprep.mubr.bf16.mxu1 %v6266_v11  ;;  %v6273_v15 = vld [vmem:[%s9031_s1 + $0x540] ss:$16 sps:$4 sm:$0xff]  }
 0x18b   : > { %v2638_v22 = vpop.f32.mrf.mxu1  ;;  %v6276_v21 = vld [vmem:[%s9031_s1 + $0x548] ss:$16 sps:$4 sm:$0xff]  }
 0x18c   : > { %9236 = vst [vmem:[#allocation25_spill] sm:$0xff] %v7121_v19  ;;  %v2094_v24 = vpop.f32.mrf.mxu0  ;;  %v6281_v22 = vld [vmem:[%s9031_s1 + $0x564] ss:$16 sps:$4 sm:$0xff]  }
 0x18d   : > { %v2639_v28 = vpop.f32.mrf.mxu1 }
 0x18e   : > { %v7132_v34 = vadd.f32 %v2639_v28, %v2094_v24  ;;  %v2096_v35 = vpop.f32.mrf.mxu0  ;;  %v6284_v28 = vld [vmem:[%s9031_s1 + $0x56c] ss:$16 sps:$4 sm:$0xff]  }
 0x18f   : > { %v2641_v40 = vpop.f32.mrf.mxu1 }
 0x190   : > { %9237 = vst [vmem:[#allocation26_spill] sm:$0xff] %v7132_v34  ;;  %v2099_v41 = vpop.f32.mrf.mxu0  ;;  %2290 = vmatmul.mubr.bf16.gmra.mxu0 %v6261_v25 }
 0x191   : > { %v2644_v43 = vpop.f32.mrf.mxu1  ;;  %2835 = vmatmul.mubr.bf16.gmra.mxu1 %v6264_v29  ;;  %2297 = vmatprep.mubr.bf16.mxu0 %v6269_v32 }
 0x192   : > { %v7137_v44 = vadd.f32 %v2644_v43, %v2099_v41  ;;  %v2101_v46 = vpop.f32.mrf.mxu0  ;;  %2842 = vmatprep.mubr.bf16.mxu1 %v6272_v38 }
 0x193   : > { %v2646_v47 = vpop.f32.mrf.mxu1  ;;  %v6279_v46 = vld [vmem:[%s9031_s1 + $0x560] ss:$16 sps:$4 sm:$0xff]  }
 0x194   : > { %9238 = vst [vmem:[#allocation27_spill] sm:$0xff] %v7137_v44  ;;  %v2102_v52 = vpop.f32.mrf.mxu0 }
 0x195   : > { %v2647_v54 = vpop.f32.mrf.mxu1 }
 0x196   : > { %v7148_v61 = vadd.f32 %v2647_v54, %v2102_v52  ;;  %v2104_v62 = vpop.f32.mrf.mxu0  ;;  %v6282_v52 = vld [vmem:[%s9031_s1 + $0x568] ss:$16 sps:$4 sm:$0xff]  }
 0x197   : > { %v2649_v0 = vpop.f32.mrf.mxu1 }
 0x198   : > { %9239 = vst [vmem:[#allocation28_spill] sm:$0xff] %v7148_v61  ;;  %v2107_v3 = vpop.f32.mrf.mxu0  ;;  %2298 = vmatmul.mubr.bf16.gmra.mxu0 %v6267_v53  ;;  %v6287_v53 = vld [vmem:[%s9031_s1 + $0x584] ss:$16 sps:$4 sm:$0xff]  }
 0x199   : > { %v2652_v4 = vpop.f32.mrf.mxu1  ;;  %2843 = vmatmul.mubr.bf16.gmra.mxu1 %v6270_v55  ;;  %2305 = vmatprep.mubr.bf16.mxu0 %v6275_v56  ;;  %v6290_v56 = vld [vmem:[%s9031_s1 + $0x58c] ss:$16 sps:$4 sm:$0xff]  }
 0x19a   : > { %v7153_v6 = vadd.f32 %v2652_v4, %v2107_v3  ;;  %v2109_v8 = vpop.f32.mrf.mxu0  ;;  %2850 = vmatprep.mubr.bf16.mxu1 %v6278_v63 }
 0x19b   : > { %v2654_v11 = vpop.f32.mrf.mxu1 }
 0x19c   : > { %9240 = vst [vmem:[#allocation29_spill] sm:$0xff] %v7153_v6  ;;  %v2110_v13 = vpop.f32.mrf.mxu0 }
 0x19d   : > { %v2655_v18 = vpop.f32.mrf.mxu1 }
 0x19e   : > { %v7164_v24 = vadd.f32 %v2655_v18, %v2110_v13  ;;  %v2112_v25 = vpop.f32.mrf.mxu0  ;;  %v6285_v13 = vld [vmem:[%s9031_s1 + $0x580] ss:$16 sps:$4 sm:$0xff]   ;;  %v6288_v18 = vld [vmem:[%s9031_s1 + $0x588] ss:$16 sps:$4 sm:$0xff]  }
 0x19f   : > { %v2657_v29 = vpop.f32.mrf.mxu1 }
 0x1a0   : > { %9241 = vst [vmem:[#allocation30_spill] sm:$0xff] %v7164_v24  ;;  %v2115_v32 = vpop.f32.mrf.mxu0  ;;  %2306 = vmatmul.mubr.bf16.gmra.mxu0 %v6273_v15 }
 0x1a1   : > { %v2660_v35 = vpop.f32.mrf.mxu1  ;;  %2851 = vmatmul.mubr.bf16.gmra.mxu1 %v6276_v21  ;;  %2313 = vmatprep.mubr.bf16.mxu0 %v6281_v22  ;;  %v6293_v21 = vld [vmem:[%s9031_s1 + $0x5a4] ss:$16 sps:$4 sm:$0xff]  }
 0x1a2   : > { %v7169_v38 = vadd.f32 %v2660_v35, %v2115_v32  ;;  %v2117_v40 = vpop.f32.mrf.mxu0  ;;  %2858 = vmatprep.mubr.bf16.mxu1 %v6284_v28  ;;  %v6296_v28 = vld [vmem:[%s9031_s1 + $0x5ac] ss:$16 sps:$4 sm:$0xff]  }
 0x1a3   : > { %v2662_v41 = vpop.f32.mrf.mxu1 }
 0x1a4   : > { %9242 = vst [vmem:[#allocation31_spill] sm:$0xff] %v7169_v38  ;;  %v2118_v43 = vpop.f32.mrf.mxu0 }
 0x1a5   : > { %v2663_v47 = vpop.f32.mrf.mxu1 }
 0x1a6   : > { %v7180_v54 = vadd.f32 %v2663_v47, %v2118_v43  ;;  %v2120_v55 = vpop.f32.mrf.mxu0  ;;  %v6291_v47 = vld [vmem:[%s9031_s1 + $0x5a0] ss:$16 sps:$4 sm:$0xff]  }
 0x1a7   : > { %v2665_v62 = vpop.f32.mrf.mxu1  ;;  %v6299_v55 = vld [vmem:[%s9031_s1 + $0x5c4] ss:$16 sps:$4 sm:$0xff]  }
 0x1a8   : > { %v2123_v63 = vpop.f32.mrf.mxu0  ;;  %2314 = vmatmul.mubr.bf16.gmra.mxu0 %v6279_v46 }
 0x1a9   : > { %v2668_v0 = vpop.f32.mrf.mxu1  ;;  %2859 = vmatmul.mubr.bf16.gmra.mxu1 %v6282_v52  ;;  %2321 = vmatprep.mubr.bf16.mxu0 %v6287_v53  ;;  %v6294_v53 = vld [vmem:[%s9031_s1 + $0x5a8] ss:$16 sps:$4 sm:$0xff]  }
 0x1aa   : > { %v7185_v3 = vadd.f32 %v2668_v0, %v2123_v63  ;;  %v2125_v4 = vpop.f32.mrf.mxu0  ;;  %2866 = vmatprep.mubr.bf16.mxu1 %v6290_v56  ;;  %v6302_v63 = vld [vmem:[%s9031_s1 + $0x5cc] ss:$16 sps:$4 sm:$0xff]  }
 0x1ab   : > { %v2670_v8 = vpop.f32.mrf.mxu1 }
 0x1ac   : > { %9243 = vst [vmem:[#allocation32_spill] sm:$0xff] %v7185_v3  ;;  %v2126_v11 = vpop.f32.mrf.mxu0 }
 0x1ad   : > { %v2671_v15 = vpop.f32.mrf.mxu1 }
 0x1ae   : > { %v7196_v22 = vadd.f32 %v2671_v15, %v2126_v11  ;;  %v2128_v25 = vpop.f32.mrf.mxu0 }
 0x1af   : > { %v2673_v29 = vpop.f32.mrf.mxu1 }
 0x1b0   : > { %v2131_v32 = vpop.f32.mrf.mxu0  ;;  %2322 = vmatmul.mubr.bf16.gmra.mxu0 %v6285_v13  ;;  %v6305_v29 = vld [vmem:[%s9031_s1 + $0x5e4] ss:$16 sps:$4 sm:$0xff]  }
 0x1b1   : > { %v2676_v35 = vpop.f32.mrf.mxu1  ;;  %2867 = vmatmul.mubr.bf16.gmra.mxu1 %v6288_v18  ;;  %2329 = vmatprep.mubr.bf16.mxu0 %v6293_v21  ;;  %v6297_v21 = vld [vmem:[%s9031_s1 + $0x5c0] ss:$16 sps:$4 sm:$0xff]  }
 0x1b2   : > { %v7201_v40 = vadd.f32 %v2676_v35, %v2131_v32  ;;  %v2133_v41 = vpop.f32.mrf.mxu0  ;;  %2874 = vmatprep.mubr.bf16.mxu1 %v6296_v28  ;;  %v6300_v28 = vld [vmem:[%s9031_s1 + $0x5c8] ss:$16 sps:$4 sm:$0xff]  }
 0x1b3   : > { %v2678_v43 = vpop.f32.mrf.mxu1  ;;  %v6308_v41 = vld [vmem:[%s9031_s1 + $0x5ec] ss:$16 sps:$4 sm:$0xff]  }
 0x1b4   : > { %9244 = vst [vmem:[#allocation33_spill] sm:$0xff] %v7201_v40  ;;  %v2134_v46 = vpop.f32.mrf.mxu0 }
 0x1b5   : > { %v2679_v52 = vpop.f32.mrf.mxu1 }
 0x1b6   : > { %v7212_v56 = vadd.f32 %v2679_v52, %v2134_v46  ;;  %v2136_v62 = vpop.f32.mrf.mxu0 }
 0x1b7   : > { %v2681_v0 = vpop.f32.mrf.mxu1 }
 0x1b8   : > { %v2139_v4 = vpop.f32.mrf.mxu0  ;;  %2330 = vmatmul.mubr.bf16.gmra.mxu0 %v6291_v47 }
 0x1b9   : > { %v2684_v8 = vpop.f32.mrf.mxu1  ;;  %2875 = vmatmul.mubr.bf16.gmra.mxu1 %v6294_v53  ;;  %2337 = vmatprep.mubr.bf16.mxu0 %v6299_v55 }
 0x1ba   : > { %v7217_v11 = vadd.f32 %v2684_v8, %v2139_v4  ;;  %v2141_v13 = vpop.f32.mrf.mxu0  ;;  %2882 = vmatprep.mubr.bf16.mxu1 %v6302_v63  ;;  %v6303_v63 = vld [vmem:[%s9031_s1 + $0x5e0] ss:$16 sps:$4 sm:$0xff]   ;;  %v6306_v4 = vld [vmem:[%s9031_s1 + $0x5e8] ss:$16 sps:$4 sm:$0xff]   ;;  %v6311_v8 = vld [vmem:[%s9031_s1 + $0x604] ss:$16 sps:$4 sm:$0xff]  }
 0x1bb   : > { %v2686_v15 = vpop.f32.mrf.mxu1 }
 0x1bc   : > { %9245 = vst [vmem:[#allocation34_spill] sm:$0xff] %v7217_v11  ;;  %v2142_v18 = vpop.f32.mrf.mxu0 }
 0x1bd   : > { %v2687_v25 = vpop.f32.mrf.mxu1 }
 0x1be   : > { %v7228_v32 = vadd.f32 %v2687_v25, %v2142_v18  ;;  %v2144_v35 = vpop.f32.mrf.mxu0  ;;  %v6314_v18 = vld [vmem:[%s9031_s1 + $0x60c] ss:$16 sps:$4 sm:$0xff]  }
 0x1bf   : > { %v2689_v43 = vpop.f32.mrf.mxu1 }
 0x1c0   : > { %v2147_v46 = vpop.f32.mrf.mxu0  ;;  %2338 = vmatmul.mubr.bf16.gmra.mxu0 %v6297_v21 }
 0x1c1   : > { %v2692_v47 = vpop.f32.mrf.mxu1  ;;  %2883 = vmatmul.mubr.bf16.gmra.mxu1 %v6300_v28  ;;  %2345 = vmatprep.mubr.bf16.mxu0 %v6305_v29 }
 0x1c2   : > { %v7233_v52 = vadd.f32 %v2692_v47, %v2147_v46  ;;  %v2149_v53 = vpop.f32.mrf.mxu0  ;;  %2890 = vmatprep.mubr.bf16.mxu1 %v6308_v41  ;;  %v6309_v46 = vld [vmem:[%s9031_s1 + $0x600] ss:$16 sps:$4 sm:$0xff]  }
 0x1c3   : > { %v2694_v55 = vpop.f32.mrf.mxu1  ;;  %v6312_v53 = vld [vmem:[%s9031_s1 + $0x608] ss:$16 sps:$4 sm:$0xff]  }
 0x1c4   : > { %9246 = vst [vmem:[#allocation35_spill] sm:$0xff] %v7233_v52  ;;  %v2150_v62 = vpop.f32.mrf.mxu0  ;;  %v6317_v55 = vld [vmem:[%s9031_s1 + $0x624] ss:$16 sps:$4 sm:$0xff]  }
 0x1c5   : > { %v2695_v0 = vpop.f32.mrf.mxu1 }
 0x1c6   : > { %v7244_v13 = vadd.f32 %v2695_v0, %v2150_v62  ;;  %v2152_v15 = vpop.f32.mrf.mxu0  ;;  %v6320_v0 = vld [vmem:[%s9031_s1 + $0x62c] ss:$16 sps:$4 sm:$0xff]  }
 0x1c7   : > { %v2697_v21 = vpop.f32.mrf.mxu1 }
 0x1c8   : > { %v2155_v25 = vpop.f32.mrf.mxu0  ;;  %2346 = vmatmul.mubr.bf16.gmra.mxu0 %v6303_v63 }
 0x1c9   : > { %v2700_v28 = vpop.f32.mrf.mxu1  ;;  %2891 = vmatmul.mubr.bf16.gmra.mxu1 %v6306_v4  ;;  %2353 = vmatprep.mubr.bf16.mxu0 %v6311_v8 }
 0x1ca   : > { %v7249_v29 = vadd.f32 %v2700_v28, %v2155_v25  ;;  %v2157_v35 = vpop.f32.mrf.mxu0  ;;  %2898 = vmatprep.mubr.bf16.mxu1 %v6314_v18 }
 0x1cb   : > { %v2702_v41 = vpop.f32.mrf.mxu1  ;;  %v6315_v35 = vld [vmem:[%s9031_s1 + $0x620] ss:$16 sps:$4 sm:$0xff]  }
 0x1cc   : > { %9247 = vst [vmem:[#allocation36_spill] sm:$0xff] %v7249_v29  ;;  %v2158_v43 = vpop.f32.mrf.mxu0 }
 0x1cd   : > { %v2703_v47 = vpop.f32.mrf.mxu1 }
 0x1ce   : > { %v7260_v62 = vadd.f32 %v2703_v47, %v2158_v43  ;;  %v2160_v63 = vpop.f32.mrf.mxu0  ;;  %v6318_v43 = vld [vmem:[%s9031_s1 + $0x628] ss:$16 sps:$4 sm:$0xff]  }
 0x1cf   : > { %v2705_v4 = vpop.f32.mrf.mxu1 }
 0x1d0   : > { %9248 = vst [vmem:[#allocation37_spill] sm:$0xff] %v7260_v62  ;;  %v2163_v8 = vpop.f32.mrf.mxu0  ;;  %2354 = vmatmul.mubr.bf16.gmra.mxu0 %v6309_v46  ;;  %v6323_v46 = vld [vmem:[%s9031_s1 + $0x644] ss:$16 sps:$4 sm:$0xff]  }
 0x1d1   : > { %v2708_v15 = vpop.f32.mrf.mxu1  ;;  %2899 = vmatmul.mubr.bf16.gmra.mxu1 %v6312_v53  ;;  %2361 = vmatprep.mubr.bf16.mxu0 %v6317_v55  ;;  %v6326_v55 = vld [vmem:[%s9031_s1 + $0x64c] ss:$16 sps:$4 sm:$0xff]  }
 0x1d2   : > { %v7265_v18 = vadd.f32 %v2708_v15, %v2163_v8  ;;  %v2165_v21 = vpop.f32.mrf.mxu0  ;;  %2906 = vmatprep.mubr.bf16.mxu1 %v6320_v0 }
 0x1d3   : > { %v2710_v25 = vpop.f32.mrf.mxu1 }
 0x1d4   : > { %9249 = vst [vmem:[#allocation38_spill] sm:$0xff] %v7265_v18  ;;  %v2166_v28 = vpop.f32.mrf.mxu0 }
 0x1d5   : > { %v2711_v41 = vpop.f32.mrf.mxu1 }
 0x1d6   : > { %v7276_v47 = vadd.f32 %v2711_v41, %v2166_v28  ;;  %v2168_v53 = vpop.f32.mrf.mxu0  ;;  %v6321_v28 = vld [vmem:[%s9031_s1 + $0x640] ss:$16 sps:$4 sm:$0xff]  }
 0x1d7   : > { %v2713_v63 = vpop.f32.mrf.mxu1  ;;  %v6324_v53 = vld [vmem:[%s9031_s1 + $0x648] ss:$16 sps:$4 sm:$0xff]  }
 0x1d8   : > { %9250 = vst [vmem:[#allocation39_spill] sm:$0xff] %v7276_v47  ;;  %v2171_v0 = vpop.f32.mrf.mxu0  ;;  %2362 = vmatmul.mubr.bf16.gmra.mxu0 %v6315_v35  ;;  %v6329_v35 = vld [vmem:[%s9031_s1 + $0x664] ss:$16 sps:$4 sm:$0xff]  }
 0x1d9   : > { %v2716_v4 = vpop.f32.mrf.mxu1  ;;  %2907 = vmatmul.mubr.bf16.gmra.mxu1 %v6318_v43  ;;  %2369 = vmatprep.mubr.bf16.mxu0 %v6323_v46 }
 0x1da   : > { %v7281_v8 = vadd.f32 %v2716_v4, %v2171_v0  ;;  %v2173_v15 = vpop.f32.mrf.mxu0  ;;  %2914 = vmatprep.mubr.bf16.mxu1 %v6326_v55  ;;  %v6332_v55 = vld [vmem:[%s9031_s1 + $0x66c] ss:$16 sps:$4 sm:$0xff]  }
 0x1db   : > { %v2718_v21 = vpop.f32.mrf.mxu1 }
 0x1dc   : > { %9251 = vst [vmem:[#allocation40_spill] sm:$0xff] %v7281_v8  ;;  %v2174_v25 = vpop.f32.mrf.mxu0 }
 0x1dd   : > { %v2719_v41 = vpop.f32.mrf.mxu1 }
 0x1de   : > { %v7292_v43 = vadd.f32 %v2719_v41, %v2174_v25  ;;  %v2176_v46 = vpop.f32.mrf.mxu0  ;;  %v6327_v25 = vld [vmem:[%s9031_s1 + $0x660] ss:$16 sps:$4 sm:$0xff]  }
 0x1df   : > { %v2721_v63 = vpop.f32.mrf.mxu1  ;;  %v6330_v46 = vld [vmem:[%s9031_s1 + $0x668] ss:$16 sps:$4 sm:$0xff]  }
 0x1e0   : > { %9252 = vst [vmem:[#allocation41_spill] sm:$0xff] %v7292_v43  ;;  %v2179_v0 = vpop.f32.mrf.mxu0  ;;  %2370 = vmatmul.mubr.bf16.gmra.mxu0 %v6321_v28  ;;  %v6335_v28 = vld [vmem:[%s9031_s1 + $0x684] ss:$16 sps:$4 sm:$0xff]  }
 0x1e1   : > { %v2724_v4 = vpop.f32.mrf.mxu1  ;;  %2915 = vmatmul.mubr.bf16.gmra.mxu1 %v6324_v53  ;;  %2377 = vmatprep.mubr.bf16.mxu0 %v6329_v35 }
 0x1e2   : > { %v7297_v15 = vadd.f32 %v2724_v4, %v2179_v0  ;;  %v2181_v21 = vpop.f32.mrf.mxu0  ;;  %2922 = vmatprep.mubr.bf16.mxu1 %v6332_v55 }
 0x1e3   : > { %v2726_v34 = vpop.f32.mrf.mxu1 }
 0x1e4   : > { %9253 = vst [vmem:[#allocation42_spill] sm:$0xff] %v7297_v15  ;;  %v2182_v19 = vpop.f32.mrf.mxu0  ;;  %v6338_v34 = vld [vmem:[%s9031_s1 + $0x68c] ss:$16 sps:$4 sm:$0xff]  }
 0x1e5   : > { %v2727_v41 = vpop.f32.mrf.mxu1 }
 0x1e6   : > { %v7308_v53 = vadd.f32 %v2727_v41, %v2182_v19  ;;  %v2184_v35 = vpop.f32.mrf.mxu0  ;;  %v6333_v19 = vld [vmem:[%s9031_s1 + $0x680] ss:$16 sps:$4 sm:$0xff]  }
 0x1e7   : > { %v2729_v55 = vpop.f32.mrf.mxu1  ;;  %v6336_v35 = vld [vmem:[%s9031_s1 + $0x688] ss:$16 sps:$4 sm:$0xff]  }
 0x1e8   : > { %9254 = vst [vmem:[#allocation43_spill] sm:$0xff] %v7308_v53  ;;  %v2187_v63 = vpop.f32.mrf.mxu0  ;;  %2378 = vmatmul.mubr.bf16.gmra.mxu0 %v6327_v25  ;;  %v6341_v25 = vld [vmem:[%s9031_s1 + $0x6a4] ss:$16 sps:$4 sm:$0xff]  }
 0x1e9   : > { %v2732_v0 = vpop.f32.mrf.mxu1  ;;  %2923 = vmatmul.mubr.bf16.gmra.mxu1 %v6330_v46  ;;  %2385 = vmatprep.mubr.bf16.mxu0 %v6335_v28 }
 0x1ea   : > { %v7313_v4 = vadd.f32 %v2732_v0, %v2187_v63  ;;  %v2189_v21 = vpop.f32.mrf.mxu0  ;;  %2930 = vmatprep.mubr.bf16.mxu1 %v6338_v34 }
 0x1eb   : > { %v2734_v7 = vpop.f32.mrf.mxu1 }
 0x1ec   : > { %9255 = vst [vmem:[#allocation44_spill] sm:$0xff] %v7313_v4  ;;  %v2190_v60 = vpop.f32.mrf.mxu0  ;;  %v6344_v7 = vld [vmem:[%s9031_s1 + $0x6ac] ss:$16 sps:$4 sm:$0xff]  }
 0x1ed   : > { %v2735_v41 = vpop.f32.mrf.mxu1 }
 0x1ee   : > { %v7324_v46 = vadd.f32 %v2735_v41, %v2190_v60  ;;  %v2192_v28 = vpop.f32.mrf.mxu0  ;;  %v6339_v60 = vld [vmem:[%s9031_s1 + $0x6a0] ss:$16 sps:$4 sm:$0xff]  }
 0x1ef   : > { %v2737_v34 = vpop.f32.mrf.mxu1  ;;  %v6342_v28 = vld [vmem:[%s9031_s1 + $0x6a8] ss:$16 sps:$4 sm:$0xff]  }
 0x1f0   : > { %9256 = vst [vmem:[#allocation45_spill] sm:$0xff] %v7324_v46  ;;  %v2195_v55 = vpop.f32.mrf.mxu0  ;;  %2386 = vmatmul.mubr.bf16.gmra.mxu0 %v6333_v19  ;;  %v6347_v19 = vld [vmem:[%s9031_s1 + $0x6c4] ss:$16 sps:$4 sm:$0xff]  }
 0x1f1   : > { %v2740_v63 = vpop.f32.mrf.mxu1  ;;  %2931 = vmatmul.mubr.bf16.gmra.mxu1 %v6336_v35  ;;  %2393 = vmatprep.mubr.bf16.mxu0 %v6341_v25 }
 0x1f2   : > { %v7329_v0 = vadd.f32 %v2740_v63, %v2195_v55  ;;  %v2197_v21 = vpop.f32.mrf.mxu0  ;;  %2938 = vmatprep.mubr.bf16.mxu1 %v6344_v7 }
 0x1f3   : > { %v2742_v48 = vpop.f32.mrf.mxu1 }
 0x1f4   : > { %9257 = vst [vmem:[#allocation46_spill] sm:$0xff] %v7329_v0  ;;  %v2198_v36 = vpop.f32.mrf.mxu0  ;;  %v6350_v48 = vld [vmem:[%s9031_s1 + $0x6cc] ss:$16 sps:$4 sm:$0xff]  }
 0x1f5   : > { %v2743_v41 = vpop.f32.mrf.mxu1 }
 0x1f6   : > { %v7340_v35 = vadd.f32 %v2743_v41, %v2198_v36  ;;  %v2200_v25 = vpop.f32.mrf.mxu0  ;;  %v6345_v36 = vld [vmem:[%s9031_s1 + $0x6c0] ss:$16 sps:$4 sm:$0xff]  }
 0x1f7   : > { %v2745_v7 = vpop.f32.mrf.mxu1  ;;  %v6348_v25 = vld [vmem:[%s9031_s1 + $0x6c8] ss:$16 sps:$4 sm:$0xff]  }
 0x1f8   : > { %9258 = vst [vmem:[#allocation47_spill] sm:$0xff] %v7340_v35  ;;  %v2203_v34 = vpop.f32.mrf.mxu0  ;;  %2394 = vmatmul.mubr.bf16.gmra.mxu0 %v6339_v60  ;;  %v6353_v60 = vld [vmem:[%s9031_s1 + $0x6e4] ss:$16 sps:$4 sm:$0xff]  }
 0x1f9   : > { %v2748_v55 = vpop.f32.mrf.mxu1  ;;  %2939 = vmatmul.mubr.bf16.gmra.mxu1 %v6342_v28  ;;  %2401 = vmatprep.mubr.bf16.mxu0 %v6347_v19 }
 0x1fa   : > { %v7345_v63 = vadd.f32 %v2748_v55, %v2203_v34  ;;  %v2205_v21 = vpop.f32.mrf.mxu0  ;;  %2946 = vmatprep.mubr.bf16.mxu1 %v6350_v48 }
 0x1fb   : > { %v2750_v27 = vpop.f32.mrf.mxu1 }
 0x1fc   : > { %9259 = vst [vmem:[#allocation48_spill] sm:$0xff] %v7345_v63  ;;  %v2206_v14 = vpop.f32.mrf.mxu0  ;;  %v6356_v27 = vld [vmem:[%s9031_s1 + $0x6ec] ss:$16 sps:$4 sm:$0xff]  }
 0x1fd   : > { %v2751_v41 = vpop.f32.mrf.mxu1 }
 0x1fe   : > { %v7356_v28 = vadd.f32 %v2751_v41, %v2206_v14  ;;  %v2208_v19 = vpop.f32.mrf.mxu0  ;;  %v6351_v14 = vld [vmem:[%s9031_s1 + $0x6e0] ss:$16 sps:$4 sm:$0xff]  }
 0x1ff   : > { %v2753_v48 = vpop.f32.mrf.mxu1  ;;  %v6354_v19 = vld [vmem:[%s9031_s1 + $0x6e8] ss:$16 sps:$4 sm:$0xff]  }
 0x200   : > { %9260 = vst [vmem:[#allocation49_spill] sm:$0xff] %v7356_v28  ;;  %v2211_v7 = vpop.f32.mrf.mxu0  ;;  %2402 = vmatmul.mubr.bf16.gmra.mxu0 %v6345_v36  ;;  %v6359_v36 = vld [vmem:[%s9031_s1 + $0x704] ss:$16 sps:$4 sm:$0xff]  }
 0x201   : > { %v2756_v34 = vpop.f32.mrf.mxu1  ;;  %2947 = vmatmul.mubr.bf16.gmra.mxu1 %v6348_v25  ;;  %2409 = vmatprep.mubr.bf16.mxu0 %v6353_v60 }
 0x202   : > { %v7361_v55 = vadd.f32 %v2756_v34, %v2211_v7  ;;  %v2213_v21 = vpop.f32.mrf.mxu0  ;;  %2954 = vmatprep.mubr.bf16.mxu1 %v6356_v27 }
 0x203   : > { %v2758_v63 = vpop.f32.mrf.mxu1 }
 0x204   : > { %9261 = vst [vmem:[#allocation50_spill] sm:$0xff] %v7361_v55  ;;  %v2214_v35 = vpop.f32.mrf.mxu0  ;;  %v6362_v63 = vld [vmem:[%s9031_s1 + $0x70c] ss:$16 sps:$4 sm:$0xff]  }
 0x205   : > { %v2759_v41 = vpop.f32.mrf.mxu1 }
 0x206   : > { %v7372_v25 = vadd.f32 %v2759_v41, %v2214_v35  ;;  %v2216_v60 = vpop.f32.mrf.mxu0  ;;  %v6357_v35 = vld [vmem:[%s9031_s1 + $0x700] ss:$16 sps:$4 sm:$0xff]  }
 0x207   : > { %v2761_v27 = vpop.f32.mrf.mxu1  ;;  %v6360_v60 = vld [vmem:[%s9031_s1 + $0x708] ss:$16 sps:$4 sm:$0xff]  }
 0x208   : > { %9262 = vst [vmem:[#allocation51_spill] sm:$0xff] %v7372_v25  ;;  %v2219_v48 = vpop.f32.mrf.mxu0  ;;  %2410 = vmatmul.mubr.bf16.gmra.mxu0 %v6351_v14  ;;  %v6365_v14 = vld [vmem:[%s9031_s1 + $0x724] ss:$16 sps:$4 sm:$0xff]  }
 0x209   : > { %v2764_v7 = vpop.f32.mrf.mxu1  ;;  %2955 = vmatmul.mubr.bf16.gmra.mxu1 %v6354_v19  ;;  %2417 = vmatprep.mubr.bf16.mxu0 %v6359_v36 }
 0x20a   : > { %v7377_v34 = vadd.f32 %v2764_v7, %v2219_v48  ;;  %v2221_v21 = vpop.f32.mrf.mxu0  ;;  %2962 = vmatprep.mubr.bf16.mxu1 %v6362_v63 }
 0x20b   : > { %v2766_v55 = vpop.f32.mrf.mxu1 }
 0x20c   : > { %9263 = vst [vmem:[#allocation52_spill] sm:$0xff] %v7377_v34  ;;  %v2222_v28 = vpop.f32.mrf.mxu0  ;;  %v6368_v55 = vld [vmem:[%s9031_s1 + $0x72c] ss:$16 sps:$4 sm:$0xff]  }
 0x20d   : > { %v2767_v41 = vpop.f32.mrf.mxu1 }
 0x20e   : > { %v7388_v19 = vadd.f32 %v2767_v41, %v2222_v28  ;;  %v2224_v36 = vpop.f32.mrf.mxu0  ;;  %v6363_v28 = vld [vmem:[%s9031_s1 + $0x720] ss:$16 sps:$4 sm:$0xff]  }
 0x20f   : > { %v2769_v63 = vpop.f32.mrf.mxu1  ;;  %v6366_v36 = vld [vmem:[%s9031_s1 + $0x728] ss:$16 sps:$4 sm:$0xff]  }
 0x210   : > { %9264 = vst [vmem:[#allocation53_spill] sm:$0xff] %v7388_v19  ;;  %v2227_v27 = vpop.f32.mrf.mxu0  ;;  %2418 = vmatmul.mubr.bf16.gmra.mxu0 %v6357_v35  ;;  %v6371_v35 = vld [vmem:[%s9031_s1 + $0x744] ss:$16 sps:$4 sm:$0xff]  }
 0x211   : > { %v2772_v48 = vpop.f32.mrf.mxu1  ;;  %2963 = vmatmul.mubr.bf16.gmra.mxu1 %v6360_v60  ;;  %2425 = vmatprep.mubr.bf16.mxu0 %v6365_v14 }
 0x212   : > { %v7393_v7 = vadd.f32 %v2772_v48, %v2227_v27  ;;  %v2229_v21 = vpop.f32.mrf.mxu0  ;;  %2970 = vmatprep.mubr.bf16.mxu1 %v6368_v55 }
 0x213   : > { %v2774_v34 = vpop.f32.mrf.mxu1 }
 0x214   : > { %9265 = vst [vmem:[#allocation54_spill] sm:$0xff] %v7393_v7  ;;  %v2230_v25 = vpop.f32.mrf.mxu0  ;;  %v6374_v34 = vld [vmem:[%s9031_s1 + $0x74c] ss:$16 sps:$4 sm:$0xff]  }
 0x215   : > { %v2775_v41 = vpop.f32.mrf.mxu1 }
 0x216   : > { %v7404_v60 = vadd.f32 %v2775_v41, %v2230_v25  ;;  %v2232_v14 = vpop.f32.mrf.mxu0  ;;  %v6369_v25 = vld [vmem:[%s9031_s1 + $0x740] ss:$16 sps:$4 sm:$0xff]  }
 0x217   : > { %v2777_v55 = vpop.f32.mrf.mxu1  ;;  %v6372_v14 = vld [vmem:[%s9031_s1 + $0x748] ss:$16 sps:$4 sm:$0xff]  }
 0x218   : > { %v2235_v63 = vpop.f32.mrf.mxu0  ;;  %2426 = vmatmul.mubr.bf16.gmra.mxu0 %v6363_v28  ;;  %v6377_v28 = vld [vmem:[%s9031_s1 + $0x764] ss:$16 sps:$4 sm:$0xff]  }
 0x219   : > { %v2780_v27 = vpop.f32.mrf.mxu1  ;;  %2971 = vmatmul.mubr.bf16.gmra.mxu1 %v6366_v36  ;;  %2433 = vmatprep.mubr.bf16.mxu0 %v6371_v35 }
 0x21a   : > { %v7409_v48 = vadd.f32 %v2780_v27, %v2235_v63  ;;  %v2237_v21 = vpop.f32.mrf.mxu0  ;;  %2978 = vmatprep.mubr.bf16.mxu1 %v6374_v34 }
 0x21b   : > { %v2782_v19 = vpop.f32.mrf.mxu1 }
 0x21c   : > { %v2238_v0 = vpop.f32.mrf.mxu0  ;;  %v6380_v19 = vld [vmem:[%s9031_s1 + $0x76c] ss:$16 sps:$4 sm:$0xff]  }
 0x21d   : > { %v2783_v41 = vpop.f32.mrf.mxu1 }
 0x21e   : > { %v7420_v36 = vadd.f32 %v2783_v41, %v2238_v0  ;;  %v2240_v35 = vpop.f32.mrf.mxu0  ;;  %v6375_v0 = vld [vmem:[%s9031_s1 + $0x760] ss:$16 sps:$4 sm:$0xff]  }
 0x21f   : > { %v2785_v34 = vpop.f32.mrf.mxu1  ;;  %v6378_v35 = vld [vmem:[%s9031_s1 + $0x768] ss:$16 sps:$4 sm:$0xff]  }
 0x220   : > { %v2243_v55 = vpop.f32.mrf.mxu0  ;;  %2434 = vmatmul.mubr.bf16.gmra.mxu0 %v6369_v25  ;;  %v6383_v25 = vld [vmem:[%s9031_s1 + $0x784] ss:$16 sps:$4 sm:$0xff]  }
 0x221   : > { %v2788_v63 = vpop.f32.mrf.mxu1  ;;  %2979 = vmatmul.mubr.bf16.gmra.mxu1 %v6372_v14  ;;  %2441 = vmatprep.mubr.bf16.mxu0 %v6377_v28 }
 0x222   : > { %v7425_v27 = vadd.f32 %v2788_v63, %v2243_v55  ;;  %v2245_v21 = vpop.f32.mrf.mxu0  ;;  %2986 = vmatprep.mubr.bf16.mxu1 %v6380_v19 }
 0x223   : > { %v2790_v46 = vpop.f32.mrf.mxu1 }
 0x224   : > { %v2246_v5 = vpop.f32.mrf.mxu0  ;;  %v6386_v46 = vld [vmem:[%s9031_s1 + $0x78c] ss:$16 sps:$4 sm:$0xff]  }
 0x225   : > { %v2791_v41 = vpop.f32.mrf.mxu1 }
 0x226   : > { %v7436_v14 = vadd.f32 %v2791_v41, %v2246_v5  ;;  %v2248_v28 = vpop.f32.mrf.mxu0  ;;  %v6381_v5 = vld [vmem:[%s9031_s1 + $0x780] ss:$16 sps:$4 sm:$0xff]  }
 0x227   : > { %v2793_v19 = vpop.f32.mrf.mxu1  ;;  %v6384_v28 = vld [vmem:[%s9031_s1 + $0x788] ss:$16 sps:$4 sm:$0xff]  }
 0x228   : > { %v2251_v34 = vpop.f32.mrf.mxu0  ;;  %2442 = vmatmul.mubr.bf16.gmra.mxu0 %v6375_v0  ;;  %v6389_v0 = vld [vmem:[%s9031_s1 + $0x7a4] ss:$16 sps:$4 sm:$0xff]  }
 0x229   : > { %v2796_v55 = vpop.f32.mrf.mxu1  ;;  %2987 = vmatmul.mubr.bf16.gmra.mxu1 %v6378_v35  ;;  %2449 = vmatprep.mubr.bf16.mxu0 %v6383_v25 }
 0x22a   : > { %v7441_v63 = vadd.f32 %v2796_v55, %v2251_v34  ;;  %v2253_v21 = vpop.f32.mrf.mxu0  ;;  %2994 = vmatprep.mubr.bf16.mxu1 %v6386_v46 }
 0x22b   : > { %v2798_v57 = vpop.f32.mrf.mxu1 }
 0x22c   : > { %v2254_v4 = vpop.f32.mrf.mxu0  ;;  %v6392_v57 = vld [vmem:[%s9031_s1 + $0x7ac] ss:$16 sps:$4 sm:$0xff]  }
 0x22d   : > { %v2799_v41 = vpop.f32.mrf.mxu1 }
 0x22e   : > { %v7452_v35 = vadd.f32 %v2799_v41, %v2254_v4  ;;  %v2256_v25 = vpop.f32.mrf.mxu0  ;;  %v6387_v4 = vld [vmem:[%s9031_s1 + $0x7a0] ss:$16 sps:$4 sm:$0xff]  }
 0x22f   : > { %v2801_v46 = vpop.f32.mrf.mxu1  ;;  %v6390_v25 = vld [vmem:[%s9031_s1 + $0x7a8] ss:$16 sps:$4 sm:$0xff]  }
 0x230   : > { %v2259_v19 = vpop.f32.mrf.mxu0  ;;  %2450 = vmatmul.mubr.bf16.gmra.mxu0 %v6381_v5  ;;  %v6395_v5 = vld [vmem:[%s9031_s1 + $0x7c4] ss:$16 sps:$4 sm:$0xff]  }
 0x231   : > { %v2804_v34 = vpop.f32.mrf.mxu1  ;;  %2995 = vmatmul.mubr.bf16.gmra.mxu1 %v6384_v28  ;;  %2457 = vmatprep.mubr.bf16.mxu0 %v6389_v0 }
 0x232   : > { %v7457_v55 = vadd.f32 %v2804_v34, %v2259_v19  ;;  %v2261_v21 = vpop.f32.mrf.mxu0  ;;  %3002 = vmatprep.mubr.bf16.mxu1 %v6392_v57 }
 0x233   : > { %v2806_v53 = vpop.f32.mrf.mxu1 }
 0x234   : > { %v2262_v50 = vpop.f32.mrf.mxu0  ;;  %v6398_v53 = vld [vmem:[%s9031_s1 + $0x7cc] ss:$16 sps:$4 sm:$0xff]  }
 0x235   : > { %v2807_v41 = vpop.f32.mrf.mxu1 }
 0x236   : > { %v7468_v28 = vadd.f32 %v2807_v41, %v2262_v50  ;;  %v2264_v0 = vpop.f32.mrf.mxu0  ;;  %v6393_v50 = vld [vmem:[%s9031_s1 + $0x7c0] ss:$16 sps:$4 sm:$0xff]  }
 0x237   : > { %v2809_v57 = vpop.f32.mrf.mxu1  ;;  %v6396_v0 = vld [vmem:[%s9031_s1 + $0x7c8] ss:$16 sps:$4 sm:$0xff]  }
 0x238   : > { %v2267_v46 = vpop.f32.mrf.mxu0  ;;  %2458 = vmatmul.mubr.bf16.gmra.mxu0 %v6387_v4  ;;  %v6401_v4 = vld [vmem:[%s9031_s1 + $0x7e4] ss:$16 sps:$4 sm:$0xff]  }
 0x239   : > { %v2812_v19 = vpop.f32.mrf.mxu1  ;;  %3003 = vmatmul.mubr.bf16.gmra.mxu1 %v6390_v25  ;;  %2465 = vmatprep.mubr.bf16.mxu0 %v6395_v5 }
 0x23a   : > { %v7473_v34 = vadd.f32 %v2812_v19, %v2267_v46  ;;  %v2269_v21 = vpop.f32.mrf.mxu0  ;;  %3010 = vmatprep.mubr.bf16.mxu1 %v6398_v53 }
 0x23b   : > { %v2814_v39 = vpop.f32.mrf.mxu1 }
 0x23c   : > { %v2270_v15 = vpop.f32.mrf.mxu0  ;;  %v6404_v39 = vld [vmem:[%s9031_s1 + $0x7ec] ss:$16 sps:$4 sm:$0xff]  }
 0x23d   : > { %v2815_v41 = vpop.f32.mrf.mxu1 }
 0x23e   : > { %v7484_v25 = vadd.f32 %v2815_v41, %v2270_v15  ;;  %v2272_v5 = vpop.f32.mrf.mxu0  ;;  %v6399_v15 = vld [vmem:[%s9031_s1 + $0x7e0] ss:$16 sps:$4 sm:$0xff]  }
 0x23f   : > { %v2817_v53 = vpop.f32.mrf.mxu1  ;;  %v6402_v5 = vld [vmem:[%s9031_s1 + $0x7e8] ss:$16 sps:$4 sm:$0xff]  }
 0x240   : > { %v2275_v57 = vpop.f32.mrf.mxu0  ;;  %2466 = vmatmul.mubr.bf16.gmra.mxu0 %v6393_v50 }
 0x241   : > { %v2820_v46 = vpop.f32.mrf.mxu1  ;;  %3011 = vmatmul.mubr.bf16.gmra.mxu1 %v6396_v0  ;;  %2473 = vmatprep.mubr.bf16.mxu0 %v6401_v4 }
 0x242   : > { %v7489_v19 = vadd.f32 %v2820_v46, %v2275_v57  ;;  %v2277_v21 = vpop.f32.mrf.mxu0  ;;  %3018 = vmatprep.mubr.bf16.mxu1 %v6404_v39 }
 0x243   : > { %v2822_v43 = vpop.f32.mrf.mxu1 }
 0x244   : > { %9266 = vst [vmem:[#allocation55_spill] sm:$0xff] %v7489_v19  ;;  %v2278_v30 = vpop.f32.mrf.mxu0 }
 0x245   : > { %v2823_v41 = vpop.f32.mrf.mxu1 }
 0x246   : > { %v7497_v53 = vadd.f32 %v2823_v41, %v2278_v30  ;;  %v2280_v50 = vpop.f32.mrf.mxu0 }
 0x247   : > { %v2825_v0 = vpop.f32.mrf.mxu1 }
 0x248   : > { %9267 = vst [vmem:[#allocation56_spill] sm:$0xff] %v7497_v53  ;;  %v2283_v4 = vpop.f32.mrf.mxu0  ;;  %2474 = vmatmul.mubr.bf16.gmra.mxu0 %v6399_v15 }
 0x249   : > { %v2828_v57 = vpop.f32.mrf.mxu1  ;;  %3019 = vmatmul.mubr.bf16.gmra.mxu1 %v6402_v5 }
 0x24a   : > { %v7499_v39 = vadd.f32 %v2828_v57, %v2283_v4  ;;  %v2285_v43 = vpop.f32.mrf.mxu0 }
 0x24b   : > { %v2830_v46 = vpop.f32.mrf.mxu1 }
 0x24c   : > { %9268 = vst [vmem:[#allocation57_spill] sm:$0xff] %v7499_v39  ;;  %v2286_v21 = vpop.f32.mrf.mxu0 }
 0x24d   : > { %v2831_v20 = vpop.f32.mrf.mxu1 }
 0x24e   : > { %v7501_v8 = vadd.f32 %v2831_v20, %v2286_v21  ;;  %v2288_v47 = vpop.f32.mrf.mxu0 }
 0x24f   : > { %v2833_v12 = vpop.f32.mrf.mxu1 }
 0x250   : > { %9269 = vst [vmem:[#allocation58_spill] sm:$0xff] %v7501_v8  ;;  %v2291_v2 = vpop.f32.mrf.mxu0 }
 0x251   : > { %v2836_v18 = vpop.f32.mrf.mxu1 }
 0x252   : > { %v7503_v30 = vadd.f32 %v2836_v18, %v2291_v2  ;;  %v2293_v41 = vpop.f32.mrf.mxu0 }
 0x253   : > { %v2838_v50 = vpop.f32.mrf.mxu1 }
 0x254   : > { %9270 = vst [vmem:[#allocation59_spill] sm:$0xff] %v7503_v30  ;;  %v2294_v0 = vpop.f32.mrf.mxu0 }
 0x255   : > { %v2839_v15 = vpop.f32.mrf.mxu1 }
 0x256   : > { %v7505_v62 = vadd.f32 %v2839_v15, %v2294_v0  ;;  %v2296_v5 = vpop.f32.mrf.mxu0 }
 0x257   : > { %v2841_v4 = vpop.f32.mrf.mxu1 }
 0x258   : > { %9271 = vst [vmem:[#allocation60_spill] sm:$0xff] %v7505_v62  ;;  %v2299_v57 = vpop.f32.mrf.mxu0 }
 0x259   : > { %v2844_v43 = vpop.f32.mrf.mxu1 }
 0x25a   : > { %v7507_v46 = vadd.f32 %v2844_v43, %v2299_v57  ;;  %v2301_v20 = vpop.f32.mrf.mxu0 }
 0x25b   : > { %v2846_v21 = vpop.f32.mrf.mxu1 }
 0x25c   : > { %9272 = vst [vmem:[#allocation61_spill] sm:$0xff] %v7507_v46  ;;  %v2302_v47 = vpop.f32.mrf.mxu0 }
 0x25d   : > { %v2847_v12 = vpop.f32.mrf.mxu1 }
 0x25e   : > { %v7509_v8 = vadd.f32 %v2847_v12, %v2302_v47  ;;  %v2304_v2 = vpop.f32.mrf.mxu0 }
 0x25f   : > { %v2849_v18 = vpop.f32.mrf.mxu1 }
 0x260   : > { %9273 = vst [vmem:[#allocation62_spill] sm:$0xff] %v7509_v8  ;;  %v2307_v41 = vpop.f32.mrf.mxu0 }
 0x261   : > { %v2852_v50 = vpop.f32.mrf.mxu1 }
 0x262   : > { %v7511_v30 = vadd.f32 %v2852_v50, %v2307_v41  ;;  %v2309_v0 = vpop.f32.mrf.mxu0 }
 0x263   : > { %v2854_v15 = vpop.f32.mrf.mxu1 }
 0x264   : > { %9274 = vst [vmem:[#allocation63_spill] sm:$0xff] %v7511_v30  ;;  %v2310_v5 = vpop.f32.mrf.mxu0 }
 0x265   : > { %v2855_v4 = vpop.f32.mrf.mxu1 }
 0x266   : > { %v7513_v62 = vadd.f32 %v2855_v4, %v2310_v5  ;;  %v2312_v57 = vpop.f32.mrf.mxu0 }
 0x267   : > { %v2857_v43 = vpop.f32.mrf.mxu1 }
 0x268   : > { %9275 = vst [vmem:[#allocation64_spill] sm:$0xff] %v7513_v62  ;;  %v2315_v20 = vpop.f32.mrf.mxu0 }
 0x269   : > { %v2860_v21 = vpop.f32.mrf.mxu1 }
 0x26a   : > { %v7515_v46 = vadd.f32 %v2860_v21, %v2315_v20  ;;  %v2317_v47 = vpop.f32.mrf.mxu0 }
 0x26b   : > { %v2862_v12 = vpop.f32.mrf.mxu1 }
 0x26c   : > { %9276 = vst [vmem:[#allocation65_spill] sm:$0xff] %v7515_v46  ;;  %v2318_v2 = vpop.f32.mrf.mxu0 }
 0x26d   : > { %v2863_v18 = vpop.f32.mrf.mxu1 }
 0x26e   : > { %v7517_v8 = vadd.f32 %v2863_v18, %v2318_v2  ;;  %v2320_v41 = vpop.f32.mrf.mxu0 }
 0x26f   : > { %v2865_v50 = vpop.f32.mrf.mxu1 }
 0x270   : > { %9277 = vst [vmem:[#allocation66_spill] sm:$0xff] %v7517_v8  ;;  %v2323_v0 = vpop.f32.mrf.mxu0 }
 0x271   : > { %v2868_v15 = vpop.f32.mrf.mxu1 }
 0x272   : > { %v7519_v30 = vadd.f32 %v2868_v15, %v2323_v0  ;;  %v2325_v5 = vpop.f32.mrf.mxu0 }
 0x273   : > { %v2870_v4 = vpop.f32.mrf.mxu1 }
 0x274   : > { %9278 = vst [vmem:[#allocation67_spill] sm:$0xff] %v7519_v30  ;;  %v2326_v57 = vpop.f32.mrf.mxu0 }
 0x275   : > { %v2871_v43 = vpop.f32.mrf.mxu1 }
 0x276   : > { %v7521_v62 = vadd.f32 %v2871_v43, %v2326_v57  ;;  %v2328_v20 = vpop.f32.mrf.mxu0 }
 0x277   : > { %v2873_v21 = vpop.f32.mrf.mxu1 }
 0x278   : > { %9279 = vst [vmem:[#allocation68_spill] sm:$0xff] %v7521_v62  ;;  %v2331_v47 = vpop.f32.mrf.mxu0 }
 0x279   : > { %v2876_v12 = vpop.f32.mrf.mxu1 }
 0x27a   : > { %v7523_v46 = vadd.f32 %v2876_v12, %v2331_v47  ;;  %v2333_v2 = vpop.f32.mrf.mxu0 }
 0x27b   : > { %v2878_v18 = vpop.f32.mrf.mxu1 }
 0x27c   : > { %9280 = vst [vmem:[#allocation69_spill] sm:$0xff] %v7523_v46  ;;  %v2334_v41 = vpop.f32.mrf.mxu0 }
 0x27d   : > { %v2879_v50 = vpop.f32.mrf.mxu1 }
 0x27e   : > { %v7525_v8 = vadd.f32 %v2879_v50, %v2334_v41  ;;  %v2336_v0 = vpop.f32.mrf.mxu0 }
 0x27f   : > { %v2881_v15 = vpop.f32.mrf.mxu1 }
 0x280   : > { %9281 = vst [vmem:[#allocation70_spill] sm:$0xff] %v7525_v8  ;;  %v2339_v5 = vpop.f32.mrf.mxu0 }
 0x281   : > { %v2884_v4 = vpop.f32.mrf.mxu1 }
 0x282   : > { %v7527_v30 = vadd.f32 %v2884_v4, %v2339_v5  ;;  %v2341_v57 = vpop.f32.mrf.mxu0  ;;  %v3252_v5 = vmul.f32 %v7137_v44, %v7137_v44 }
 0x283   : > { %v2886_v43 = vpop.f32.mrf.mxu1 }
 0x284   : > { %9282 = vst [vmem:[#allocation71_spill] sm:$0xff] %v7527_v30  ;;  %v2342_v20 = vpop.f32.mrf.mxu0 }
 0x285   : > { %v2887_v21 = vpop.f32.mrf.mxu1 }
 0x286   : > { %v7529_v62 = vadd.f32 %v2887_v21, %v2342_v20  ;;  %v2344_v47 = vpop.f32.mrf.mxu0  ;;  %v3220_v20 = vmul.f32 %v6881_v9, %v6881_v9  ;;  %v3027_v21 = vadd.f32 %v7137_v44, %v6881_v9  ;;  %v3317_v44 = vmul.f32 %v7404_v60, %v7404_v60 }
 0x287   : > { %v2889_v12 = vpop.f32.mrf.mxu1  ;;  %v3316_v47 = vmul.f32 %v7393_v7, %v7393_v7 }
 0x288   : > { %9283 = vst [vmem:[#allocation72_spill] sm:$0xff] %v7529_v62  ;;  %v2347_v2 = vpop.f32.mrf.mxu0 }
 0x289   : > { %v2892_v18 = vpop.f32.mrf.mxu1 }
 0x28a   : > { %v7531_v46 = vadd.f32 %v2892_v18, %v2347_v2  ;;  %v2349_v41 = vpop.f32.mrf.mxu0  ;;  %v3253_v18 = vmul.f32 %v7148_v61, %v7148_v61 }
 0x28b   : > { %v2894_v50 = vpop.f32.mrf.mxu1 }
 0x28c   : > { %9284 = vst [vmem:[#allocation73_spill] sm:$0xff] %v7531_v46  ;;  %v2350_v0 = vpop.f32.mrf.mxu0 }
 0x28d   : > { %v2895_v15 = vpop.f32.mrf.mxu1 }
 0x28e   : > { %v7535_v4 = vadd.f32 %v2895_v15, %v2350_v0  ;;  %v2352_v57 = vpop.f32.mrf.mxu0  ;;  %v3059_v0 = vadd.f32 %v3027_v21, %v7393_v7  ;;  %v3284_v15 = vadd.f32 %v3252_v5, %v3220_v20  ;;  %v3254_v5 = vmul.f32 %v7153_v6, %v7153_v6 }
 0x28f   : > { %v2897_v43 = vpop.f32.mrf.mxu1  ;;  %v3221_v57 = vmul.f32 %v6892_v17, %v6892_v17 }
 0x290   : > { %9285 = vst [vmem:[#allocation74_spill] sm:$0xff] %v7535_v4  ;;  %v2355_v12 = vpop.f32.mrf.mxu0  ;;  %v3348_v46 = vadd.f32 %v3316_v47, %v3284_v15  ;;  %v3222_v47 = vmul.f32 %v6897_v23, %v6897_v23 }
 0x291   : > { %v2900_v2 = vpop.f32.mrf.mxu1  ;;  %v3285_v62 = vadd.f32 %v3253_v18, %v3221_v57 }
 0x292   : > { %v7545_v41 = vadd.f32 %v2900_v2, %v2355_v12  ;;  %v2357_v50 = vpop.f32.mrf.mxu0  ;;  %v3028_v2 = vadd.f32 %v7148_v61, %v6892_v17  ;;  %v3318_v61 = vmul.f32 %v7409_v48, %v7409_v48  ;;  %v3286_v57 = vadd.f32 %v3254_v5, %v3222_v47 }
 0x293   : > { %v2902_v43 = vpop.f32.mrf.mxu1  ;;  %v3256_v47 = vmul.f32 %v7169_v38, %v7169_v38 }
 0x294   : > { %9286 = vst [vmem:[#allocation75_spill] sm:$0xff] %v7545_v41  ;;  %v2358_v9 = vpop.f32.mrf.mxu0  ;;  %v3091_v4 = vadd.f32 %v3059_v0, %v7545_v41  ;;  %v3380_v12 = vmul.f32 %v7545_v41, %v7545_v41  ;;  %v3029_v0 = vadd.f32 %v7153_v6, %v6897_v23  ;;  %v3349_v41 = vadd.f32 %v3317_v44, %v3285_v62 }
 0x295   : > { %v2903_v20 = vpop.f32.mrf.mxu1  ;;  %v3030_v44 = vadd.f32 %v7164_v24, %v6908_v31  ;;  %v3255_v62 = vmul.f32 %v7164_v24, %v7164_v24  ;;  %v3350_v5 = vadd.f32 %v3318_v61, %v3286_v57 }
 0x296   : > { %v7559_v21 = vadd.f32 %v2903_v20, %v2358_v9  ;;  %v3124_v50 = vsel %vm3123_vm0, %v3091_v4, 0.0  ;;  %v2360_v43 = vpop.f32.mrf.mxu0  ;;  %v3412_v7 = vadd.f32 %v3380_v12, %v3348_v46  ;;  %v3060_v4 = vadd.f32 %v3028_v2, %v7404_v60 }
 0x297   : > { %v2905_v15 = vpop.f32.mrf.mxu1  ;;  %3125 = vadd.xlane.f32.xlu0 %v3124_v50  ;;  %v3061_v18 = vadd.f32 %v3029_v0, %v7409_v48  ;;  %v3062_v57 = vadd.f32 %v3030_v44, %v7420_v36 }
 0x298   : > { %v2363_v17 = vpop.f32.mrf.mxu0  ;;  %v3381_v9 = vmul.f32 %v7559_v21, %v7559_v21  ;;  %v3444_v20 = vsel %vm3123_vm0, %v3412_v7, 0.0  ;;  %v3092_v15 = vadd.f32 %v3060_v4, %v7559_v21 }
 0x299   : > { %v2908_v46 = vpop.f32.mrf.mxu1 }
 0x29a   : > { %v7572_v12 = vadd.f32 %v2908_v46, %v2363_v17  ;;  %v2365_v43 = vpop.f32.mrf.mxu0  ;;  %v3413_v50 = vadd.f32 %v3381_v9, %v3349_v41  ;;  %v3223_v41 = vmul.f32 %v6908_v31, %v6908_v31  ;;  %v3319_v9 = vmul.f32 %v7420_v36, %v7420_v36 }
 0x29b   : > { %v2910_v6 = vpop.f32.mrf.mxu1  ;;  %3445 = vadd.xlane.f32.xlu0 %v3444_v20  ;;  %v3127_v46 = vsel %vm3123_vm0, %v3092_v15, 0.0  ;;  %v3224_v20 = vmul.f32 %v6913_v37, %v6913_v37  ;;  %v3320_v43 = vmul.f32 %v7425_v27, %v7425_v27 }
 0x29c   : > { %v3447_v2 = vsel %vm3123_vm0, %v3413_v50, 0.0  ;;  %v2366_v0 = vpop.f32.mrf.mxu0  ;;  %v3093_v17 = vadd.f32 %v3061_v18, %v7572_v12  ;;  %v3382_v7 = vmul.f32 %v7572_v12, %v7572_v12  ;;  %v3287_v24 = vadd.f32 %v3255_v62, %v3223_v41 }
 0x29d   : > { %v2911_v6 = vpop.f32.mrf.mxu1  ;;  %3448 = vadd.xlane.f32.xlu1 %v3447_v2  ;;  %v3031_v2 = vadd.f32 %v7169_v38, %v6913_v37 }
 0x29e   : > { %v7590_v4 = vadd.f32 %v2911_v6, %v2366_v0  ;;  %v2368_v18 = vpop.f32.mrf.mxu0  ;;  %v3414_v61 = vadd.f32 %v3382_v7, %v3350_v5  ;;  %v3130_v0 = vsel %vm3123_vm0, %v3093_v17, 0.0  ;;  %v3288_v7 = vadd.f32 %v3256_v47, %v3224_v20 }
 0x29f   : > { %v2913_v50 = vpop.f32.mrf.mxu1  ;;  %3128 = vadd.xlane.f32.xlu0 %v3127_v46  ;;  %v3063_v62 = vadd.f32 %v3031_v2, %v7425_v27  ;;  %v3351_v41 = vadd.f32 %v3319_v9, %v3287_v24  ;;  %v3032_v17 = vadd.f32 %v7180_v54, %v6924_v45  ;;  %v3225_v24 = vmul.f32 %v6924_v45, %v6924_v45 }
 0x2a0   : > { %v2371_v6 = vpop.f32.mrf.mxu0  ;;  %v3094_v15 = vadd.f32 %v3062_v57, %v7590_v4  ;;  %v3383_v44 = vmul.f32 %v7590_v4, %v7590_v4  ;;  %v3450_v50 = vsel %vm3123_vm0, %v3414_v61, 0.0  ;;  %v3257_v57 = vmul.f32 %v7180_v54, %v7180_v54 }
 0x2a1   : > { %v2916_v5 = vpop.f32.mrf.mxu1  ;;  %3131 = vadd.xlane.f32.xlu1 %v3130_v0  ;;  %v3352_v37 = vadd.f32 %v3320_v43, %v3288_v7  ;;  %v3258_v9 = vmul.f32 %v7185_v3, %v7185_v3  ;;  %v3064_v7 = vadd.f32 %v3032_v17, %v7436_v14 }
 0x2a2   : > { %v7604_v18 = vadd.f32 %v2916_v5, %v2371_v6  ;;  %v2373_v46 = vpop.f32.mrf.mxu0  ;;  %v3133_v0 = vsel %vm3123_vm0, %v3094_v15, 0.0  ;;  %v3415_v6 = vadd.f32 %v3383_v44, %v3351_v41  ;;  %v3289_v41 = vadd.f32 %v3257_v57, %v3225_v24 }
 0x2a3   : > { %v2918_v38 = vpop.f32.mrf.mxu1  ;;  %3451 = vadd.xlane.f32.xlu0 %v3450_v50  ;;  %v3226_v50 = vmul.f32 %v6929_v51, %v6929_v51  ;;  %v3322_v46 = vmul.f32 %v7441_v63, %v7441_v63 }
 0x2a4   : > { %v2374_v47 = vpop.f32.mrf.mxu0  ;;  %v3095_v20 = vadd.f32 %v3063_v62, %v7604_v18  ;;  %v3384_v61 = vmul.f32 %v7604_v18, %v7604_v18  ;;  %v3321_v38 = vmul.f32 %v7436_v14, %v7436_v14 }
 0x2a5   : > { %v2919_v2 = vpop.f32.mrf.mxu1  ;;  %3134 = vadd.xlane.f32.xlu1 %v3133_v0  ;;  %v3033_v0 = vadd.f32 %v7185_v3, %v6929_v51 }
 0x2a6   : > { %v7622_v43 = vadd.f32 %v2919_v2, %v2374_v47  ;;  %v3136_v15 = vsel %vm3123_vm0, %v3095_v20, 0.0  ;;  %v2376_v5 = vpop.f32.mrf.mxu0  ;;  %v3416_v44 = vadd.f32 %v3384_v61, %v3352_v37  ;;  %v3453_v47 = vsel %vm3123_vm0, %v3415_v6, 0.0 }
 0x2a7   : > { %v2921_v62 = vpop.f32.mrf.mxu1  ;;  %3137 = vadd.xlane.f32.xlu0 %v3136_v15  ;;  %v3290_v61 = vadd.f32 %v3258_v9, %v3226_v50  ;;  %v3065_v57 = vadd.f32 %v3033_v0, %v7441_v63  ;;  %v3353_v24 = vadd.f32 %v3321_v38, %v3289_v41  ;;  %v3034_v6 = vadd.f32 %v7196_v22, %v6940_v59 }
 0x2a8   : > { %v2379_v2 = vpop.f32.mrf.mxu0  ;;  %v3096_v20 = vadd.f32 %v3064_v7, %v7622_v43  ;;  %v3385_v37 = vmul.f32 %v7622_v43, %v7622_v43  ;;  %v3456_v62 = vsel %vm3123_vm0, %v3416_v44, 0.0  ;;  %v3259_v7 = vmul.f32 %v7196_v22, %v7196_v22 }
 0x2a9   : > { %v2924_v17 = vpop.f32.mrf.mxu1  ;;  %3454 = vadd.xlane.f32.xlu1 %v3453_v47  ;;  %v3354_v51 = vadd.f32 %v3322_v46, %v3290_v61  ;;  %v3227_v38 = vmul.f32 %v6940_v59, %v6940_v59  ;;  %v3260_v41 = vmul.f32 %v7201_v40, %v7201_v40  ;;  %v3066_v61 = vadd.f32 %v3034_v6, %v7452_v35 }
 0x2aa   : > { %v7636_v5 = vadd.f32 %v2924_v17, %v2379_v2  ;;  %v2381_v15 = vpop.f32.mrf.mxu0  ;;  %v3139_v47 = vsel %vm3123_vm0, %v3096_v20, 0.0  ;;  %v3417_v2 = vadd.f32 %v3385_v37, %v3353_v24 }
 0x2ab   : > { %v2926_v3 = vpop.f32.mrf.mxu1  ;;  %3457 = vadd.xlane.f32.xlu0 %v3456_v62  ;;  %v3228_v62 = vmul.f32 %v6945_v1, %v6945_v1  ;;  %v3324_v15 = vmul.f32 %v7457_v55, %v7457_v55  ;;  %v3291_v24 = vadd.f32 %v3259_v7, %v3227_v38 }
 0x2ac   : > { %v2382_v9 = vpop.f32.mrf.mxu0  ;;  %v3097_v50 = vadd.f32 %v3065_v57, %v7636_v5  ;;  %v3386_v44 = vmul.f32 %v7636_v5, %v7636_v5  ;;  %v3323_v3 = vmul.f32 %v7452_v35, %v7452_v35 }
 0x2ad   : > { %v2927_v0 = vpop.f32.mrf.mxu1  ;;  %3140 = vadd.xlane.f32.xlu1 %v3139_v47  ;;  %v3035_v47 = vadd.f32 %v7201_v40, %v6945_v1 }
 0x2ae   : > { %v7654_v46 = vadd.f32 %v2927_v0, %v2382_v9  ;;  %v3142_v20 = vsel %vm3123_vm0, %v3097_v50, 0.0  ;;  %v2384_v17 = vpop.f32.mrf.mxu0  ;;  %v3418_v37 = vadd.f32 %v3386_v44, %v3354_v51  ;;  %v3459_v9 = vsel %vm3123_vm0, %v3417_v2, 0.0 }
 0x2af   : > { %v2929_v57 = vpop.f32.mrf.mxu1  ;;  %3143 = vadd.xlane.f32.xlu0 %v3142_v20  ;;  %v3292_v44 = vadd.f32 %v3260_v41, %v3228_v62  ;;  %v3067_v7 = vadd.f32 %v3035_v47, %v7457_v55  ;;  %v3355_v38 = vadd.f32 %v3323_v3, %v3291_v24  ;;  %v3036_v2 = vadd.f32 %v7212_v56, %v6956_v10 }
 0x2b0   : > { %v2387_v0 = vpop.f32.mrf.mxu0  ;;  %v3098_v50 = vadd.f32 %v3066_v61, %v7654_v46  ;;  %v3387_v51 = vmul.f32 %v7654_v46, %v7654_v46  ;;  %v3462_v57 = vsel %vm3123_vm0, %v3418_v37, 0.0  ;;  %v3261_v61 = vmul.f32 %v7212_v56, %v7212_v56 }
 0x2b1   : > { %v2932_v6 = vpop.f32.mrf.mxu1  ;;  %3460 = vadd.xlane.f32.xlu1 %v3459_v9  ;;  %v3356_v1 = vadd.f32 %v3324_v15, %v3292_v44  ;;  %v3229_v3 = vmul.f32 %v6956_v10, %v6956_v10  ;;  %v3262_v24 = vmul.f32 %v7217_v11, %v7217_v11  ;;  %v3068_v44 = vadd.f32 %v3036_v2, %v7468_v28 }
 0x2b2   : > { %v7668_v17 = vadd.f32 %v2932_v6, %v2387_v0  ;;  %v2389_v20 = vpop.f32.mrf.mxu0  ;;  %v3145_v9 = vsel %vm3123_vm0, %v3098_v50, 0.0  ;;  %v3419_v0 = vadd.f32 %v3387_v51, %v3355_v38 }
 0x2b3   : > { %v2934_v40 = vpop.f32.mrf.mxu1  ;;  %3463 = vadd.xlane.f32.xlu0 %v3462_v57  ;;  %v3230_v57 = vmul.f32 %v6961_v16, %v6961_v16  ;;  %v3326_v20 = vmul.f32 %v7473_v34, %v7473_v34  ;;  %v3293_v38 = vadd.f32 %v3261_v61, %v3229_v3 }
 0x2b4   : > { %v2390_v41 = vpop.f32.mrf.mxu0  ;;  %v3099_v62 = vadd.f32 %v3067_v7, %v7668_v17  ;;  %v3388_v37 = vmul.f32 %v7668_v17, %v7668_v17  ;;  %v3325_v40 = vmul.f32 %v7468_v28, %v7468_v28 }
 0x2b5   : > { %v2935_v47 = vpop.f32.mrf.mxu1  ;;  %3146 = vadd.xlane.f32.xlu1 %v3145_v9  ;;  %v3037_v9 = vadd.f32 %v7217_v11, %v6961_v16 }
 0x2b6   : > { %v7686_v15 = vadd.f32 %v2935_v47, %v2390_v41  ;;  %v3148_v50 = vsel %vm3123_vm0, %v3099_v62, 0.0  ;;  %v2392_v6 = vpop.f32.mrf.mxu0  ;;  %v3420_v51 = vadd.f32 %v3388_v37, %v3356_v1  ;;  %v3465_v41 = vsel %vm3123_vm0, %v3419_v0, 0.0 }
 0x2b7   : > { %v2937_v7 = vpop.f32.mrf.mxu1  ;;  %3149 = vadd.xlane.f32.xlu0 %v3148_v50  ;;  %v3294_v37 = vadd.f32 %v3262_v24, %v3230_v57  ;;  %v3069_v61 = vadd.f32 %v3037_v9, %v7473_v34  ;;  %v3357_v3 = vadd.f32 %v3325_v40, %v3293_v38  ;;  %v3038_v0 = vadd.f32 %v7228_v32, %v6972_v26 }
 0x2b8   : > { %v2395_v47 = vpop.f32.mrf.mxu0  ;;  %v3100_v62 = vadd.f32 %v3068_v44, %v7686_v15  ;;  %v3389_v1 = vmul.f32 %v7686_v15, %v7686_v15  ;;  %v3468_v7 = vsel %vm3123_vm0, %v3420_v51, 0.0  ;;  %v3263_v44 = vmul.f32 %v7228_v32, %v7228_v32 }
 0x2b9   : > { %v2940_v2 = vpop.f32.mrf.mxu1  ;;  %3466 = vadd.xlane.f32.xlu1 %v3465_v41  ;;  %v3358_v16 = vadd.f32 %v3326_v20, %v3294_v37  ;;  %v3231_v40 = vmul.f32 %v6972_v26, %v6972_v26  ;;  %v3264_v38 = vmul.f32 %v7233_v52, %v7233_v52  ;;  %v3070_v37 = vadd.f32 %v3038_v0, %v7484_v25 }
 0x2ba   : > { %v7700_v6 = vadd.f32 %v2940_v2, %v2395_v47  ;;  %v2397_v50 = vpop.f32.mrf.mxu0  ;;  %v3151_v41 = vsel %vm3123_vm0, %v3100_v62, 0.0  ;;  %v3421_v47 = vadd.f32 %v3389_v1, %v3357_v3 }
 0x2bb   : > { %v2942_v11 = vpop.f32.mrf.mxu1  ;;  %3469 = vadd.xlane.f32.xlu0 %v3468_v7  ;;  %v3232_v7 = vmul.f32 %v6977_v33, %v6977_v33  ;;  %v3328_v50 = vmul.f32 %v7489_v19, %v7489_v19  ;;  %v3295_v3 = vadd.f32 %v3263_v44, %v3231_v40 }
 0x2bc   : > { %v2398_v24 = vpop.f32.mrf.mxu0  ;;  %v3101_v57 = vadd.f32 %v3069_v61, %v7700_v6  ;;  %v3390_v51 = vmul.f32 %v7700_v6, %v7700_v6  ;;  %v3327_v11 = vmul.f32 %v7484_v25, %v7484_v25 }
 0x2bd   : > { %v2943_v9 = vpop.f32.mrf.mxu1  ;;  %3152 = vadd.xlane.f32.xlu1 %v3151_v41  ;;  %v3039_v41 = vadd.f32 %v7233_v52, %v6977_v33 }
 0x2be   : > { %v7718_v20 = vadd.f32 %v2943_v9, %v2398_v24  ;;  %v3154_v62 = vsel %vm3123_vm0, %v3101_v57, 0.0  ;;  %v2400_v2 = vpop.f32.mrf.mxu0  ;;  %v3422_v1 = vadd.f32 %v3390_v51, %v3358_v16  ;;  %v3471_v24 = vsel %vm3123_vm0, %v3421_v47, 0.0 }
 0x2bf   : > { %v2945_v61 = vpop.f32.mrf.mxu1  ;;  %3155 = vadd.xlane.f32.xlu0 %v3154_v62  ;;  %v3296_v51 = vadd.f32 %v3264_v38, %v3232_v7  ;;  %v3071_v44 = vadd.f32 %v3039_v41, %v7489_v19  ;;  %v3359_v40 = vadd.f32 %v3327_v11, %v3295_v3  ;;  %v3040_v47 = vadd.f32 %v7244_v13, %v6988_v42 }
 0x2c0   : > { %v2403_v9 = vpop.f32.mrf.mxu0  ;;  %v3102_v57 = vadd.f32 %v3070_v37, %v7718_v20  ;;  %v3391_v16 = vmul.f32 %v7718_v20, %v7718_v20  ;;  %v3474_v61 = vsel %vm3123_vm0, %v3422_v1, 0.0  ;;  %v3265_v37 = vmul.f32 %v7244_v13, %v7244_v13 }
 0x2c1   : > { %v2948_v0 = vpop.f32.mrf.mxu1  ;;  %3472 = vadd.xlane.f32.xlu1 %v3471_v24  ;;  %v3360_v33 = vadd.f32 %v3328_v50, %v3296_v51  ;;  %v3233_v11 = vmul.f32 %v6988_v42, %v6988_v42  ;;  %v3266_v3 = vmul.f32 %v7249_v29, %v7249_v29  ;;  %v3072_v51 = vadd.f32 %v3040_v47, %v7497_v53 }
 0x2c2   : > { %v7732_v2 = vadd.f32 %v2948_v0, %v2403_v9  ;;  %v2405_v62 = vpop.f32.mrf.mxu0  ;;  %v3157_v24 = vsel %vm3123_vm0, %v3102_v57, 0.0  ;;  %v3423_v9 = vadd.f32 %v3391_v16, %v3359_v40 }
 0x2c3   : > { %v2950_v52 = vpop.f32.mrf.mxu1  ;;  %3475 = vadd.xlane.f32.xlu0 %v3474_v61  ;;  %v3234_v61 = vmul.f32 %v6993_v49, %v6993_v49  ;;  %v3330_v62 = vmul.f32 %v7499_v39, %v7499_v39  ;;  %v3297_v40 = vadd.f32 %v3265_v37, %v3233_v11 }
 0x2c4   : > { %9287 = vst [vmem:[#allocation76_spill] sm:$0xff] %v7732_v2  ;;  %v2406_v38 = vpop.f32.mrf.mxu0  ;;  %v3103_v7 = vadd.f32 %v3071_v44, %v7732_v2  ;;  %v3392_v1 = vmul.f32 %v7732_v2, %v7732_v2  ;;  %v3329_v52 = vmul.f32 %v7497_v53, %v7497_v53 }
 0x2c5   : > { %v2951_v41 = vpop.f32.mrf.mxu1  ;;  %3158 = vadd.xlane.f32.xlu1 %v3157_v24  ;;  %v3041_v24 = vadd.f32 %v7249_v29, %v6993_v49  ;;  %v9290_v29 = vld [vmem:[#allocation37_spill] sm:$0xff] }
 0x2c6   : > { %v7750_v50 = vadd.f32 %v2951_v41, %v2406_v38  ;;  %v3160_v57 = vsel %vm3123_vm0, %v3103_v7, 0.0  ;;  %v2408_v0 = vpop.f32.mrf.mxu0  ;;  %v3424_v16 = vadd.f32 %v3392_v1, %v3360_v33  ;;  %v3477_v38 = vsel %vm3123_vm0, %v3423_v9, 0.0 }
 0x2c7   : > { %v2953_v44 = vpop.f32.mrf.mxu1  ;;  %3161 = vadd.xlane.f32.xlu0 %v3160_v57  ;;  %v3298_v1 = vadd.f32 %v3266_v3, %v3234_v61  ;;  %v3073_v37 = vadd.f32 %v3041_v24, %v7499_v39  ;;  %v3361_v11 = vadd.f32 %v3329_v52, %v3297_v40  ;;  %v3042_v9 = vadd.f32 %v9290_v29, %v7004_v58  ;;  %v9291_v40 = vld [vmem:[#allocation38_spill] sm:$0xff] }
 0x2c8   : > { %9288 = vst [vmem:[#allocation77_spill] sm:$0xff] %v7750_v50  ;;  %v2411_v41 = vpop.f32.mrf.mxu0  ;;  %v3104_v7 = vadd.f32 %v3072_v51, %v7750_v50  ;;  %v3393_v33 = vmul.f32 %v7750_v50, %v7750_v50  ;;  %v3480_v44 = vsel %vm3123_vm0, %v3424_v16, 0.0  ;;  %v3267_v51 = vmul.f32 %v9290_v29, %v9290_v29 }
 0x2c9   : > { %v2956_v47 = vpop.f32.mrf.mxu1  ;;  %3478 = vadd.xlane.f32.xlu1 %v3477_v38  ;;  %v3362_v2 = vadd.f32 %v3330_v62, %v3298_v1  ;;  %v3235_v52 = vmul.f32 %v7004_v58, %v7004_v58  ;;  %v3268_v24 = vmul.f32 %v9291_v40, %v9291_v40 }
 0x2ca   : > { %v7764_v0 = vadd.f32 %v2956_v47, %v2411_v41  ;;  %v2413_v57 = vpop.f32.mrf.mxu0  ;;  %v3163_v38 = vsel %vm3123_vm0, %v3104_v7, 0.0  ;;  %v3425_v41 = vadd.f32 %v3393_v33, %v3361_v11  ;;  %v9292_v47 = vld [vmem:[#allocation58_spill] sm:$0xff] }
 0x2cb   : > { %v2958_v49 = vpop.f32.mrf.mxu1  ;;  %3481 = vadd.xlane.f32.xlu0 %v3480_v44  ;;  %v3074_v57 = vadd.f32 %v3042_v9, %v9292_v47  ;;  %v3299_v58 = vadd.f32 %v3267_v51, %v3235_v52 }
 0x2cc   : > { %9289 = vst [vmem:[#allocation78_spill] sm:$0xff] %v7764_v0  ;;  %v2414_v3 = vpop.f32.mrf.mxu0  ;;  %v3105_v61 = vadd.f32 %v3073_v37, %v7764_v0  ;;  %v3394_v16 = vmul.f32 %v7764_v0, %v7764_v0  ;;  %v3331_v49 = vmul.f32 %v9292_v47, %v9292_v47  ;;  %v9294_v37 = vld [vmem:[#allocation11_spill] sm:$0xff] }
 0x2cd   : > { %v2959_v44 = vpop.f32.mrf.mxu1  ;;  %3164 = vadd.xlane.f32.xlu1 %v3163_v38  ;;  %v3236_v11 = vmul.f32 %v9294_v37, %v9294_v37  ;;  %v9295_v0 = vld [vmem:[#allocation59_spill] sm:$0xff]  ;;  %v3043_v38 = vadd.f32 %v9291_v40, %v9294_v37  ;;  %v9297_v40 = vld [vmem:[#allocation12_spill] sm:$0xff] }
 0x2ce   : > { %v7782_v62 = vadd.f32 %v2959_v44, %v2414_v3  ;;  %v3166_v7 = vsel %vm3123_vm0, %v3105_v61, 0.0  ;;  %v2416_v1 = vpop.f32.mrf.mxu0  ;;  %v3426_v33 = vadd.f32 %v3394_v16, %v3362_v2  ;;  %v3332_v39 = vmul.f32 %v9295_v0, %v9295_v0  ;;  %v9298_v37 = vld [vmem:[#allocation39_spill] sm:$0xff] }
 0x2cf   : > { %v2961_v29 = vpop.f32.mrf.mxu1  ;;  %3167 = vadd.xlane.f32.xlu0 %v3166_v7  ;;  %v3483_v3 = vsel %vm3123_vm0, %v3425_v41, 0.0  ;;  %v3300_v16 = vadd.f32 %v3268_v24, %v3236_v11  ;;  %v3075_v51 = vadd.f32 %v3043_v38, %v9295_v0  ;;  %v3363_v52 = vadd.f32 %v3331_v49, %v3299_v58  ;;  %v9299_v49 = vld [vmem:[#allocation40_spill] sm:$0xff] }
 0x2d0   : > { %9293 = vst [vmem:[#allocation79_spill] sm:$0xff] %v7782_v62  ;;  %v2419_v44 = vpop.f32.mrf.mxu0  ;;  %v3106_v61 = vadd.f32 %v3074_v57, %v7782_v62  ;;  %v3395_v2 = vmul.f32 %v7782_v62, %v7782_v62  ;;  %v3486_v29 = vsel %vm3123_vm0, %v3426_v33, 0.0  ;;  %v3044_v41 = vadd.f32 %v9298_v37, %v9297_v40 }
 0x2d1   : > { %v2964_v9 = vpop.f32.mrf.mxu1  ;;  %3484 = vadd.xlane.f32.xlu1 %v3483_v3  ;;  %v3269_v57 = vmul.f32 %v9298_v37, %v9298_v37  ;;  %v3364_v62 = vadd.f32 %v3332_v39, %v3300_v16  ;;  %v3237_v58 = vmul.f32 %v9297_v40, %v9297_v40  ;;  %v3270_v38 = vmul.f32 %v9299_v49, %v9299_v49 }
 0x2d2   : > { %v7796_v1 = vadd.f32 %v2964_v9, %v2419_v44  ;;  %v2421_v7 = vpop.f32.mrf.mxu0  ;;  %v3169_v3 = vsel %vm3123_vm0, %v3106_v61, 0.0  ;;  %v3427_v44 = vadd.f32 %v3395_v2, %v3363_v52  ;;  %v9300_v9 = vld [vmem:[#allocation60_spill] sm:$0xff] }
 0x2d3   : > { %v2966_v47 = vpop.f32.mrf.mxu1  ;;  %3487 = vadd.xlane.f32.xlu0 %v3486_v29  ;;  %v3076_v7 = vadd.f32 %v3044_v41, %v9300_v9  ;;  %v3301_v40 = vadd.f32 %v3269_v57, %v3237_v58 }
 0x2d4   : > { %9296 = vst [vmem:[#allocation80_spill] sm:$0xff] %v7796_v1  ;;  %v2422_v24 = vpop.f32.mrf.mxu0  ;;  %v3107_v11 = vadd.f32 %v3075_v51, %v7796_v1  ;;  %v3396_v33 = vmul.f32 %v7796_v1, %v7796_v1  ;;  %v3333_v47 = vmul.f32 %v9300_v9, %v9300_v9  ;;  %v9302_v51 = vld [vmem:[#allocation13_spill] sm:$0xff] }
 0x2d5   : > { %v2967_v29 = vpop.f32.mrf.mxu1  ;;  %3170 = vadd.xlane.f32.xlu1 %v3169_v3  ;;  %v3238_v52 = vmul.f32 %v9302_v51, %v9302_v51  ;;  %v9303_v1 = vld [vmem:[#allocation61_spill] sm:$0xff]  ;;  %v3045_v3 = vadd.f32 %v9299_v49, %v9302_v51  ;;  %v9305_v49 = vld [vmem:[#allocation14_spill] sm:$0xff] }
 0x2d6   : > { %v7814_v39 = vadd.f32 %v2967_v29, %v2422_v24  ;;  %v3172_v61 = vsel %vm3123_vm0, %v3107_v11, 0.0  ;;  %v2424_v16 = vpop.f32.mrf.mxu0  ;;  %v3428_v2 = vadd.f32 %v3396_v33, %v3364_v62  ;;  %v3334_v0 = vmul.f32 %v9303_v1, %v9303_v1  ;;  %v9306_v51 = vld [vmem:[#allocation41_spill] sm:$0xff] }
 0x2d7   : > { %v2969_v37 = vpop.f32.mrf.mxu1  ;;  %3173 = vadd.xlane.f32.xlu0 %v3172_v61  ;;  %v3489_v24 = vsel %vm3123_vm0, %v3427_v44, 0.0  ;;  %v3302_v33 = vadd.f32 %v3270_v38, %v3238_v52  ;;  %v3077_v57 = vadd.f32 %v3045_v3, %v9303_v1  ;;  %v3365_v58 = vadd.f32 %v3333_v47, %v3301_v40  ;;  %v9307_v47 = vld [vmem:[#allocation42_spill] sm:$0xff] }
 0x2d8   : > { %9301 = vst [vmem:[#allocation81_spill] sm:$0xff] %v7814_v39  ;;  %v2427_v29 = vpop.f32.mrf.mxu0  ;;  %v3108_v11 = vadd.f32 %v3076_v7, %v7814_v39  ;;  %v3397_v62 = vmul.f32 %v7814_v39, %v7814_v39  ;;  %v3492_v37 = vsel %vm3123_vm0, %v3428_v2, 0.0  ;;  %v3046_v44 = vadd.f32 %v9306_v51, %v9305_v49 }
 0x2d9   : > { %v2972_v41 = vpop.f32.mrf.mxu1  ;;  %3490 = vadd.xlane.f32.xlu1 %v3489_v24  ;;  %v3271_v7 = vmul.f32 %v9306_v51, %v9306_v51  ;;  %v3366_v39 = vadd.f32 %v3334_v0, %v3302_v33  ;;  %v3239_v40 = vmul.f32 %v9305_v49, %v9305_v49  ;;  %v3272_v3 = vmul.f32 %v9307_v47, %v9307_v47 }
 0x2da   : > { %v7828_v16 = vadd.f32 %v2972_v41, %v2427_v29  ;;  %v2429_v61 = vpop.f32.mrf.mxu0  ;;  %v3175_v24 = vsel %vm3123_vm0, %v3108_v11, 0.0  ;;  %v3429_v29 = vadd.f32 %v3397_v62, %v3365_v58  ;;  %v9308_v41 = vld [vmem:[#allocation62_spill] sm:$0xff] }
 0x2db   : > { %v2974_v9 = vpop.f32.mrf.mxu1  ;;  %3493 = vadd.xlane.f32.xlu0 %v3492_v37  ;;  %v3078_v61 = vadd.f32 %v3046_v44, %v9308_v41  ;;  %v3303_v49 = vadd.f32 %v3271_v7, %v3239_v40 }
 0x2dc   : > { %9304 = vst [vmem:[#allocation82_spill] sm:$0xff] %v7828_v16  ;;  %v2430_v38 = vpop.f32.mrf.mxu0  ;;  %v3109_v52 = vadd.f32 %v3077_v57, %v7828_v16  ;;  %v3398_v2 = vmul.f32 %v7828_v16, %v7828_v16  ;;  %v3335_v9 = vmul.f32 %v9308_v41, %v9308_v41  ;;  %v9310_v57 = vld [vmem:[#allocation15_spill] sm:$0xff] }
 0x2dd   : > { %v2975_v37 = vpop.f32.mrf.mxu1  ;;  %3176 = vadd.xlane.f32.xlu1 %v3175_v24  ;;  %v3240_v58 = vmul.f32 %v9310_v57, %v9310_v57  ;;  %v9311_v16 = vld [vmem:[#allocation63_spill] sm:$0xff]  ;;  %v3047_v24 = vadd.f32 %v9307_v47, %v9310_v57  ;;  %v9313_v47 = vld [vmem:[#allocation16_spill] sm:$0xff] }
 0x2de   : > { %v7846_v0 = vadd.f32 %v2975_v37, %v2430_v38  ;;  %v3178_v11 = vsel %vm3123_vm0, %v3109_v52, 0.0  ;;  %v2432_v33 = vpop.f32.mrf.mxu0  ;;  %v3430_v62 = vadd.f32 %v3398_v2, %v3366_v39  ;;  %v3336_v1 = vmul.f32 %v9311_v16, %v9311_v16  ;;  %v9314_v57 = vld [vmem:[#allocation43_spill] sm:$0xff] }
 0x2df   : > { %v2977_v51 = vpop.f32.mrf.mxu1  ;;  %3179 = vadd.xlane.f32.xlu0 %v3178_v11  ;;  %v3495_v38 = vsel %vm3123_vm0, %v3429_v29, 0.0  ;;  %v3304_v2 = vadd.f32 %v3272_v3, %v3240_v58  ;;  %v3079_v7 = vadd.f32 %v3047_v24, %v9311_v16  ;;  %v3367_v40 = vadd.f32 %v3335_v9, %v3303_v49  ;;  %v9315_v9 = vld [vmem:[#allocation44_spill] sm:$0xff] }
 0x2e0   : > { %9309 = vst [vmem:[#allocation83_spill] sm:$0xff] %v7846_v0  ;;  %v2435_v37 = vpop.f32.mrf.mxu0  ;;  %v3110_v52 = vadd.f32 %v3078_v61, %v7846_v0  ;;  %v3399_v39 = vmul.f32 %v7846_v0, %v7846_v0  ;;  %v3498_v51 = vsel %vm3123_vm0, %v3430_v62, 0.0  ;;  %v3048_v29 = vadd.f32 %v9314_v57, %v9313_v47 }
 0x2e1   : > { %v2980_v44 = vpop.f32.mrf.mxu1  ;;  %3496 = vadd.xlane.f32.xlu1 %v3495_v38  ;;  %v3273_v61 = vmul.f32 %v9314_v57, %v9314_v57  ;;  %v3368_v0 = vadd.f32 %v3336_v1, %v3304_v2  ;;  %v3241_v49 = vmul.f32 %v9313_v47, %v9313_v47  ;;  %v3274_v24 = vmul.f32 %v9315_v9, %v9315_v9 }
 0x2e2   : > { %v7860_v33 = vadd.f32 %v2980_v44, %v2435_v37  ;;  %v2437_v11 = vpop.f32.mrf.mxu0  ;;  %v3181_v38 = vsel %vm3123_vm0, %v3110_v52, 0.0  ;;  %v3431_v37 = vadd.f32 %v3399_v39, %v3367_v40  ;;  %v9316_v44 = vld [vmem:[#allocation64_spill] sm:$0xff] }
 0x2e3   : > { %v2982_v41 = vpop.f32.mrf.mxu1  ;;  %3499 = vadd.xlane.f32.xlu0 %v3498_v51  ;;  %v3080_v11 = vadd.f32 %v3048_v29, %v9316_v44  ;;  %v3305_v47 = vadd.f32 %v3273_v61, %v3241_v49 }
 0x2e4   : > { %9312 = vst [vmem:[#allocation84_spill] sm:$0xff] %v7860_v33  ;;  %v2438_v3 = vpop.f32.mrf.mxu0  ;;  %v3111_v58 = vadd.f32 %v3079_v7, %v7860_v33  ;;  %v3400_v62 = vmul.f32 %v7860_v33, %v7860_v33  ;;  %v3337_v41 = vmul.f32 %v9316_v44, %v9316_v44  ;;  %v9318_v7 = vld [vmem:[#allocation17_spill] sm:$0xff] }
 0x2e5   : > { %v2983_v51 = vpop.f32.mrf.mxu1  ;;  %3182 = vadd.xlane.f32.xlu1 %v3181_v38  ;;  %v3242_v40 = vmul.f32 %v9318_v7, %v9318_v7  ;;  %v9319_v33 = vld [vmem:[#allocation65_spill] sm:$0xff]  ;;  %v3049_v38 = vadd.f32 %v9315_v9, %v9318_v7  ;;  %v9321_v9 = vld [vmem:[#allocation18_spill] sm:$0xff] }
 0x2e6   : > { %v7878_v1 = vadd.f32 %v2983_v51, %v2438_v3  ;;  %v3184_v52 = vsel %vm3123_vm0, %v3111_v58, 0.0  ;;  %v2440_v2 = vpop.f32.mrf.mxu0  ;;  %v3432_v39 = vadd.f32 %v3400_v62, %v3368_v0  ;;  %v3338_v16 = vmul.f32 %v9319_v33, %v9319_v33  ;;  %v9322_v7 = vld [vmem:[#allocation45_spill] sm:$0xff] }
 0x2e7   : > { %v2985_v57 = vpop.f32.mrf.mxu1  ;;  %3185 = vadd.xlane.f32.xlu0 %v3184_v52  ;;  %v3501_v3 = vsel %vm3123_vm0, %v3431_v37, 0.0  ;;  %v3306_v62 = vadd.f32 %v3274_v24, %v3242_v40  ;;  %v3081_v61 = vadd.f32 %v3049_v38, %v9319_v33  ;;  %v3369_v49 = vadd.f32 %v3337_v41, %v3305_v47  ;;  %v9323_v41 = vld [vmem:[#allocation46_spill] sm:$0xff] }
 0x2e8   : > { %9317 = vst [vmem:[#allocation85_spill] sm:$0xff] %v7878_v1  ;;  %v2443_v51 = vpop.f32.mrf.mxu0  ;;  %v3112_v58 = vadd.f32 %v3080_v11, %v7878_v1  ;;  %v3401_v0 = vmul.f32 %v7878_v1, %v7878_v1  ;;  %v3504_v57 = vsel %vm3123_vm0, %v3432_v39, 0.0  ;;  %v3050_v37 = vadd.f32 %v9322_v7, %v9321_v9 }
 0x2e9   : > { %v2988_v29 = vpop.f32.mrf.mxu1  ;;  %3502 = vadd.xlane.f32.xlu1 %v3501_v3  ;;  %v3275_v11 = vmul.f32 %v9322_v7, %v9322_v7  ;;  %v3370_v1 = vadd.f32 %v3338_v16, %v3306_v62  ;;  %v3243_v47 = vmul.f32 %v9321_v9, %v9321_v9  ;;  %v3276_v38 = vmul.f32 %v9323_v41, %v9323_v41 }
 0x2ea   : > { %v7892_v2 = vadd.f32 %v2988_v29, %v2443_v51  ;;  %v2445_v52 = vpop.f32.mrf.mxu0  ;;  %v3187_v3 = vsel %vm3123_vm0, %v3112_v58, 0.0  ;;  %v3433_v51 = vadd.f32 %v3401_v0, %v3369_v49  ;;  %v9324_v29 = vld [vmem:[#allocation66_spill] sm:$0xff] }
 0x2eb   : > { %v2990_v44 = vpop.f32.mrf.mxu1  ;;  %3505 = vadd.xlane.f32.xlu0 %v3504_v57  ;;  %v3082_v52 = vadd.f32 %v3050_v37, %v9324_v29  ;;  %v3307_v9 = vadd.f32 %v3275_v11, %v3243_v47 }
 0x2ec   : > { %9320 = vst [vmem:[#allocation86_spill] sm:$0xff] %v7892_v2  ;;  %v2446_v24 = vpop.f32.mrf.mxu0  ;;  %v3113_v40 = vadd.f32 %v3081_v61, %v7892_v2  ;;  %v3402_v39 = vmul.f32 %v7892_v2, %v7892_v2  ;;  %v3339_v44 = vmul.f32 %v9324_v29, %v9324_v29  ;;  %v9326_v61 = vld [vmem:[#allocation19_spill] sm:$0xff] }
 0x2ed   : > { %v2991_v57 = vpop.f32.mrf.mxu1  ;;  %3188 = vadd.xlane.f32.xlu1 %v3187_v3  ;;  %v3244_v49 = vmul.f32 %v9326_v61, %v9326_v61  ;;  %v9327_v2 = vld [vmem:[#allocation67_spill] sm:$0xff]  ;;  %v3051_v3 = vadd.f32 %v9323_v41, %v9326_v61  ;;  %v9329_v41 = vld [vmem:[#allocation20_spill] sm:$0xff] }
 0x2ee   : > { %v7910_v16 = vadd.f32 %v2991_v57, %v2446_v24  ;;  %v3190_v58 = vsel %vm3123_vm0, %v3113_v40, 0.0  ;;  %v2448_v62 = vpop.f32.mrf.mxu0  ;;  %v3434_v0 = vadd.f32 %v3402_v39, %v3370_v1  ;;  %v3340_v33 = vmul.f32 %v9327_v2, %v9327_v2  ;;  %v9330_v61 = vld [vmem:[#allocation47_spill] sm:$0xff] }
 0x2ef   : > { %v2993_v7 = vpop.f32.mrf.mxu1  ;;  %3191 = vadd.xlane.f32.xlu0 %v3190_v58  ;;  %v3507_v24 = vsel %vm3123_vm0, %v3433_v51, 0.0  ;;  %v3308_v39 = vadd.f32 %v3276_v38, %v3244_v49  ;;  %v3083_v11 = vadd.f32 %v3051_v3, %v9327_v2  ;;  %v3371_v47 = vadd.f32 %v3339_v44, %v3307_v9  ;;  %v9331_v44 = vld [vmem:[#allocation48_spill] sm:$0xff] }
 0x2f0   : > { %9325 = vst [vmem:[#allocation87_spill] sm:$0xff] %v7910_v16  ;;  %v2451_v57 = vpop.f32.mrf.mxu0  ;;  %v3114_v40 = vadd.f32 %v3082_v52, %v7910_v16  ;;  %v3403_v1 = vmul.f32 %v7910_v16, %v7910_v16  ;;  %v3510_v7 = vsel %vm3123_vm0, %v3434_v0, 0.0  ;;  %v3052_v51 = vadd.f32 %v9330_v61, %v9329_v41 }
 0x2f1   : > { %v2996_v37 = vpop.f32.mrf.mxu1  ;;  %3508 = vadd.xlane.f32.xlu1 %v3507_v24  ;;  %v3277_v52 = vmul.f32 %v9330_v61, %v9330_v61  ;;  %v3372_v16 = vadd.f32 %v3340_v33, %v3308_v39  ;;  %v3245_v9 = vmul.f32 %v9329_v41, %v9329_v41  ;;  %v3278_v3 = vmul.f32 %v9331_v44, %v9331_v44 }
 0x2f2   : > { %v7924_v62 = vadd.f32 %v2996_v37, %v2451_v57  ;;  %v2453_v58 = vpop.f32.mrf.mxu0  ;;  %v3193_v24 = vsel %vm3123_vm0, %v3114_v40, 0.0  ;;  %v3435_v57 = vadd.f32 %v3403_v1, %v3371_v47  ;;  %v9332_v37 = vld [vmem:[#allocation68_spill] sm:$0xff] }
 0x2f3   : > { %v2998_v29 = vpop.f32.mrf.mxu1  ;;  %3511 = vadd.xlane.f32.xlu0 %v3510_v7  ;;  %v3084_v58 = vadd.f32 %v3052_v51, %v9332_v37  ;;  %v3309_v41 = vadd.f32 %v3277_v52, %v3245_v9 }
 0x2f4   : > { %9328 = vst [vmem:[#allocation88_spill] sm:$0xff] %v7924_v62  ;;  %v2454_v38 = vpop.f32.mrf.mxu0  ;;  %v3115_v49 = vadd.f32 %v3083_v11, %v7924_v62  ;;  %v3404_v0 = vmul.f32 %v7924_v62, %v7924_v62  ;;  %v3341_v29 = vmul.f32 %v9332_v37, %v9332_v37  ;;  %v9334_v11 = vld [vmem:[#allocation21_spill] sm:$0xff] }
 0x2f5   : > { %v2999_v7 = vpop.f32.mrf.mxu1  ;;  %3194 = vadd.xlane.f32.xlu1 %v3193_v24  ;;  %v3246_v47 = vmul.f32 %v9334_v11, %v9334_v11  ;;  %v9335_v62 = vld [vmem:[#allocation69_spill] sm:$0xff]  ;;  %v3053_v24 = vadd.f32 %v9331_v44, %v9334_v11  ;;  %v9337_v44 = vld [vmem:[#allocation22_spill] sm:$0xff] }
 0x2f6   : > { %v7942_v33 = vadd.f32 %v2999_v7, %v2454_v38  ;;  %v3196_v40 = vsel %vm3123_vm0, %v3115_v49, 0.0  ;;  %v2456_v39 = vpop.f32.mrf.mxu0  ;;  %v3436_v1 = vadd.f32 %v3404_v0, %v3372_v16  ;;  %v3342_v2 = vmul.f32 %v9335_v62, %v9335_v62  ;;  %v9338_v11 = vld [vmem:[#allocation49_spill] sm:$0xff] }
 0x2f7   : > { %v3001_v61 = vpop.f32.mrf.mxu1  ;;  %3197 = vadd.xlane.f32.xlu0 %v3196_v40  ;;  %v3513_v38 = vsel %vm3123_vm0, %v3435_v57, 0.0  ;;  %v3310_v0 = vadd.f32 %v3278_v3, %v3246_v47  ;;  %v3085_v52 = vadd.f32 %v3053_v24, %v9335_v62  ;;  %v3373_v9 = vadd.f32 %v3341_v29, %v3309_v41  ;;  %v9339_v29 = vld [vmem:[#allocation50_spill] sm:$0xff] }
 0x2f8   : > { %9333 = vst [vmem:[#allocation89_spill] sm:$0xff] %v7942_v33  ;;  %v2459_v7 = vpop.f32.mrf.mxu0  ;;  %v3116_v49 = vadd.f32 %v3084_v58, %v7942_v33  ;;  %v3405_v16 = vmul.f32 %v7942_v33, %v7942_v33  ;;  %v3516_v61 = vsel %vm3123_vm0, %v3436_v1, 0.0  ;;  %v3054_v57 = vadd.f32 %v9338_v11, %v9337_v44 }
 0x2f9   : > { %v3004_v51 = vpop.f32.mrf.mxu1  ;;  %3514 = vadd.xlane.f32.xlu1 %v3513_v38  ;;  %v3279_v58 = vmul.f32 %v9338_v11, %v9338_v11  ;;  %v3374_v33 = vadd.f32 %v3342_v2, %v3310_v0  ;;  %v3247_v41 = vmul.f32 %v9337_v44, %v9337_v44  ;;  %v3280_v24 = vmul.f32 %v9339_v29, %v9339_v29 }
 0x2fa   : > { %v7956_v39 = vadd.f32 %v3004_v51, %v2459_v7  ;;  %v2461_v40 = vpop.f32.mrf.mxu0  ;;  %v3199_v38 = vsel %vm3123_vm0, %v3116_v49, 0.0  ;;  %v3437_v7 = vadd.f32 %v3405_v16, %v3373_v9  ;;  %v3344_v9 = vmul.f32 %v7527_v30, %v7527_v30 }
 0x2fb   : > { %v3006_v37 = vpop.f32.mrf.mxu1  ;;  %3517 = vadd.xlane.f32.xlu0 %v3516_v61  ;;  %v3086_v61 = vadd.f32 %v3054_v57, %v7525_v8  ;;  %v9341_v40 = vld [vmem:[#allocation23_spill] sm:$0xff]  ;;  %v3311_v62 = vadd.f32 %v3279_v58, %v3247_v41 }
 0x2fc   : > { %9336 = vst [vmem:[#allocation90_spill] sm:$0xff] %v7956_v39  ;;  %v2462_v3 = vpop.f32.mrf.mxu0  ;;  %v3117_v47 = vadd.f32 %v3085_v52, %v7956_v39  ;;  %v3406_v1 = vmul.f32 %v7956_v39, %v7956_v39  ;;  %v3343_v37 = vmul.f32 %v7525_v8, %v7525_v8  ;;  %v3248_v52 = vmul.f32 %v9341_v40, %v9341_v40 }
 0x2fd   : > { %v3007_v51 = vpop.f32.mrf.mxu1  ;;  %3200 = vadd.xlane.f32.xlu1 %v3199_v38  ;;  %v3055_v38 = vadd.f32 %v9339_v29, %v9341_v40  ;;  %v9343_v29 = vld [vmem:[#allocation24_spill] sm:$0xff]  ;;  %v9344_v40 = vld [vmem:[#allocation51_spill] sm:$0xff] }
 0x2fe   : > { %v7974_v2 = vadd.f32 %v3007_v51, %v2462_v3  ;;  %v3202_v49 = vsel %vm3123_vm0, %v3117_v47, 0.0  ;;  %v2464_v0 = vpop.f32.mrf.mxu0  ;;  %v3438_v16 = vadd.f32 %v3406_v1, %v3374_v33  ;;  %v3519_v3 = vsel %vm3123_vm0, %v3437_v7, 0.0 }
 0x2ff   : > { %v3009_v39 = vpop.f32.mrf.mxu1  ;;  %3203 = vadd.xlane.f32.xlu0 %v3202_v49  ;;  %v3312_v1 = vadd.f32 %v3280_v24, %v3248_v52  ;;  %v3087_v58 = vadd.f32 %v3055_v38, %v7527_v30  ;;  %v3375_v41 = vadd.f32 %v3343_v37, %v3311_v62  ;;  %v3056_v7 = vadd.f32 %v9344_v40, %v9343_v29  ;;  %v9345_v37 = vld [vmem:[#allocation52_spill] sm:$0xff] }
 0x300   : > { %9340 = vst [vmem:[#allocation91_spill] sm:$0xff] %v7974_v2  ;;  %v2467_v51 = vpop.f32.mrf.mxu0  ;;  %v3118_v47 = vadd.f32 %v3086_v61, %v7974_v2  ;;  %v3407_v33 = vmul.f32 %v7974_v2, %v7974_v2  ;;  %v3522_v39 = vsel %vm3123_vm0, %v3438_v16, 0.0  ;;  %v3281_v61 = vmul.f32 %v9344_v40, %v9344_v40 }
 0x301   : > { %v3012_v57 = vpop.f32.mrf.mxu1  ;;  %3520 = vadd.xlane.f32.xlu1 %v3519_v3  ;;  %v3376_v2 = vadd.f32 %v3344_v9, %v3312_v1  ;;  %v3249_v62 = vmul.f32 %v9343_v29, %v9343_v29  ;;  %v3282_v38 = vmul.f32 %v9345_v37, %v9345_v37 }
 0x302   : > { %v7988_v0 = vadd.f32 %v3012_v57, %v2467_v51  ;;  %v2469_v49 = vpop.f32.mrf.mxu0  ;;  %v3205_v3 = vsel %vm3123_vm0, %v3118_v47, 0.0  ;;  %v3439_v51 = vadd.f32 %v3407_v33, %v3375_v41  ;;  %v9346_v57 = vld [vmem:[#allocation72_spill] sm:$0xff] }
 0x303   : > { %v3014_v8 = vpop.f32.mrf.mxu1  ;;  %3523 = vadd.xlane.f32.xlu0 %v3522_v39  ;;  %v3088_v49 = vadd.f32 %v3056_v7, %v9346_v57  ;;  %v3313_v29 = vadd.f32 %v3281_v61, %v3249_v62 }
 0x304   : > { %9342 = vst [vmem:[#allocation92_spill] sm:$0xff] %v7988_v0  ;;  %v2470_v24 = vpop.f32.mrf.mxu0  ;;  %v3119_v52 = vadd.f32 %v3087_v58, %v7988_v0  ;;  %v3408_v16 = vmul.f32 %v7988_v0, %v7988_v0  ;;  %v3345_v8 = vmul.f32 %v9346_v57, %v9346_v57  ;;  %v9348_v58 = vld [vmem:[#allocation25_spill] sm:$0xff] }
 0x305   : > { %v3015_v39 = vpop.f32.mrf.mxu1  ;;  %3206 = vadd.xlane.f32.xlu1 %v3205_v3  ;;  %v3250_v41 = vmul.f32 %v9348_v58, %v9348_v58  ;;  %v9349_v0 = vld [vmem:[#allocation73_spill] sm:$0xff]  ;;  %v3057_v3 = vadd.f32 %v9345_v37, %v9348_v58  ;;  %v9351_v37 = vld [vmem:[#allocation26_spill] sm:$0xff] }
 0x306   : > { %v8006_v9 = vadd.f32 %v3015_v39, %v2470_v24  ;;  %v3208_v47 = vsel %vm3123_vm0, %v3119_v52, 0.0  ;;  %v2472_v1 = vpop.f32.mrf.mxu0  ;;  %v3440_v33 = vadd.f32 %v3408_v16, %v3376_v2  ;;  %v3346_v30 = vmul.f32 %v9349_v0, %v9349_v0  ;;  %v9352_v58 = vld [vmem:[#allocation53_spill] sm:$0xff] }
 0x307   : > { %v3017_v40 = vpop.f32.mrf.mxu1  ;;  %3209 = vadd.xlane.f32.xlu0 %v3208_v47  ;;  %v3525_v24 = vsel %vm3123_vm0, %v3439_v51, 0.0  ;;  %v3314_v16 = vadd.f32 %v3282_v38, %v3250_v41  ;;  %v3089_v61 = vadd.f32 %v3057_v3, %v9349_v0  ;;  %v3377_v62 = vadd.f32 %v3345_v8, %v3313_v29  ;;  %v9353_v8 = vld [vmem:[#allocation74_spill] sm:$0xff] }
 0x308   : > { %9347 = vst [vmem:[#allocation93_spill] sm:$0xff] %v8006_v9  ;;  %v2475_v39 = vpop.f32.mrf.mxu0  ;;  %v3120_v52 = vadd.f32 %v3088_v49, %v8006_v9  ;;  %v3409_v2 = vmul.f32 %v8006_v9, %v8006_v9  ;;  %v3528_v40 = vsel %vm3123_vm0, %v3440_v33, 0.0  ;;  %v3058_v51 = vadd.f32 %v9352_v58, %v9351_v37 }
 0x309   : > { %v3020_v7 = vpop.f32.mrf.mxu1  ;;  %3526 = vadd.xlane.f32.xlu1 %v3525_v24  ;;  %v3283_v49 = vmul.f32 %v9352_v58, %v9352_v58  ;;  %v3378_v9 = vadd.f32 %v3346_v30, %v3314_v16  ;;  %v3251_v29 = vmul.f32 %v9351_v37, %v9351_v37  ;;  %v3347_v3 = vmul.f32 %v9353_v8, %v9353_v8 }
 0x30a   : > { %v8020_v1 = vadd.f32 %v3020_v7, %v2475_v39  ;;  %v2477_v47 = vpop.f32.mrf.mxu0  ;;  %v3211_v24 = vsel %vm3123_vm0, %v3120_v52, 0.0  ;;  %v3441_v39 = vadd.f32 %v3409_v2, %v3377_v62 }
 0x30b   : > { %v3022_v57 = vpop.f32.mrf.mxu1  ;;  %3529 = vadd.xlane.f32.xlu0 %v3528_v40  ;;  %v3090_v40 = vadd.f32 %v3058_v51, %v9353_v8  ;;  %v3315_v62 = vadd.f32 %v3283_v49, %v3251_v29 }
 0x30c   : > { %9350 = vst [vmem:[#allocation94_spill] sm:$0xff] %v8020_v1  ;;  %v2478_v38 = vpop.f32.mrf.mxu0  ;;  %v3121_v41 = vadd.f32 %v3089_v61, %v8020_v1  ;;  %v3410_v33 = vmul.f32 %v8020_v1, %v8020_v1  ;;  %v3531_v47 = vsel %vm3123_vm0, %v3441_v39, 0.0 }
 0x30d   : > { %v3023_v7 = vpop.f32.mrf.mxu1  ;;  %3212 = vadd.xlane.f32.xlu1 %v3211_v24 }
 0x30e   : > { %v8036_v57 = vadd.f32 %v3023_v7, %v2478_v38  ;;  %v3214_v30 = vsel %vm3123_vm0, %v3121_v41, 0.0  ;;  %v2480_v52 = vpop.f32.mrf.mxu0  ;;  %v3442_v16 = vadd.f32 %v3410_v33, %v3378_v9  ;;  %v3379_v38 = vadd.f32 %v3347_v3, %v3315_v62 }
 0x30f   : > { %v3025_v2 = vpop.f32.mrf.mxu1  ;;  %3215 = vadd.xlane.f32.xlu0 %v3214_v30 }
 0x310   : > { %9354 = vst [vmem:[#allocation95_spill] sm:$0xff] %v8036_v57  ;;  %v3122_v61 = vadd.f32 %v3090_v40, %v8036_v57  ;;  %v3411_v58 = vmul.f32 %v8036_v57, %v8036_v57  ;;  %v3534_v24 = vsel %vm3123_vm0, %v3442_v16, 0.0 }
 0x311   : > { %3532 = vadd.xlane.f32.xlu1 %v3531_v47 }
 0x312   : > { %v3217_v41 = vsel %vm3123_vm0, %v3122_v61, 0.0  ;;  %v3443_v9 = vadd.f32 %v3411_v58, %v3379_v38 }
 0x313   : > { %3535 = vadd.xlane.f32.xlu0 %v3534_v24 }
 0x314   : > { %v3537_v51 = vsel %vm3123_vm0, %v3443_v9, 0.0 }
 0x315   : > { %3218 = vadd.xlane.f32.xlu1 %v3217_v41 }
 0x319   : > { %3538 = vadd.xlane.f32.xlu1 %v3537_v51 }
 0x320   : > { %v3126_v33 = vpop.xlane.xlu0 %3125 }
 0x321   : > { %v3541_v39 = vmul.f32 0.015625, %v3126_v33 }
 0x323   : > { %v3605_v30 = vmul.f32 %v3541_v39, %v3541_v39 }
 0x324   : > { %v3446_v7 = vpop.xlane.xlu0 %3445 }
 0x325   : > { %v3573_v49 = vmul.f32 0.015625, %v3446_v7 }
 0x326   : > { %v3449_v29 = vpop.xlane.xlu1 %3448 }
 0x327   : > { %v3637_v52 = vsub.f32 %v3573_v49, %v3605_v30  ;;  %v3574_v16 = vmul.f32 0.015625, %v3449_v29 }
 0x328   : > { %v3129_v40 = vpop.xlane.xlu0 %3128 }
 0x329   : > { %v3669_v2 = vmax.f32 %v3637_v52, 0.0  ;;  %v3542_v47 = vmul.f32 0.015625, %v3129_v40  ;;  %3767 = vperm.xlu0 %5987, %v3541_v39  }
 0x32a   : > { %v3132_v3 = vpop.xlane.xlu1 %3131 }
 0x32b   : > { %v3606_v62 = vmul.f32 %v3542_v47, %v3542_v47  ;;  %v3543_v61 = vmul.f32 0.015625, %v3132_v3  ;;  %3772 = vperm.xlu1 %5988, %v3542_v47   ;;  %v3701_v24 = vadd.f32 1e-05, %v3669_v2 }
 0x32c   : > { %v3452_v58 = vpop.xlane.xlu0 %3451 }
 0x32d   : > { %v3638_v38 = vsub.f32 %v3574_v16, %v3606_v62  ;;  %v3607_v41 = vmul.f32 %v3543_v61, %v3543_v61  ;;  %v3575_v9 = vmul.f32 0.015625, %v3452_v58  ;;  %6405 = vrsqrt.f32 %v3701_v24 }
 0x32e   : > { %v3135_v51 = vpop.xlane.xlu1 %3134 }
 0x32f   : > { %v3670_v33 = vmax.f32 %v3638_v38, 0.0  ;;  %v3544_v57 = vmul.f32 0.015625, %v3135_v51  ;;  %3777 = vperm.xlu1 %5988, %v3543_v61   ;;  %v3639_v49 = vsub.f32 %v3575_v9, %v3607_v41 }
 0x330   : > { %v3138_v7 = vpop.xlane.xlu0 %3137 }
 0x331   : > { %v3702_v30 = vadd.f32 1e-05, %v3670_v33  ;;  %v3608_v39 = vmul.f32 %v3544_v57, %v3544_v57  ;;  %v3545_v29 = vmul.f32 0.015625, %v3138_v7  ;;  %v3671_v3 = vmax.f32 %v3639_v49, 0.0 }
 0x332   : > { %v3455_v52 = vpop.xlane.xlu1 %3454 }
 0x333   : > { %6407 = vrsqrt.f32 %v3702_v30  ;;  %v3576_v40 = vmul.f32 0.015625, %v3455_v52  ;;  %3782 = vperm.xlu1 %5988, %v3544_v57   ;;  %v3609_v58 = vmul.f32 %v3545_v29, %v3545_v29  ;;  %v3703_v51 = vadd.f32 1e-05, %v3671_v3 }
 0x334   : > { %v3458_v47 = vpop.xlane.xlu0 %3457 }
 0x335   : > { %v3640_v2 = vsub.f32 %v3576_v40, %v3608_v39  ;;  %v3577_v16 = vmul.f32 0.015625, %v3458_v47 }
 0x336   : > { %v3141_v62 = vpop.xlane.xlu1 %3140 }
 0x337   : > { %v3672_v8 = vmax.f32 %v3640_v2, 0.0  ;;  %v3546_v38 = vmul.f32 0.015625, %v3141_v62  ;;  %3787 = vperm.xlu1 %5988, %v3545_v29   ;;  %v3641_v33 = vsub.f32 %v3577_v16, %v3609_v58 }
 0x338   : > { %v3144_v61 = vpop.xlane.xlu0 %3143 }
 0x339   : > { %v3704_v24 = vadd.f32 1e-05, %v3672_v8  ;;  %v3610_v9 = vmul.f32 %v3546_v38, %v3546_v38  ;;  %v3547_v30 = vmul.f32 0.015625, %v3144_v61  ;;  %v3673_v49 = vmax.f32 %v3641_v33, 0.0 }
 0x33a   : > { %v3461_v41 = vpop.xlane.xlu1 %3460  ;;  %v6406_v40 = vpop.eup %6405 }
 0x33b   : > { %6409 = vrsqrt.f32 %v3704_v24  ;;  %v3578_v7 = vmul.f32 0.015625, %v3461_v41  ;;  %3792 = vperm.xlu1 %5988, %v3546_v38   ;;  %v3611_v2 = vmul.f32 %v3547_v30, %v3547_v30  ;;  %v3705_v16 = vadd.f32 1e-05, %v3673_v49 }
 0x33c   : > { %v3464_v57 = vpop.xlane.xlu0 %3463  ;;  %6411 = vrsqrt.f32 %v3703_v51 }
 0x33d   : > { %v3642_v52 = vsub.f32 %v3578_v7, %v3610_v9  ;;  %v3579_v39 = vmul.f32 0.015625, %v3464_v57 }
 0x33e   : > { %v3147_v47 = vpop.xlane.xlu1 %3146 }
 0x33f   : > { %v3674_v62 = vmax.f32 %v3642_v52, 0.0  ;;  %v3548_v29 = vmul.f32 0.015625, %v3147_v47  ;;  %4055 = vperm.xlu1 %5988, %v6406_v40   ;;  %v3643_v24 = vsub.f32 %v3579_v39, %v3611_v2 }
 0x340   : > { %v6408_v3 = vpop.eup %6407  ;;  %v3150_v8 = vpop.xlane.xlu0 %3149 }
 0x341   : > { %v3706_v58 = vadd.f32 1e-05, %v3674_v62  ;;  %4060 = vperm.xlu0 %5987, %v6408_v3   ;;  %v3612_v38 = vmul.f32 %v3548_v29, %v3548_v29  ;;  %v3549_v41 = vmul.f32 0.015625, %v3150_v8  ;;  %v3675_v9 = vmax.f32 %v3643_v24, 0.0 }
 0x342   : > { %v3467_v61 = vpop.xlane.xlu1 %3466 }
 0x343   : > { %6413 = vrsqrt.f32 %v3706_v58  ;;  %v3580_v51 = vmul.f32 0.015625, %v3467_v61  ;;  %3797 = vperm.xlu1 %5988, %v3547_v30   ;;  %v3613_v47 = vmul.f32 %v3549_v41, %v3549_v41  ;;  %v3707_v39 = vadd.f32 1e-05, %v3675_v9 }
 0x344   : > { %v3470_v33 = vpop.xlane.xlu0 %3469  ;;  %6415 = vrsqrt.f32 %v3705_v16 }
 0x345   : > { %v3644_v7 = vsub.f32 %v3580_v51, %v3612_v38  ;;  %v3581_v57 = vmul.f32 0.015625, %v3470_v33 }
 0x346   : > { %v3153_v52 = vpop.xlane.xlu1 %3152 }
 0x347   : > { %v3676_v40 = vmax.f32 %v3644_v7, 0.0  ;;  %v3550_v37 = vmul.f32 0.015625, %v3153_v52  ;;  %3802 = vperm.xlu1 %5988, %v3548_v29   ;;  %v3645_v3 = vsub.f32 %v3581_v57, %v3613_v47 }
 0x348   : > { %v6410_v49 = vpop.eup %6409  ;;  %v3156_v62 = vpop.xlane.xlu0 %3155 }
 0x349   : > { %v3708_v2 = vadd.f32 1e-05, %v3676_v40  ;;  %4070 = vperm.xlu0 %5987, %v6410_v49   ;;  %v6412_v58 = vpop.eup %6411  ;;  %v3614_v30 = vmul.f32 %v3550_v37, %v3550_v37  ;;  %v3551_v61 = vmul.f32 0.015625, %v3156_v62  ;;  %v3677_v38 = vmax.f32 %v3645_v3, 0.0 }
 0x34a   : > { %v3473_v8 = vpop.xlane.xlu1 %3472 }
 0x34b   : > { %6417 = vrsqrt.f32 %v3708_v2  ;;  %v3582_v16 = vmul.f32 0.015625, %v3473_v8  ;;  %4065 = vperm.xlu1 %5988, %v6412_v58   ;;  %v3615_v7 = vmul.f32 %v3551_v61, %v3551_v61  ;;  %v3709_v40 = vadd.f32 1e-05, %v3677_v38 }
 0x34c   : > { %v3476_v24 = vpop.xlane.xlu0 %3475  ;;  %6419 = vrsqrt.f32 %v3707_v39 }
 0x34d   : > { %v3646_v51 = vsub.f32 %v3582_v16, %v3614_v30  ;;  %v3583_v33 = vmul.f32 0.015625, %v3476_v24  ;;  %3812 = vperm.xlu0 %5987, %v3550_v37  }
 0x34e   : > { %v3159_v29 = vpop.xlane.xlu1 %3158 }
 0x34f   : > { %v3678_v52 = vmax.f32 %v3646_v51, 0.0  ;;  %v3552_v9 = vmul.f32 0.015625, %v3159_v29  ;;  %3807 = vperm.xlu1 %5988, %v3549_v41   ;;  %v3647_v2 = vsub.f32 %v3583_v33, %v3615_v7 }
 0x350   : > { %v6414_v57 = vpop.eup %6413  ;;  %v3162_v47 = vpop.xlane.xlu0 %3161 }
 0x351   : > { %v3710_v49 = vadd.f32 1e-05, %v3678_v52  ;;  %4080 = vperm.xlu0 %5987, %v6414_v57   ;;  %v6416_v62 = vpop.eup %6415  ;;  %v3616_v58 = vmul.f32 %v3552_v9, %v3552_v9  ;;  %v3553_v39 = vmul.f32 0.015625, %v3162_v47  ;;  %v3679_v37 = vmax.f32 %v3647_v2, 0.0 }
 0x352   : > { %v3479_v8 = vpop.xlane.xlu1 %3478 }
 0x353   : > { %6421 = vrsqrt.f32 %v3710_v49  ;;  %v3584_v3 = vmul.f32 0.015625, %v3479_v8  ;;  %4075 = vperm.xlu1 %5988, %v6416_v62   ;;  %v3617_v51 = vmul.f32 %v3553_v39, %v3553_v39  ;;  %v3711_v52 = vadd.f32 1e-05, %v3679_v37 }
 0x354   : > { %v3482_v30 = vpop.xlane.xlu0 %3481  ;;  %6423 = vrsqrt.f32 %v3709_v40 }
 0x355   : > { %v3648_v16 = vsub.f32 %v3584_v3, %v3616_v58  ;;  %v3585_v24 = vmul.f32 0.015625, %v3482_v30  ;;  %3822 = vperm.xlu0 %5987, %v3552_v9  }
 0x356   : > { %v3165_v41 = vpop.xlane.xlu1 %3164 }
 0x357   : > { %v3680_v29 = vmax.f32 %v3648_v16, 0.0  ;;  %v3554_v38 = vmul.f32 0.015625, %v3165_v41  ;;  %3817 = vperm.xlu1 %5988, %v3551_v61   ;;  %v3649_v49 = vsub.f32 %v3585_v24, %v3617_v51 }
 0x358   : > { %v6418_v33 = vpop.eup %6417  ;;  %v3168_v7 = vpop.xlane.xlu0 %3167 }
 0x359   : > { %v3712_v57 = vadd.f32 1e-05, %v3680_v29  ;;  %4090 = vperm.xlu0 %5987, %v6418_v33   ;;  %v6420_v47 = vpop.eup %6419  ;;  %v3618_v62 = vmul.f32 %v3554_v38, %v3554_v38  ;;  %v3555_v40 = vmul.f32 0.015625, %v3168_v7  ;;  %v3681_v9 = vmax.f32 %v3649_v49, 0.0 }
 0x35a   : > { %v3485_v8 = vpop.xlane.xlu1 %3484 }
 0x35b   : > { %6425 = vrsqrt.f32 %v3712_v57  ;;  %v3586_v2 = vmul.f32 0.015625, %v3485_v8  ;;  %4085 = vperm.xlu1 %5988, %v6420_v47   ;;  %v3619_v16 = vmul.f32 %v3555_v40, %v3555_v40  ;;  %v3713_v29 = vadd.f32 1e-05, %v3681_v9 }
 0x35c   : > { %v3488_v58 = vpop.xlane.xlu0 %3487  ;;  %6427 = vrsqrt.f32 %v3711_v52 }
 0x35d   : > { %v3650_v3 = vsub.f32 %v3586_v2, %v3618_v62  ;;  %v3587_v30 = vmul.f32 0.015625, %v3488_v58  ;;  %3832 = vperm.xlu0 %5987, %v3554_v38  }
 0x35e   : > { %v3171_v61 = vpop.xlane.xlu1 %3170 }
 0x35f   : > { %v3682_v41 = vmax.f32 %v3650_v3, 0.0  ;;  %v3556_v37 = vmul.f32 0.015625, %v3171_v61  ;;  %3827 = vperm.xlu1 %5988, %v3553_v39   ;;  %v3651_v57 = vsub.f32 %v3587_v30, %v3619_v16 }
 0x360   : > { %v6422_v24 = vpop.eup %6421  ;;  %v3174_v51 = vpop.xlane.xlu0 %3173 }
 0x361   : > { %v3714_v33 = vadd.f32 1e-05, %v3682_v41  ;;  %4100 = vperm.xlu0 %5987, %v6422_v24   ;;  %v6424_v7 = vpop.eup %6423  ;;  %v3620_v47 = vmul.f32 %v3556_v37, %v3556_v37  ;;  %v3557_v52 = vmul.f32 0.015625, %v3174_v51  ;;  %v3683_v38 = vmax.f32 %v3651_v57, 0.0 }
 0x362   : > { %v3491_v8 = vpop.xlane.xlu1 %3490 }
 0x363   : > { %6429 = vrsqrt.f32 %v3714_v33  ;;  %v3588_v49 = vmul.f32 0.015625, %v3491_v8  ;;  %4095 = vperm.xlu1 %5988, %v6424_v7   ;;  %v3621_v3 = vmul.f32 %v3557_v52, %v3557_v52  ;;  %v3715_v41 = vadd.f32 1e-05, %v3683_v38 }
 0x364   : > { %v3494_v62 = vpop.xlane.xlu0 %3493  ;;  %6431 = vrsqrt.f32 %v3713_v29 }
 0x365   : > { %v3652_v2 = vsub.f32 %v3588_v49, %v3620_v47  ;;  %v3589_v58 = vmul.f32 0.015625, %v3494_v62  ;;  %3842 = vperm.xlu0 %5987, %v3556_v37  }
 0x366   : > { %v3177_v39 = vpop.xlane.xlu1 %3176 }
 0x367   : > { %v3684_v61 = vmax.f32 %v3652_v2, 0.0  ;;  %v3558_v9 = vmul.f32 0.015625, %v3177_v39  ;;  %3837 = vperm.xlu1 %5988, %v3555_v40   ;;  %v3653_v33 = vsub.f32 %v3589_v58, %v3621_v3 }
 0x368   : > { %v6426_v30 = vpop.eup %6425  ;;  %v3180_v16 = vpop.xlane.xlu0 %3179 }
 0x369   : > { %v3716_v24 = vadd.f32 1e-05, %v3684_v61  ;;  %4110 = vperm.xlu0 %5987, %v6426_v30   ;;  %v6428_v51 = vpop.eup %6427  ;;  %v3622_v7 = vmul.f32 %v3558_v9, %v3558_v9  ;;  %v3559_v29 = vmul.f32 0.015625, %v3180_v16  ;;  %v3685_v37 = vmax.f32 %v3653_v33, 0.0 }
 0x36a   : > { %v3497_v8 = vpop.xlane.xlu1 %3496 }
 0x36b   : > { %6433 = vrsqrt.f32 %v3716_v24  ;;  %v3590_v57 = vmul.f32 0.015625, %v3497_v8  ;;  %4105 = vperm.xlu1 %5988, %v6428_v51   ;;  %v3623_v2 = vmul.f32 %v3559_v29, %v3559_v29  ;;  %v3717_v61 = vadd.f32 1e-05, %v3685_v37 }
 0x36c   : > { %v3500_v47 = vpop.xlane.xlu0 %3499  ;;  %6435 = vrsqrt.f32 %v3715_v41 }
 0x36d   : > { %v3654_v49 = vsub.f32 %v3590_v57, %v3622_v7  ;;  %v3591_v62 = vmul.f32 0.015625, %v3500_v47  ;;  %3852 = vperm.xlu0 %5987, %v3558_v9  }
 0x36e   : > { %v3183_v40 = vpop.xlane.xlu1 %3182 }
 0x36f   : > { %v3686_v39 = vmax.f32 %v3654_v49, 0.0  ;;  %v3560_v38 = vmul.f32 0.015625, %v3183_v40  ;;  %3847 = vperm.xlu1 %5988, %v3557_v52   ;;  %v3655_v24 = vsub.f32 %v3591_v62, %v3623_v2 }
 0x370   : > { %v6430_v58 = vpop.eup %6429  ;;  %v3186_v3 = vpop.xlane.xlu0 %3185 }
 0x371   : > { %v3718_v30 = vadd.f32 1e-05, %v3686_v39  ;;  %4120 = vperm.xlu0 %5987, %v6430_v58   ;;  %v6432_v16 = vpop.eup %6431  ;;  %v3624_v51 = vmul.f32 %v3560_v38, %v3560_v38  ;;  %v3561_v41 = vmul.f32 0.015625, %v3186_v3  ;;  %v3687_v9 = vmax.f32 %v3655_v24, 0.0 }
 0x372   : > { %v3503_v8 = vpop.xlane.xlu1 %3502 }
 0x373   : > { %6437 = vrsqrt.f32 %v3718_v30  ;;  %v3592_v33 = vmul.f32 0.015625, %v3503_v8  ;;  %4115 = vperm.xlu1 %5988, %v6432_v16   ;;  %v3625_v49 = vmul.f32 %v3561_v41, %v3561_v41  ;;  %v3719_v39 = vadd.f32 1e-05, %v3687_v9 }
 0x374   : > { %v3506_v7 = vpop.xlane.xlu0 %3505  ;;  %6439 = vrsqrt.f32 %v3717_v61 }
 0x375   : > { %v3656_v57 = vsub.f32 %v3592_v33, %v3624_v51  ;;  %v3593_v47 = vmul.f32 0.015625, %v3506_v7  ;;  %3862 = vperm.xlu0 %5987, %v3560_v38  }
 0x376   : > { %v3189_v52 = vpop.xlane.xlu1 %3188 }
 0x377   : > { %v3688_v40 = vmax.f32 %v3656_v57, 0.0  ;;  %v3562_v37 = vmul.f32 0.015625, %v3189_v52  ;;  %3857 = vperm.xlu1 %5988, %v3559_v29   ;;  %v3657_v30 = vsub.f32 %v3593_v47, %v3625_v49 }
 0x378   : > { %v6434_v62 = vpop.eup %6433  ;;  %v3192_v2 = vpop.xlane.xlu0 %3191 }
 0x379   : > { %v3720_v58 = vadd.f32 1e-05, %v3688_v40  ;;  %4130 = vperm.xlu0 %5987, %v6434_v62   ;;  %v6436_v3 = vpop.eup %6435  ;;  %v3626_v16 = vmul.f32 %v3562_v37, %v3562_v37  ;;  %v3563_v61 = vmul.f32 0.015625, %v3192_v2  ;;  %v3689_v38 = vmax.f32 %v3657_v30, 0.0 }
 0x37a   : > { %v3509_v8 = vpop.xlane.xlu1 %3508 }
 0x37b   : > { %6441 = vrsqrt.f32 %v3720_v58  ;;  %v3594_v24 = vmul.f32 0.015625, %v3509_v8  ;;  %4125 = vperm.xlu1 %5988, %v6436_v3   ;;  %v3627_v57 = vmul.f32 %v3563_v61, %v3563_v61  ;;  %v3721_v40 = vadd.f32 1e-05, %v3689_v38 }
 0x37c   : > { %v3512_v51 = vpop.xlane.xlu0 %3511  ;;  %6443 = vrsqrt.f32 %v3719_v39 }
 0x37d   : > { %v3658_v33 = vsub.f32 %v3594_v24, %v3626_v16  ;;  %v3595_v7 = vmul.f32 0.015625, %v3512_v51  ;;  %3872 = vperm.xlu0 %5987, %v3562_v37  }
 0x37e   : > { %v3195_v29 = vpop.xlane.xlu1 %3194 }
 0x37f   : > { %v3690_v52 = vmax.f32 %v3658_v33, 0.0  ;;  %v3564_v9 = vmul.f32 0.015625, %v3195_v29  ;;  %3867 = vperm.xlu1 %5988, %v3561_v41   ;;  %v3659_v58 = vsub.f32 %v3595_v7, %v3627_v57 }
 0x380   : > { %v6438_v47 = vpop.eup %6437  ;;  %v3198_v49 = vpop.xlane.xlu0 %3197 }
 0x381   : > { %v3722_v62 = vadd.f32 1e-05, %v3690_v52  ;;  %4140 = vperm.xlu0 %5987, %v6438_v47   ;;  %v6440_v2 = vpop.eup %6439  ;;  %v3628_v3 = vmul.f32 %v3564_v9, %v3564_v9  ;;  %v3565_v39 = vmul.f32 0.015625, %v3198_v49  ;;  %v3691_v37 = vmax.f32 %v3659_v58, 0.0 }
 0x382   : > { %v3515_v8 = vpop.xlane.xlu1 %3514 }
 0x383   : > { %6445 = vrsqrt.f32 %v3722_v62  ;;  %v3596_v30 = vmul.f32 0.015625, %v3515_v8  ;;  %4135 = vperm.xlu1 %5988, %v6440_v2   ;;  %v3629_v33 = vmul.f32 %v3565_v39, %v3565_v39  ;;  %v3723_v52 = vadd.f32 1e-05, %v3691_v37 }
 0x384   : > { %v3518_v16 = vpop.xlane.xlu0 %3517  ;;  %6447 = vrsqrt.f32 %v3721_v40 }
 0x385   : > { %v3660_v24 = vsub.f32 %v3596_v30, %v3628_v3  ;;  %v3597_v51 = vmul.f32 0.015625, %v3518_v16  ;;  %3882 = vperm.xlu0 %5987, %v3564_v9  }
 0x386   : > { %v3201_v41 = vpop.xlane.xlu1 %3200 }
 0x387   : > { %v3692_v29 = vmax.f32 %v3660_v24, 0.0  ;;  %v3566_v38 = vmul.f32 0.015625, %v3201_v41  ;;  %3877 = vperm.xlu1 %5988, %v3563_v61   ;;  %v3661_v62 = vsub.f32 %v3597_v51, %v3629_v33 }
 0x388   : > { %v6442_v7 = vpop.eup %6441  ;;  %v3204_v57 = vpop.xlane.xlu0 %3203 }
 0x389   : > { %v3724_v47 = vadd.f32 1e-05, %v3692_v29  ;;  %4150 = vperm.xlu0 %5987, %v6442_v7   ;;  %v6444_v49 = vpop.eup %6443  ;;  %v3567_v8 = vmul.f32 0.015625, %v3204_v57  ;;  %v3630_v40 = vmul.f32 %v3566_v38, %v3566_v38  ;;  %v3693_v9 = vmax.f32 %v3661_v62, 0.0 }
 0x38a   : > { %v3521_v2 = vpop.xlane.xlu1 %3520 }
 0x38b   : > { %6449 = vrsqrt.f32 %v3724_v47  ;;  %v3598_v58 = vmul.f32 0.015625, %v3521_v2  ;;  %4145 = vperm.xlu1 %5988, %v6444_v49   ;;  %v3631_v61 = vmul.f32 %v3567_v8, %v3567_v8  ;;  %v3725_v7 = vadd.f32 1e-05, %v3693_v9 }
 0x38c   : > { %v3524_v3 = vpop.xlane.xlu0 %3523  ;;  %6451 = vrsqrt.f32 %v3723_v52 }
 0x38d   : > { %v3662_v30 = vsub.f32 %v3598_v58, %v3630_v40  ;;  %v3599_v16 = vmul.f32 0.015625, %v3524_v3  ;;  %3892 = vperm.xlu0 %5987, %v3566_v38  }
 0x38e   : > { %v3207_v24 = vpop.xlane.xlu1 %3206 }
 0x38f   : > { %v3694_v41 = vmax.f32 %v3662_v30, 0.0  ;;  %v3568_v37 = vmul.f32 0.015625, %v3207_v24  ;;  %3887 = vperm.xlu1 %5988, %v3565_v39   ;;  %v3663_v33 = vsub.f32 %v3599_v16, %v3631_v61 }
 0x390   : > { %v6446_v51 = vpop.eup %6445  ;;  %v3210_v29 = vpop.xlane.xlu0 %3209 }
 0x391   : > { %v3726_v57 = vadd.f32 1e-05, %v3694_v41  ;;  %v3569_v47 = vmul.f32 0.015625, %v3210_v29  ;;  %4160 = vperm.xlu0 %5987, %v6446_v51   ;;  %v6448_v2 = vpop.eup %6447  ;;  %v3632_v52 = vmul.f32 %v3568_v37, %v3568_v37  ;;  %v3695_v40 = vmax.f32 %v3663_v33, 0.0 }
 0x392   : > { %v3527_v49 = vpop.xlane.xlu1 %3526 }
 0x393   : > { %6453 = vrsqrt.f32 %v3726_v57  ;;  %v3600_v62 = vmul.f32 0.015625, %v3527_v49  ;;  %4155 = vperm.xlu1 %5988, %v6448_v2   ;;  %v3633_v58 = vmul.f32 %v3569_v47, %v3569_v47  ;;  %v3727_v41 = vadd.f32 1e-05, %v3695_v40 }
 0x394   : > { %v3530_v38 = vpop.xlane.xlu0 %3529  ;;  %6455 = vrsqrt.f32 %v3725_v7 }
 0x395   : > { %v3664_v3 = vsub.f32 %v3600_v62, %v3632_v52  ;;  %v3601_v30 = vmul.f32 0.015625, %v3530_v38  ;;  %3902 = vperm.xlu0 %5987, %v3568_v37  }
 0x396   : > { %v3213_v39 = vpop.xlane.xlu1 %3212 }
 0x397   : > { %v3696_v16 = vmax.f32 %v3664_v3, 0.0  ;;  %v3665_v61 = vsub.f32 %v3601_v30, %v3633_v58  ;;  %v3570_v9 = vmul.f32 0.015625, %v3213_v39  ;;  %3897 = vperm.xlu1 %5988, %v3567_v8  }
 0x398   : > { %v6450_v24 = vpop.eup %6449  ;;  %v3216_v51 = vpop.xlane.xlu0 %3215 }
 0x399   : > { %v3728_v29 = vadd.f32 1e-05, %v3696_v16  ;;  %v3697_v57 = vmax.f32 %v3665_v61, 0.0  ;;  %v3571_v1 = vmul.f32 0.015625, %v3216_v51  ;;  %4170 = vperm.xlu0 %5987, %v6450_v24   ;;  %v6452_v2 = vpop.eup %6451  ;;  %v3634_v7 = vmul.f32 %v3570_v9, %v3570_v9 }
 0x39a   : > { %v3533_v33 = vpop.xlane.xlu1 %3532 }
 0x39b   : > { %6457 = vrsqrt.f32 %v3728_v29  ;;  %v3602_v49 = vmul.f32 0.015625, %v3533_v33  ;;  %4165 = vperm.xlu1 %5988, %v6452_v2   ;;  %v3729_v52 = vadd.f32 1e-05, %v3697_v57  ;;  %v3635_v62 = vmul.f32 %v3571_v1, %v3571_v1 }
 0x39c   : > { %6459 = vrsqrt.f32 %v3727_v41  ;;  %v3536_v37 = vpop.xlane.xlu0 %3535 }
 0x39d   : > { %v3666_v38 = vsub.f32 %v3602_v49, %v3634_v7  ;;  %v3603_v58 = vmul.f32 0.015625, %v3536_v37  ;;  %3912 = vperm.xlu0 %5987, %v3570_v9   ;;  %6461 = vrsqrt.f32 %v3729_v52 }
 0x39e   : > { %v3219_v8 = vpop.xlane.xlu1 %3218 }
 0x39f   : > { %v3698_v40 = vmax.f32 %v3666_v38, 0.0  ;;  %v3667_v3 = vsub.f32 %v3603_v58, %v3635_v62  ;;  %v3572_v30 = vmul.f32 0.015625, %v3219_v8  ;;  %3907 = vperm.xlu1 %5988, %v3569_v47  }
 0x3a0   : > { %v6454_v39 = vpop.eup %6453 }
 0x3a1   : > { %v3730_v16 = vadd.f32 1e-05, %v3698_v40  ;;  %v3699_v61 = vmax.f32 %v3667_v3, 0.0  ;;  %4180 = vperm.xlu0 %5987, %v6454_v39   ;;  %v6456_v24 = vpop.eup %6455  ;;  %v3636_v29 = vmul.f32 %v3572_v30, %v3572_v30 }
 0x3a2   : > { %v3539_v51 = vpop.xlane.xlu1 %3538 }
 0x3a3   : > { %6463 = vrsqrt.f32 %v3730_v16  ;;  %v3731_v41 = vadd.f32 1e-05, %v3699_v61  ;;  %v3604_v57 = vmul.f32 0.015625, %v3539_v51  ;;  %4175 = vperm.xlu1 %5988, %v6456_v24   ;;  %v9357_v16 = vld [vmem:[#allocation54_spill] sm:$0xff]  ;;  %v9358_v24 = vld [vmem:[#allocation75_spill] sm:$0xff] }
 0x3a4   : > { %v3768_v40 = vpop.permute.xlu0 %3767 }
 0x3a5   : > { %6465 = vrsqrt.f32 %v3731_v41  ;;  %v3668_v2 = vsub.f32 %v3604_v57, %v3636_v29  ;;  %3922 = vperm.xlu0 %5987, %v3572_v30   ;;  %v9356_v30 = vld [vmem:[#allocation27_spill] sm:$0xff]  ;;  %v3989_v61 = vsub.f32 %v9357_v16, %v3768_v40  ;;  %v4021_v51 = vsub.f32 %v9358_v24, %v3768_v40  ;;  %v9363_v24 = vld [vmem:[#allocation4_spill] sm:$0xff] }
 0x3a6   : > { %v8047_v9 = vpop.permute.xlu1 %3772  ;;  %v3957_v39 = vsub.f32 %v9356_v30, %v3768_v40  ;;  %v9359_v29 = vld [vmem:[#allocation3_spill] sm:$0xff]  ;;  %v9362_v30 = vld [vmem:[#allocation30_spill] sm:$0xff] }
 0x3a7   : > { %v3700_v33 = vmax.f32 %v3668_v2, 0.0  ;;  %3917 = vperm.xlu1 %5988, %v3571_v1   ;;  %v9355_v1 = vld [vmem:[#allocation2_spill] sm:$0xff]  ;;  %v3926_v57 = vsub.f32 %v9359_v29, %v8047_v9  ;;  %v9360_v2 = vld [vmem:[#allocation28_spill] sm:$0xff] }
 0x3a8   : > { %v6458_v47 = vpop.eup %6457  ;;  %v3925_v3 = vsub.f32 %v9355_v1, %v3768_v40 }
 0x3a9   : > { %v6460_v7 = vpop.eup %6459  ;;  %v3732_v49 = vadd.f32 1e-05, %v3700_v33  ;;  %4190 = vperm.xlu0 %5987, %v6458_v47   ;;  %v3958_v33 = vsub.f32 %v9360_v2, %v8047_v9  ;;  %v3990_v47 = vsub.f32 %v7404_v60, %v8047_v9  ;;  %v9364_v2 = vld [vmem:[#allocation31_spill] sm:$0xff] }
 0x3aa   : > { %v8049_v37 = vpop.permute.xlu1 %3777  ;;  %v6462_v52 = vpop.eup %6461 }
 0x3ab   : > { %6467 = vrsqrt.f32 %v3732_v49  ;;  %4185 = vperm.xlu1 %5988, %v6460_v7   ;;  %v4022_v7 = vsub.f32 %v7559_v21, %v8047_v9 }
 0x3ae   : > { %v8051_v62 = vpop.permute.xlu1 %3782 }
 0x3af   : > { %4195 = vperm.xlu1 %5988, %v6462_v52  }
 0x3b0   : > { %v6464_v38 = vpop.eup %6463 }
 0x3b1   : > { %4200 = vperm.xlu0 %5987, %v6464_v38   ;;  %v9361_v38 = vld [vmem:[#allocation29_spill] sm:$0xff] }
 0x3b2   : > { %v6466_v58 = vpop.eup %6465  ;;  %v8053_v8 = vpop.permute.xlu1 %3787 }
 0x3b3   : > { %4205 = vperm.xlu1 %5988, %v6466_v58  }
 0x3b6   : > { %v8059_v41 = vpop.permute.xlu1 %3792 }
 0x3b8   : > { %v6468_v49 = vpop.eup %6467 }
 0x3b9   : > { %4210 = vperm.xlu0 %5987, %v6468_v49  }
 0x3ba   : > { %v4056_v52 = vpop.permute.xlu1 %4055 }
 0x3bb   : > { %v4213_v21 = vmul.f32 %v4056_v52, %v3925_v3  ;;  %v4245_v9 = vmul.f32 %v4056_v52, %v3957_v39  ;;  %v4277_v60 = vmul.f32 %v4056_v52, %v3989_v61  ;;  %v4309_v0 = vmul.f32 %v4056_v52, %v4021_v51 }
 0x3bc   : > { %v4061_v16 = vpop.permute.xlu0 %4060 }
 0x3bd   : > { %vm4341_vm2 = vcmp.ge.f32.partialorder %v4213_v21, 0.0  ;;  %vm4373_vm3 = vcmp.ge.f32.partialorder %v4245_v9, 0.0  ;;  %vm4405_vm4 = vcmp.ge.f32.partialorder %v4277_v60, 0.0  ;;  %vm4437_vm5 = vcmp.ge.f32.partialorder %v4309_v0, 0.0 }
 0x3be   : > { %v4469_v3 = vmul.f32 0.2, %v4213_v21  ;;  %v4501_v39 = vmul.f32 0.2, %v4245_v9  ;;  %v4533_v61 = vmul.f32 0.2, %v4277_v60  ;;  %v4214_v51 = vmul.f32 %v4061_v16, %v3926_v57  ;;  %v8102_v52 = vpop.permute.xlu1 %3797 }
 0x3bf   : > { %v4565_v58 = vmul.f32 0.2, %v4309_v0  ;;  %v4246_v29 = vmul.f32 %v4061_v16, %v3958_v33  ;;  %v4278_v49 = vmul.f32 %v4061_v16, %v3990_v47  ;;  %v4310_v11 = vmul.f32 %v4061_v16, %v4022_v7 }
 0x3c0   : > { %v4597_v40 = vsel %vm4341_vm2, %v4213_v21, %v4469_v3  ;;  %v4629_v1 = vsel %vm4373_vm3, %v4245_v9, %v4501_v39  ;;  %v4661_v44 = vsel %vm4405_vm4, %v4277_v60, %v4533_v61  ;;  %vm4342_vm6 = vcmp.ge.f32.partialorder %v4214_v51, 0.0 }
 0x3c1   : > { %v4693_v19 = vsel %vm4437_vm5, %v4309_v0, %v4565_v58  ;;  %v5850_v57 = vpack.c.bf16 %v4597_v40, %v4597_v40  ;;  %v5882_v50 = vpack.c.bf16 %v4629_v1, %v4629_v1  ;;  %v5914_v53 = vpack.c.bf16 %v4661_v44, %v4661_v44  ;;  %v9365_v0 = vld [vmem:[#allocation5_spill] sm:$0xff]  ;;  %v9366_v44 = vld [vmem:[#allocation32_spill] sm:$0xff] }
 0x3c2   : > { %v5946_v33 = vpack.c.bf16 %v4693_v19, %v4693_v19  ;;  %vm4374_vm7 = vcmp.ge.f32.partialorder %v4246_v29, 0.0  ;;  %vm4406_vm8 = vcmp.ge.f32.partialorder %v4278_v49, 0.0  ;;  %vm4438_vm9 = vcmp.ge.f32.partialorder %v4310_v11, 0.0  ;;  %v8109_v47 = vpop.permute.xlu1 %3802 }
 0x3c3   : > { %5238 = vst.msk [vmem:[%s8107_s8] sm:$0xf] %vm5237_vm1, %v5850_v57  ;;  %5270 = vst.msk [vmem:[%s8107_s8 + $0x80] sm:$0xf] %vm5237_vm1, %v5882_v50  ;;  %v4470_v7 = vmul.f32 0.2, %v4214_v51  ;;  %v3932_v39 = vsub.f32 %v6940_v59, %v8109_v47  ;;  %v3964_v58 = vsub.f32 %v7196_v22, %v8109_v47 }
 0x3c4   : > { %5302 = vst.msk [vmem:[%s8107_s8 + $0x100] sm:$0xf] %vm5237_vm1, %v5914_v53  ;;  %v4502_v60 = vmul.f32 0.2, %v4246_v29  ;;  %v4534_v21 = vmul.f32 0.2, %v4278_v49  ;;  %v4071_v53 = vpop.permute.xlu0 %4070 }
 0x3c5   : > { %5334 = vst.msk [vmem:[%s8107_s8 + $0x180] sm:$0xf] %vm5237_vm1, %v5946_v33  ;;  %v4566_v19 = vmul.f32 0.2, %v4310_v11  ;;  %v4598_v9 = vsel %vm4342_vm6, %v4214_v51, %v4470_v7  ;;  %v3996_v51 = vsub.f32 %v7452_v35, %v8109_v47  ;;  %v9368_v7 = vsub.f32 %v9362_v30, %v8051_v62 }
 0x3c6   : > { %v4630_v16 = vsel %vm4374_vm7, %v4246_v29, %v4502_v60  ;;  %v4662_v3 = vsel %vm4406_vm8, %v4278_v49, %v4534_v21  ;;  %v5851_v57 = vpack.c.bf16 %v4598_v9, %v4598_v9  ;;  %v4066_v40 = vpop.permute.xlu1 %4065  ;;  %v9369_v21 = vsub.f32 %v7420_v36, %v8051_v62 }
 0x3c7   : > { %v4694_v61 = vsel %vm4438_vm9, %v4310_v11, %v4566_v19  ;;  %v5883_v33 = vpack.c.bf16 %v4630_v16, %v4630_v16  ;;  %v5915_v1 = vpack.c.bf16 %v4662_v3, %v4662_v3  ;;  %v9367_v11 = vsub.f32 %v6908_v31, %v8051_v62 }
 0x3c8   : > { %v5947_v50 = vpack.c.bf16 %v4694_v61, %v4694_v61  ;;  %5239 = vst.msk [vmem:[%s8107_s8 + $0x4] sm:$0xf] %vm5237_vm1, %v5851_v57  ;;  %v4248_v60 = vmul.f32 %v4071_v53, %v9368_v7  ;;  %v4280_v19 = vmul.f32 %v4071_v53, %v9369_v21  ;;  %v9370_v9 = vsub.f32 %v7590_v4, %v8051_v62  ;;  %v8157_v3 = vpop.permute.xlu0 %3812 }
 0x3c9   : > { %5271 = vst.msk [vmem:[%s8107_s8 + $0x84] sm:$0xf] %vm5237_vm1, %v5883_v33  ;;  %5303 = vst.msk [vmem:[%s8107_s8 + $0x104] sm:$0xf] %vm5237_vm1, %v5915_v1  ;;  %v4216_v49 = vmul.f32 %v4071_v53, %v9367_v11  ;;  %v9371_v31 = vsub.f32 %v6897_v23, %v8049_v37  ;;  %v9372_v30 = vsub.f32 %v9361_v38, %v8049_v37 }
 0x3ca   : > { %v4312_v16 = vmul.f32 %v4071_v53, %v9370_v9  ;;  %5335 = vst.msk [vmem:[%s8107_s8 + $0x184] sm:$0xf] %vm5237_vm1, %v5947_v50  ;;  %v9373_v36 = vsub.f32 %v7409_v48, %v8049_v37  ;;  %v9374_v4 = vsub.f32 %v7572_v12, %v8049_v37  ;;  %vm4376_vm11 = vcmp.ge.f32.partialorder %v4248_v60, 0.0  ;;  %v8173_v50 = vpop.permute.xlu1 %3807 }
 0x3cb   : > { %v4215_v1 = vmul.f32 %v4066_v40, %v9371_v31  ;;  %v4247_v61 = vmul.f32 %v4066_v40, %v9372_v30  ;;  %vm4344_vm10 = vcmp.ge.f32.partialorder %v4216_v49, 0.0  ;;  %vm4408_vm12 = vcmp.ge.f32.partialorder %v4280_v19, 0.0 }
 0x3cc   : > { %v4279_v57 = vmul.f32 %v4066_v40, %v9373_v36  ;;  %v4311_v62 = vmul.f32 %v4066_v40, %v9374_v4  ;;  %vm4440_vm13 = vcmp.ge.f32.partialorder %v4312_v16, 0.0  ;;  %v4472_v23 = vmul.f32 0.2, %v4216_v49  ;;  %v4081_v48 = vpop.permute.xlu0 %4080 }
 0x3cd   : > { %v4504_v53 = vmul.f32 0.2, %v4248_v60  ;;  %v4536_v33 = vmul.f32 0.2, %v4280_v19  ;;  %v4568_v11 = vmul.f32 0.2, %v4312_v16 }
 0x3ce   : > { %vm4343_vm14 = vcmp.ge.f32.partialorder %v4215_v1, 0.0  ;;  %vm4375_vm15 = vcmp.ge.f32.partialorder %v4247_v61, 0.0  ;;  %vm4407_vm0 = vcmp.ge.f32.partialorder %v4279_v57, 0.0  ;;  %v4600_v12 = vsel %vm4344_vm10, %v4216_v49, %v4472_v23 }
 0x3cf   : > { %v4632_v37 = vsel %vm4376_vm11, %v4248_v60, %v4504_v53  ;;  %v4664_v40 = vsel %vm4408_vm12, %v4280_v19, %v4536_v33  ;;  %vm4439_vm2 = vcmp.ge.f32.partialorder %v4311_v62, 0.0  ;;  %v4696_v7 = vsel %vm4440_vm13, %v4312_v16, %v4568_v11  ;;  %v4076_v16 = vpop.permute.xlu1 %4075  ;;  %v9376_v19 = vld [vmem:[#allocation33_spill] sm:$0xff] }
 0x3d0   : > { %v5853_v21 = vpack.c.bf16 %v4600_v12, %v4600_v12  ;;  %v5885_v9 = vpack.c.bf16 %v4632_v37, %v4632_v37  ;;  %v5917_v31 = vpack.c.bf16 %v4664_v40, %v4664_v40  ;;  %v5949_v30 = vpack.c.bf16 %v4696_v7, %v4696_v7  ;;  %v8189_v23 = vpop.permute.xlu0 %3822  ;;  %v9375_v12 = vld [vmem:[#allocation6_spill] sm:$0xff] }
 0x3d1   : > { %v4471_v36 = vmul.f32 0.2, %v4215_v1  ;;  %v4503_v4 = vmul.f32 0.2, %v4247_v61  ;;  %v4535_v38 = vmul.f32 0.2, %v4279_v57  ;;  %v3966_v49 = vsub.f32 %v7212_v56, %v8157_v3 }
 0x3d2   : > { %5241 = vst.msk [vmem:[%s8107_s8 + $0xc] sm:$0xf] %vm5237_vm1, %v5853_v21  ;;  %5273 = vst.msk [vmem:[%s8107_s8 + $0x8c] sm:$0xf] %vm5237_vm1, %v5885_v9  ;;  %v4567_v29 = vmul.f32 0.2, %v4311_v62  ;;  %v3933_v37 = vsub.f32 %v9375_v12, %v8173_v50  ;;  %v3965_v60 = vsub.f32 %v9376_v19, %v8173_v50 }
 0x3d3   : > { %5305 = vst.msk [vmem:[%s8107_s8 + $0x10c] sm:$0xf] %vm5237_vm1, %v5917_v31  ;;  %5337 = vst.msk [vmem:[%s8107_s8 + $0x18c] sm:$0xf] %vm5237_vm1, %v5949_v30  ;;  %v4599_v53 = vsel %vm4343_vm14, %v4215_v1, %v4471_v36  ;;  %v4631_v33 = vsel %vm4375_vm15, %v4247_v61, %v4503_v4  ;;  %v4663_v11 = vsel %vm4407_vm0, %v4279_v57, %v4535_v38  ;;  %v9401_v19 = vld [vmem:[#allocation10_spill] sm:$0xff] }
 0x3d4   : > { %v4695_v40 = vsel %vm4439_vm2, %v4311_v62, %v4567_v29  ;;  %v5852_v7 = vpack.c.bf16 %v4599_v53, %v4599_v53  ;;  %v5884_v21 = vpack.c.bf16 %v4631_v33, %v4631_v33  ;;  %v5916_v9 = vpack.c.bf16 %v4663_v11, %v4663_v11  ;;  %v4091_v33 = vpop.permute.xlu0 %4090 }
 0x3d5   : > { %v5948_v31 = vpack.c.bf16 %v4695_v40, %v4695_v40  ;;  %v3997_v1 = vsub.f32 %v7457_v55, %v8173_v50  ;;  %v4029_v61 = vsub.f32 %v7668_v17, %v8173_v50  ;;  %v9377_v29 = vsub.f32 %v6924_v45, %v8059_v41 }
 0x3d6   : > { %5240 = vst.msk [vmem:[%s8107_s8 + $0x8] sm:$0xf] %vm5237_vm1, %v5852_v7  ;;  %5272 = vst.msk [vmem:[%s8107_s8 + $0x88] sm:$0xf] %vm5237_vm1, %v5884_v21  ;;  %v9378_v62 = vsub.f32 %v7180_v54, %v8059_v41  ;;  %v9379_v30 = vsub.f32 %v7436_v14, %v8059_v41  ;;  %v9380_v4 = vsub.f32 %v7622_v43, %v8059_v41  ;;  %v8237_v41 = vpop.permute.xlu1 %3817 }
 0x3d7   : > { %5304 = vst.msk [vmem:[%s8107_s8 + $0x108] sm:$0xf] %vm5237_vm1, %v5916_v9  ;;  %v4218_v57 = vmul.f32 %v4081_v48, %v9377_v29  ;;  %5336 = vst.msk [vmem:[%s8107_s8 + $0x188] sm:$0xf] %vm5237_vm1, %v5948_v31  ;;  %v9381_v11 = vsub.f32 %v9363_v24, %v8053_v8  ;;  %v9382_v40 = vsub.f32 %v9364_v2, %v8053_v8 }
 0x3d8   : > { %v4250_v38 = vmul.f32 %v4081_v48, %v9378_v62  ;;  %v4282_v36 = vmul.f32 %v4081_v48, %v9379_v30  ;;  %v4314_v53 = vmul.f32 %v4081_v48, %v9380_v4  ;;  %v9383_v7 = vsub.f32 %v7425_v27, %v8053_v8  ;;  %v8241_v4 = vpop.permute.xlu0 %3832 }
 0x3d9   : > { %v4217_v45 = vmul.f32 %v4076_v16, %v9381_v11  ;;  %v4249_v54 = vmul.f32 %v4076_v16, %v9382_v40  ;;  %v9384_v21 = vsub.f32 %v7604_v18, %v8053_v8  ;;  %vm4346_vm3 = vcmp.ge.f32.partialorder %v4218_v57, 0.0 }
 0x3da   : > { %v4281_v14 = vmul.f32 %v4076_v16, %v9383_v7  ;;  %vm4378_vm4 = vcmp.ge.f32.partialorder %v4250_v38, 0.0  ;;  %vm4410_vm5 = vcmp.ge.f32.partialorder %v4282_v36, 0.0  ;;  %vm4442_vm6 = vcmp.ge.f32.partialorder %v4314_v53, 0.0 }
 0x3db   : > { %v4313_v43 = vmul.f32 %v4076_v16, %v9384_v21  ;;  %v4474_v24 = vmul.f32 0.2, %v4218_v57  ;;  %v4506_v48 = vmul.f32 0.2, %v4250_v38  ;;  %v4538_v9 = vmul.f32 0.2, %v4282_v36 }
 0x3dc   : > { %v3936_v2 = vsub.f32 %v6972_v26, %v8189_v23  ;;  %v4570_v31 = vmul.f32 0.2, %v4314_v53  ;;  %vm4345_vm7 = vcmp.ge.f32.partialorder %v4217_v45, 0.0  ;;  %vm4377_vm8 = vcmp.ge.f32.partialorder %v4249_v54, 0.0 }
 0x3dd   : > { %vm4409_vm9 = vcmp.ge.f32.partialorder %v4281_v14, 0.0  ;;  %v4602_v27 = vsel %vm4346_vm3, %v4218_v57, %v4474_v24  ;;  %v4634_v18 = vsel %vm4378_vm4, %v4250_v38, %v4506_v48  ;;  %v4666_v8 = vsel %vm4410_vm5, %v4282_v36, %v4538_v9  ;;  %v4086_v24 = vpop.permute.xlu1 %4085 }
 0x3de   : > { %vm4441_vm10 = vcmp.ge.f32.partialorder %v4313_v43, 0.0  ;;  %v4698_v16 = vsel %vm4442_vm6, %v4314_v53, %v4570_v31  ;;  %v5855_v29 = vpack.c.bf16 %v4602_v27, %v4602_v27  ;;  %v5887_v62 = vpack.c.bf16 %v4634_v18, %v4634_v18  ;;  %v9385_v27 = vld [vmem:[#allocation7_spill] sm:$0xff]  ;;  %v9386_v53 = vld [vmem:[#allocation34_spill] sm:$0xff] }
 0x3df   : > { %v5919_v30 = vpack.c.bf16 %v4666_v8, %v4666_v8  ;;  %v5951_v11 = vpack.c.bf16 %v4698_v16, %v4698_v16  ;;  %v4473_v40 = vmul.f32 0.2, %v4217_v45  ;;  %v4505_v7 = vmul.f32 0.2, %v4249_v54 }
 0x3e0   : > { %v4537_v21 = vmul.f32 0.2, %v4281_v14  ;;  %5243 = vst.msk [vmem:[%s8107_s8 + $0x14] sm:$0xf] %vm5237_vm1, %v5855_v29  ;;  %5275 = vst.msk [vmem:[%s8107_s8 + $0x94] sm:$0xf] %vm5237_vm1, %v5887_v62  ;;  %v3968_v38 = vsub.f32 %v7228_v32, %v8189_v23  ;;  %v3935_v18 = vsub.f32 %v9385_v27, %v8237_v41  ;;  %v3967_v36 = vsub.f32 %v9386_v53, %v8237_v41 }
 0x3e1   : > { %5307 = vst.msk [vmem:[%s8107_s8 + $0x114] sm:$0xf] %vm5237_vm1, %v5919_v30  ;;  %v4569_v57 = vmul.f32 0.2, %v4313_v43  ;;  %5339 = vst.msk [vmem:[%s8107_s8 + $0x194] sm:$0xf] %vm5237_vm1, %v5951_v11  ;;  %v4601_v48 = vsel %vm4345_vm7, %v4217_v45, %v4473_v40  ;;  %v4633_v9 = vsel %vm4377_vm8, %v4249_v54, %v4505_v7  ;;  %v3999_v45 = vsub.f32 %v7473_v34, %v8237_v41 }
 0x3e2   : > { %v4665_v31 = vsel %vm4409_vm9, %v4281_v14, %v4537_v21  ;;  %v5854_v16 = vpack.c.bf16 %v4601_v48, %v4601_v48  ;;  %v5886_v29 = vpack.c.bf16 %v4633_v9, %v4633_v9  ;;  %v4031_v54 = vsub.f32 %v7700_v6, %v8237_v41  ;;  %v4101_v21 = vpop.permute.xlu0 %4100  ;;  %v9411_v53 = vld [vmem:[#allocation12_spill] sm:$0xff] }
 0x3e3   : > { %v4697_v8 = vsel %vm4441_vm10, %v4313_v43, %v4569_v57  ;;  %v5918_v62 = vpack.c.bf16 %v4665_v31, %v4665_v31  ;;  %v4220_v14 = vmul.f32 %v4091_v33, %v3932_v39  ;;  %v4252_v43 = vmul.f32 %v4091_v33, %v3964_v58 }
 0x3e4   : > { %v5950_v30 = vpack.c.bf16 %v4697_v8, %v4697_v8  ;;  %5242 = vst.msk [vmem:[%s8107_s8 + $0x10] sm:$0xf] %vm5237_vm1, %v5854_v16  ;;  %5274 = vst.msk [vmem:[%s8107_s8 + $0x90] sm:$0xf] %vm5237_vm1, %v5886_v29  ;;  %v4284_v11 = vmul.f32 %v4091_v33, %v3996_v51  ;;  %v9387_v40 = vsub.f32 %v7654_v46, %v8109_v47  ;;  %v8301_v47 = vpop.permute.xlu1 %3827 }
 0x3e5   : > { %5306 = vst.msk [vmem:[%s8107_s8 + $0x110] sm:$0xf] %vm5237_vm1, %v5918_v62  ;;  %v9388_v57 = vsub.f32 %v9365_v0, %v8102_v52  ;;  %v9389_v39 = vsub.f32 %v9366_v44, %v8102_v52  ;;  %v9390_v58 = vsub.f32 %v7441_v63, %v8102_v52  ;;  %v9391_v51 = vsub.f32 %v7636_v5, %v8102_v52 }
 0x3e6   : > { %v4316_v7 = vmul.f32 %v4091_v33, %v9387_v40  ;;  %5338 = vst.msk [vmem:[%s8107_s8 + $0x190] sm:$0xf] %vm5237_vm1, %v5950_v30  ;;  %vm4348_vm11 = vcmp.ge.f32.partialorder %v4220_v14, 0.0  ;;  %vm4380_vm12 = vcmp.ge.f32.partialorder %v4252_v43, 0.0  ;;  %vm4412_vm13 = vcmp.ge.f32.partialorder %v4284_v11, 0.0  ;;  %v8305_v29 = vpop.permute.xlu0 %3842 }
 0x3e7   : > { %v4219_v59 = vmul.f32 %v4086_v24, %v9388_v57  ;;  %v4251_v22 = vmul.f32 %v4086_v24, %v9389_v39  ;;  %v4283_v35 = vmul.f32 %v4086_v24, %v9390_v58  ;;  %v4315_v46 = vmul.f32 %v4086_v24, %v9391_v51  ;;  %v9393_v39 = vld [vmem:[#allocation77_spill] sm:$0xff] }
 0x3e8   : > { %vm4444_vm14 = vcmp.ge.f32.partialorder %v4316_v7, 0.0  ;;  %v4476_v0 = vmul.f32 0.2, %v4220_v14  ;;  %v4508_v33 = vmul.f32 0.2, %v4252_v43  ;;  %v3938_v44 = vsub.f32 %v6988_v42, %v8241_v4  ;;  %v4096_v51 = vpop.permute.xlu1 %4095 }
 0x3e9   : > { %v4540_v48 = vmul.f32 0.2, %v4284_v11  ;;  %v4572_v9 = vmul.f32 0.2, %v4316_v7  ;;  %vm4347_vm15 = vcmp.ge.f32.partialorder %v4219_v59, 0.0  ;;  %vm4379_vm0 = vcmp.ge.f32.partialorder %v4251_v22, 0.0 }
 0x3ea   : > { %vm4411_vm2 = vcmp.ge.f32.partialorder %v4283_v35, 0.0  ;;  %v4604_v63 = vsel %vm4348_vm11, %v4220_v14, %v4476_v0  ;;  %v4636_v5 = vsel %vm4380_vm12, %v4252_v43, %v4508_v33  ;;  %vm4443_vm3 = vcmp.ge.f32.partialorder %v4315_v46, 0.0 }
 0x3eb   : > { %v4668_v52 = vsel %vm4412_vm13, %v4284_v11, %v4540_v48  ;;  %v4700_v24 = vsel %vm4444_vm14, %v4316_v7, %v4572_v9  ;;  %v5857_v31 = vpack.c.bf16 %v4604_v63, %v4604_v63  ;;  %v5889_v8 = vpack.c.bf16 %v4636_v5, %v4636_v5  ;;  %v9392_v11 = vld [vmem:[#allocation56_spill] sm:$0xff] }
 0x3ec   : > { %v5921_v16 = vpack.c.bf16 %v4668_v52, %v4668_v52  ;;  %v5953_v62 = vpack.c.bf16 %v4700_v24, %v4700_v24  ;;  %v4475_v30 = vmul.f32 0.2, %v4219_v59  ;;  %v4507_v40 = vmul.f32 0.2, %v4251_v22  ;;  %v9394_v9 = vld [vmem:[#allocation8_spill] sm:$0xff] }
 0x3ed   : > { %v4539_v57 = vmul.f32 0.2, %v4283_v35  ;;  %5245 = vst.msk [vmem:[%s8107_s8 + $0x1c] sm:$0xf] %vm5237_vm1, %v5857_v31  ;;  %5277 = vst.msk [vmem:[%s8107_s8 + $0x9c] sm:$0xf] %vm5237_vm1, %v5889_v8  ;;  %v3970_v43 = vsub.f32 %v7244_v13, %v8241_v4  ;;  %v4002_v7 = vsub.f32 %v9392_v11, %v8241_v4  ;;  %v3937_v63 = vsub.f32 %v9394_v9, %v8301_v47 }
 0x3ee   : > { %5309 = vst.msk [vmem:[%s8107_s8 + $0x11c] sm:$0xf] %vm5237_vm1, %v5921_v16  ;;  %v4571_v14 = vmul.f32 0.2, %v4315_v46  ;;  %5341 = vst.msk [vmem:[%s8107_s8 + $0x19c] sm:$0xf] %vm5237_vm1, %v5953_v62  ;;  %v4603_v0 = vsel %vm4347_vm15, %v4219_v59, %v4475_v30  ;;  %v4635_v33 = vsel %vm4379_vm0, %v4251_v22, %v4507_v40  ;;  %v4254_v40 = vmul.f32 %v4101_v21, %v3966_v49 }
 0x3ef   : > { %v4667_v48 = vsel %vm4411_vm2, %v4283_v35, %v4539_v57  ;;  %v5856_v52 = vpack.c.bf16 %v4603_v0, %v4603_v0  ;;  %v5888_v24 = vpack.c.bf16 %v4635_v33, %v4635_v33  ;;  %v9395_v16 = vld [vmem:[#allocation35_spill] sm:$0xff]  ;;  %v9397_v22 = vld [vmem:[#allocation76_spill] sm:$0xff]  ;;  %v9398_v35 = vsub.f32 %v6956_v10, %v8157_v3  ;;  %v9420_v9 = vld [vmem:[#allocation14_spill] sm:$0xff] }
 0x3f0   : > { %v4699_v5 = vsel %vm4443_vm3, %v4315_v46, %v4571_v14  ;;  %v5920_v31 = vpack.c.bf16 %v4667_v48, %v4667_v48  ;;  %v3969_v58 = vsub.f32 %v9395_v16, %v8301_v47  ;;  %v9396_v62 = vld [vmem:[#allocation55_spill] sm:$0xff]  ;;  %v4033_v30 = vsub.f32 %v9397_v22, %v8301_v47  ;;  %v4111_v48 = vpop.permute.xlu0 %4110 }
 0x3f1   : > { %v5952_v8 = vpack.c.bf16 %v4699_v5, %v4699_v5  ;;  %v4001_v59 = vsub.f32 %v9396_v62, %v8301_v47  ;;  %5244 = vst.msk [vmem:[%s8107_s8 + $0x18] sm:$0xf] %vm5237_vm1, %v5856_v52  ;;  %5276 = vst.msk [vmem:[%s8107_s8 + $0x98] sm:$0xf] %vm5237_vm1, %v5888_v24  ;;  %v4222_v46 = vmul.f32 %v4101_v21, %v9398_v35  ;;  %vm4382_vm5 = vcmp.ge.f32.partialorder %v4254_v40, 0.0 }
 0x3f2   : > { %5308 = vst.msk [vmem:[%s8107_s8 + $0x118] sm:$0xf] %vm5237_vm1, %v5920_v31  ;;  %v9399_v57 = vsub.f32 %v7468_v28, %v8157_v3  ;;  %v9400_v0 = vsub.f32 %v7686_v15, %v8157_v3  ;;  %v4221_v10 = vmul.f32 %v4096_v51, %v3933_v37  ;;  %v4253_v56 = vmul.f32 %v4096_v51, %v3965_v60  ;;  %v8365_v3 = vpop.permute.xlu1 %3837 }
 0x3f3   : > { %5340 = vst.msk [vmem:[%s8107_s8 + $0x198] sm:$0xf] %vm5237_vm1, %v5952_v8  ;;  %v4285_v28 = vmul.f32 %v4096_v51, %v3997_v1  ;;  %v4317_v15 = vmul.f32 %v4096_v51, %v4029_v61  ;;  %vm4350_vm4 = vcmp.ge.f32.partialorder %v4222_v46, 0.0  ;;  %v4478_v49 = vmul.f32 0.2, %v4222_v46 }
 0x3f4   : > { %v4286_v14 = vmul.f32 %v4101_v21, %v9399_v57  ;;  %v4318_v33 = vmul.f32 %v4101_v21, %v9400_v0  ;;  %v4510_v12 = vmul.f32 0.2, %v4254_v40  ;;  %v3940_v60 = vsub.f32 %v9401_v19, %v8305_v29  ;;  %v8369_v52 = vpop.permute.xlu0 %3852  ;;  %v9406_v0 = vld [vmem:[#allocation36_spill] sm:$0xff] }
 0x3f5   : > { %vm4349_vm8 = vcmp.ge.f32.partialorder %v4221_v10, 0.0  ;;  %vm4381_vm9 = vcmp.ge.f32.partialorder %v4253_v56, 0.0  ;;  %vm4413_vm10 = vcmp.ge.f32.partialorder %v4285_v28, 0.0  ;;  %v4606_v55 = vsel %vm4350_vm4, %v4222_v46, %v4478_v49 }
 0x3f6   : > { %vm4414_vm6 = vcmp.ge.f32.partialorder %v4286_v14, 0.0  ;;  %vm4446_vm7 = vcmp.ge.f32.partialorder %v4318_v33, 0.0  ;;  %v4542_v37 = vmul.f32 0.2, %v4286_v14  ;;  %v4574_v21 = vmul.f32 0.2, %v4318_v33 }
 0x3f7   : > { %v4638_v17 = vsel %vm4382_vm5, %v4254_v40, %v4510_v12  ;;  %vm4445_vm11 = vcmp.ge.f32.partialorder %v4317_v15, 0.0  ;;  %v5859_v61 = vpack.c.bf16 %v4606_v55, %v4606_v55  ;;  %v4477_v31 = vmul.f32 0.2, %v4221_v10  ;;  %v9402_v40 = vld [vmem:[#allocation37_spill] sm:$0xff]  ;;  %v4106_v12 = vpop.permute.xlu1 %4105 }
 0x3f8   : > { %v4670_v50 = vsel %vm4414_vm6, %v4286_v14, %v4542_v37  ;;  %v4702_v1 = vsel %vm4446_vm7, %v4318_v33, %v4574_v21  ;;  %v5891_v51 = vpack.c.bf16 %v4638_v17, %v4638_v17  ;;  %v4509_v8 = vmul.f32 0.2, %v4253_v56  ;;  %v9403_v14 = vld [vmem:[#allocation58_spill] sm:$0xff]  ;;  %v9404_v33 = vld [vmem:[#allocation79_spill] sm:$0xff]  ;;  %v9405_v17 = vld [vmem:[#allocation9_spill] sm:$0xff] }
 0x3f9   : > { %v5923_v5 = vpack.c.bf16 %v4670_v50, %v4670_v50  ;;  %v5955_v24 = vpack.c.bf16 %v4702_v1, %v4702_v1  ;;  %v4541_v35 = vmul.f32 0.2, %v4285_v28  ;;  %5247 = vst.msk [vmem:[%s8107_s8 + $0x24] sm:$0xf] %vm5237_vm1, %v5859_v61  ;;  %v4573_v46 = vmul.f32 0.2, %v4317_v15 }
 0x3fa   : > { %5279 = vst.msk [vmem:[%s8107_s8 + $0xa4] sm:$0xf] %vm5237_vm1, %v5891_v51  ;;  %v4605_v37 = vsel %vm4349_vm8, %v4221_v10, %v4477_v31  ;;  %v4637_v21 = vsel %vm4381_vm9, %v4253_v56, %v4509_v8  ;;  %v3939_v50 = vsub.f32 %v9405_v17, %v8365_v3  ;;  %v3971_v57 = vsub.f32 %v9406_v0, %v8365_v3  ;;  %v9408_v56 = vld [vmem:[#allocation78_spill] sm:$0xff]  ;;  %v9431_v0 = vld [vmem:[#allocation16_spill] sm:$0xff] }
 0x3fb   : > { %5311 = vst.msk [vmem:[%s8107_s8 + $0x124] sm:$0xf] %vm5237_vm1, %v5923_v5  ;;  %5343 = vst.msk [vmem:[%s8107_s8 + $0x1a4] sm:$0xf] %vm5237_vm1, %v5955_v24  ;;  %v4669_v55 = vsel %vm4413_vm10, %v4285_v28, %v4541_v35  ;;  %v4701_v1 = vsel %vm4445_vm11, %v4317_v15, %v4573_v46  ;;  %v5858_v61 = vpack.c.bf16 %v4605_v37, %v4605_v37  ;;  %v9407_v24 = vld [vmem:[#allocation57_spill] sm:$0xff] }
 0x3fc   : > { %v5890_v51 = vpack.c.bf16 %v4637_v21, %v4637_v21  ;;  %v5922_v5 = vpack.c.bf16 %v4669_v55, %v4669_v55  ;;  %v5954_v49 = vpack.c.bf16 %v4701_v1, %v4701_v1  ;;  %v4003_v10 = vsub.f32 %v9407_v24, %v8365_v3  ;;  %v4121_v21 = vpop.permute.xlu0 %4120 }
 0x3fd   : > { %v4035_v31 = vsub.f32 %v9408_v56, %v8365_v3  ;;  %5246 = vst.msk [vmem:[%s8107_s8 + $0x20] sm:$0xf] %vm5237_vm1, %v5858_v61  ;;  %v4224_v28 = vmul.f32 %v4111_v48, %v3936_v2  ;;  %v4256_v15 = vmul.f32 %v4111_v48, %v3968_v38  ;;  %v9409_v8 = vsub.f32 %v7484_v25, %v8189_v23 }
 0x3fe   : > { %5278 = vst.msk [vmem:[%s8107_s8 + $0xa0] sm:$0xf] %vm5237_vm1, %v5890_v51  ;;  %5310 = vst.msk [vmem:[%s8107_s8 + $0x120] sm:$0xf] %vm5237_vm1, %v5922_v5  ;;  %v9410_v46 = vsub.f32 %v7718_v20, %v8189_v23  ;;  %v4223_v26 = vmul.f32 %v4106_v12, %v3935_v18  ;;  %v4255_v32 = vmul.f32 %v4106_v12, %v3967_v36  ;;  %v8429_v23 = vpop.permute.xlu1 %3847 }
 0x3ff   : > { %v4288_v35 = vmul.f32 %v4111_v48, %v9409_v8  ;;  %5342 = vst.msk [vmem:[%s8107_s8 + $0x1a0] sm:$0xf] %vm5237_vm1, %v5954_v49  ;;  %v4287_v25 = vmul.f32 %v4106_v12, %v3999_v45  ;;  %v4319_v20 = vmul.f32 %v4106_v12, %v4031_v54  ;;  %vm4352_vm12 = vcmp.ge.f32.partialorder %v4224_v28, 0.0  ;;  %v9413_v8 = vld [vmem:[#allocation60_spill] sm:$0xff] }
 0x400   : > { %v4320_v37 = vmul.f32 %v4111_v48, %v9410_v46  ;;  %vm4384_vm13 = vcmp.ge.f32.partialorder %v4256_v15, 0.0  ;;  %v4480_v2 = vmul.f32 0.2, %v4224_v28  ;;  %v4512_v38 = vmul.f32 0.2, %v4256_v15  ;;  %v8433_v12 = vpop.permute.xlu0 %3862  ;;  %v9414_v46 = vld [vmem:[#allocation81_spill] sm:$0xff] }
 0x401   : > { %vm4416_vm14 = vcmp.ge.f32.partialorder %v4288_v35, 0.0  ;;  %v4544_v27 = vmul.f32 0.2, %v4288_v35  ;;  %v3942_v36 = vsub.f32 %v9411_v53, %v8369_v52  ;;  %vm4351_vm0 = vcmp.ge.f32.partialorder %v4223_v26, 0.0 }
 0x402   : > { %vm4448_vm15 = vcmp.ge.f32.partialorder %v4320_v37, 0.0  ;;  %v4576_v18 = vmul.f32 0.2, %v4320_v37  ;;  %vm4383_vm2 = vcmp.ge.f32.partialorder %v4255_v32, 0.0  ;;  %vm4415_vm3 = vcmp.ge.f32.partialorder %v4287_v25, 0.0 }
 0x403   : > { %v4608_v34 = vsel %vm4352_vm12, %v4224_v28, %v4480_v2  ;;  %v4640_v6 = vsel %vm4384_vm13, %v4256_v15, %v4512_v38  ;;  %v4672_v41 = vsel %vm4416_vm14, %v4288_v35, %v4544_v27  ;;  %vm4447_vm4 = vcmp.ge.f32.partialorder %v4319_v20, 0.0  ;;  %v9412_v28 = vld [vmem:[#allocation39_spill] sm:$0xff]  ;;  %v4116_v2 = vpop.permute.xlu1 %4115 }
 0x404   : > { %v4704_v45 = vsel %vm4448_vm15, %v4320_v37, %v4576_v18  ;;  %v5861_v54 = vpack.c.bf16 %v4608_v34, %v4608_v34  ;;  %v5893_v48 = vpack.c.bf16 %v4640_v6, %v4640_v6  ;;  %v5925_v49 = vpack.c.bf16 %v4672_v41, %v4672_v41  ;;  %v9415_v34 = vld [vmem:[#allocation11_spill] sm:$0xff]  ;;  %v9416_v37 = vld [vmem:[#allocation38_spill] sm:$0xff] }
 0x405   : > { %v5957_v55 = vpack.c.bf16 %v4704_v45, %v4704_v45  ;;  %v4479_v1 = vmul.f32 0.2, %v4223_v26  ;;  %v4511_v61 = vmul.f32 0.2, %v4255_v32  ;;  %v4543_v51 = vmul.f32 0.2, %v4287_v25 }
 0x406   : > { %5249 = vst.msk [vmem:[%s8107_s8 + $0x2c] sm:$0xf] %vm5237_vm1, %v5861_v54  ;;  %5281 = vst.msk [vmem:[%s8107_s8 + $0xac] sm:$0xf] %vm5237_vm1, %v5893_v48  ;;  %v4575_v5 = vmul.f32 0.2, %v4319_v20  ;;  %v3974_v15 = vsub.f32 %v9412_v28, %v8369_v52  ;;  %v3941_v6 = vsub.f32 %v9415_v34, %v8429_v23  ;;  %v3973_v35 = vsub.f32 %v9416_v37, %v8429_v23 }
 0x407   : > { %5313 = vst.msk [vmem:[%s8107_s8 + $0x12c] sm:$0xf] %vm5237_vm1, %v5925_v49  ;;  %5345 = vst.msk [vmem:[%s8107_s8 + $0x1ac] sm:$0xf] %vm5237_vm1, %v5957_v55  ;;  %v4607_v38 = vsel %vm4351_vm0, %v4223_v26, %v4479_v1  ;;  %v4639_v27 = vsel %vm4383_vm2, %v4255_v32, %v4511_v61  ;;  %v4671_v18 = vsel %vm4415_vm3, %v4287_v25, %v4543_v51  ;;  %v9417_v55 = vld [vmem:[#allocation59_spill] sm:$0xff]  ;;  %v9418_v32 = vld [vmem:[#allocation80_spill] sm:$0xff] }
 0x408   : > { %v4703_v41 = vsel %vm4447_vm4, %v4319_v20, %v4575_v5  ;;  %v5860_v45 = vpack.c.bf16 %v4607_v38, %v4607_v38  ;;  %v5892_v54 = vpack.c.bf16 %v4639_v27, %v4639_v27  ;;  %v5924_v48 = vpack.c.bf16 %v4671_v18, %v4671_v18  ;;  %v4131_v38 = vpop.permute.xlu0 %4130  ;;  %v9441_v37 = vld [vmem:[#allocation18_spill] sm:$0xff] }
 0x409   : > { %v5956_v49 = vpack.c.bf16 %v4703_v41, %v4703_v41  ;;  %v4005_v26 = vsub.f32 %v9417_v55, %v8429_v23  ;;  %v4037_v1 = vsub.f32 %v9418_v32, %v8429_v23  ;;  %v4226_v25 = vmul.f32 %v4121_v21, %v3938_v44 }
 0x40a   : > { %5248 = vst.msk [vmem:[%s8107_s8 + $0x28] sm:$0xf] %vm5237_vm1, %v5860_v45  ;;  %5280 = vst.msk [vmem:[%s8107_s8 + $0xa8] sm:$0xf] %vm5237_vm1, %v5892_v54  ;;  %v4258_v20 = vmul.f32 %v4121_v21, %v3970_v43  ;;  %v4290_v61 = vmul.f32 %v4121_v21, %v4002_v7  ;;  %v9419_v51 = vsub.f32 %v9393_v39, %v8241_v4  ;;  %v8493_v43 = vpop.permute.xlu1 %3857 }
 0x40b   : > { %5312 = vst.msk [vmem:[%s8107_s8 + $0x128] sm:$0xf] %vm5237_vm1, %v5924_v48  ;;  %5344 = vst.msk [vmem:[%s8107_s8 + $0x1a8] sm:$0xf] %vm5237_vm1, %v5956_v49  ;;  %v4225_v42 = vmul.f32 %v4116_v2, %v3937_v63  ;;  %v4257_v13 = vmul.f32 %v4116_v2, %v3969_v58  ;;  %v4289_v44 = vmul.f32 %v4116_v2, %v4001_v59  ;;  %vm4354_vm5 = vcmp.ge.f32.partialorder %v4226_v25, 0.0  ;;  %v9421_v48 = vld [vmem:[#allocation41_spill] sm:$0xff] }
 0x40c   : > { %v4322_v5 = vmul.f32 %v4121_v21, %v9419_v51  ;;  %v4321_v4 = vmul.f32 %v4116_v2, %v4033_v30  ;;  %vm4386_vm6 = vcmp.ge.f32.partialorder %v4258_v20, 0.0  ;;  %vm4418_vm7 = vcmp.ge.f32.partialorder %v4290_v61, 0.0  ;;  %v8497_v2 = vpop.permute.xlu0 %3872 }
 0x40d   : > { %v4482_v11 = vmul.f32 0.2, %v4226_v25  ;;  %v4514_v7 = vmul.f32 0.2, %v4258_v20  ;;  %v4546_v39 = vmul.f32 0.2, %v4290_v61  ;;  %v3944_v58 = vsub.f32 %v9420_v9, %v8433_v12 }
 0x40e   : > { %vm4450_vm8 = vcmp.ge.f32.partialorder %v4322_v5, 0.0  ;;  %v4578_v63 = vmul.f32 0.2, %v4322_v5  ;;  %vm4353_vm9 = vcmp.ge.f32.partialorder %v4225_v42, 0.0  ;;  %vm4385_vm10 = vcmp.ge.f32.partialorder %v4257_v13, 0.0 }
 0x40f   : > { %vm4417_vm11 = vcmp.ge.f32.partialorder %v4289_v44, 0.0  ;;  %v4610_v47 = vsel %vm4354_vm5, %v4226_v25, %v4482_v11  ;;  %v4642_v16 = vsel %vm4386_vm6, %v4258_v20, %v4514_v7  ;;  %v4674_v62 = vsel %vm4418_vm7, %v4290_v61, %v4546_v39  ;;  %v9422_v25 = vld [vmem:[#allocation62_spill] sm:$0xff]  ;;  %v9423_v61 = vld [vmem:[#allocation83_spill] sm:$0xff] }
 0x410   : > { %vm4449_vm12 = vcmp.ge.f32.partialorder %v4321_v4, 0.0  ;;  %v4706_v59 = vsel %vm4450_vm8, %v4322_v5, %v4578_v63  ;;  %v5863_v22 = vpack.c.bf16 %v4610_v47, %v4610_v47  ;;  %v5895_v30 = vpack.c.bf16 %v4642_v16, %v4642_v16  ;;  %v4126_v5 = vpop.permute.xlu1 %4125  ;;  %v9424_v63 = vld [vmem:[#allocation13_spill] sm:$0xff] }
 0x411   : > { %v5927_v21 = vpack.c.bf16 %v4674_v62, %v4674_v62  ;;  %v5959_v27 = vpack.c.bf16 %v4706_v59, %v4706_v59  ;;  %v4481_v18 = vmul.f32 0.2, %v4225_v42  ;;  %v4513_v41 = vmul.f32 0.2, %v4257_v13 }
 0x412   : > { %v4545_v45 = vmul.f32 0.2, %v4289_v44  ;;  %5251 = vst.msk [vmem:[%s8107_s8 + $0x34] sm:$0xf] %vm5237_vm1, %v5863_v22  ;;  %5283 = vst.msk [vmem:[%s8107_s8 + $0xb4] sm:$0xf] %vm5237_vm1, %v5895_v30  ;;  %v3976_v49 = vsub.f32 %v9421_v48, %v8433_v12  ;;  %v4008_v20 = vsub.f32 %v9422_v25, %v8433_v12  ;;  %v3943_v47 = vsub.f32 %v9424_v63, %v8493_v43 }
 0x413   : > { %5315 = vst.msk [vmem:[%s8107_s8 + $0x134] sm:$0xf] %vm5237_vm1, %v5927_v21  ;;  %v4577_v54 = vmul.f32 0.2, %v4321_v4  ;;  %5347 = vst.msk [vmem:[%s8107_s8 + $0x1b4] sm:$0xf] %vm5237_vm1, %v5959_v27  ;;  %v4609_v11 = vsel %vm4353_vm9, %v4225_v42, %v4481_v18  ;;  %v4641_v7 = vsel %vm4385_vm10, %v4257_v13, %v4513_v41  ;;  %v4227_v19 = vmul.f32 %v4126_v5, %v3939_v50 }
 0x414   : > { %v4673_v39 = vsel %vm4417_vm11, %v4289_v44, %v4545_v45  ;;  %v5862_v62 = vpack.c.bf16 %v4609_v11, %v4609_v11  ;;  %v5894_v59 = vpack.c.bf16 %v4641_v7, %v4641_v7  ;;  %v9425_v21 = vld [vmem:[#allocation40_spill] sm:$0xff]  ;;  %v9426_v27 = vld [vmem:[#allocation61_spill] sm:$0xff]  ;;  %v9427_v13 = vld [vmem:[#allocation82_spill] sm:$0xff]  ;;  %v4228_v44 = vmul.f32 %v4131_v38, %v3940_v60 }
 0x415   : > { %v4705_v16 = vsel %vm4449_vm12, %v4321_v4, %v4577_v54  ;;  %v5926_v22 = vpack.c.bf16 %v4673_v39, %v4673_v39  ;;  %v3975_v51 = vsub.f32 %v9425_v21, %v8493_v43  ;;  %v4007_v42 = vsub.f32 %v9426_v27, %v8493_v43  ;;  %v4141_v39 = vpop.permute.xlu0 %4140  ;;  %v9450_v63 = vld [vmem:[#allocation20_spill] sm:$0xff] }
 0x416   : > { %v5958_v30 = vpack.c.bf16 %v4705_v16, %v4705_v16  ;;  %v4039_v18 = vsub.f32 %v9427_v13, %v8493_v43  ;;  %5250 = vst.msk [vmem:[%s8107_s8 + $0x30] sm:$0xf] %vm5237_vm1, %v5862_v62  ;;  %5282 = vst.msk [vmem:[%s8107_s8 + $0xb0] sm:$0xf] %vm5237_vm1, %v5894_v59  ;;  %v9428_v4 = vsub.f32 %v9402_v40, %v8305_v29  ;;  %vm4356_vm13 = vcmp.ge.f32.partialorder %v4228_v44, 0.0 }
 0x417   : > { %5314 = vst.msk [vmem:[%s8107_s8 + $0x130] sm:$0xf] %vm5237_vm1, %v5926_v22  ;;  %v9429_v45 = vsub.f32 %v9403_v14, %v8305_v29  ;;  %v9430_v11 = vsub.f32 %v9404_v33, %v8305_v29  ;;  %v4259_v60 = vmul.f32 %v4126_v5, %v3971_v57  ;;  %v4291_v40 = vmul.f32 %v4126_v5, %v4003_v10  ;;  %v8557_v14 = vpop.permute.xlu1 %3867 }
 0x418   : > { %v4260_v41 = vmul.f32 %v4131_v38, %v9428_v4  ;;  %5346 = vst.msk [vmem:[%s8107_s8 + $0x1b0] sm:$0xf] %vm5237_vm1, %v5958_v30  ;;  %v4323_v29 = vmul.f32 %v4126_v5, %v4035_v31  ;;  %v4484_v33 = vmul.f32 0.2, %v4228_v44  ;;  %v3946_v57 = vsub.f32 %v9431_v0, %v8497_v2 }
 0x419   : > { %v4292_v54 = vmul.f32 %v4131_v38, %v9429_v45  ;;  %v4324_v7 = vmul.f32 %v4131_v38, %v9430_v11  ;;  %vm4355_vm2 = vcmp.ge.f32.partialorder %v4227_v19, 0.0  ;;  %vm4387_vm3 = vcmp.ge.f32.partialorder %v4259_v60, 0.0  ;;  %v8561_v62 = vpop.permute.xlu0 %3882  ;;  %v9436_v11 = vld [vmem:[#allocation42_spill] sm:$0xff] }
 0x41a   : > { %vm4388_vm14 = vcmp.ge.f32.partialorder %v4260_v41, 0.0  ;;  %v4516_v17 = vmul.f32 0.2, %v4260_v41  ;;  %vm4419_vm4 = vcmp.ge.f32.partialorder %v4291_v40, 0.0  ;;  %v4612_v3 = vsel %vm4356_vm13, %v4228_v44, %v4484_v33 }
 0x41b   : > { %vm4420_vm15 = vcmp.ge.f32.partialorder %v4292_v54, 0.0  ;;  %vm4452_vm0 = vcmp.ge.f32.partialorder %v4324_v7, 0.0  ;;  %v4548_v50 = vmul.f32 0.2, %v4292_v54  ;;  %v4580_v38 = vmul.f32 0.2, %v4324_v7 }
 0x41c   : > { %v4644_v24 = vsel %vm4388_vm14, %v4260_v41, %v4516_v17  ;;  %vm4451_vm5 = vcmp.ge.f32.partialorder %v4323_v29, 0.0  ;;  %v5865_v31 = vpack.c.bf16 %v4612_v3, %v4612_v3  ;;  %v4483_v22 = vmul.f32 0.2, %v4227_v19  ;;  %v9432_v41 = vld [vmem:[#allocation43_spill] sm:$0xff]  ;;  %v4136_v17 = vpop.permute.xlu1 %4135 }
 0x41d   : > { %v4676_v10 = vsel %vm4420_vm15, %v4292_v54, %v4548_v50  ;;  %v4708_v56 = vsel %vm4452_vm0, %v4324_v7, %v4580_v38  ;;  %v5897_v5 = vpack.c.bf16 %v4644_v24, %v4644_v24  ;;  %v4515_v30 = vmul.f32 0.2, %v4259_v60  ;;  %v9433_v54 = vld [vmem:[#allocation64_spill] sm:$0xff]  ;;  %v9434_v7 = vld [vmem:[#allocation85_spill] sm:$0xff]  ;;  %v9435_v24 = vld [vmem:[#allocation15_spill] sm:$0xff] }
 0x41e   : > { %v5929_v16 = vpack.c.bf16 %v4676_v10, %v4676_v10  ;;  %v5961_v59 = vpack.c.bf16 %v4708_v56, %v4708_v56  ;;  %v4547_v4 = vmul.f32 0.2, %v4291_v40  ;;  %5253 = vst.msk [vmem:[%s8107_s8 + $0x3c] sm:$0xf] %vm5237_vm1, %v5865_v31  ;;  %v4579_v44 = vmul.f32 0.2, %v4323_v29 }
 0x41f   : > { %5285 = vst.msk [vmem:[%s8107_s8 + $0xbc] sm:$0xf] %vm5237_vm1, %v5897_v5  ;;  %v4611_v50 = vsel %vm4355_vm2, %v4227_v19, %v4483_v22  ;;  %v4643_v38 = vsel %vm4387_vm3, %v4259_v60, %v4515_v30  ;;  %v3945_v10 = vsub.f32 %v9435_v24, %v8557_v14  ;;  %v3977_v45 = vsub.f32 %v9436_v11, %v8557_v14  ;;  %v9438_v60 = vld [vmem:[#allocation84_spill] sm:$0xff]  ;;  %v9461_v11 = vld [vmem:[#allocation22_spill] sm:$0xff] }
 0x420   : > { %5317 = vst.msk [vmem:[%s8107_s8 + $0x13c] sm:$0xf] %vm5237_vm1, %v5929_v16  ;;  %5349 = vst.msk [vmem:[%s8107_s8 + $0x1bc] sm:$0xf] %vm5237_vm1, %v5961_v59  ;;  %v4675_v3 = vsel %vm4419_vm4, %v4291_v40, %v4547_v4  ;;  %v4707_v56 = vsel %vm4451_vm5, %v4323_v29, %v4579_v44  ;;  %v5864_v31 = vpack.c.bf16 %v4611_v50, %v4611_v50  ;;  %v9437_v59 = vld [vmem:[#allocation63_spill] sm:$0xff] }
 0x421   : > { %v5896_v5 = vpack.c.bf16 %v4643_v38, %v4643_v38  ;;  %v5928_v16 = vpack.c.bf16 %v4675_v3, %v4675_v3  ;;  %v5960_v33 = vpack.c.bf16 %v4707_v56, %v4707_v56  ;;  %v4009_v19 = vsub.f32 %v9437_v59, %v8557_v14  ;;  %v4151_v38 = vpop.permute.xlu0 %4150 }
 0x422   : > { %v4041_v22 = vsub.f32 %v9438_v60, %v8557_v14  ;;  %5252 = vst.msk [vmem:[%s8107_s8 + $0x38] sm:$0xf] %vm5237_vm1, %v5864_v31  ;;  %v4230_v40 = vmul.f32 %v4141_v39, %v3942_v36  ;;  %v4262_v29 = vmul.f32 %v4141_v39, %v3974_v15  ;;  %v9439_v30 = vsub.f32 %v9413_v8, %v8369_v52  ;;  %v8621_v15 = vpop.permute.xlu1 %3877 }
 0x423   : > { %5284 = vst.msk [vmem:[%s8107_s8 + $0xb8] sm:$0xf] %vm5237_vm1, %v5896_v5  ;;  %5316 = vst.msk [vmem:[%s8107_s8 + $0x138] sm:$0xf] %vm5237_vm1, %v5928_v16  ;;  %v9440_v44 = vsub.f32 %v9414_v46, %v8369_v52  ;;  %v4229_v53 = vmul.f32 %v4136_v17, %v3941_v6  ;;  %v4261_v36 = vmul.f32 %v4136_v17, %v3973_v35 }
 0x424   : > { %v4294_v4 = vmul.f32 %v4141_v39, %v9439_v30  ;;  %5348 = vst.msk [vmem:[%s8107_s8 + $0x1b8] sm:$0xf] %vm5237_vm1, %v5960_v33  ;;  %v4293_v28 = vmul.f32 %v4136_v17, %v4005_v26  ;;  %v4325_v52 = vmul.f32 %v4136_v17, %v4037_v1  ;;  %vm4358_vm6 = vcmp.ge.f32.partialorder %v4230_v40, 0.0  ;;  %v9443_v30 = vld [vmem:[#allocation66_spill] sm:$0xff] }
 0x425   : > { %v4326_v50 = vmul.f32 %v4141_v39, %v9440_v44  ;;  %vm4390_vm7 = vcmp.ge.f32.partialorder %v4262_v29, 0.0  ;;  %v4486_v8 = vmul.f32 0.2, %v4230_v40  ;;  %v4518_v46 = vmul.f32 0.2, %v4262_v29  ;;  %v8625_v17 = vpop.permute.xlu0 %3892  ;;  %v9444_v44 = vld [vmem:[#allocation87_spill] sm:$0xff] }
 0x426   : > { %vm4422_vm8 = vcmp.ge.f32.partialorder %v4294_v4, 0.0  ;;  %v4550_v34 = vmul.f32 0.2, %v4294_v4  ;;  %v3948_v35 = vsub.f32 %v9441_v37, %v8561_v62  ;;  %vm4357_vm10 = vcmp.ge.f32.partialorder %v4229_v53, 0.0 }
 0x427   : > { %vm4454_vm9 = vcmp.ge.f32.partialorder %v4326_v50, 0.0  ;;  %v4582_v6 = vmul.f32 0.2, %v4326_v50  ;;  %vm4389_vm11 = vcmp.ge.f32.partialorder %v4261_v36, 0.0  ;;  %vm4421_vm12 = vcmp.ge.f32.partialorder %v4293_v28, 0.0 }
 0x428   : > { %v4614_v23 = vsel %vm4358_vm6, %v4230_v40, %v4486_v8  ;;  %v4646_v55 = vsel %vm4390_vm7, %v4262_v29, %v4518_v46  ;;  %v4678_v26 = vsel %vm4422_vm8, %v4294_v4, %v4550_v34  ;;  %vm4453_vm13 = vcmp.ge.f32.partialorder %v4325_v52, 0.0  ;;  %v9442_v40 = vld [vmem:[#allocation45_spill] sm:$0xff]  ;;  %v4146_v8 = vpop.permute.xlu1 %4145 }
 0x429   : > { %v4710_v32 = vsel %vm4454_vm9, %v4326_v50, %v4582_v6  ;;  %v5867_v1 = vpack.c.bf16 %v4614_v23, %v4614_v23  ;;  %v5899_v39 = vpack.c.bf16 %v4646_v55, %v4646_v55  ;;  %v5931_v33 = vpack.c.bf16 %v4678_v26, %v4678_v26  ;;  %v9445_v23 = vld [vmem:[#allocation17_spill] sm:$0xff]  ;;  %v9446_v50 = vld [vmem:[#allocation44_spill] sm:$0xff] }
 0x42a   : > { %v5963_v3 = vpack.c.bf16 %v4710_v32, %v4710_v32  ;;  %v4485_v56 = vmul.f32 0.2, %v4229_v53  ;;  %v4517_v31 = vmul.f32 0.2, %v4261_v36  ;;  %v4549_v5 = vmul.f32 0.2, %v4293_v28 }
 0x42b   : > { %5255 = vst.msk [vmem:[%s8107_s8 + $0x44] sm:$0xf] %vm5237_vm1, %v5867_v1  ;;  %5287 = vst.msk [vmem:[%s8107_s8 + $0xc4] sm:$0xf] %vm5237_vm1, %v5899_v39  ;;  %v4581_v16 = vmul.f32 0.2, %v4325_v52  ;;  %v3980_v29 = vsub.f32 %v9442_v40, %v8561_v62  ;;  %v3947_v55 = vsub.f32 %v9445_v23, %v8621_v15  ;;  %v3979_v4 = vsub.f32 %v9446_v50, %v8621_v15 }
 0x42c   : > { %5319 = vst.msk [vmem:[%s8107_s8 + $0x144] sm:$0xf] %vm5237_vm1, %v5931_v33  ;;  %5351 = vst.msk [vmem:[%s8107_s8 + $0x1c4] sm:$0xf] %vm5237_vm1, %v5963_v3  ;;  %v4613_v46 = vsel %vm4357_vm10, %v4229_v53, %v4485_v56  ;;  %v4645_v34 = vsel %vm4389_vm11, %v4261_v36, %v4517_v31  ;;  %v4677_v6 = vsel %vm4421_vm12, %v4293_v28, %v4549_v5  ;;  %v9447_v3 = vld [vmem:[#allocation65_spill] sm:$0xff]  ;;  %v9448_v36 = vld [vmem:[#allocation86_spill] sm:$0xff] }
 0x42d   : > { %v4709_v26 = vsel %vm4453_vm13, %v4325_v52, %v4581_v16  ;;  %v5866_v32 = vpack.c.bf16 %v4613_v46, %v4613_v46  ;;  %v5898_v1 = vpack.c.bf16 %v4645_v34, %v4645_v34  ;;  %v5930_v39 = vpack.c.bf16 %v4677_v6, %v4677_v6  ;;  %v4161_v46 = vpop.permute.xlu0 %4160  ;;  %v9471_v50 = vld [vmem:[#allocation24_spill] sm:$0xff] }
 0x42e   : > { %v5962_v33 = vpack.c.bf16 %v4709_v26, %v4709_v26  ;;  %v4011_v53 = vsub.f32 %v9447_v3, %v8621_v15  ;;  %v4043_v56 = vsub.f32 %v9448_v36, %v8621_v15  ;;  %v4232_v28 = vmul.f32 %v4151_v38, %v3944_v58 }
 0x42f   : > { %5254 = vst.msk [vmem:[%s8107_s8 + $0x40] sm:$0xf] %vm5237_vm1, %v5866_v32  ;;  %5286 = vst.msk [vmem:[%s8107_s8 + $0xc0] sm:$0xf] %vm5237_vm1, %v5898_v1  ;;  %v4264_v52 = vmul.f32 %v4151_v38, %v3976_v49  ;;  %v4296_v31 = vmul.f32 %v4151_v38, %v4008_v20  ;;  %v9449_v5 = vsub.f32 %v9423_v61, %v8433_v12  ;;  %v8685_v49 = vpop.permute.xlu1 %3887 }
 0x430   : > { %5318 = vst.msk [vmem:[%s8107_s8 + $0x140] sm:$0xf] %vm5237_vm1, %v5930_v39  ;;  %5350 = vst.msk [vmem:[%s8107_s8 + $0x1c0] sm:$0xf] %vm5237_vm1, %v5962_v33  ;;  %v4231_v9 = vmul.f32 %v4146_v8, %v3943_v47  ;;  %v4263_v58 = vmul.f32 %v4146_v8, %v3975_v51  ;;  %v4295_v48 = vmul.f32 %v4146_v8, %v4007_v42  ;;  %vm4360_vm14 = vcmp.ge.f32.partialorder %v4232_v28, 0.0  ;;  %v9451_v39 = vld [vmem:[#allocation47_spill] sm:$0xff] }
 0x431   : > { %v4328_v16 = vmul.f32 %v4151_v38, %v9449_v5  ;;  %v4327_v12 = vmul.f32 %v4146_v8, %v4039_v18  ;;  %vm4392_vm15 = vcmp.ge.f32.partialorder %v4264_v52, 0.0  ;;  %vm4424_vm0 = vcmp.ge.f32.partialorder %v4296_v31, 0.0  ;;  %v8689_v8 = vpop.permute.xlu0 %3902 }
 0x432   : > { %v4488_v25 = vmul.f32 0.2, %v4232_v28  ;;  %v4520_v20 = vmul.f32 0.2, %v4264_v52  ;;  %v4552_v61 = vmul.f32 0.2, %v4296_v31  ;;  %v3950_v51 = vsub.f32 %v9450_v63, %v8625_v17 }
 0x433   : > { %vm4456_vm2 = vcmp.ge.f32.partialorder %v4328_v16, 0.0  ;;  %v4584_v47 = vmul.f32 0.2, %v4328_v16  ;;  %vm4359_vm3 = vcmp.ge.f32.partialorder %v4231_v9, 0.0  ;;  %vm4391_vm4 = vcmp.ge.f32.partialorder %v4263_v58, 0.0 }
 0x434   : > { %vm4423_vm5 = vcmp.ge.f32.partialorder %v4295_v48, 0.0  ;;  %v4616_v43 = vsel %vm4360_vm14, %v4232_v28, %v4488_v25  ;;  %v4648_v21 = vsel %vm4392_vm15, %v4264_v52, %v4520_v20  ;;  %v4680_v27 = vsel %vm4424_vm0, %v4296_v31, %v4552_v61  ;;  %v9452_v28 = vld [vmem:[#allocation68_spill] sm:$0xff]  ;;  %v9453_v31 = vld [vmem:[#allocation89_spill] sm:$0xff] }
 0x435   : > { %vm4455_vm6 = vcmp.ge.f32.partialorder %v4327_v12, 0.0  ;;  %v4712_v42 = vsel %vm4456_vm2, %v4328_v16, %v4584_v47  ;;  %v5869_v13 = vpack.c.bf16 %v4616_v43, %v4616_v43  ;;  %v5901_v18 = vpack.c.bf16 %v4648_v21, %v4648_v21  ;;  %v4156_v16 = vpop.permute.xlu1 %4155  ;;  %v9454_v47 = vld [vmem:[#allocation19_spill] sm:$0xff] }
 0x436   : > { %v5933_v38 = vpack.c.bf16 %v4680_v27, %v4680_v27  ;;  %v5965_v34 = vpack.c.bf16 %v4712_v42, %v4712_v42  ;;  %v4487_v6 = vmul.f32 0.2, %v4231_v9  ;;  %v4519_v26 = vmul.f32 0.2, %v4263_v58 }
 0x437   : > { %v4551_v32 = vmul.f32 0.2, %v4295_v48  ;;  %5257 = vst.msk [vmem:[%s8107_s8 + $0x4c] sm:$0xf] %vm5237_vm1, %v5869_v13  ;;  %5289 = vst.msk [vmem:[%s8107_s8 + $0xcc] sm:$0xf] %vm5237_vm1, %v5901_v18  ;;  %v3982_v33 = vsub.f32 %v9451_v39, %v8625_v17  ;;  %v4014_v52 = vsub.f32 %v9452_v28, %v8625_v17  ;;  %v3949_v43 = vsub.f32 %v9454_v47, %v8685_v49 }
 0x438   : > { %5321 = vst.msk [vmem:[%s8107_s8 + $0x14c] sm:$0xf] %vm5237_vm1, %v5933_v38  ;;  %v4583_v1 = vmul.f32 0.2, %v4327_v12  ;;  %5353 = vst.msk [vmem:[%s8107_s8 + $0x1cc] sm:$0xf] %vm5237_vm1, %v5965_v34  ;;  %v4615_v25 = vsel %vm4359_vm3, %v4231_v9, %v4487_v6  ;;  %v4647_v20 = vsel %vm4391_vm4, %v4263_v58, %v4519_v26  ;;  %v4233_v0 = vmul.f32 %v4156_v16, %v3945_v10 }
 0x439   : > { %v4679_v61 = vsel %vm4423_vm5, %v4295_v48, %v4551_v32  ;;  %v5868_v27 = vpack.c.bf16 %v4615_v25, %v4615_v25  ;;  %v5900_v42 = vpack.c.bf16 %v4647_v20, %v4647_v20  ;;  %v9455_v38 = vld [vmem:[#allocation46_spill] sm:$0xff]  ;;  %v9456_v34 = vld [vmem:[#allocation67_spill] sm:$0xff]  ;;  %v9457_v58 = vld [vmem:[#allocation88_spill] sm:$0xff]  ;;  %v4234_v48 = vmul.f32 %v4161_v46, %v3946_v57 }
 0x43a   : > { %v4711_v21 = vsel %vm4455_vm6, %v4327_v12, %v4583_v1  ;;  %v5932_v13 = vpack.c.bf16 %v4679_v61, %v4679_v61  ;;  %v3981_v5 = vsub.f32 %v9455_v38, %v8685_v49  ;;  %v4013_v9 = vsub.f32 %v9456_v34, %v8685_v49  ;;  %v4171_v61 = vpop.permute.xlu0 %4170 }
 0x43b   : > { %v5964_v18 = vpack.c.bf16 %v4711_v21, %v4711_v21  ;;  %v4045_v6 = vsub.f32 %v9457_v58, %v8685_v49  ;;  %5256 = vst.msk [vmem:[%s8107_s8 + $0x48] sm:$0xf] %vm5237_vm1, %v5868_v27  ;;  %5288 = vst.msk [vmem:[%s8107_s8 + $0xc8] sm:$0xf] %vm5237_vm1, %v5900_v42  ;;  %v9458_v12 = vsub.f32 %v9432_v41, %v8497_v2  ;;  %vm4362_vm7 = vcmp.ge.f32.partialorder %v4234_v48, 0.0 }
 0x43c   : > { %5320 = vst.msk [vmem:[%s8107_s8 + $0x148] sm:$0xf] %vm5237_vm1, %v5932_v13  ;;  %v9459_v32 = vsub.f32 %v9433_v54, %v8497_v2  ;;  %v9460_v25 = vsub.f32 %v9434_v7, %v8497_v2  ;;  %v4265_v57 = vmul.f32 %v4156_v16, %v3977_v45  ;;  %v4297_v41 = vmul.f32 %v4156_v16, %v4009_v19  ;;  %v8749_v54 = vpop.permute.xlu1 %3897 }
 0x43d   : > { %v4266_v26 = vmul.f32 %v4161_v46, %v9458_v12  ;;  %5352 = vst.msk [vmem:[%s8107_s8 + $0x1c8] sm:$0xf] %vm5237_vm1, %v5964_v18  ;;  %v4329_v2 = vmul.f32 %v4156_v16, %v4041_v22  ;;  %v4490_v7 = vmul.f32 0.2, %v4234_v48  ;;  %v3952_v45 = vsub.f32 %v9461_v11, %v8689_v8 }
 0x43e   : > { %v4298_v1 = vmul.f32 %v4161_v46, %v9459_v32  ;;  %v4330_v20 = vmul.f32 %v4161_v46, %v9460_v25  ;;  %vm4361_vm11 = vcmp.ge.f32.partialorder %v4233_v0, 0.0  ;;  %vm4393_vm12 = vcmp.ge.f32.partialorder %v4265_v57, 0.0  ;;  %v8753_v27 = vpop.permute.xlu0 %3912  ;;  %v9466_v25 = vld [vmem:[#allocation48_spill] sm:$0xff] }
 0x43f   : > { %vm4394_vm8 = vcmp.ge.f32.partialorder %v4266_v26, 0.0  ;;  %v4522_v24 = vmul.f32 0.2, %v4266_v26  ;;  %vm4425_vm13 = vcmp.ge.f32.partialorder %v4297_v41, 0.0  ;;  %v4618_v14 = vsel %vm4362_vm7, %v4234_v48, %v4490_v7 }
 0x440   : > { %vm4426_vm9 = vcmp.ge.f32.partialorder %v4298_v1, 0.0  ;;  %vm4458_vm10 = vcmp.ge.f32.partialorder %v4330_v20, 0.0  ;;  %v4554_v10 = vmul.f32 0.2, %v4298_v1  ;;  %v4586_v46 = vmul.f32 0.2, %v4330_v20 }
 0x441   : > { %v4650_v59 = vsel %vm4394_vm8, %v4266_v26, %v4522_v24  ;;  %vm4457_vm14 = vcmp.ge.f32.partialorder %v4329_v2, 0.0  ;;  %v5871_v22 = vpack.c.bf16 %v4618_v14, %v4618_v14  ;;  %v4489_v13 = vmul.f32 0.2, %v4233_v0  ;;  %v9462_v26 = vld [vmem:[#allocation49_spill] sm:$0xff]  ;;  %v4166_v24 = vpop.permute.xlu1 %4165 }
 0x442   : > { %v4682_v19 = vsel %vm4426_vm9, %v4298_v1, %v4554_v10  ;;  %v4714_v60 = vsel %vm4458_vm10, %v4330_v20, %v4586_v46  ;;  %v5903_v16 = vpack.c.bf16 %v4650_v59, %v4650_v59  ;;  %v4521_v18 = vmul.f32 0.2, %v4265_v57  ;;  %v9463_v1 = vld [vmem:[#allocation70_spill] sm:$0xff]  ;;  %v9464_v20 = vld [vmem:[#allocation91_spill] sm:$0xff]  ;;  %v9465_v59 = vld [vmem:[#allocation21_spill] sm:$0xff] }
 0x443   : > { %v5935_v21 = vpack.c.bf16 %v4682_v19, %v4682_v19  ;;  %v5967_v42 = vpack.c.bf16 %v4714_v60, %v4714_v60  ;;  %v4553_v12 = vmul.f32 0.2, %v4297_v41  ;;  %5259 = vst.msk [vmem:[%s8107_s8 + $0x54] sm:$0xf] %vm5237_vm1, %v5871_v22  ;;  %v4585_v48 = vmul.f32 0.2, %v4329_v2 }
 0x444   : > { %5291 = vst.msk [vmem:[%s8107_s8 + $0xd4] sm:$0xf] %vm5237_vm1, %v5903_v16  ;;  %v4617_v10 = vsel %vm4361_vm11, %v4233_v0, %v4489_v13  ;;  %v4649_v46 = vsel %vm4393_vm12, %v4265_v57, %v4521_v18  ;;  %v3951_v19 = vsub.f32 %v9465_v59, %v8749_v54  ;;  %v3983_v32 = vsub.f32 %v9466_v25, %v8749_v54  ;;  %v9468_v57 = vld [vmem:[#allocation90_spill] sm:$0xff] }
 0x445   : > { %5323 = vst.msk [vmem:[%s8107_s8 + $0x154] sm:$0xf] %vm5237_vm1, %v5935_v21  ;;  %5355 = vst.msk [vmem:[%s8107_s8 + $0x1d4] sm:$0xf] %vm5237_vm1, %v5967_v42  ;;  %v4681_v14 = vsel %vm4425_vm13, %v4297_v41, %v4553_v12  ;;  %v4713_v60 = vsel %vm4457_vm14, %v4329_v2, %v4585_v48  ;;  %v5870_v22 = vpack.c.bf16 %v4617_v10, %v4617_v10  ;;  %v9467_v42 = vld [vmem:[#allocation69_spill] sm:$0xff] }
 0x446   : > { %v5902_v16 = vpack.c.bf16 %v4649_v46, %v4649_v46  ;;  %v5934_v21 = vpack.c.bf16 %v4681_v14, %v4681_v14  ;;  %v5966_v7 = vpack.c.bf16 %v4713_v60, %v4713_v60  ;;  %v4015_v0 = vsub.f32 %v9467_v42, %v8749_v54  ;;  %v4181_v46 = vpop.permute.xlu0 %4180 }
 0x447   : > { %v4047_v13 = vsub.f32 %v9468_v57, %v8749_v54  ;;  %5258 = vst.msk [vmem:[%s8107_s8 + $0x50] sm:$0xf] %vm5237_vm1, %v5870_v22  ;;  %v4236_v41 = vmul.f32 %v4171_v61, %v3948_v35  ;;  %v4268_v2 = vmul.f32 %v4171_v61, %v3980_v29  ;;  %v9469_v18 = vsub.f32 %v9443_v30, %v8561_v62  ;;  %v8813_v29 = vpop.permute.xlu1 %3907 }
 0x448   : > { %5290 = vst.msk [vmem:[%s8107_s8 + $0xd0] sm:$0xf] %vm5237_vm1, %v5902_v16  ;;  %5322 = vst.msk [vmem:[%s8107_s8 + $0x150] sm:$0xf] %vm5237_vm1, %v5934_v21  ;;  %v9470_v48 = vsub.f32 %v9444_v44, %v8561_v62  ;;  %v4235_v37 = vmul.f32 %v4166_v24, %v3947_v55  ;;  %v4267_v35 = vmul.f32 %v4166_v24, %v3979_v4 }
 0x449   : > { %v4300_v12 = vmul.f32 %v4171_v61, %v9469_v18  ;;  %5354 = vst.msk [vmem:[%s8107_s8 + $0x1d0] sm:$0xf] %vm5237_vm1, %v5966_v7  ;;  %v4299_v40 = vmul.f32 %v4166_v24, %v4011_v53  ;;  %v4331_v62 = vmul.f32 %v4166_v24, %v4043_v56  ;;  %vm4364_vm15 = vcmp.ge.f32.partialorder %v4236_v41, 0.0  ;;  %v9473_v18 = vld [vmem:[#allocation72_spill] sm:$0xff] }
 0x44a   : > { %v4332_v10 = vmul.f32 %v4171_v61, %v9470_v48  ;;  %vm4396_vm0 = vcmp.ge.f32.partialorder %v4268_v2, 0.0  ;;  %v4492_v30 = vmul.f32 0.2, %v4236_v41  ;;  %v4524_v44 = vmul.f32 0.2, %v4268_v2  ;;  %v8817_v24 = vpop.permute.xlu0 %3922  ;;  %v9474_v48 = vld [vmem:[#allocation93_spill] sm:$0xff] }
 0x44b   : > { %vm4428_vm2 = vcmp.ge.f32.partialorder %v4300_v12, 0.0  ;;  %v4556_v23 = vmul.f32 0.2, %v4300_v12  ;;  %v3954_v4 = vsub.f32 %v9471_v50, %v8753_v27  ;;  %vm4363_vm4 = vcmp.ge.f32.partialorder %v4235_v37, 0.0 }
 0x44c   : > { %vm4460_vm3 = vcmp.ge.f32.partialorder %v4332_v10, 0.0  ;;  %v4588_v55 = vmul.f32 0.2, %v4332_v10  ;;  %vm4395_vm5 = vcmp.ge.f32.partialorder %v4267_v35, 0.0  ;;  %vm4427_vm6 = vcmp.ge.f32.partialorder %v4299_v40, 0.0 }
 0x44d   : > { %v4620_v15 = vsel %vm4364_vm15, %v4236_v41, %v4492_v30  ;;  %v4652_v3 = vsel %vm4396_vm0, %v4268_v2, %v4524_v44  ;;  %v4684_v53 = vsel %vm4428_vm2, %v4300_v12, %v4556_v23  ;;  %vm4459_vm7 = vcmp.ge.f32.partialorder %v4331_v62, 0.0  ;;  %v9472_v41 = vld [vmem:[#allocation51_spill] sm:$0xff]  ;;  %v4176_v30 = vpop.permute.xlu1 %4175 }
 0x44e   : > { %v4716_v36 = vsel %vm4460_vm3, %v4332_v10, %v4588_v55  ;;  %v5873_v56 = vpack.c.bf16 %v4620_v15, %v4620_v15  ;;  %v5905_v61 = vpack.c.bf16 %v4652_v3, %v4652_v3  ;;  %v5937_v7 = vpack.c.bf16 %v4684_v53, %v4684_v53  ;;  %v9475_v15 = vld [vmem:[#allocation23_spill] sm:$0xff]  ;;  %v9476_v10 = vld [vmem:[#allocation50_spill] sm:$0xff] }
 0x44f   : > { %v5969_v14 = vpack.c.bf16 %v4716_v36, %v4716_v36  ;;  %v4491_v60 = vmul.f32 0.2, %v4235_v37  ;;  %v4523_v22 = vmul.f32 0.2, %v4267_v35  ;;  %v4555_v16 = vmul.f32 0.2, %v4299_v40 }
 0x450   : > { %5261 = vst.msk [vmem:[%s8107_s8 + $0x5c] sm:$0xf] %vm5237_vm1, %v5873_v56  ;;  %5293 = vst.msk [vmem:[%s8107_s8 + $0xdc] sm:$0xf] %vm5237_vm1, %v5905_v61  ;;  %v4587_v21 = vmul.f32 0.2, %v4331_v62  ;;  %v3986_v2 = vsub.f32 %v9472_v41, %v8753_v27  ;;  %v3953_v3 = vsub.f32 %v9475_v15, %v8813_v29  ;;  %v3985_v12 = vsub.f32 %v9476_v10, %v8813_v29 }
 0x451   : > { %5325 = vst.msk [vmem:[%s8107_s8 + $0x15c] sm:$0xf] %vm5237_vm1, %v5937_v7  ;;  %5357 = vst.msk [vmem:[%s8107_s8 + $0x1dc] sm:$0xf] %vm5237_vm1, %v5969_v14  ;;  %v4619_v44 = vsel %vm4363_vm4, %v4235_v37, %v4491_v60  ;;  %v4651_v23 = vsel %vm4395_vm5, %v4267_v35, %v4523_v22  ;;  %v4683_v55 = vsel %vm4427_vm6, %v4299_v40, %v4555_v16  ;;  %v9477_v14 = vld [vmem:[#allocation71_spill] sm:$0xff]  ;;  %v9478_v35 = vld [vmem:[#allocation92_spill] sm:$0xff] }
 0x452   : > { %v4715_v53 = vsel %vm4459_vm7, %v4331_v62, %v4587_v21  ;;  %v5872_v36 = vpack.c.bf16 %v4619_v44, %v4619_v44  ;;  %v5904_v56 = vpack.c.bf16 %v4651_v23, %v4651_v23  ;;  %v5936_v61 = vpack.c.bf16 %v4683_v55, %v4683_v55  ;;  %v4191_v44 = vpop.permute.xlu0 %4190 }
 0x453   : > { %v5968_v7 = vpack.c.bf16 %v4715_v53, %v4715_v53  ;;  %v4017_v37 = vsub.f32 %v9477_v14, %v8813_v29  ;;  %v4049_v60 = vsub.f32 %v9478_v35, %v8813_v29  ;;  %v4238_v40 = vmul.f32 %v4181_v46, %v3950_v51 }
 0x454   : > { %5260 = vst.msk [vmem:[%s8107_s8 + $0x58] sm:$0xf] %vm5237_vm1, %v5872_v36  ;;  %5292 = vst.msk [vmem:[%s8107_s8 + $0xd8] sm:$0xf] %vm5237_vm1, %v5904_v56  ;;  %v4270_v62 = vmul.f32 %v4181_v46, %v3982_v33  ;;  %v4302_v22 = vmul.f32 %v4181_v46, %v4014_v52  ;;  %v9479_v16 = vsub.f32 %v9453_v31, %v8625_v17  ;;  %v8877_v33 = vpop.permute.xlu1 %3917 }
 0x455   : > { %5324 = vst.msk [vmem:[%s8107_s8 + $0x158] sm:$0xf] %vm5237_vm1, %v5936_v61  ;;  %5356 = vst.msk [vmem:[%s8107_s8 + $0x1d8] sm:$0xf] %vm5237_vm1, %v5968_v7  ;;  %v4237_v63 = vmul.f32 %v4176_v30, %v3949_v43  ;;  %v4269_v51 = vmul.f32 %v4176_v30, %v3981_v5  ;;  %v4301_v39 = vmul.f32 %v4176_v30, %v4013_v9  ;;  %vm4366_vm8 = vcmp.ge.f32.partialorder %v4238_v40, 0.0 }
 0x456   : > { %v4334_v21 = vmul.f32 %v4181_v46, %v9479_v16  ;;  %v4333_v17 = vmul.f32 %v4176_v30, %v4045_v6  ;;  %vm4398_vm9 = vcmp.ge.f32.partialorder %v4270_v62, 0.0  ;;  %vm4430_vm10 = vcmp.ge.f32.partialorder %v4302_v22, 0.0  ;;  %v4201_v10 = vpop.permute.xlu0 %4200 }
 0x457   : > { %v4494_v28 = vmul.f32 0.2, %v4238_v40  ;;  %v4526_v52 = vmul.f32 0.2, %v4270_v62  ;;  %v4558_v31 = vmul.f32 0.2, %v4302_v22  ;;  %v4240_v5 = vmul.f32 %v4191_v44, %v3952_v45 }
 0x458   : > { %vm4462_vm11 = vcmp.ge.f32.partialorder %v4334_v21, 0.0  ;;  %v4590_v47 = vmul.f32 0.2, %v4334_v21  ;;  %vm4365_vm12 = vcmp.ge.f32.partialorder %v4237_v63, 0.0  ;;  %vm4397_vm13 = vcmp.ge.f32.partialorder %v4269_v51, 0.0 }
 0x459   : > { %vm4429_vm14 = vcmp.ge.f32.partialorder %v4301_v39, 0.0  ;;  %v4622_v49 = vsel %vm4366_vm8, %v4238_v40, %v4494_v28  ;;  %v4654_v43 = vsel %vm4398_vm9, %v4270_v62, %v4526_v52  ;;  %v4686_v38 = vsel %vm4430_vm10, %v4302_v22, %v4558_v31  ;;  %v4186_v40 = vpop.permute.xlu1 %4185 }
 0x45a   : > { %vm4461_vm15 = vcmp.ge.f32.partialorder %v4333_v17, 0.0  ;;  %v4718_v34 = vsel %vm4462_vm11, %v4334_v21, %v4590_v47  ;;  %v5875_v9 = vpack.c.bf16 %v4622_v49, %v4622_v49  ;;  %v5907_v58 = vpack.c.bf16 %v4654_v43, %v4654_v43 }
 0x45b   : > { %v5939_v6 = vpack.c.bf16 %v4686_v38, %v4686_v38  ;;  %v5971_v46 = vpack.c.bf16 %v4718_v34, %v4718_v34  ;;  %v4493_v30 = vmul.f32 0.2, %v4237_v63  ;;  %v4525_v11 = vmul.f32 0.2, %v4269_v51 }
 0x45c   : > { %v4557_v45 = vmul.f32 0.2, %v4301_v39  ;;  %5263 = vst.msk [vmem:[%s8107_s8 + $0x64] sm:$0xf] %vm5237_vm1, %v5875_v9  ;;  %5295 = vst.msk [vmem:[%s8107_s8 + $0xe4] sm:$0xf] %vm5237_vm1, %v5907_v58  ;;  %v9480_v55 = vsub.f32 %v9462_v26, %v8689_v8  ;;  %v9481_v36 = vsub.f32 %v9463_v1, %v8689_v8  ;;  %v9482_v61 = vsub.f32 %v9464_v20, %v8689_v8 }
 0x45d   : > { %5327 = vst.msk [vmem:[%s8107_s8 + $0x164] sm:$0xf] %vm5237_vm1, %v5939_v6  ;;  %v4589_v23 = vmul.f32 0.2, %v4333_v17  ;;  %5359 = vst.msk [vmem:[%s8107_s8 + $0x1e4] sm:$0xf] %vm5237_vm1, %v5971_v46  ;;  %v4621_v62 = vsel %vm4365_vm12, %v4237_v63, %v4493_v30  ;;  %v4653_v22 = vsel %vm4397_vm13, %v4269_v51, %v4525_v11  ;;  %v4271_v28 = vmul.f32 %v4186_v40, %v3983_v32  ;;  %v4196_v25 = vpop.permute.xlu1 %4195 }
 0x45e   : > { %v4272_v53 = vmul.f32 %v4191_v44, %v9480_v55  ;;  %v4304_v56 = vmul.f32 %v4191_v44, %v9481_v36  ;;  %v4336_v7 = vmul.f32 %v4191_v44, %v9482_v61  ;;  %v4685_v26 = vsel %vm4429_vm14, %v4301_v39, %v4557_v45 }
 0x45f   : > { %vm4368_vm0 = vcmp.ge.f32.partialorder %v4240_v5, 0.0  ;;  %v4717_v1 = vsel %vm4461_vm15, %v4333_v17, %v4589_v23  ;;  %v5874_v16 = vpack.c.bf16 %v4621_v62, %v4621_v62  ;;  %v5906_v21 = vpack.c.bf16 %v4653_v22, %v4653_v22 }
 0x460   : > { %v5938_v8 = vpack.c.bf16 %v4685_v26, %v4685_v26  ;;  %v5970_v20 = vpack.c.bf16 %v4717_v1, %v4717_v1  ;;  %vm4400_vm2 = vcmp.ge.f32.partialorder %v4272_v53, 0.0  ;;  %vm4432_vm3 = vcmp.ge.f32.partialorder %v4304_v56, 0.0  ;;  %v9485_v26 = vld [vmem:[#allocation25_spill] sm:$0xff] }
 0x461   : > { %vm4464_vm4 = vcmp.ge.f32.partialorder %v4336_v7, 0.0  ;;  %5262 = vst.msk [vmem:[%s8107_s8 + $0x60] sm:$0xf] %vm5237_vm1, %v5874_v16  ;;  %5294 = vst.msk [vmem:[%s8107_s8 + $0xe0] sm:$0xf] %vm5237_vm1, %v5906_v21  ;;  %v4239_v39 = vmul.f32 %v4186_v40, %v3951_v19  ;;  %v4303_v52 = vmul.f32 %v4186_v40, %v4015_v0  ;;  %v4335_v31 = vmul.f32 %v4186_v40, %v4047_v13  ;;  %v9486_v21 = vld [vmem:[#allocation52_spill] sm:$0xff] }
 0x462   : > { %5326 = vst.msk [vmem:[%s8107_s8 + $0x160] sm:$0xf] %vm5237_vm1, %v5938_v8  ;;  %v4496_v44 = vmul.f32 0.2, %v4240_v5  ;;  %v4528_v63 = vmul.f32 0.2, %v4272_v53  ;;  %v4273_v34 = vmul.f32 %v4196_v25, %v3985_v12  ;;  %v4305_v9 = vmul.f32 %v4196_v25, %v4017_v37 }
 0x463   : > { %v4560_v51 = vmul.f32 0.2, %v4304_v56  ;;  %5358 = vst.msk [vmem:[%s8107_s8 + $0x1e0] sm:$0xf] %vm5237_vm1, %v5970_v20  ;;  %v4592_v17 = vmul.f32 0.2, %v4336_v7  ;;  %v4337_v58 = vmul.f32 %v4196_v25, %v4049_v60  ;;  %v4242_v11 = vmul.f32 %v4201_v10, %v3954_v4 }
 0x464   : > { %v4624_v59 = vsel %vm4368_vm0, %v4240_v5, %v4496_v44  ;;  %v4656_v19 = vsel %vm4400_vm2, %v4272_v53, %v4528_v63  ;;  %vm4367_vm5 = vcmp.ge.f32.partialorder %v4239_v39, 0.0  ;;  %vm4399_vm6 = vcmp.ge.f32.partialorder %v4271_v28, 0.0  ;;  %v9487_v20 = vld [vmem:[#allocation73_spill] sm:$0xff]  ;;  %v9488_v63 = vld [vmem:[#allocation94_spill] sm:$0xff] }
 0x465   : > { %v4688_v47 = vsel %vm4432_vm3, %v4304_v56, %v4560_v51  ;;  %v4720_v32 = vsel %vm4464_vm4, %v4336_v7, %v4592_v17  ;;  %v5877_v42 = vpack.c.bf16 %v4624_v59, %v4624_v59  ;;  %v5909_v49 = vpack.c.bf16 %v4656_v19, %v4656_v19 }
 0x466   : > { %v5941_v0 = vpack.c.bf16 %v4688_v47, %v4688_v47  ;;  %v5973_v43 = vpack.c.bf16 %v4720_v32, %v4720_v32  ;;  %vm4431_vm7 = vcmp.ge.f32.partialorder %v4303_v52, 0.0  ;;  %vm4463_vm8 = vcmp.ge.f32.partialorder %v4335_v31, 0.0 }
 0x467   : > { %5265 = vst.msk [vmem:[%s8107_s8 + $0x6c] sm:$0xf] %vm5237_vm1, %v5877_v42  ;;  %5297 = vst.msk [vmem:[%s8107_s8 + $0xec] sm:$0xf] %vm5237_vm1, %v5909_v49  ;;  %v4495_v54 = vmul.f32 0.2, %v4239_v39  ;;  %v4241_v5 = vmul.f32 %v4196_v25, %v3953_v3  ;;  %v4274_v23 = vmul.f32 %v4201_v10, %v3986_v2  ;;  %v9483_v55 = vsub.f32 %v9473_v18, %v8753_v27 }
 0x468   : > { %5329 = vst.msk [vmem:[%s8107_s8 + $0x16c] sm:$0xf] %vm5237_vm1, %v5941_v0  ;;  %v4527_v57 = vmul.f32 0.2, %v4271_v28  ;;  %v4559_v13 = vmul.f32 0.2, %v4303_v52  ;;  %v9484_v36 = vsub.f32 %v9474_v48, %v8753_v27  ;;  %v4206_v27 = vpop.permute.xlu1 %4205  ;;  %v3955_v1 = vsub.f32 %v9485_v26, %v8877_v33 }
 0x469   : > { %5361 = vst.msk [vmem:[%s8107_s8 + $0x1ec] sm:$0xf] %vm5237_vm1, %v5973_v43  ;;  %v4591_v38 = vmul.f32 0.2, %v4335_v31  ;;  %v4623_v15 = vsel %vm4367_vm5, %v4239_v39, %v4495_v54  ;;  %vm4369_vm9 = vcmp.ge.f32.partialorder %v4241_v5, 0.0  ;;  %vm4401_vm10 = vcmp.ge.f32.partialorder %v4273_v34, 0.0 }
 0x46a   : > { %v4655_v3 = vsel %vm4399_vm6, %v4271_v28, %v4527_v57  ;;  %v4687_v6 = vsel %vm4431_vm7, %v4303_v52, %v4559_v13  ;;  %v5876_v14 = vpack.c.bf16 %v4623_v15, %v4623_v15  ;;  %vm4433_vm11 = vcmp.ge.f32.partialorder %v4305_v9, 0.0  ;;  %v9489_v0 = vld [vmem:[#allocation26_spill] sm:$0xff]  ;;  %v9490_v54 = vld [vmem:[#allocation53_spill] sm:$0xff]  ;;  %v4211_v13 = vpop.permute.xlu0 %4210 }
 0x46b   : > { %v4719_v12 = vsel %vm4463_vm8, %v4335_v31, %v4591_v38  ;;  %v5908_v46 = vpack.c.bf16 %v4655_v3, %v4655_v3  ;;  %v5940_v37 = vpack.c.bf16 %v4687_v6, %v4687_v6  ;;  %vm4465_vm12 = vcmp.ge.f32.partialorder %v4337_v58, 0.0 }
 0x46c   : > { %v5972_v30 = vpack.c.bf16 %v4719_v12, %v4719_v12  ;;  %5264 = vst.msk [vmem:[%s8107_s8 + $0x68] sm:$0xf] %vm5237_vm1, %v5876_v14  ;;  %v4497_v29 = vmul.f32 0.2, %v4241_v5  ;;  %v4529_v35 = vmul.f32 0.2, %v4273_v34  ;;  %v4306_v53 = vmul.f32 %v4201_v10, %v9483_v55 }
 0x46d   : > { %5296 = vst.msk [vmem:[%s8107_s8 + $0xe8] sm:$0xf] %vm5237_vm1, %v5908_v46  ;;  %5328 = vst.msk [vmem:[%s8107_s8 + $0x168] sm:$0xf] %vm5237_vm1, %v5940_v37  ;;  %v4561_v60 = vmul.f32 0.2, %v4305_v9  ;;  %v4338_v56 = vmul.f32 %v4201_v10, %v9484_v36  ;;  %v3987_v8 = vsub.f32 %v9486_v21, %v8877_v33  ;;  %v4019_v44 = vsub.f32 %v9487_v20, %v8877_v33 }
 0x46e   : > { %5360 = vst.msk [vmem:[%s8107_s8 + $0x1e8] sm:$0xf] %vm5237_vm1, %v5972_v30  ;;  %v4593_v45 = vmul.f32 0.2, %v4337_v58  ;;  %v4625_v50 = vsel %vm4369_vm9, %v4241_v5, %v4497_v29  ;;  %v4657_v4 = vsel %vm4401_vm10, %v4273_v34, %v4529_v35  ;;  %vm4370_vm13 = vcmp.ge.f32.partialorder %v4242_v11, 0.0  ;;  %v9492_v10 = vld [vmem:[#allocation95_spill] sm:$0xff] }
 0x46f   : > { %v4689_v61 = vsel %vm4433_vm11, %v4305_v9, %v4561_v60  ;;  %v5878_v2 = vpack.c.bf16 %v4625_v50, %v4625_v50  ;;  %v5910_v18 = vpack.c.bf16 %v4657_v4, %v4657_v4  ;;  %vm4402_vm14 = vcmp.ge.f32.partialorder %v4274_v23, 0.0 }
 0x470   : > { %v4721_v41 = vsel %vm4465_vm12, %v4337_v58, %v4593_v45  ;;  %v5942_v7 = vpack.c.bf16 %v4689_v61, %v4689_v61  ;;  %vm4434_vm15 = vcmp.ge.f32.partialorder %v4306_v53, 0.0  ;;  %vm4466_vm0 = vcmp.ge.f32.partialorder %v4338_v56, 0.0  ;;  %v9491_v58 = vld [vmem:[#allocation74_spill] sm:$0xff] }
 0x471   : > { %v5974_v40 = vpack.c.bf16 %v4721_v41, %v4721_v41  ;;  %5266 = vst.msk [vmem:[%s8107_s8 + $0x70] sm:$0xf] %vm5237_vm1, %v5878_v2  ;;  %5298 = vst.msk [vmem:[%s8107_s8 + $0xf0] sm:$0xf] %vm5237_vm1, %v5910_v18  ;;  %v4498_v48 = vmul.f32 0.2, %v4242_v11  ;;  %v4051_v51 = vsub.f32 %v9488_v63, %v8877_v33  ;;  %v4243_v52 = vmul.f32 %v4206_v27, %v3955_v1 }
 0x472   : > { %5330 = vst.msk [vmem:[%s8107_s8 + $0x170] sm:$0xf] %vm5237_vm1, %v5942_v7  ;;  %v4530_v62 = vmul.f32 0.2, %v4274_v23  ;;  %v4562_v22 = vmul.f32 0.2, %v4306_v53  ;;  %v4275_v32 = vmul.f32 %v4206_v27, %v3987_v8  ;;  %v4307_v42 = vmul.f32 %v4206_v27, %v4019_v44 }
 0x473   : > { %5362 = vst.msk [vmem:[%s8107_s8 + $0x1f0] sm:$0xf] %vm5237_vm1, %v5974_v40  ;;  %v4594_v16 = vmul.f32 0.2, %v4338_v56  ;;  %v4626_v39 = vsel %vm4370_vm13, %v4242_v11, %v4498_v48  ;;  %v4339_v49 = vmul.f32 %v4206_v27, %v4051_v51  ;;  %vm4371_vm2 = vcmp.ge.f32.partialorder %v4243_v52, 0.0 }
 0x474   : > { %v4658_v17 = vsel %vm4402_vm14, %v4274_v23, %v4530_v62  ;;  %v4690_v28 = vsel %vm4434_vm15, %v4306_v53, %v4562_v22  ;;  %v5879_v59 = vpack.c.bf16 %v4626_v39, %v4626_v39  ;;  %v4499_v33 = vmul.f32 0.2, %v4243_v52 }
 0x475   : > { %v4722_v31 = vsel %vm4466_vm0, %v4338_v56, %v4594_v16  ;;  %v5911_v19 = vpack.c.bf16 %v4658_v17, %v4658_v17  ;;  %v5943_v47 = vpack.c.bf16 %v4690_v28, %v4690_v28  ;;  %v3956_v43 = vsub.f32 %v9489_v0, %v8817_v24 }
 0x476   : > { %v5975_v25 = vpack.c.bf16 %v4722_v31, %v4722_v31  ;;  %5267 = vst.msk [vmem:[%s8107_s8 + $0x74] sm:$0xf] %vm5237_vm1, %v5879_v59  ;;  %v3988_v57 = vsub.f32 %v9490_v54, %v8817_v24  ;;  %vm4403_vm3 = vcmp.ge.f32.partialorder %v4275_v32, 0.0  ;;  %vm4435_vm4 = vcmp.ge.f32.partialorder %v4307_v42, 0.0 }
 0x477   : > { %5299 = vst.msk [vmem:[%s8107_s8 + $0xf4] sm:$0xf] %vm5237_vm1, %v5911_v19  ;;  %5331 = vst.msk [vmem:[%s8107_s8 + $0x174] sm:$0xf] %vm5237_vm1, %v5943_v47  ;;  %vm4467_vm5 = vcmp.ge.f32.partialorder %v4339_v49, 0.0  ;;  %v4627_v9 = vsel %vm4371_vm2, %v4243_v52, %v4499_v33  ;;  %v4020_v15 = vsub.f32 %v9491_v58, %v8817_v24  ;;  %v4052_v12 = vsub.f32 %v9492_v10, %v8817_v24 }
 0x478   : > { %5363 = vst.msk [vmem:[%s8107_s8 + $0x1f4] sm:$0xf] %vm5237_vm1, %v5975_v25  ;;  %v4531_v5 = vmul.f32 0.2, %v4275_v32  ;;  %v4563_v38 = vmul.f32 0.2, %v4307_v42  ;;  %v5880_v6 = vpack.c.bf16 %v4627_v9, %v4627_v9  ;;  %v4244_v14 = vmul.f32 %v4211_v13, %v3956_v43 }
 0x479   : > { %v4595_v34 = vmul.f32 0.2, %v4339_v49  ;;  %v4276_v29 = vmul.f32 %v4211_v13, %v3988_v57  ;;  %v4308_v11 = vmul.f32 %v4211_v13, %v4020_v15  ;;  %v4340_v45 = vmul.f32 %v4211_v13, %v4052_v12 }
 0x47a   : > { %v4659_v3 = vsel %vm4403_vm3, %v4275_v32, %v4531_v5  ;;  %v4691_v46 = vsel %vm4435_vm4, %v4307_v42, %v4563_v38  ;;  %5268 = vst.msk [vmem:[%s8107_s8 + $0x78] sm:$0xf] %vm5237_vm1, %v5880_v6  ;;  %vm4372_vm6 = vcmp.ge.f32.partialorder %v4244_v14, 0.0  ;;  %v4500_v23 = vmul.f32 0.2, %v4244_v14 }
 0x47b   : > { %v4723_v37 = vsel %vm4467_vm5, %v4339_v49, %v4595_v34  ;;  %v5912_v30 = vpack.c.bf16 %v4659_v3, %v4659_v3  ;;  %v5944_v35 = vpack.c.bf16 %v4691_v46, %v4691_v46  ;;  %vm4404_vm7 = vcmp.ge.f32.partialorder %v4276_v29, 0.0 }
 0x47c   : > { %v5976_v60 = vpack.c.bf16 %v4723_v37, %v4723_v37  ;;  %v4532_v24 = vmul.f32 0.2, %v4276_v29  ;;  %vm4436_vm8 = vcmp.ge.f32.partialorder %v4308_v11, 0.0  ;;  %vm4468_vm9 = vcmp.ge.f32.partialorder %v4340_v45, 0.0 }
 0x47d   : > { %5300 = vst.msk [vmem:[%s8107_s8 + $0xf8] sm:$0xf] %vm5237_vm1, %v5912_v30  ;;  %5332 = vst.msk [vmem:[%s8107_s8 + $0x178] sm:$0xf] %vm5237_vm1, %v5944_v35  ;;  %v4564_v55 = vmul.f32 0.2, %v4308_v11  ;;  %v4628_v36 = vsel %vm4372_vm6, %v4244_v14, %v4500_v23 }
 0x47e   : > { %5364 = vst.msk [vmem:[%s8107_s8 + $0x1f8] sm:$0xf] %vm5237_vm1, %v5976_v60  ;;  %v4596_v53 = vmul.f32 0.2, %v4340_v45  ;;  %v4660_v56 = vsel %vm4404_vm7, %v4276_v29, %v4532_v24  ;;  %v5881_v61 = vpack.c.bf16 %v4628_v36, %v4628_v36 }
 0x47f   : > { %v4692_v50 = vsel %vm4436_vm8, %v4308_v11, %v4564_v55  ;;  %v5913_v41 = vpack.c.bf16 %v4660_v56, %v4660_v56 }
 0x480   : > { %v4724_v4 = vsel %vm4468_vm9, %v4340_v45, %v4596_v53  ;;  %v5945_v2 = vpack.c.bf16 %v4692_v50, %v4692_v50  ;;  %5269 = vst.msk [vmem:[%s8107_s8 + $0x7c] sm:$0xf] %vm5237_vm1, %v5881_v61 }
 0x481   : > { %v5977_v18 = vpack.c.bf16 %v4724_v4, %v4724_v4  ;;  %5301 = vst.msk [vmem:[%s8107_s8 + $0xfc] sm:$0xf] %vm5237_vm1, %v5913_v41 }
 0x482   : > { %5333 = vst.msk [vmem:[%s8107_s8 + $0x17c] sm:$0xf] %vm5237_vm1, %v5945_v2 }
 0x483   : > { %5365 = vst.msk [vmem:[%s8107_s8 + $0x1fc] sm:$0xf] %vm5237_vm1, %v5977_v18 }
 0x484 PF: > { %s12_s9 = sadd.s32 1, %s6475_s9  }
 0x485   : > { %p9_p4 = scmp.ge.s32.totalorder %s12_s9, 4  }
 0x487   :  { %11 = sbr.rel (!%p9_p4) target bundleno = 1 (0x1), region = 58 }

// kernel: zencoder_forward.9
= control target key start
LH: loop header
LB: loop body
LE: loop exit
PB: predicated region body
PF: predicated region fallthrough
CT: control target
= control target key end

     0   :  { %s2555_s15 = smov 0   ;;  %s2801_s0 = inlined_call_operand.vmem [shape: bf16[2,2304,64], index: 0, kind: input, shape index: {}]   ;;  %s2802_s1 = inlined_call_operand.vmem [shape: bf16[8,2304], index: 1, kind: input, shape index: {}]   ;;  %s2803_s2 = inlined_call_operand.vmem [shape: f32[8,1], index: 2, kind: input, shape index: {}]   ;;  %s2804_s3 = inlined_call_operand.vmem [shape: f32[2,6,64], index: 3, kind: input, shape index: {}]   ;;  %s2805_s4 = inlined_call_operand.vmem [shape: f32[2,6,8], index: 4, kind: output, shape index: {}]  }
   0x1 LB: > { %s1961_s16 = sadd.s32 4294967295, %s2525_s15   ;;  %p1965_p0 = scmp.ge.s32.totalorder %s2525_s15, 1  ;;  %s2525_s15 = sphi %s2555_s15, %s14_s15  }
   0x2   : > { %p171_p1 = scmp.lt.s32.totalorder %s2525_s15, 3 }
   0x4   : > { %p172_p2 = pnand %p1965_p0, %p171_p1 }
   0x5   : > { %p200_p3 = scmp.lt.s32.totalorder (!%p172_p2), %s1961_s16, 1 }
   0x6   : > { %175 = sbr.rel (%p172_p2) target bundleno = 589 (0x24d), region = 36 }
   0xb   : > { %v2566_v0 = vld [vmem:[%s2802_s1] sm:$0xff]  ;;  %v2571_v1 = vld [vmem:[%s2802_s1 + $0x8] sm:$0xff]  ;;  %v2527_v4 = vmov 0   ;;  %s2807_s16 = smov (!%p200_p3, %s1961_s16), 1  ;;  %v2618_v33 = vld [vmem:[%s2802_s1 + $0x10] sm:$0xff]  ;;  %vm2529_vm0 = vmmov 0  }
   0xc   : > { %v1970_v2 = vcombine.high %v2566_v0, %v2566_v0  ;;  %v1972_v3 = vcombine.high %v2571_v1, %v2571_v1  ;;  %2352 = vset.pattern.permute.xlu0 %v2527_v4  ;;  %v511_v5 = vld [vmem:[%s2803_s2] sm:$0xff]  ;;  %s2340_s23 = smul.u32 1152, %s2807_s16  ;;  %v2625_v36 = vld [vmem:[%s2802_s1 + $0x18] sm:$0xff]  ;;  %v1969_v39 = vcombine.low %v2566_v0, %v2566_v0  ;;  %v1974_v41 = vcombine.high %v2618_v33, %v2618_v33  ;;  %s1967_s17 = sshll.u32 %s2807_s16, 3 }
   0xd   : > { %514 = vperm.xlu0 %2352, %v511_v5   ;;  %v1971_v43 = vcombine.low %v2571_v1, %v2571_v1  ;;  %v1976_v45 = vcombine.high %v2625_v36, %v2625_v36  ;;  %s208_s20 = scalar_lea.vmem %s2804_s3, %s1967_s17  ;;  %vm1883_vm1 = vcmask 521216   ;;  %vm1806_vm2 = vcmask 523264  }
   0xe   : > { %1476 = vmatprep.mubr.bf16.mxu0 %v1970_v2  ;;  %1516 = vmatprep.mubr.bf16.mxu1 %v1972_v3  ;;  %s2586_s26 = scalar_lea.vmem %s2801_s0, %s2340_s23  ;;  %s212_s23 = scalar_lea.vmem %s2805_s4, %s1967_s17  ;;  %vm1894_vm3 = vcmask 62464  }
   0xf   : > { %v2353_v6 = vld [vmem:[%s2586_s26 + $0x78] sm:$0xff]   ;;  %v2357_v10 = vld [vmem:[%s2586_s26 + $0x70] sm:$0xff]   ;;  %v2361_v14 = vld [vmem:[%s2586_s26 + $0x68] sm:$0xff]  }
  0x10   : > { %v2354_v7 = vld [vmem:[%s2586_s26 + $0x38] sm:$0xff]   ;;  %2135 = vmatprep.subr.bf16.mxu0 %v2353_v6  ;;  %v2358_v11 = vld [vmem:[%s2586_s26 + $0x30] sm:$0xff]   ;;  %v2362_v15 = vld [vmem:[%s2586_s26 + $0x28] sm:$0xff]  }
  0x11   : > { %v2355_v8 = vld [vmem:[%s2586_s26 + $0xf8] sm:$0xff]   ;;  %2136 = vmatpush3.bf16.msra.mxu0 %v2354_v7  ;;  %v2359_v12 = vld [vmem:[%s2586_s26 + $0xf0] sm:$0xff]   ;;  %v2363_v16 = vld [vmem:[%s2586_s26 + $0xe8] sm:$0xff]  }
  0x12   : > { %v2356_v9 = vld [vmem:[%s2586_s26 + $0xb8] sm:$0xff]   ;;  %2157 = vmatprep.subr.bf16.mxu1 %v2355_v8  ;;  %2137 = vmatprep.subr.bf16.mxu0 %v2357_v10  ;;  %v2360_v13 = vld [vmem:[%s2586_s26 + $0xb0] sm:$0xff]   ;;  %v2364_v17 = vld [vmem:[%s2586_s26 + $0xa8] sm:$0xff]  }
  0x13   : > { %2158 = vmatpush3.bf16.msra.mxu1 %v2356_v9  ;;  %v2365_v18 = vld [vmem:[%s2586_s26 + $0x60] sm:$0xff]   ;;  %v2369_v22 = vld [vmem:[%s2586_s26 + $0x58] sm:$0xff]   ;;  %v2373_v26 = vld [vmem:[%s2586_s26 + $0x50] sm:$0xff]  }
  0x14   : > { %2159 = vmatprep.subr.bf16.mxu1 %v2359_v12  ;;  %v2366_v19 = vld [vmem:[%s2586_s26 + $0x20] sm:$0xff]   ;;  %v2370_v23 = vld [vmem:[%s2586_s26 + $0x18] sm:$0xff]   ;;  %v2374_v27 = vld [vmem:[%s2586_s26 + $0x10] sm:$0xff]  }
  0x15   : > { %2138 = vmatpush3.bf16.msra.mxu0 %v2358_v11  ;;  %v2367_v20 = vld [vmem:[%s2586_s26 + $0xe0] sm:$0xff]   ;;  %v2371_v24 = vld [vmem:[%s2586_s26 + $0xd8] sm:$0xff]   ;;  %v2375_v28 = vld [vmem:[%s2586_s26 + $0xd0] sm:$0xff]  }
  0x16   : > { %2139 = vmatprep.subr.bf16.mxu0 %v2361_v14  ;;  %v2368_v21 = vld [vmem:[%s2586_s26 + $0xa0] sm:$0xff]   ;;  %v2372_v25 = vld [vmem:[%s2586_s26 + $0x98] sm:$0xff]   ;;  %v2376_v29 = vld [vmem:[%s2586_s26 + $0x90] sm:$0xff]  }
  0x17   : > { %2160 = vmatpush3.bf16.msra.mxu1 %v2360_v13  ;;  %v2377_v30 = vld [vmem:[%s2586_s26 + $0x48] sm:$0xff]   ;;  %v2381_v35 = vld [vmem:[%s2586_s26 + $0x40] sm:$0xff]   ;;  %v2387_v42 = vld [vmem:[%s2586_s26 + $0x178] sm:$0xff]   ;;  %v1973_v13 = vcombine.low %v2618_v33, %v2618_v33 }
  0x18   : > { %2161 = vmatprep.subr.bf16.mxu1 %v2363_v16  ;;  %v2378_v31 = vld [vmem:[%s2586_s26 + $0x8] sm:$0xff]   ;;  %v2382_v37 = vld [vmem:[%s2586_s26] sm:$0xff]   ;;  %v2390_v44 = vld [vmem:[%s2586_s26 + $0x138] sm:$0xff]  }
  0x19   : > { %2140 = vmatpush3.bf16.msra.mxu0 %v2362_v15  ;;  %v2379_v32 = vld [vmem:[%s2586_s26 + $0xc8] sm:$0xff]   ;;  %v2383_v38 = vld [vmem:[%s2586_s26 + $0xc0] sm:$0xff]   ;;  %v2391_v46 = vld [vmem:[%s2586_s26 + $0x1f8] sm:$0xff]  }
  0x1a   : > { %2141 = vmatprep.subr.bf16.mxu0 %v2365_v18  ;;  %v2380_v34 = vld [vmem:[%s2586_s26 + $0x88] sm:$0xff]   ;;  %v2386_v40 = vld [vmem:[%s2586_s26 + $0x80] sm:$0xff]   ;;  %v2392_v47 = vld [vmem:[%s2586_s26 + $0x1b8] sm:$0xff]  }
  0x1b   : > { %2162 = vmatpush3.bf16.msra.mxu1 %v2364_v17  ;;  %v2393_v48 = vld [vmem:[%s2586_s26 + $0x170] sm:$0xff]   ;;  %v2397_v52 = vld [vmem:[%s2586_s26 + $0x168] sm:$0xff]   ;;  %v2401_v56 = vld [vmem:[%s2586_s26 + $0x160] sm:$0xff]   ;;  %v1975_v17 = vcombine.low %v2625_v36, %v2625_v36 }
  0x1c   : > { %2163 = vmatprep.subr.bf16.mxu1 %v2367_v20  ;;  %v2394_v49 = vld [vmem:[%s2586_s26 + $0x130] sm:$0xff]   ;;  %v2398_v53 = vld [vmem:[%s2586_s26 + $0x128] sm:$0xff]   ;;  %v2402_v57 = vld [vmem:[%s2586_s26 + $0x120] sm:$0xff]  }
  0x1d   : > { %2142 = vmatpush3.bf16.msra.mxu0 %v2366_v19  ;;  %v2395_v50 = vld [vmem:[%s2586_s26 + $0x1f0] sm:$0xff]   ;;  %v2399_v54 = vld [vmem:[%s2586_s26 + $0x1e8] sm:$0xff]   ;;  %v2403_v58 = vld [vmem:[%s2586_s26 + $0x1e0] sm:$0xff]  }
  0x1e   : > { %2143 = vmatprep.subr.bf16.mxu0 %v2369_v22  ;;  %v2396_v51 = vld [vmem:[%s2586_s26 + $0x1b0] sm:$0xff]   ;;  %v2400_v55 = vld [vmem:[%s2586_s26 + $0x1a8] sm:$0xff]   ;;  %v2404_v59 = vld [vmem:[%s2586_s26 + $0x1a0] sm:$0xff]  }
  0x1f   : > { %2164 = vmatpush3.bf16.msra.mxu1 %v2368_v21  ;;  %v2405_v60 = vld [vmem:[%s2586_s26 + $0x158] sm:$0xff]   ;;  %v2409_v0 = vld [vmem:[%s2586_s26 + $0x150] sm:$0xff]   ;;  %v2413_v4 = vld [vmem:[%s2586_s26 + $0x148] sm:$0xff]  }
  0x20   : > { %2165 = vmatprep.subr.bf16.mxu1 %v2371_v24  ;;  %v2406_v61 = vld [vmem:[%s2586_s26 + $0x118] sm:$0xff]   ;;  %v2410_v1 = vld [vmem:[%s2586_s26 + $0x110] sm:$0xff]   ;;  %v2414_v5 = vld [vmem:[%s2586_s26 + $0x108] sm:$0xff]  }
  0x21   : > { %2144 = vmatpush3.bf16.msra.mxu0 %v2370_v23  ;;  %v2407_v62 = vld [vmem:[%s2586_s26 + $0x1d8] sm:$0xff]   ;;  %v2411_v2 = vld [vmem:[%s2586_s26 + $0x1d0] sm:$0xff]   ;;  %v2415_v6 = vld [vmem:[%s2586_s26 + $0x1c8] sm:$0xff]  }
  0x22   : > { %2145 = vmatprep.subr.bf16.mxu0 %v2373_v26  ;;  %v2408_v63 = vld [vmem:[%s2586_s26 + $0x198] sm:$0xff]   ;;  %v2412_v3 = vld [vmem:[%s2586_s26 + $0x190] sm:$0xff]   ;;  %v2668_v7 = vld [vmem:[%s2802_s1 + $0x20] sm:$0xff] }
  0x23   : > { %2166 = vmatpush3.bf16.msra.mxu1 %v2372_v25  ;;  %v2416_v8 = vld [vmem:[%s2586_s26 + $0x188] sm:$0xff]   ;;  %v2417_v9 = vld [vmem:[%s2586_s26 + $0x140] sm:$0xff]   ;;  %v1978_v15 = vcombine.high %v2668_v7, %v2668_v7  ;;  %v2423_v16 = vld [vmem:[%s2586_s26 + $0x278] sm:$0xff]  }
  0x24   : > { %2167 = vmatprep.subr.bf16.mxu1 %v2375_v28  ;;  %v2675_v10 = vld [vmem:[%s2802_s1 + $0x28] sm:$0xff]  ;;  %v2418_v11 = vld [vmem:[%s2586_s26 + $0x100] sm:$0xff]   ;;  %v2426_v18 = vld [vmem:[%s2586_s26 + $0x238] sm:$0xff]  }
  0x25   : > { %2146 = vmatpush3.bf16.msra.mxu0 %v2374_v27  ;;  %v2419_v12 = vld [vmem:[%s2586_s26 + $0x1c0] sm:$0xff]   ;;  %v1980_v19 = vcombine.high %v2675_v10, %v2675_v10  ;;  %v2427_v20 = vld [vmem:[%s2586_s26 + $0x2f8] sm:$0xff]   ;;  %v2429_v22 = vld [vmem:[%s2586_s26 + $0x270] sm:$0xff]  }
  0x26   : > { %2147 = vmatprep.subr.bf16.mxu0 %v2377_v30  ;;  %v2422_v14 = vld [vmem:[%s2586_s26 + $0x180] sm:$0xff]   ;;  %v2428_v21 = vld [vmem:[%s2586_s26 + $0x2b8] sm:$0xff]   ;;  %v2430_v23 = vld [vmem:[%s2586_s26 + $0x230] sm:$0xff]  }
  0x27   : > { %2168 = vmatpush3.bf16.msra.mxu1 %v2376_v29  ;;  %v2431_v24 = vld [vmem:[%s2586_s26 + $0x2f0] sm:$0xff]   ;;  %v2433_v26 = vld [vmem:[%s2586_s26 + $0x268] sm:$0xff]   ;;  %v2437_v30 = vld [vmem:[%s2586_s26 + $0x260] sm:$0xff]  }
  0x28   : > { %2169 = vmatprep.subr.bf16.mxu1 %v2379_v32  ;;  %v2432_v25 = vld [vmem:[%s2586_s26 + $0x2b0] sm:$0xff]   ;;  %v2434_v27 = vld [vmem:[%s2586_s26 + $0x228] sm:$0xff]   ;;  %v2439_v32 = vld [vmem:[%s2586_s26 + $0x2e0] sm:$0xff]  }
  0x29   : > { %2148 = vmatpush3.bf16.msra.mxu0 %v2378_v31  ;;  %v2435_v28 = vld [vmem:[%s2586_s26 + $0x2e8] sm:$0xff]   ;;  %v2438_v31 = vld [vmem:[%s2586_s26 + $0x220] sm:$0xff]   ;;  %v2443_v36 = vld [vmem:[%s2586_s26 + $0x2d8] sm:$0xff]  }
  0x2a   : > { %2149 = vmatprep.subr.bf16.mxu0 %v2381_v35  ;;  %v2436_v29 = vld [vmem:[%s2586_s26 + $0x2a8] sm:$0xff]   ;;  %v2440_v33 = vld [vmem:[%s2586_s26 + $0x2a0] sm:$0xff]   ;;  %v2442_v35 = vld [vmem:[%s2586_s26 + $0x218] sm:$0xff]  }
  0x2b   : > { %2170 = vmatpush3.bf16.msra.mxu1 %v2380_v34  ;;  %v2441_v34 = vld [vmem:[%s2586_s26 + $0x258] sm:$0xff]  }
  0x2c   : > { %2171 = vmatprep.subr.bf16.mxu1 %v2383_v38  ;;  %v2445_v38 = vld [vmem:[%s2586_s26 + $0x250] sm:$0xff]  }
  0x2d   : > { %2150 = vmatpush3.bf16.msra.mxu0 %v2382_v37  ;;  %v2444_v37 = vld [vmem:[%s2586_s26 + $0x298] sm:$0xff]  }
  0x2e   : > { %2179 = vmatprep.subr.bf16.mxu0 %v2387_v42  ;;  %v2449_v42 = vld [vmem:[%s2586_s26 + $0x248] sm:$0xff]  }
  0x2f   : > { %2172 = vmatpush3.bf16.msra.mxu1 %v2386_v40  ;;  %v2447_v40 = vld [vmem:[%s2586_s26 + $0x2d0] sm:$0xff]  }
  0x30   : > { %1477 = vmatmul.mubr.bf16.vlgmr.msra.gmra.mxu0 %v1969_v39  ;;  %2201 = vmatprep.subr.bf16.mxu1 %v2391_v46  ;;  %v2446_v39 = vld [vmem:[%s2586_s26 + $0x210] sm:$0xff]   ;;  %v2452_v46 = vld [vmem:[%s2586_s26 + $0x288] sm:$0xff]  }
  0x31   : > { %2180 = vmatpush3.bf16.msra.mxu0 %v2390_v44  ;;  %1556 = vmatprep.mubr.bf16.mxu0 %v1974_v41  ;;  %v2448_v41 = vld [vmem:[%s2586_s26 + $0x290] sm:$0xff]   ;;  %v2451_v44 = vld [vmem:[%s2586_s26 + $0x2c8] sm:$0xff]  }
  0x32   : > { %1517 = vmatmul.mubr.bf16.vlgmr.msra.gmra.mxu1 %v1971_v43  ;;  %2181 = vmatprep.subr.bf16.mxu0 %v2393_v48  ;;  %v2450_v43 = vld [vmem:[%s2586_s26 + $0x208] sm:$0xff]   ;;  %v2454_v48 = vld [vmem:[%s2586_s26 + $0x200] sm:$0xff]  }
  0x33   : > { %2202 = vmatpush3.bf16.msra.mxu1 %v2392_v47  ;;  %1596 = vmatprep.mubr.bf16.mxu1 %v1976_v45  ;;  %v2718_v45 = vld [vmem:[%s2802_s1 + $0x30] sm:$0xff]  ;;  %v2453_v47 = vld [vmem:[%s2586_s26 + $0x240] sm:$0xff]  }
  0x34   : > { %2203 = vmatprep.subr.bf16.mxu1 %v2395_v50  ;;  %v1977_v50 = vcombine.low %v2668_v7, %v2668_v7  ;;  %v2478_v7 = vld [vmem:[%s2586_s26 + $0x318] sm:$0xff]  }
  0x35   : > { %2182 = vmatpush3.bf16.msra.mxu0 %v2394_v49  ;;  %v2455_v49 = vld [vmem:[%s2586_s26 + $0x2c0] sm:$0xff]  }
  0x36   : > { %2183 = vmatprep.subr.bf16.mxu0 %v2397_v52  ;;  %v1982_v52 = vcombine.high %v2718_v45, %v2718_v45 }
  0x37   : > { %2204 = vmatpush3.bf16.msra.mxu1 %v2396_v51  ;;  %v2458_v51 = vld [vmem:[%s2586_s26 + $0x280] sm:$0xff]  }
  0x38   : > { %2205 = vmatprep.subr.bf16.mxu1 %v2399_v54  ;;  %v1979_v54 = vcombine.low %v2675_v10, %v2675_v10  ;;  %v2481_v10 = vld [vmem:[%s2586_s26 + $0x350] sm:$0xff]  }
  0x39   : > { %2184 = vmatpush3.bf16.msra.mxu0 %v2398_v53  ;;  %v2459_v53 = vld [vmem:[%s2586_s26 + $0x378] sm:$0xff]  }
  0x3a   : > { %2185 = vmatprep.subr.bf16.mxu0 %v2401_v56  ;;  %v2463_v56 = vld [vmem:[%s2586_s26 + $0x3f8] sm:$0xff]  }
  0x3b   : > { %2206 = vmatpush3.bf16.msra.mxu1 %v2400_v55  ;;  %v2462_v55 = vld [vmem:[%s2586_s26 + $0x338] sm:$0xff]  }
  0x3c   : > { %2207 = vmatprep.subr.bf16.mxu1 %v2403_v58  ;;  %v2465_v58 = vld [vmem:[%s2586_s26 + $0x370] sm:$0xff]  }
  0x3d   : > { %2186 = vmatpush3.bf16.msra.mxu0 %v2402_v57  ;;  %v2464_v57 = vld [vmem:[%s2586_s26 + $0x3b8] sm:$0xff]  }
  0x3e   : > { %2187 = vmatprep.subr.bf16.mxu0 %v2405_v60  ;;  %v2467_v60 = vld [vmem:[%s2586_s26 + $0x3f0] sm:$0xff]  }
  0x3f   : > { %2208 = vmatpush3.bf16.msra.mxu1 %v2404_v59  ;;  %v2466_v59 = vld [vmem:[%s2586_s26 + $0x330] sm:$0xff]  }
  0x40   : > { %2209 = vmatprep.subr.bf16.mxu1 %v2407_v62  ;;  %v2469_v62 = vld [vmem:[%s2586_s26 + $0x368] sm:$0xff]  }
  0x41   : > { %2188 = vmatpush3.bf16.msra.mxu0 %v2406_v61  ;;  %v2468_v61 = vld [vmem:[%s2586_s26 + $0x3b0] sm:$0xff]  }
  0x42   : > { %2189 = vmatprep.subr.bf16.mxu0 %v2409_v0  ;;  %v2471_v0 = vld [vmem:[%s2586_s26 + $0x3e8] sm:$0xff]  }
  0x43   : > { %2210 = vmatpush3.bf16.msra.mxu1 %v2408_v63  ;;  %v2470_v63 = vld [vmem:[%s2586_s26 + $0x328] sm:$0xff]  }
  0x44   : > { %2211 = vmatprep.subr.bf16.mxu1 %v2411_v2  ;;  %v2473_v2 = vld [vmem:[%s2586_s26 + $0x360] sm:$0xff]  }
  0x45   : > { %2190 = vmatpush3.bf16.msra.mxu0 %v2410_v1  ;;  %v2472_v1 = vld [vmem:[%s2586_s26 + $0x3a8] sm:$0xff]  }
  0x46   : > { %2191 = vmatprep.subr.bf16.mxu0 %v2413_v4  ;;  %v2475_v4 = vld [vmem:[%s2586_s26 + $0x3e0] sm:$0xff]  }
  0x47   : > { %2212 = vmatpush3.bf16.msra.mxu1 %v2412_v3  ;;  %v2474_v3 = vld [vmem:[%s2586_s26 + $0x320] sm:$0xff]  }
  0x48   : > { %2213 = vmatprep.subr.bf16.mxu1 %v2415_v6  ;;  %v2477_v6 = vld [vmem:[%s2586_s26 + $0x358] sm:$0xff]  }
  0x49   : > { %2192 = vmatpush3.bf16.msra.mxu0 %v2414_v5  ;;  %v2476_v5 = vld [vmem:[%s2586_s26 + $0x3a0] sm:$0xff]  }
  0x4a   : > { %2193 = vmatprep.subr.bf16.mxu0 %v2417_v9  ;;  %v2480_v9 = vld [vmem:[%s2586_s26 + $0x398] sm:$0xff]  }
  0x4b   : > { %2214 = vmatpush3.bf16.msra.mxu1 %v2416_v8  ;;  %v2479_v8 = vld [vmem:[%s2586_s26 + $0x3d8] sm:$0xff]  }
  0x4c   : > { %2215 = vmatprep.subr.bf16.mxu1 %v2419_v12  ;;  %v2483_v12 = vld [vmem:[%s2586_s26 + $0x3d0] sm:$0xff]  }
  0x4d   : > { %2194 = vmatpush3.bf16.msra.mxu0 %v2418_v11  ;;  %v2482_v11 = vld [vmem:[%s2586_s26 + $0x310] sm:$0xff]  }
  0x4e   : > { %2223 = vmatprep.subr.bf16.mxu0 %v2423_v16  ;;  %v2487_v16 = vld [vmem:[%s2586_s26 + $0x3c8] sm:$0xff]  }
  0x4f   : > { %2216 = vmatpush3.bf16.msra.mxu1 %v2422_v14  ;;  %v2485_v14 = vld [vmem:[%s2586_s26 + $0x348] sm:$0xff]  }
  0x50   : > { %1557 = vmatmul.mubr.bf16.vlgmr.msra.gmra.mxu0 %v1973_v13  ;;  %2245 = vmatprep.subr.bf16.mxu1 %v2427_v20  ;;  %v2484_v13 = vld [vmem:[%s2586_s26 + $0x390] sm:$0xff]   ;;  %v2491_v20 = vld [vmem:[%s2586_s26 + $0x3c0] sm:$0xff]  }
  0x51   : > { %2224 = vmatpush3.bf16.msra.mxu0 %v2426_v18  ;;  %1636 = vmatprep.mubr.bf16.mxu0 %v1978_v15  ;;  %v2486_v15 = vld [vmem:[%s2586_s26 + $0x308] sm:$0xff]   ;;  %v2489_v18 = vld [vmem:[%s2586_s26 + $0x340] sm:$0xff]  }
  0x52   : > { %1597 = vmatmul.mubr.bf16.vlgmr.msra.gmra.mxu1 %v1975_v17  ;;  %2225 = vmatprep.subr.bf16.mxu0 %v2429_v22  ;;  %v2488_v17 = vld [vmem:[%s2586_s26 + $0x388] sm:$0xff]   ;;  %v2494_v22 = vld [vmem:[%s2586_s26 + $0x380] sm:$0xff]  }
  0x53   : > { %2246 = vmatpush3.bf16.msra.mxu1 %v2428_v21  ;;  %1676 = vmatprep.mubr.bf16.mxu1 %v1980_v19  ;;  %v2490_v19 = vld [vmem:[%s2586_s26 + $0x300] sm:$0xff]   ;;  %v1981_v21 = vcombine.low %v2718_v45, %v2718_v45 }
  0x54   : > { %2247 = vmatprep.subr.bf16.mxu1 %v2431_v24  ;;  %v221_v24 = vld [vmem:[%s2802_s1 + $0x38] sm:$0xff] }
  0x55   : > { %2226 = vmatpush3.bf16.msra.mxu0 %v2430_v23  ;;  %v2495_v23 = vld [vmem:[%s2586_s26 + $0x478] sm:$0xff]  }
  0x56   : > { %2227 = vmatprep.subr.bf16.mxu0 %v2433_v26  ;;  %v1984_v26 = vcombine.high %v221_v24, %v221_v24 }
  0x57   : > { %2248 = vmatpush3.bf16.msra.mxu1 %v2432_v25  ;;  %v1983_v25 = vcombine.low %v221_v24, %v221_v24 }
  0x58   : > { %2249 = vmatprep.subr.bf16.mxu1 %v2435_v28  ;;  %v2499_v28 = vld [vmem:[%s2586_s26 + $0x470] sm:$0xff]  }
  0x59   : > { %2228 = vmatpush3.bf16.msra.mxu0 %v2434_v27  ;;  %v2498_v27 = vld [vmem:[%s2586_s26 + $0x438] sm:$0xff]  }
  0x5a   : > { %2229 = vmatprep.subr.bf16.mxu0 %v2437_v30  ;;  %v2501_v30 = vld [vmem:[%s2586_s26 + $0x468] sm:$0xff]  }
  0x5b   : > { %2250 = vmatpush3.bf16.msra.mxu1 %v2436_v29  ;;  %v2500_v29 = vld [vmem:[%s2586_s26 + $0x430] sm:$0xff]  }
  0x5c   : > { %2251 = vmatprep.subr.bf16.mxu1 %v2439_v32  ;;  %v2503_v32 = vld [vmem:[%s2586_s26 + $0x460] sm:$0xff]  }
  0x5d   : > { %2230 = vmatpush3.bf16.msra.mxu0 %v2438_v31  ;;  %v2502_v31 = vld [vmem:[%s2586_s26 + $0x428] sm:$0xff]  }
  0x5e   : > { %2231 = vmatprep.subr.bf16.mxu0 %v2441_v34  ;;  %v2505_v34 = vld [vmem:[%s2586_s26 + $0x458] sm:$0xff]  }
  0x5f   : > { %2252 = vmatpush3.bf16.msra.mxu1 %v2440_v33  ;;  %v2504_v33 = vld [vmem:[%s2586_s26 + $0x420] sm:$0xff]  }
  0x60   : > { %2253 = vmatprep.subr.bf16.mxu1 %v2443_v36  ;;  %v222_v36 = vld [vmem:[%s2802_s1 + $0x40] sm:$0xff] }
  0x61   : > { %2232 = vmatpush3.bf16.msra.mxu0 %v2442_v35  ;;  %v2506_v35 = vld [vmem:[%s2586_s26 + $0x418] sm:$0xff]  }
  0x62   : > { %2233 = vmatprep.subr.bf16.mxu0 %v2445_v38  ;;  %v1986_v38 = vcombine.high %v222_v36, %v222_v36 }
  0x63   : > { %2254 = vmatpush3.bf16.msra.mxu1 %v2444_v37  ;;  %v2507_v37 = vld [vmem:[%s2586_s26 + $0x450] sm:$0xff]  }
  0x64   : > { %2255 = vmatprep.subr.bf16.mxu1 %v2447_v40  ;;  %v2509_v40 = vld [vmem:[%s2586_s26 + $0x448] sm:$0xff]  }
  0x65   : > { %2234 = vmatpush3.bf16.msra.mxu0 %v2446_v39  ;;  %v2508_v39 = vld [vmem:[%s2586_s26 + $0x410] sm:$0xff]  }
  0x66   : > { %2235 = vmatprep.subr.bf16.mxu0 %v2449_v42  ;;  %v2511_v42 = vld [vmem:[%s2586_s26 + $0x440] sm:$0xff]  }
  0x67   : > { %2256 = vmatpush3.bf16.msra.mxu1 %v2448_v41  ;;  %v2510_v41 = vld [vmem:[%s2586_s26 + $0x408] sm:$0xff]  }
  0x68   : > { %2257 = vmatprep.subr.bf16.mxu1 %v2451_v44  ;;  %v1985_v44 = vcombine.low %v222_v36, %v222_v36 }
  0x69   : > { %2236 = vmatpush3.bf16.msra.mxu0 %v2450_v43  ;;  %v2512_v43 = vld [vmem:[%s2586_s26 + $0x400] sm:$0xff]  }
  0x6a   : > { %2237 = vmatprep.subr.bf16.mxu0 %v2453_v47 }
  0x6b   : > { %2258 = vmatpush3.bf16.msra.mxu1 %v2452_v46 }
  0x6c   : > { %2259 = vmatprep.subr.bf16.mxu1 %v2455_v49 }
  0x6d   : > { %2238 = vmatpush3.bf16.msra.mxu0 %v2454_v48 }
  0x6e   : > { %2267 = vmatprep.subr.bf16.mxu0 %v2459_v53 }
  0x6f   : > { %2260 = vmatpush3.bf16.msra.mxu1 %v2458_v51 }
  0x70   : > { %1637 = vmatmul.mubr.bf16.vlgmr.msra.gmra.mxu0 %v1977_v50  ;;  %2289 = vmatprep.subr.bf16.mxu1 %v2463_v56 }
  0x71   : > { %2268 = vmatpush3.bf16.msra.mxu0 %v2462_v55  ;;  %1716 = vmatprep.mubr.bf16.mxu0 %v1982_v52 }
  0x72   : > { %1677 = vmatmul.mubr.bf16.vlgmr.msra.gmra.mxu1 %v1979_v54  ;;  %2269 = vmatprep.subr.bf16.mxu0 %v2465_v58  ;;  %v2528_v58 = vmov 0.0  }
  0x73   : > { %2290 = vmatpush3.bf16.msra.mxu1 %v2464_v57  ;;  %1756 = vmatprep.mubr.bf16.mxu1 %v1984_v26 }
  0x74   : > { %2291 = vmatprep.subr.bf16.mxu1 %v2467_v60 }
  0x75   : > { %2270 = vmatpush3.bf16.msra.mxu0 %v2466_v59  ;;  %v1805_v59 = vld [vmem:[%s208_s20] sm:$0x3f] }
  0x76   : > { %2271 = vmatprep.subr.bf16.mxu0 %v2469_v62  ;;  %v1884_v60 = vsel %vm1883_vm1, %v1805_v59, 0.0 }
  0x77   : > { %2292 = vmatpush3.bf16.msra.mxu1 %v2468_v61  ;;  %1885 = vadd.xlane.f32.xlu0 %v1884_v60 }
  0x78   : > { %2293 = vmatprep.subr.bf16.mxu1 %v2471_v0 }
  0x79   : > { %2272 = vmatpush3.bf16.msra.mxu0 %v2470_v63 }
  0x7a   : > { %2273 = vmatprep.subr.bf16.mxu0 %v2473_v2 }
  0x7b   : > { %2294 = vmatpush3.bf16.msra.mxu1 %v2472_v1 }
  0x7c   : > { %2295 = vmatprep.subr.bf16.mxu1 %v2475_v4 }
  0x7d   : > { %2274 = vmatpush3.bf16.msra.mxu0 %v2474_v3 }
  0x7e   : > { %2275 = vmatprep.subr.bf16.mxu0 %v2477_v6 }
  0x7f   : > { %2296 = vmatpush3.bf16.msra.mxu1 %v2476_v5 }
  0x80   : > { %2297 = vmatprep.subr.bf16.mxu1 %v2479_v8 }
  0x81   : > { %2276 = vmatpush3.bf16.msra.mxu0 %v2478_v7 }
  0x82   : > { %2277 = vmatprep.subr.bf16.mxu0 %v2481_v10 }
  0x83   : > { %2298 = vmatpush3.bf16.msra.mxu1 %v2480_v9 }
  0x84   : > { %2299 = vmatprep.subr.bf16.mxu1 %v2483_v12 }
  0x85   : > { %2278 = vmatpush3.bf16.msra.mxu0 %v2482_v11 }
  0x86   : > { %2279 = vmatprep.subr.bf16.mxu0 %v2485_v14 }
  0x87   : > { %2300 = vmatpush3.bf16.msra.mxu1 %v2484_v13 }
  0x88   : > { %2301 = vmatprep.subr.bf16.mxu1 %v2487_v16  ;;  %v515_v46 = vpop.permute.xlu0 %514 }
  0x89   : > { %2280 = vmatpush3.bf16.msra.mxu0 %v2486_v15 }
  0x8a   : > { %2281 = vmatprep.subr.bf16.mxu0 %v2489_v18 }
  0x8b   : > { %2302 = vmatpush3.bf16.msra.mxu1 %v2488_v17 }
  0x8c   : > { %2303 = vmatprep.subr.bf16.mxu1 %v2491_v20 }
  0x8d   : > { %2282 = vmatpush3.bf16.msra.mxu0 %v2490_v19 }
  0x8e   : > { %2311 = vmatprep.subr.bf16.mxu0 %v2495_v23 }
  0x8f   : > { %2304 = vmatpush3.bf16.msra.mxu1 %v2494_v22 }
  0x90   : > { %1717 = vmatmul.mubr.bf16.vlgmr.msra.gmra.mxu0 %v1981_v21  ;;  %2335 = vmatprep.subr.mxu1 %v2528_v58 }
  0x91   : > { %2312 = vmatpush3.bf16.msra.mxu0 %v2498_v27  ;;  %1796 = vmatprep.mubr.bf16.mxu0 %v1986_v38 }
  0x92   : > { %1757 = vmatmul.mubr.bf16.vlgmr.msra.gmra.mxu1 %v1983_v25  ;;  %2313 = vmatprep.subr.bf16.mxu0 %v2499_v28 }
  0x93   : > { %2337 = vmatprep.mubr.msk.f32.mxu1 %vm2529_vm0, %v2528_v58 }
  0x95   : > { %2314 = vmatpush3.bf16.msra.mxu0 %v2500_v29 }
  0x96   : > { %2315 = vmatprep.subr.bf16.mxu0 %v2501_v30 }
  0x99   : > { %2316 = vmatpush3.bf16.msra.mxu0 %v2502_v31 }
  0x9a   : > { %2317 = vmatprep.subr.bf16.mxu0 %v2503_v32 }
  0x9d   : > { %2318 = vmatpush3.bf16.msra.mxu0 %v2504_v33 }
  0x9e   : > { %2319 = vmatprep.subr.bf16.mxu0 %v2505_v34 }
  0xa1   : > { %2320 = vmatpush3.bf16.msra.mxu0 %v2506_v35 }
  0xa2   : > { %2321 = vmatprep.subr.bf16.mxu0 %v2507_v37 }
  0xa5   : > { %2322 = vmatpush3.bf16.msra.mxu0 %v2508_v39 }
  0xa6   : > { %2323 = vmatprep.subr.bf16.mxu0 %v2509_v40 }
  0xa9   : > { %2324 = vmatpush3.bf16.msra.mxu0 %v2510_v41 }
  0xaa   : > { %2325 = vmatprep.subr.bf16.mxu0 %v2511_v42 }
  0xad   : > { %2326 = vmatpush3.bf16.msra.mxu0 %v2512_v43 }
  0xb0   : > { %1797 = vmatmul.mubr.bf16.vlgmr.msra.gmra.mxu0 %v1985_v44 }
  0xf0   : > { %v2151_v45 = vpop.f32.mrf.mxu0 }
  0xf2   : > { %v2152_v47 = vpop.f32.mrf.mxu0  ;;  %v2173_v48 = vpop.f32.mrf.mxu1 }
  0xf3   : > { %v2153_v49 = vadd.f32 %v2152_v47, %v2151_v45 }
  0xf4   : > { %v2154_v50 = vpop.f32.mrf.mxu0  ;;  %v2174_v51 = vpop.f32.mrf.mxu1 }
  0xf5   : > { %v1479_v52 = vadd.f32 %v2153_v49, %v515_v46  ;;  %v2175_v53 = vadd.f32 %v2174_v51, %v2173_v48 }
  0xf6   : > { %v2155_v54 = vpop.f32.mrf.mxu0  ;;  %v2176_v55 = vpop.f32.mrf.mxu1 }
  0xf7   : > { %v1519_v56 = vadd.f32 %v2175_v53, %v1479_v52 }
  0xf8   : > { %v2177_v57 = vpop.f32.mrf.mxu1 }
 0x100   : > { %v1886_v40 = vpop.xlane.xlu0 %1885 }
 0x101   : > { %v1888_v41 = vmax.f32 %v1886_v40, 1.0  ;;  %vm1887_vm4 = vcmp.gt.f32.partialorder %v1886_v40, 0.0 }
 0x110   : > { %v2195_v61 = vpop.f32.mrf.mxu0 }
 0x112   : > { %v2196_v62 = vpop.f32.mrf.mxu0  ;;  %v2217_v63 = vpop.f32.mrf.mxu1 }
 0x113   : > { %v2197_v0 = vadd.f32 %v2196_v62, %v2195_v61 }
 0x114   : > { %v2198_v1 = vpop.f32.mrf.mxu0  ;;  %v2218_v2 = vpop.f32.mrf.mxu1 }
 0x115   : > { %v1559_v3 = vadd.f32 %v2197_v0, %v1519_v56  ;;  %v2219_v4 = vadd.f32 %v2218_v2, %v2217_v63 }
 0x116   : > { %v2199_v5 = vpop.f32.mrf.mxu0  ;;  %v2220_v6 = vpop.f32.mrf.mxu1 }
 0x117   : > { %v1599_v7 = vadd.f32 %v2219_v4, %v1559_v3 }
 0x118   : > { %v2221_v8 = vpop.f32.mrf.mxu1 }
 0x130   : > { %v2239_v9 = vpop.f32.mrf.mxu0 }
 0x132   : > { %v2240_v10 = vpop.f32.mrf.mxu0  ;;  %v2261_v11 = vpop.f32.mrf.mxu1 }
 0x133   : > { %v2241_v25 = vadd.f32 %v2240_v10, %v2239_v9 }
 0x134   : > { %v2242_v12 = vpop.f32.mrf.mxu0  ;;  %v2262_v13 = vpop.f32.mrf.mxu1 }
 0x135   : > { %v1639_v26 = vadd.f32 %v2241_v25, %v1599_v7  ;;  %v2263_v27 = vadd.f32 %v2262_v13, %v2261_v11 }
 0x136   : > { %v2243_v14 = vpop.f32.mrf.mxu0  ;;  %v2264_v15 = vpop.f32.mrf.mxu1 }
 0x137   : > { %v1679_v29 = vadd.f32 %v2263_v27, %v1639_v26 }
 0x138   : > { %v2265_v16 = vpop.f32.mrf.mxu1 }
 0x150   : > { %v2283_v17 = vpop.f32.mrf.mxu0 }
 0x152   : > { %v2284_v18 = vpop.f32.mrf.mxu0  ;;  %v2305_v19 = vpop.f32.mrf.mxu1 }
 0x153   : > { %v2285_v28 = vadd.f32 %v2284_v18, %v2283_v17 }
 0x154   : > { %v2286_v20 = vpop.f32.mrf.mxu0  ;;  %v2306_v21 = vpop.f32.mrf.mxu1 }
 0x155   : > { %v1719_v30 = vadd.f32 %v2285_v28, %v1679_v29  ;;  %v2307_v31 = vadd.f32 %v2306_v21, %v2305_v19 }
 0x156   : > { %v2287_v22 = vpop.f32.mrf.mxu0  ;;  %v2308_v23 = vpop.f32.mrf.mxu1 }
 0x157   : > { %v1759_v34 = vadd.f32 %v2307_v31, %v1719_v30 }
 0x158   : > { %v2309_v24 = vpop.f32.mrf.mxu1 }
 0x170   : > { %v2327_v32 = vpop.f32.mrf.mxu0 }
 0x172   : > { %v2328_v33 = vpop.f32.mrf.mxu0 }
 0x173   : > { %v2329_v35 = vadd.f32 %v2328_v33, %v2327_v32 }
 0x174   : > { %v2330_v36 = vpop.f32.mrf.mxu0 }
 0x175   : > { %v1799_v37 = vadd.f32 %v2329_v35, %v1759_v34 }
 0x176   : > { %v2331_v38 = vpop.f32.mrf.mxu0 }
 0x177   : > { %2515 = vtanh.f32 %v1799_v37 }
 0x178   : > { %2517 = vrcp.f32 %v1888_v41 }
 0x184   : > { %v2516_v39 = vpop.eup %2515 }
 0x185   : > { %2336 = vmatpush3.xpose.msk.msra.mxu1 %vm1806_vm2, %v2516_v39  ;;  %v2518_v42 = vpop.eup %2517 }
 0x188   : > { %2338 = vmatmul.mubr.msk.f32.vlgmr.msra.gmra.mxu1 %vm1806_vm2, %v1805_v59 }
 0x248   : > { %v1879_v43 = vpop.f32.mrf.mxu1 }
 0x249   : > { %v1890_v44 = vmul.f32 %v2518_v42, %v1879_v43 }
 0x24a   : > { %v2339_v45 = vpop.f32.mrf.mxu1 }
 0x24b   : > { %v1893_v46 = vsel %vm1887_vm4, %v1890_v44, 0.0 }
 0x24c   : > { %1895 = vst.msk [vmem:[%s212_s23] sm:$0x3f] %vm1894_vm3, %v1893_v46 }
 0x24d PF: > { %s14_s15 = sadd.s32 1, %s2525_s15  }
 0x24e   : > { %p11_p4 = scmp.ge.s32.totalorder %s14_s15, 4  }
 0x250   :  { %13 = sbr.rel (!%p11_p4) target bundleno = 1 (0x1), region = 69 }

</bundles_post_ra>
